<compile_context>
chip_gen: v5e
topology: v5e:2x2
jax: 0.10.0
libtpu: 0.0.40
codegen_flags: <defaults>
</compile_context>

<pallas_src>
import math

import jax
import jax.numpy as jnp
from jax import lax
from jax.experimental import pallas as pl
from jax.experimental.pallas import tpu as pltpu


# dot_general dimension numbers: contract axis 0 of both operands (q^T @ k).
_TN_DIMS = (((0,), (0,)), ((), ()))


def _round_up(v, m):
    return ((v + m - 1) // m) * m


# ----------------------------------------------------------------------------
# Fused per-stereo-pair kernel
# ----------------------------------------------------------------------------
def _make_pab_kernel(C, H, W, Wp, E, Qp, L1p, Lt, inv_c, out_dtype):
    """Per grid step (one stereo pair): both heads, residual, q/k, both costs."""
    twoE = 2 * E
    # tap (ky, kx) of a 3x3 conv reads the flat image shifted by ky*Wp + kx.
    offs = [ky * Wp + kx for ky in range(3) for kx in range(3)]

    def kernel(x_ref, w1_ref, b1_ref, w2_ref, b2_ref,
               wq_ref, bq_ref, wk_ref, bk_ref, mask_ref, cin_ref,
               res_ref, cost_ref, t_ref, qs_ref, ks_ref):
        # conv2 taps read t_ref[:, :Qp + 2E); zero the tail beyond the conv1
        # window so the (sliced-off) padding outputs stay finite.
        t_ref[:, L1p:] = jnp.zeros((C, Lt - L1p), jnp.float32)

        for side in range(2):                       # 0 = left, 1 = right
            # ---- conv1 3x3 + folded BN + LeakyReLU(0.1), width L1p ----
            # nine accumulated bf16 (C,C)@(C,L1p) matmuls over shifted ref
            # slices of the zero-padded channel-major flat image.
            acc = jnp.zeros((C, L1p), jnp.float32)
            for idx, off in enumerate(offs):
                tap = x_ref[side, 0, :, off:off + L1p].astype(jnp.bfloat16)
                acc = acc + jnp.dot(w1_ref[idx], tap,
                                    preferred_element_type=jnp.float32)
            acc = acc + b1_ref[...]                  # folded BN bias
            t = jnp.maximum(acc, 0.1 * acc)          # LeakyReLU(0.1)
            t_ref[:, :L1p] = t * mask_ref[...]       # re-zero the padding ring

            # ---- conv2 3x3 + folded BN + LeakyReLU(0.1), width Qp ----
            acc = jnp.zeros((C, Qp), jnp.float32)
            for idx, off in enumerate(offs):
                tap = t_ref[:, off:off + Qp].astype(jnp.bfloat16)
                acc = acc + jnp.dot(w2_ref[idx], tap,
                                    preferred_element_type=jnp.float32)
            acc = acc + b2_ref[...]
            fea = jnp.maximum(acc, 0.1 * acc)        # (C, Qp) f32

            # ---- residual: x + head(x)  (lane-dense full-width store) ----
            res_ref[side, 0] = (x_ref[side, 0, :, twoE:twoE + Qp]
                                + fea).astype(out_dtype)

            # ---- query / key: 1x1 conv + folded BN (no activation) ----
            fea_bf = fea.astype(jnp.bfloat16)
            qs_ref[side] = (jnp.dot(wq_ref[...], fea_bf,
                                    preferred_element_type=jnp.float32)
                            + bq_ref[...])
            ks_ref[side] = (jnp.dot(wk_ref[...], fea_bf,
                                    preferred_element_type=jnp.float32)
                            + bk_ref[...])

        # ---- parallax matching cost, both directions, from VMEM q/k ----
        # d=0: Q_left K_right^T (right->left); d=1: Q_right K_left^T.
        for d, (qi, ki) in enumerate(((0, 1), (1, 0))):
            for h in range(H):
                s = (h + 1) * Wp + 1                 # interior row start
                qrow = qs_ref[qi, :, s:s + W]        # (C, W)
                krow = ks_ref[ki, :, s:s + W]        # (C, W)
                blk = lax.dot_general(qrow, krow, _TN_DIMS,
                                      preferred_element_type=jnp.float32)
                r0 = h * W
                cost_ref[d, 0, r0:r0 + W, :] = (
                    blk * inv_c + cin_ref[d, 0, r0:r0 + W, :]
                ).astype(out_dtype)

    return kernel


# ----------------------------------------------------------------------------
# Parameter construction / BN folding
# ----------------------------------------------------------------------------
def init_pab_params(key, channels):
    def conv_init(k, cout, cin, ks):
        fan_in = cin * ks * ks
        bound = 1.0 / math.sqrt(fan_in)
        kw_, kb_ = jax.random.split(k)
        w = jax.random.uniform(kw_, (cout, cin, ks, ks), jnp.float32,
                               -bound, bound)
        b = jax.random.uniform(kb_, (cout,), jnp.float32, -bound, bound)
        return w, b

    def bn_init(k, c):
        k1, k2, k3, k4 = jax.random.split(k, 4)
        gamma = jax.random.uniform(k1, (c,), jnp.float32, 0.5, 1.5)
        beta = 0.1 * jax.random.normal(k2, (c,), jnp.float32)
        mean = 0.1 * jax.random.normal(k3, (c,), jnp.float32)
        var = jax.random.uniform(k4, (c,), jnp.float32, 0.5, 1.5)
        return gamma, beta, mean, var

    ks = jax.random.split(key, 8)
    hw1, hb1 = conv_init(ks[0], channels, channels, 3)
    hw2, hb2 = conv_init(ks[2], channels, channels, 3)
    qw, qb = conv_init(ks[4], channels, channels, 1)
    kw, kb = conv_init(ks[6], channels, channels, 1)
    return dict(hw1=hw1, hb1=hb1, hbn1=bn_init(ks[1], channels),
                hw2=hw2, hb2=hb2, hbn2=bn_init(ks[3], channels),
                qw=qw, qb=qb, qbn=bn_init(ks[5], channels),
                kw=kw, kb=kb, kbn=bn_init(ks[7], channels))


def _fold_conv_bn(w, b, bn, eps=1e-5):
    gamma, beta, mean, var = bn
    scale = gamma / jnp.sqrt(var + eps)
    return w * scale[:, None, None, None], scale * (b - mean) + beta


def fold_pab_params(raw):
    C = raw["hw1"].shape[0]

    def taps3x3(w):   # (Cout, Cin, 3, 3) -> (9, Cout, Cin), tap idx = ky*3+kx
        return jnp.transpose(w, (2, 3, 0, 1)).reshape(9, C, C)

    w1, b1 = _fold_conv_bn(raw["hw1"], raw["hb1"], raw["hbn1"])
    w2, b2 = _fold_conv_bn(raw["hw2"], raw["hb2"], raw["hbn2"])
    wq, bq = _fold_conv_bn(raw["qw"], raw["qb"], raw["qbn"])
    wk, bk = _fold_conv_bn(raw["kw"], raw["kb"], raw["kbn"])
    bf16 = jnp.bfloat16
    return {
        "w1": taps3x3(w1).astype(bf16), "b1": b1.reshape(C, 1),
        "w2": taps3x3(w2).astype(bf16), "b2": b2.reshape(C, 1),
        "wq": wq[:, :, 0, 0].astype(bf16), "bq": bq.reshape(C, 1),
        "wk": wk[:, :, 0, 0].astype(bf16), "bk": bk.reshape(C, 1),
    }


# ----------------------------------------------------------------------------
# PAB forward (matches the PyTorch module semantics, inference-mode BN)
# ----------------------------------------------------------------------------
@jax.jit
def pab_forward(params, x_left, x_right, cost):
    """x_left/x_right: (B, C, H, W);  cost: (2, B, H, W, W)."""
    B, C, H, W = x_left.shape
    Hp, Wp = H + 2, W + 2
    Q = Hp * Wp                           # flattened padded-frame length
    E = Wp + 1                            # max 3x3 tap offset
    L1p = _round_up(Q + 2 * E, 128)       # conv1 output window (lane padded)
    Qp = _round_up(Q, 128)                # conv2 / residual width (lane padded)
    Lt = _round_up(Qp + 2 * E, 128)       # conv1-activation scratch width
    Lx = _round_up(L1p + 2 * E, 128)      # padded flat input width
    dtype = x_left.dtype

    # (2, B, C, Lx): zero-padded frame, flattened channel-major; the true
    # frame occupies flat positions [2E, 2E + Q).
    x = jnp.stack([x_left, x_right], axis=0)
    xp = jnp.pad(x, ((0, 0), (0, 0), (0, 0), (1, 1), (1, 1)))
    xf = jnp.pad(xp.reshape(2, B, C, Q),
                 ((0, 0), (0, 0), (0, 0), (2 * E, Lx - Q - 2 * E)))

    # Interior mask over the conv1 output window: output j corresponds to
    # padded-frame position j - E; keep rows 1..H, cols 1..W only.
    pos = jnp.arange(L1p) - E
    row, col = pos // Wp, pos % Wp
    valid = ((pos >= 0) & (pos < Q) & (row >= 1) & (row <= H)
             & (col >= 1) & (col <= W))
    mask = valid.astype(jnp.float32).reshape(1, L1p)

    # (2, B, H*W, W) view of the input matching cost (row-major, free reshape).
    cost4 = cost.reshape(2, B, H * W, W)

    kernel = _make_pab_kernel(C, H, W, Wp, E, Qp, L1p, Lt, 1.0 / C, dtype)

    pair4 = lambda i: (0, i, 0, 0)
    const2 = lambda i: (0, 0)
    const3 = lambda i: (0, 0, 0)

    res, cost_out = pl.pallas_call(
        kernel,
        out_shape=[jax.ShapeDtypeStruct((2, B, C, Qp), dtype),
                   jax.ShapeDtypeStruct((2, B, H * W, W), dtype)],
        grid=(B,),
        in_specs=[
            pl.BlockSpec((2, 1, C, Lx), pair4),        # padded flat images
            pl.BlockSpec((9, C, C), const3),           # conv1 taps (bf16)
            pl.BlockSpec((C, 1), const2),              # conv1 folded bias
            pl.BlockSpec((9, C, C), const3),           # conv2 taps (bf16)
            pl.BlockSpec((C, 1), const2),              # conv2 folded bias
            pl.BlockSpec((C, C), const2),              # query 1x1 (bf16)
            pl.BlockSpec((C, 1), const2),              # query folded bias
            pl.BlockSpec((C, C), const2),              # key 1x1 (bf16)
            pl.BlockSpec((C, 1), const2),              # key folded bias
            pl.BlockSpec((1, L1p), const2),            # interior mask
            pl.BlockSpec((2, 1, H * W, W), pair4),     # input matching cost
        ],
        out_specs=[pl.BlockSpec((2, 1, C, Qp), pair4),
                   pl.BlockSpec((2, 1, H * W, W), pair4)],
        scratch_shapes=[pltpu.VMEM((C, Lt), jnp.float32),      # conv1 act.
                        pltpu.VMEM((2, C, Qp), jnp.float32),   # query  l/r
                        pltpu.VMEM((2, C, Qp), jnp.float32)],  # key    l/r
        compiler_params=pltpu.CompilerParams(
            dimension_semantics=("parallel",),
            vmem_limit_bytes=32 * 1024 * 1024),
    )(xf, params["w1"], params["b1"], params["w2"], params["b2"],
      params["wq"], params["bq"], params["wk"], params["bk"], mask, cost4)

    # Slice the H x W interior back out of the padded flat residual.
    res = res[:, :, :, :Q].reshape(2, B, C, Hp, Wp)[:, :, :, 1:H + 1, 1:W + 1]
    cost_out = cost_out.reshape(2, B, H, W, W)
    return res[0], res[1], (cost_out[0], cost_out[1])


# ----------------------------------------------------------------------------
# Pure-JAX reference (inference-mode BN), used for a sanity check in __main__.
# ----------------------------------------------------------------------------
def pab_reference(raw, x_left, x_right, cost, eps=1e-5):
    def conv(x, w, b, pad):
        y = lax.conv_general_dilated(
            x, w, (1, 1), ((pad, pad), (pad, pad)),
            dimension_numbers=("NCHW", "OIHW", "NCHW"))
        return y + b[None, :, None, None]

    def bn(x, p):
        gamma, beta, mean, var = p
        inv = gamma / jnp.sqrt(var + eps)
        return ((x - mean[None, :, None, None]) * inv[None, :, None, None]
                + beta[None, :, None, None])

    def lrelu(x):
        return jnp.where(x > 0, x, 0.1 * x)

    def head(x):
        y = lrelu(bn(conv(x, raw["hw1"], raw["hb1"], 1), raw["hbn1"]))
        return lrelu(bn(conv(y, raw["hw2"], raw["hb2"], 1), raw["hbn2"]))

    def query(x):
        return bn(conv(x, raw["qw"], raw["qb"], 0), raw["qbn"])

    def keyf(x):
        return bn(conv(x, raw["kw"], raw["kb"], 0), raw["kbn"])

    c = x_left.shape[1]
    fl, fr = head(x_left), head(x_right)
    cr2l = jnp.einsum("bchw,bchv->bhwv", query(fl), keyf(fr)) / c + cost[0]
    cl2r = jnp.einsum("bchw,bchv->bhwv", query(fr), keyf(fl)) / c + cost[1]
    return x_left + fl, x_right + fr, (cr2l, cl2r)


# ----------------------------------------------------------------------------
# Demo
# ----------------------------------------------------------------------------
if __name__ == "__main__":
    key = jax.random.PRNGKey(0)
    kx1, kx2, kc, kp = jax.random.split(key, 4)

    B, C, H, W = 2, 8, 16, 16
    x_left = jax.random.normal(kx1, (B, C, H, W), jnp.float32)
    x_right = jax.random.normal(kx2, (B, C, H, W), jnp.float32)
    cost = 0.1 * jax.random.normal(kc, (2, B, H, W, W), jnp.float32)

    raw = init_pab_params(kp, C)
    folded = fold_pab_params(raw)

    out_l, out_r, (c_r2l, c_l2r) = pab_forward(folded, x_left, x_right, cost)
    jax.block_until_ready((out_l, out_r, c_r2l, c_l2r))

    assert out_l.shape == (B, C, H, W) and out_r.shape == (B, C, H, W)
    assert c_r2l.shape == (B, H, W, W) and c_l2r.shape == (B, H, W, W)
    assert bool(jnp.all(jnp.isfinite(out_l))) and bool(jnp.all(jnp.isfinite(c_r2l)))

    ref_l, ref_r, (ref_r2l, ref_l2r) = pab_reference(raw, x_left, x_right, cost)
    for got, ref in ((out_l, ref_l), (out_r, ref_r),
                     (c_r2l, ref_r2l), (c_l2r, ref_l2r)):
        assert bool(jnp.allclose(got, ref, rtol=5e-2, atol=5e-2)), (
            float(jnp.max(jnp.abs(got - ref))))

    print("KERNEL_OK")
</pallas_src>

<mosaic_0001>
module attributes {stable_mosaic.version = 11 : i64} {
  func.func @kernel(%arg0: i32, %arg1: memref<2x1x8x512xf32, #tpu.memory_space<vmem>>, %arg2: memref<9x8x8xbf16, #tpu.memory_space<vmem>>, %arg3: memref<8x1xf32, #tpu.memory_space<vmem>>, %arg4: memref<9x8x8xbf16, #tpu.memory_space<vmem>>, %arg5: memref<8x1xf32, #tpu.memory_space<vmem>>, %arg6: memref<8x8xbf16, #tpu.memory_space<vmem>>, %arg7: memref<8x1xf32, #tpu.memory_space<vmem>>, %arg8: memref<8x8xbf16, #tpu.memory_space<vmem>>, %arg9: memref<8x1xf32, #tpu.memory_space<vmem>>, %arg10: memref<1x384xf32, #tpu.memory_space<vmem>>, %arg11: memref<2x1x256x16xf32, #tpu.memory_space<vmem>>, %arg12: memref<2x1x8x384xf32, #tpu.memory_space<vmem>>, %arg13: memref<2x1x256x16xf32, #tpu.memory_space<vmem>>, %arg14: memref<8x512xf32, #tpu.memory_space<vmem>>, %arg15: memref<2x8x384xf32, #tpu.memory_space<vmem>>, %arg16: memref<2x8x384xf32, #tpu.memory_space<vmem>>) attributes {dimension_semantics = [#tpu.dimension_semantics<parallel>], iteration_bounds = array<i64: 2>, scalar_prefetch = 0 : i64, scratch_operands = 3 : i64, tpu.core_type = #tpu.core_type<tc>, window_params = [{transform_indices = @transform_0, window_bounds = array<i64: 2, 1, 8, 512>}, {pipeline_mode = #tpu.pipeline_mode<synchronous>, transform_indices = @transform_1, window_bounds = array<i64: 9, 8, 8>}, {pipeline_mode = #tpu.pipeline_mode<synchronous>, transform_indices = @transform_2, window_bounds = array<i64: 8, 1>}, {pipeline_mode = #tpu.pipeline_mode<synchronous>, transform_indices = @transform_3, window_bounds = array<i64: 9, 8, 8>}, {pipeline_mode = #tpu.pipeline_mode<synchronous>, transform_indices = @transform_4, window_bounds = array<i64: 8, 1>}, {pipeline_mode = #tpu.pipeline_mode<synchronous>, transform_indices = @transform_5, window_bounds = array<i64: 8, 8>}, {pipeline_mode = #tpu.pipeline_mode<synchronous>, transform_indices = @transform_6, window_bounds = array<i64: 8, 1>}, {pipeline_mode = #tpu.pipeline_mode<synchronous>, transform_indices = @transform_7, window_bounds = array<i64: 8, 8>}, {pipeline_mode = #tpu.pipeline_mode<synchronous>, transform_indices = @transform_8, window_bounds = array<i64: 8, 1>}, {pipeline_mode = #tpu.pipeline_mode<synchronous>, transform_indices = @transform_9, window_bounds = array<i64: 1, 384>}, {transform_indices = @transform_10, window_bounds = array<i64: 2, 1, 256, 16>}, {transform_indices = @transform_11, window_bounds = array<i64: 2, 1, 8, 384>}, {transform_indices = @transform_12, window_bounds = array<i64: 2, 1, 256, 16>}]} {
    %cst = arith.constant 0.000000e+00 : f32
    %0 = vector.broadcast %cst : f32 to vector<8x128xf32>
    %c0 = arith.constant 0 : index
    %c384 = arith.constant 384 : index
    %1 = vector.load %arg14[%c0, %c384] : memref<8x512xf32, #tpu.memory_space<vmem>>, vector<8x128xf32>
    tpu.vector_store %arg14[%c0, %c384], %0 {strides = array<i32>} : memref<8x512xf32, #tpu.memory_space<vmem>>, vector<8x128xf32>,
    %cst_0 = arith.constant 0.000000e+00 : f32
    %2 = vector.broadcast %cst_0 : f32 to vector<8x384xf32>
    %c0_1 = arith.constant 0 : index
    %c0_2 = arith.constant 0 : index
    %c0_3 = arith.constant 0 : index
    %c0_4 = arith.constant 0 : index
    %3 = vector.load %arg1[%c0_1, %c0_2, %c0_3, %c0_4] : memref<2x1x8x512xf32, #tpu.memory_space<vmem>>, vector<1x1x8x384xf32>
    %4 = vector.shape_cast %3 : vector<1x1x8x384xf32> to vector<8x384xf32>
    %5 = arith.truncf %4 : vector<8x384xf32> to vector<8x384xbf16>
    %c0_5 = arith.constant 0 : index
    %c0_6 = arith.constant 0 : index
    %c0_7 = arith.constant 0 : index
    %6 = vector.load %arg2[%c0_5, %c0_6, %c0_7] : memref<9x8x8xbf16, #tpu.memory_space<vmem>>, vector<1x8x8xbf16>
    %7 = vector.shape_cast %6 : vector<1x8x8xbf16> to vector<8x8xbf16>
    %cst_8 = arith.constant dense<0.000000e+00> : vector<8x384xf32>
    %8 = tpu.matmul %7, %5, %cst_8 {dimension_numbers = #tpu.dot_dimension_numbers<[1], [0], [0], [1], [0, 0, 1, 1], [], []>} : vector<8x8xbf16>, vector<8x384xbf16>, vector<8x384xf32> -> vector<8x384xf32>
    %9 = arith.addf %2, %8 : vector<8x384xf32>
    %c0_9 = arith.constant 0 : index
    %c0_10 = arith.constant 0 : index
    %c0_11 = arith.constant 0 : index
    %c1 = arith.constant 1 : index
    %10 = vector.load %arg1[%c0_9, %c0_10, %c0_11, %c1] : memref<2x1x8x512xf32, #tpu.memory_space<vmem>>, vector<1x1x8x384xf32>
    %11 = vector.shape_cast %10 : vector<1x1x8x384xf32> to vector<8x384xf32>
    %12 = arith.truncf %11 : vector<8x384xf32> to vector<8x384xbf16>
    %c1_12 = arith.constant 1 : index
    %c0_13 = arith.constant 0 : index
    %c0_14 = arith.constant 0 : index
    %13 = vector.load %arg2[%c1_12, %c0_13, %c0_14] : memref<9x8x8xbf16, #tpu.memory_space<vmem>>, vector<1x8x8xbf16>
    %14 = vector.shape_cast %13 : vector<1x8x8xbf16> to vector<8x8xbf16>
    %cst_15 = arith.constant dense<0.000000e+00> : vector<8x384xf32>
    %15 = tpu.matmul %14, %12, %cst_15 {dimension_numbers = #tpu.dot_dimension_numbers<[1], [0], [0], [1], [0, 0, 1, 1], [], []>} : vector<8x8xbf16>, vector<8x384xbf16>, vector<8x384xf32> -> vector<8x384xf32>
    %16 = arith.addf %9, %15 : vector<8x384xf32>
    %c0_16 = arith.constant 0 : index
    %c0_17 = arith.constant 0 : index
    %c0_18 = arith.constant 0 : index
    %c2 = arith.constant 2 : index
    %17 = vector.load %arg1[%c0_16, %c0_17, %c0_18, %c2] : memref<2x1x8x512xf32, #tpu.memory_space<vmem>>, vector<1x1x8x384xf32>
    %18 = vector.shape_cast %17 : vector<1x1x8x384xf32> to vector<8x384xf32>
    %19 = arith.truncf %18 : vector<8x384xf32> to vector<8x384xbf16>
    %c2_19 = arith.constant 2 : index
    %c0_20 = arith.constant 0 : index
    %c0_21 = arith.constant 0 : index
    %20 = vector.load %arg2[%c2_19, %c0_20, %c0_21] : memref<9x8x8xbf16, #tpu.memory_space<vmem>>, vector<1x8x8xbf16>
    %21 = vector.shape_cast %20 : vector<1x8x8xbf16> to vector<8x8xbf16>
    %cst_22 = arith.constant dense<0.000000e+00> : vector<8x384xf32>
    %22 = tpu.matmul %21, %19, %cst_22 {dimension_numbers = #tpu.dot_dimension_numbers<[1], [0], [0], [1], [0, 0, 1, 1], [], []>} : vector<8x8xbf16>, vector<8x384xbf16>, vector<8x384xf32> -> vector<8x384xf32>
    %23 = arith.addf %16, %22 : vector<8x384xf32>
    %c0_23 = arith.constant 0 : index
    %c0_24 = arith.constant 0 : index
    %c0_25 = arith.constant 0 : index
    %c18 = arith.constant 18 : index
    %24 = vector.load %arg1[%c0_23, %c0_24, %c0_25, %c18] : memref<2x1x8x512xf32, #tpu.memory_space<vmem>>, vector<1x1x8x384xf32>
    %25 = vector.shape_cast %24 : vector<1x1x8x384xf32> to vector<8x384xf32>
    %26 = arith.truncf %25 : vector<8x384xf32> to vector<8x384xbf16>
    %c3 = arith.constant 3 : index
    %c0_26 = arith.constant 0 : index
    %c0_27 = arith.constant 0 : index
    %27 = vector.load %arg2[%c3, %c0_26, %c0_27] : memref<9x8x8xbf16, #tpu.memory_space<vmem>>, vector<1x8x8xbf16>
    %28 = vector.shape_cast %27 : vector<1x8x8xbf16> to vector<8x8xbf16>
    %cst_28 = arith.constant dense<0.000000e+00> : vector<8x384xf32>
    %29 = tpu.matmul %28, %26, %cst_28 {dimension_numbers = #tpu.dot_dimension_numbers<[1], [0], [0], [1], [0, 0, 1, 1], [], []>} : vector<8x8xbf16>, vector<8x384xbf16>, vector<8x384xf32> -> vector<8x384xf32>
    %30 = arith.addf %23, %29 : vector<8x384xf32>
    %c0_29 = arith.constant 0 : index
    %c0_30 = arith.constant 0 : index
    %c0_31 = arith.constant 0 : index
    %c19 = arith.constant 19 : index
    %31 = vector.load %arg1[%c0_29, %c0_30, %c0_31, %c19] : memref<2x1x8x512xf32, #tpu.memory_space<vmem>>, vector<1x1x8x384xf32>
    %32 = vector.shape_cast %31 : vector<1x1x8x384xf32> to vector<8x384xf32>
    %33 = arith.truncf %32 : vector<8x384xf32> to vector<8x384xbf16>
    %c4 = arith.constant 4 : index
    %c0_32 = arith.constant 0 : index
    %c0_33 = arith.constant 0 : index
    %34 = vector.load %arg2[%c4, %c0_32, %c0_33] : memref<9x8x8xbf16, #tpu.memory_space<vmem>>, vector<1x8x8xbf16>
    %35 = vector.shape_cast %34 : vector<1x8x8xbf16> to vector<8x8xbf16>
    %cst_34 = arith.constant dense<0.000000e+00> : vector<8x384xf32>
    %36 = tpu.matmul %35, %33, %cst_34 {dimension_numbers = #tpu.dot_dimension_numbers<[1], [0], [0], [1], [0, 0, 1, 1], [], []>} : vector<8x8xbf16>, vector<8x384xbf16>, vector<8x384xf32> -> vector<8x384xf32>
    %37 = arith.addf %30, %36 : vector<8x384xf32>
    %c0_35 = arith.constant 0 : index
    %c0_36 = arith.constant 0 : index
    %c0_37 = arith.constant 0 : index
    %c20 = arith.constant 20 : index
    %38 = vector.load %arg1[%c0_35, %c0_36, %c0_37, %c20] : memref<2x1x8x512xf32, #tpu.memory_space<vmem>>, vector<1x1x8x384xf32>
    %39 = vector.shape_cast %38 : vector<1x1x8x384xf32> to vector<8x384xf32>
    %40 = arith.truncf %39 : vector<8x384xf32> to vector<8x384xbf16>
    %c5 = arith.constant 5 : index
    %c0_38 = arith.constant 0 : index
    %c0_39 = arith.constant 0 : index
    %41 = vector.load %arg2[%c5, %c0_38, %c0_39] : memref<9x8x8xbf16, #tpu.memory_space<vmem>>, vector<1x8x8xbf16>
    %42 = vector.shape_cast %41 : vector<1x8x8xbf16> to vector<8x8xbf16>
    %cst_40 = arith.constant dense<0.000000e+00> : vector<8x384xf32>
    %43 = tpu.matmul %42, %40, %cst_40 {dimension_numbers = #tpu.dot_dimension_numbers<[1], [0], [0], [1], [0, 0, 1, 1], [], []>} : vector<8x8xbf16>, vector<8x384xbf16>, vector<8x384xf32> -> vector<8x384xf32>
    %44 = arith.addf %37, %43 : vector<8x384xf32>
    %c0_41 = arith.constant 0 : index
    %c0_42 = arith.constant 0 : index
    %c0_43 = arith.constant 0 : index
    %c36 = arith.constant 36 : index
    %45 = vector.load %arg1[%c0_41, %c0_42, %c0_43, %c36] : memref<2x1x8x512xf32, #tpu.memory_space<vmem>>, vector<1x1x8x384xf32>
    %46 = vector.shape_cast %45 : vector<1x1x8x384xf32> to vector<8x384xf32>
    %47 = arith.truncf %46 : vector<8x384xf32> to vector<8x384xbf16>
    %c6 = arith.constant 6 : index
    %c0_44 = arith.constant 0 : index
    %c0_45 = arith.constant 0 : index
    %48 = vector.load %arg2[%c6, %c0_44, %c0_45] : memref<9x8x8xbf16, #tpu.memory_space<vmem>>, vector<1x8x8xbf16>
    %49 = vector.shape_cast %48 : vector<1x8x8xbf16> to vector<8x8xbf16>
    %cst_46 = arith.constant dense<0.000000e+00> : vector<8x384xf32>
    %50 = tpu.matmul %49, %47, %cst_46 {dimension_numbers = #tpu.dot_dimension_numbers<[1], [0], [0], [1], [0, 0, 1, 1], [], []>} : vector<8x8xbf16>, vector<8x384xbf16>, vector<8x384xf32> -> vector<8x384xf32>
    %51 = arith.addf %44, %50 : vector<8x384xf32>
    %c0_47 = arith.constant 0 : index
    %c0_48 = arith.constant 0 : index
    %c0_49 = arith.constant 0 : index
    %c37 = arith.constant 37 : index
    %52 = vector.load %arg1[%c0_47, %c0_48, %c0_49, %c37] : memref<2x1x8x512xf32, #tpu.memory_space<vmem>>, vector<1x1x8x384xf32>
    %53 = vector.shape_cast %52 : vector<1x1x8x384xf32> to vector<8x384xf32>
    %54 = arith.truncf %53 : vector<8x384xf32> to vector<8x384xbf16>
    %c7 = arith.constant 7 : index
    %c0_50 = arith.constant 0 : index
    %c0_51 = arith.constant 0 : index
    %55 = vector.load %arg2[%c7, %c0_50, %c0_51] : memref<9x8x8xbf16, #tpu.memory_space<vmem>>, vector<1x8x8xbf16>
    %56 = vector.shape_cast %55 : vector<1x8x8xbf16> to vector<8x8xbf16>
    %cst_52 = arith.constant dense<0.000000e+00> : vector<8x384xf32>
    %57 = tpu.matmul %56, %54, %cst_52 {dimension_numbers = #tpu.dot_dimension_numbers<[1], [0], [0], [1], [0, 0, 1, 1], [], []>} : vector<8x8xbf16>, vector<8x384xbf16>, vector<8x384xf32> -> vector<8x384xf32>
    %58 = arith.addf %51, %57 : vector<8x384xf32>
    %c0_53 = arith.constant 0 : index
    %c0_54 = arith.constant 0 : index
    %c0_55 = arith.constant 0 : index
    %c38 = arith.constant 38 : index
    %59 = vector.load %arg1[%c0_53, %c0_54, %c0_55, %c38] : memref<2x1x8x512xf32, #tpu.memory_space<vmem>>, vector<1x1x8x384xf32>
    %60 = vector.shape_cast %59 : vector<1x1x8x384xf32> to vector<8x384xf32>
    %61 = arith.truncf %60 : vector<8x384xf32> to vector<8x384xbf16>
    %c8 = arith.constant 8 : index
    %c0_56 = arith.constant 0 : index
    %c0_57 = arith.constant 0 : index
    %62 = vector.load %arg2[%c8, %c0_56, %c0_57] : memref<9x8x8xbf16, #tpu.memory_space<vmem>>, vector<1x8x8xbf16>
    %63 = vector.shape_cast %62 : vector<1x8x8xbf16> to vector<8x8xbf16>
    %cst_58 = arith.constant dense<0.000000e+00> : vector<8x384xf32>
    %64 = tpu.matmul %63, %61, %cst_58 {dimension_numbers = #tpu.dot_dimension_numbers<[1], [0], [0], [1], [0, 0, 1, 1], [], []>} : vector<8x8xbf16>, vector<8x384xbf16>, vector<8x384xf32> -> vector<8x384xf32>
    %65 = arith.addf %58, %64 : vector<8x384xf32>
    %c0_59 = arith.constant 0 : index
    %c0_60 = arith.constant 0 : index
    %66 = vector.load %arg3[%c0_59, %c0_60] : memref<8x1xf32, #tpu.memory_space<vmem>>, vector<8x1xf32>
    %67 = vector.broadcast %66 : vector<8x1xf32> to vector<8x384xf32>
    %68 = arith.addf %65, %67 : vector<8x384xf32>
    %cst_61 = arith.constant 1.000000e-01 : f32
    %69 = vector.broadcast %cst_61 : f32 to vector<8x384xf32>
    %70 = arith.mulf %69, %68 : vector<8x384xf32>
    %71 = arith.maximumf %68, %70 : vector<8x384xf32>
    %c0_62 = arith.constant 0 : index
    %c0_63 = arith.constant 0 : index
    %72 = vector.load %arg10[%c0_62, %c0_63] : memref<1x384xf32, #tpu.memory_space<vmem>>, vector<1x384xf32>
    %73 = vector.broadcast %72 : vector<1x384xf32> to vector<8x384xf32>
    %74 = arith.mulf %71, %73 : vector<8x384xf32>
    %c0_64 = arith.constant 0 : index
    %c0_65 = arith.constant 0 : index
    %75 = vector.load %arg14[%c0_64, %c0_65] : memref<8x512xf32, #tpu.memory_space<vmem>>, vector<8x384xf32>
    tpu.vector_store %arg14[%c0_64, %c0_65], %74 {strides = array<i32>} : memref<8x512xf32, #tpu.memory_space<vmem>>, vector<8x384xf32>,
    %cst_66 = arith.constant 0.000000e+00 : f32
    %76 = vector.broadcast %cst_66 : f32 to vector<8x384xf32>
    %c0_67 = arith.constant 0 : index
    %c0_68 = arith.constant 0 : index
    %77 = vector.load %arg14[%c0_67, %c0_68] : memref<8x512xf32, #tpu.memory_space<vmem>>, vector<8x384xf32>
    %78 = arith.truncf %77 : vector<8x384xf32> to vector<8x384xbf16>
    %c0_69 = arith.constant 0 : index
    %c0_70 = arith.constant 0 : index
    %c0_71 = arith.constant 0 : index
    %79 = vector.load %arg4[%c0_69, %c0_70, %c0_71] : memref<9x8x8xbf16, #tpu.memory_space<vmem>>, vector<1x8x8xbf16>
    %80 = vector.shape_cast %79 : vector<1x8x8xbf16> to vector<8x8xbf16>
    %cst_72 = arith.constant dense<0.000000e+00> : vector<8x384xf32>
    %81 = tpu.matmul %80, %78, %cst_72 {dimension_numbers = #tpu.dot_dimension_numbers<[1], [0], [0], [1], [0, 0, 1, 1], [], []>} : vector<8x8xbf16>, vector<8x384xbf16>, vector<8x384xf32> -> vector<8x384xf32>
    %82 = arith.addf %76, %81 : vector<8x384xf32>
    %c0_73 = arith.constant 0 : index
    %c1_74 = arith.constant 1 : index
    %83 = vector.load %arg14[%c0_73, %c1_74] : memref<8x512xf32, #tpu.memory_space<vmem>>, vector<8x384xf32>
    %84 = arith.truncf %83 : vector<8x384xf32> to vector<8x384xbf16>
    %c1_75 = arith.constant 1 : index
    %c0_76 = arith.constant 0 : index
    %c0_77 = arith.constant 0 : index
    %85 = vector.load %arg4[%c1_75, %c0_76, %c0_77] : memref<9x8x8xbf16, #tpu.memory_space<vmem>>, vector<1x8x8xbf16>
    %86 = vector.shape_cast %85 : vector<1x8x8xbf16> to vector<8x8xbf16>
    %cst_78 = arith.constant dense<0.000000e+00> : vector<8x384xf32>
    %87 = tpu.matmul %86, %84, %cst_78 {dimension_numbers = #tpu.dot_dimension_numbers<[1], [0], [0], [1], [0, 0, 1, 1], [], []>} : vector<8x8xbf16>, vector<8x384xbf16>, vector<8x384xf32> -> vector<8x384xf32>
    %88 = arith.addf %82, %87 : vector<8x384xf32>
    %c0_79 = arith.constant 0 : index
    %c2_80 = arith.constant 2 : index
    %89 = vector.load %arg14[%c0_79, %c2_80] : memref<8x512xf32, #tpu.memory_space<vmem>>, vector<8x384xf32>
    %90 = arith.truncf %89 : vector<8x384xf32> to vector<8x384xbf16>
    %c2_81 = arith.constant 2 : index
    %c0_82 = arith.constant 0 : index
    %c0_83 = arith.constant 0 : index
    %91 = vector.load %arg4[%c2_81, %c0_82, %c0_83] : memref<9x8x8xbf16, #tpu.memory_space<vmem>>, vector<1x8x8xbf16>
    %92 = vector.shape_cast %91 : vector<1x8x8xbf16> to vector<8x8xbf16>
    %cst_84 = arith.constant dense<0.000000e+00> : vector<8x384xf32>
    %93 = tpu.matmul %92, %90, %cst_84 {dimension_numbers = #tpu.dot_dimension_numbers<[1], [0], [0], [1], [0, 0, 1, 1], [], []>} : vector<8x8xbf16>, vector<8x384xbf16>, vector<8x384xf32> -> vector<8x384xf32>
    %94 = arith.addf %88, %93 : vector<8x384xf32>
    %c0_85 = arith.constant 0 : index
    %c18_86 = arith.constant 18 : index
    %95 = vector.load %arg14[%c0_85, %c18_86] : memref<8x512xf32, #tpu.memory_space<vmem>>, vector<8x384xf32>
    %96 = arith.truncf %95 : vector<8x384xf32> to vector<8x384xbf16>
    %c3_87 = arith.constant 3 : index
    %c0_88 = arith.constant 0 : index
    %c0_89 = arith.constant 0 : index
    %97 = vector.load %arg4[%c3_87, %c0_88, %c0_89] : memref<9x8x8xbf16, #tpu.memory_space<vmem>>, vector<1x8x8xbf16>
    %98 = vector.shape_cast %97 : vector<1x8x8xbf16> to vector<8x8xbf16>
    %cst_90 = arith.constant dense<0.000000e+00> : vector<8x384xf32>
    %99 = tpu.matmul %98, %96, %cst_90 {dimension_numbers = #tpu.dot_dimension_numbers<[1], [0], [0], [1], [0, 0, 1, 1], [], []>} : vector<8x8xbf16>, vector<8x384xbf16>, vector<8x384xf32> -> vector<8x384xf32>
    %100 = arith.addf %94, %99 : vector<8x384xf32>
    %c0_91 = arith.constant 0 : index
    %c19_92 = arith.constant 19 : index
    %101 = vector.load %arg14[%c0_91, %c19_92] : memref<8x512xf32, #tpu.memory_space<vmem>>, vector<8x384xf32>
    %102 = arith.truncf %101 : vector<8x384xf32> to vector<8x384xbf16>
    %c4_93 = arith.constant 4 : index
    %c0_94 = arith.constant 0 : index
    %c0_95 = arith.constant 0 : index
    %103 = vector.load %arg4[%c4_93, %c0_94, %c0_95] : memref<9x8x8xbf16, #tpu.memory_space<vmem>>, vector<1x8x8xbf16>
    %104 = vector.shape_cast %103 : vector<1x8x8xbf16> to vector<8x8xbf16>
    %cst_96 = arith.constant dense<0.000000e+00> : vector<8x384xf32>
    %105 = tpu.matmul %104, %102, %cst_96 {dimension_numbers = #tpu.dot_dimension_numbers<[1], [0], [0], [1], [0, 0, 1, 1], [], []>} : vector<8x8xbf16>, vector<8x384xbf16>, vector<8x384xf32> -> vector<8x384xf32>
    %106 = arith.addf %100, %105 : vector<8x384xf32>
    %c0_97 = arith.constant 0 : index
    %c20_98 = arith.constant 20 : index
    %107 = vector.load %arg14[%c0_97, %c20_98] : memref<8x512xf32, #tpu.memory_space<vmem>>, vector<8x384xf32>
    %108 = arith.truncf %107 : vector<8x384xf32> to vector<8x384xbf16>
    %c5_99 = arith.constant 5 : index
    %c0_100 = arith.constant 0 : index
    %c0_101 = arith.constant 0 : index
    %109 = vector.load %arg4[%c5_99, %c0_100, %c0_101] : memref<9x8x8xbf16, #tpu.memory_space<vmem>>, vector<1x8x8xbf16>
    %110 = vector.shape_cast %109 : vector<1x8x8xbf16> to vector<8x8xbf16>
    %cst_102 = arith.constant dense<0.000000e+00> : vector<8x384xf32>
    %111 = tpu.matmul %110, %108, %cst_102 {dimension_numbers = #tpu.dot_dimension_numbers<[1], [0], [0], [1], [0, 0, 1, 1], [], []>} : vector<8x8xbf16>, vector<8x384xbf16>, vector<8x384xf32> -> vector<8x384xf32>
    %112 = arith.addf %106, %111 : vector<8x384xf32>
    %c0_103 = arith.constant 0 : index
    %c36_104 = arith.constant 36 : index
    %113 = vector.load %arg14[%c0_103, %c36_104] : memref<8x512xf32, #tpu.memory_space<vmem>>, vector<8x384xf32>
    %114 = arith.truncf %113 : vector<8x384xf32> to vector<8x384xbf16>
    %c6_105 = arith.constant 6 : index
    %c0_106 = arith.constant 0 : index
    %c0_107 = arith.constant 0 : index
    %115 = vector.load %arg4[%c6_105, %c0_106, %c0_107] : memref<9x8x8xbf16, #tpu.memory_space<vmem>>, vector<1x8x8xbf16>
    %116 = vector.shape_cast %115 : vector<1x8x8xbf16> to vector<8x8xbf16>
    %cst_108 = arith.constant dense<0.000000e+00> : vector<8x384xf32>
    %117 = tpu.matmul %116, %114, %cst_108 {dimension_numbers = #tpu.dot_dimension_numbers<[1], [0], [0], [1], [0, 0, 1, 1], [], []>} : vector<8x8xbf16>, vector<8x384xbf16>, vector<8x384xf32> -> vector<8x384xf32>
    %118 = arith.addf %112, %117 : vector<8x384xf32>
    %c0_109 = arith.constant 0 : index
    %c37_110 = arith.constant 37 : index
    %119 = vector.load %arg14[%c0_109, %c37_110] : memref<8x512xf32, #tpu.memory_space<vmem>>, vector<8x384xf32>
    %120 = arith.truncf %119 : vector<8x384xf32> to vector<8x384xbf16>
    %c7_111 = arith.constant 7 : index
    %c0_112 = arith.constant 0 : index
    %c0_113 = arith.constant 0 : index
    %121 = vector.load %arg4[%c7_111, %c0_112, %c0_113] : memref<9x8x8xbf16, #tpu.memory_space<vmem>>, vector<1x8x8xbf16>
    %122 = vector.shape_cast %121 : vector<1x8x8xbf16> to vector<8x8xbf16>
    %cst_114 = arith.constant dense<0.000000e+00> : vector<8x384xf32>
    %123 = tpu.matmul %122, %120, %cst_114 {dimension_numbers = #tpu.dot_dimension_numbers<[1], [0], [0], [1], [0, 0, 1, 1], [], []>} : vector<8x8xbf16>, vector<8x384xbf16>, vector<8x384xf32> -> vector<8x384xf32>
    %124 = arith.addf %118, %123 : vector<8x384xf32>
    %c0_115 = arith.constant 0 : index
    %c38_116 = arith.constant 38 : index
    %125 = vector.load %arg14[%c0_115, %c38_116] : memref<8x512xf32, #tpu.memory_space<vmem>>, vector<8x384xf32>
    %126 = arith.truncf %125 : vector<8x384xf32> to vector<8x384xbf16>
    %c8_117 = arith.constant 8 : index
    %c0_118 = arith.constant 0 : index
    %c0_119 = arith.constant 0 : index
    %127 = vector.load %arg4[%c8_117, %c0_118, %c0_119] : memref<9x8x8xbf16, #tpu.memory_space<vmem>>, vector<1x8x8xbf16>
    %128 = vector.shape_cast %127 : vector<1x8x8xbf16> to vector<8x8xbf16>
    %cst_120 = arith.constant dense<0.000000e+00> : vector<8x384xf32>
    %129 = tpu.matmul %128, %126, %cst_120 {dimension_numbers = #tpu.dot_dimension_numbers<[1], [0], [0], [1], [0, 0, 1, 1], [], []>} : vector<8x8xbf16>, vector<8x384xbf16>, vector<8x384xf32> -> vector<8x384xf32>
    %130 = arith.addf %124, %129 : vector<8x384xf32>
    %c0_121 = arith.constant 0 : index
    %c0_122 = arith.constant 0 : index
    %131 = vector.load %arg5[%c0_121, %c0_122] : memref<8x1xf32, #tpu.memory_space<vmem>>, vector<8x1xf32>
    %132 = vector.broadcast %131 : vector<8x1xf32> to vector<8x384xf32>
    %133 = arith.addf %130, %132 : vector<8x384xf32>
    %cst_123 = arith.constant 1.000000e-01 : f32
    %134 = vector.broadcast %cst_123 : f32 to vector<8x384xf32>
    %135 = arith.mulf %134, %133 : vector<8x384xf32>
    %136 = arith.maximumf %133, %135 : vector<8x384xf32>
    %c0_124 = arith.constant 0 : index
    %c0_125 = arith.constant 0 : index
    %c0_126 = arith.constant 0 : index
    %c38_127 = arith.constant 38 : index
    %137 = vector.load %arg1[%c0_124, %c0_125, %c0_126, %c38_127] : memref<2x1x8x512xf32, #tpu.memory_space<vmem>>, vector<1x1x8x384xf32>
    %138 = vector.shape_cast %137 : vector<1x1x8x384xf32> to vector<8x384xf32>
    %139 = arith.addf %138, %136 : vector<8x384xf32>
    %c0_128 = arith.constant 0 : index
    %c0_129 = arith.constant 0 : index
    %c0_130 = arith.constant 0 : index
    %c0_131 = arith.constant 0 : index
    %140 = vector.load %arg12[%c0_128, %c0_129, %c0_130, %c0_131] : memref<2x1x8x384xf32, #tpu.memory_space<vmem>>, vector<1x1x8x384xf32>
    %141 = vector.shape_cast %140 : vector<1x1x8x384xf32> to vector<8x384xf32>
    %142 = vector.shape_cast %139 : vector<8x384xf32> to vector<1x1x8x384xf32>
    tpu.vector_store %arg12[%c0_128, %c0_129, %c0_130, %c0_131], %142 {strides = array<i32>} : memref<2x1x8x384xf32, #tpu.memory_space<vmem>>, vector<1x1x8x384xf32>,
    %143 = arith.truncf %136 : vector<8x384xf32> to vector<8x384xbf16>
    %c0_132 = arith.constant 0 : index
    %c0_133 = arith.constant 0 : index
    %144 = vector.load %arg6[%c0_132, %c0_133] : memref<8x8xbf16, #tpu.memory_space<vmem>>, vector<8x8xbf16>
    %cst_134 = arith.constant dense<0.000000e+00> : vector<8x384xf32>
    %145 = tpu.matmul %144, %143, %cst_134 {dimension_numbers = #tpu.dot_dimension_numbers<[1], [0], [0], [1], [0, 0, 1, 1], [], []>} : vector<8x8xbf16>, vector<8x384xbf16>, vector<8x384xf32> -> vector<8x384xf32>
    %c0_135 = arith.constant 0 : index
    %c0_136 = arith.constant 0 : index
    %146 = vector.load %arg7[%c0_135, %c0_136] : memref<8x1xf32, #tpu.memory_space<vmem>>, vector<8x1xf32>
    %147 = vector.broadcast %146 : vector<8x1xf32> to vector<8x384xf32>
    %148 = arith.addf %145, %147 : vector<8x384xf32>
    %c0_137 = arith.constant 0 : index
    %c0_138 = arith.constant 0 : index
    %c0_139 = arith.constant 0 : index
    %149 = vector.load %arg15[%c0_137, %c0_138, %c0_139] : memref<2x8x384xf32, #tpu.memory_space<vmem>>, vector<1x8x384xf32>
    %150 = vector.shape_cast %149 : vector<1x8x384xf32> to vector<8x384xf32>
    %151 = vector.shape_cast %148 : vector<8x384xf32> to vector<1x8x384xf32>
    tpu.vector_store %arg15[%c0_137, %c0_138, %c0_139], %151 {strides = array<i32>} : memref<2x8x384xf32, #tpu.memory_space<vmem>>, vector<1x8x384xf32>,
    %c0_140 = arith.constant 0 : index
    %c0_141 = arith.constant 0 : index
    %152 = vector.load %arg8[%c0_140, %c0_141] : memref<8x8xbf16, #tpu.memory_space<vmem>>, vector<8x8xbf16>
    %cst_142 = arith.constant dense<0.000000e+00> : vector<8x384xf32>
    %153 = tpu.matmul %152, %143, %cst_142 {dimension_numbers = #tpu.dot_dimension_numbers<[1], [0], [0], [1], [0, 0, 1, 1], [], []>} : vector<8x8xbf16>, vector<8x384xbf16>, vector<8x384xf32> -> vector<8x384xf32>
    %c0_143 = arith.constant 0 : index
    %c0_144 = arith.constant 0 : index
    %154 = vector.load %arg9[%c0_143, %c0_144] : memref<8x1xf32, #tpu.memory_space<vmem>>, vector<8x1xf32>
    %155 = vector.broadcast %154 : vector<8x1xf32> to vector<8x384xf32>
    %156 = arith.addf %153, %155 : vector<8x384xf32>
    %c0_145 = arith.constant 0 : index
    %c0_146 = arith.constant 0 : index
    %c0_147 = arith.constant 0 : index
    %157 = vector.load %arg16[%c0_145, %c0_146, %c0_147] : memref<2x8x384xf32, #tpu.memory_space<vmem>>, vector<1x8x384xf32>
    %158 = vector.shape_cast %157 : vector<1x8x384xf32> to vector<8x384xf32>
    %159 = vector.shape_cast %156 : vector<8x384xf32> to vector<1x8x384xf32>
    tpu.vector_store %arg16[%c0_145, %c0_146, %c0_147], %159 {strides = array<i32>} : memref<2x8x384xf32, #tpu.memory_space<vmem>>, vector<1x8x384xf32>,
    %cst_148 = arith.constant 0.000000e+00 : f32
    %160 = vector.broadcast %cst_148 : f32 to vector<8x384xf32>
    %c1_149 = arith.constant 1 : index
    %c0_150 = arith.constant 0 : index
    %c0_151 = arith.constant 0 : index
    %c0_152 = arith.constant 0 : index
    %161 = vector.load %arg1[%c1_149, %c0_150, %c0_151, %c0_152] : memref<2x1x8x512xf32, #tpu.memory_space<vmem>>, vector<1x1x8x384xf32>
    %162 = vector.shape_cast %161 : vector<1x1x8x384xf32> to vector<8x384xf32>
    %163 = arith.truncf %162 : vector<8x384xf32> to vector<8x384xbf16>
    %c0_153 = arith.constant 0 : index
    %c0_154 = arith.constant 0 : index
    %c0_155 = arith.constant 0 : index
    %164 = vector.load %arg2[%c0_153, %c0_154, %c0_155] : memref<9x8x8xbf16, #tpu.memory_space<vmem>>, vector<1x8x8xbf16>
    %165 = vector.shape_cast %164 : vector<1x8x8xbf16> to vector<8x8xbf16>
    %cst_156 = arith.constant dense<0.000000e+00> : vector<8x384xf32>
    %166 = tpu.matmul %165, %163, %cst_156 {dimension_numbers = #tpu.dot_dimension_numbers<[1], [0], [0], [1], [0, 0, 1, 1], [], []>} : vector<8x8xbf16>, vector<8x384xbf16>, vector<8x384xf32> -> vector<8x384xf32>
    %167 = arith.addf %160, %166 : vector<8x384xf32>
    %c1_157 = arith.constant 1 : index
    %c0_158 = arith.constant 0 : index
    %c0_159 = arith.constant 0 : index
    %c1_160 = arith.constant 1 : index
    %168 = vector.load %arg1[%c1_157, %c0_158, %c0_159, %c1_160] : memref<2x1x8x512xf32, #tpu.memory_space<vmem>>, vector<1x1x8x384xf32>
    %169 = vector.shape_cast %168 : vector<1x1x8x384xf32> to vector<8x384xf32>
    %170 = arith.truncf %169 : vector<8x384xf32> to vector<8x384xbf16>
    %c1_161 = arith.constant 1 : index
    %c0_162 = arith.constant 0 : index
    %c0_163 = arith.constant 0 : index
    %171 = vector.load %arg2[%c1_161, %c0_162, %c0_163] : memref<9x8x8xbf16, #tpu.memory_space<vmem>>, vector<1x8x8xbf16>
    %172 = vector.shape_cast %171 : vector<1x8x8xbf16> to vector<8x8xbf16>
    %cst_164 = arith.constant dense<0.000000e+00> : vector<8x384xf32>
    %173 = tpu.matmul %172, %170, %cst_164 {dimension_numbers = #tpu.dot_dimension_numbers<[1], [0], [0], [1], [0, 0, 1, 1], [], []>} : vector<8x8xbf16>, vector<8x384xbf16>, vector<8x384xf32> -> vector<8x384xf32>
    %174 = arith.addf %167, %173 : vector<8x384xf32>
    %c1_165 = arith.constant 1 : index
    %c0_166 = arith.constant 0 : index
    %c0_167 = arith.constant 0 : index
    %c2_168 = arith.constant 2 : index
    %175 = vector.load %arg1[%c1_165, %c0_166, %c0_167, %c2_168] : memref<2x1x8x512xf32, #tpu.memory_space<vmem>>, vector<1x1x8x384xf32>
    %176 = vector.shape_cast %175 : vector<1x1x8x384xf32> to vector<8x384xf32>
    %177 = arith.truncf %176 : vector<8x384xf32> to vector<8x384xbf16>
    %c2_169 = arith.constant 2 : index
    %c0_170 = arith.constant 0 : index
    %c0_171 = arith.constant 0 : index
    %178 = vector.load %arg2[%c2_169, %c0_170, %c0_171] : memref<9x8x8xbf16, #tpu.memory_space<vmem>>, vector<1x8x8xbf16>
    %179 = vector.shape_cast %178 : vector<1x8x8xbf16> to vector<8x8xbf16>
    %cst_172 = arith.constant dense<0.000000e+00> : vector<8x384xf32>
    %180 = tpu.matmul %179, %177, %cst_172 {dimension_numbers = #tpu.dot_dimension_numbers<[1], [0], [0], [1], [0, 0, 1, 1], [], []>} : vector<8x8xbf16>, vector<8x384xbf16>, vector<8x384xf32> -> vector<8x384xf32>
    %181 = arith.addf %174, %180 : vector<8x384xf32>
    %c1_173 = arith.constant 1 : index
    %c0_174 = arith.constant 0 : index
    %c0_175 = arith.constant 0 : index
    %c18_176 = arith.constant 18 : index
    %182 = vector.load %arg1[%c1_173, %c0_174, %c0_175, %c18_176] : memref<2x1x8x512xf32, #tpu.memory_space<vmem>>, vector<1x1x8x384xf32>
    %183 = vector.shape_cast %182 : vector<1x1x8x384xf32> to vector<8x384xf32>
    %184 = arith.truncf %183 : vector<8x384xf32> to vector<8x384xbf16>
    %c3_177 = arith.constant 3 : index
    %c0_178 = arith.constant 0 : index
    %c0_179 = arith.constant 0 : index
    %185 = vector.load %arg2[%c3_177, %c0_178, %c0_179] : memref<9x8x8xbf16, #tpu.memory_space<vmem>>, vector<1x8x8xbf16>
    %186 = vector.shape_cast %185 : vector<1x8x8xbf16> to vector<8x8xbf16>
    %cst_180 = arith.constant dense<0.000000e+00> : vector<8x384xf32>
    %187 = tpu.matmul %186, %184, %cst_180 {dimension_numbers = #tpu.dot_dimension_numbers<[1], [0], [0], [1], [0, 0, 1, 1], [], []>} : vector<8x8xbf16>, vector<8x384xbf16>, vector<8x384xf32> -> vector<8x384xf32>
    %188 = arith.addf %181, %187 : vector<8x384xf32>
    %c1_181 = arith.constant 1 : index
    %c0_182 = arith.constant 0 : index
    %c0_183 = arith.constant 0 : index
    %c19_184 = arith.constant 19 : index
    %189 = vector.load %arg1[%c1_181, %c0_182, %c0_183, %c19_184] : memref<2x1x8x512xf32, #tpu.memory_space<vmem>>, vector<1x1x8x384xf32>
    %190 = vector.shape_cast %189 : vector<1x1x8x384xf32> to vector<8x384xf32>
    %191 = arith.truncf %190 : vector<8x384xf32> to vector<8x384xbf16>
    %c4_185 = arith.constant 4 : index
    %c0_186 = arith.constant 0 : index
    %c0_187 = arith.constant 0 : index
    %192 = vector.load %arg2[%c4_185, %c0_186, %c0_187] : memref<9x8x8xbf16, #tpu.memory_space<vmem>>, vector<1x8x8xbf16>
    %193 = vector.shape_cast %192 : vector<1x8x8xbf16> to vector<8x8xbf16>
    %cst_188 = arith.constant dense<0.000000e+00> : vector<8x384xf32>
    %194 = tpu.matmul %193, %191, %cst_188 {dimension_numbers = #tpu.dot_dimension_numbers<[1], [0], [0], [1], [0, 0, 1, 1], [], []>} : vector<8x8xbf16>, vector<8x384xbf16>, vector<8x384xf32> -> vector<8x384xf32>
    %195 = arith.addf %188, %194 : vector<8x384xf32>
    %c1_189 = arith.constant 1 : index
    %c0_190 = arith.constant 0 : index
    %c0_191 = arith.constant 0 : index
    %c20_192 = arith.constant 20 : index
    %196 = vector.load %arg1[%c1_189, %c0_190, %c0_191, %c20_192] : memref<2x1x8x512xf32, #tpu.memory_space<vmem>>, vector<1x1x8x384xf32>
    %197 = vector.shape_cast %196 : vector<1x1x8x384xf32> to vector<8x384xf32>
    %198 = arith.truncf %197 : vector<8x384xf32> to vector<8x384xbf16>
    %c5_193 = arith.constant 5 : index
    %c0_194 = arith.constant 0 : index
    %c0_195 = arith.constant 0 : index
    %199 = vector.load %arg2[%c5_193, %c0_194, %c0_195] : memref<9x8x8xbf16, #tpu.memory_space<vmem>>, vector<1x8x8xbf16>
    %200 = vector.shape_cast %199 : vector<1x8x8xbf16> to vector<8x8xbf16>
    %cst_196 = arith.constant dense<0.000000e+00> : vector<8x384xf32>
    %201 = tpu.matmul %200, %198, %cst_196 {dimension_numbers = #tpu.dot_dimension_numbers<[1], [0], [0], [1], [0, 0, 1, 1], [], []>} : vector<8x8xbf16>, vector<8x384xbf16>, vector<8x384xf32> -> vector<8x384xf32>
    %202 = arith.addf %195, %201 : vector<8x384xf32>
    %c1_197 = arith.constant 1 : index
    %c0_198 = arith.constant 0 : index
    %c0_199 = arith.constant 0 : index
    %c36_200 = arith.constant 36 : index
    %203 = vector.load %arg1[%c1_197, %c0_198, %c0_199, %c36_200] : memref<2x1x8x512xf32, #tpu.memory_space<vmem>>, vector<1x1x8x384xf32>
    %204 = vector.shape_cast %203 : vector<1x1x8x384xf32> to vector<8x384xf32>
    %205 = arith.truncf %204 : vector<8x384xf32> to vector<8x384xbf16>
    %c6_201 = arith.constant 6 : index
    %c0_202 = arith.constant 0 : index
    %c0_203 = arith.constant 0 : index
    %206 = vector.load %arg2[%c6_201, %c0_202, %c0_203] : memref<9x8x8xbf16, #tpu.memory_space<vmem>>, vector<1x8x8xbf16>
    %207 = vector.shape_cast %206 : vector<1x8x8xbf16> to vector<8x8xbf16>
    %cst_204 = arith.constant dense<0.000000e+00> : vector<8x384xf32>
    %208 = tpu.matmul %207, %205, %cst_204 {dimension_numbers = #tpu.dot_dimension_numbers<[1], [0], [0], [1], [0, 0, 1, 1], [], []>} : vector<8x8xbf16>, vector<8x384xbf16>, vector<8x384xf32> -> vector<8x384xf32>
    %209 = arith.addf %202, %208 : vector<8x384xf32>
    %c1_205 = arith.constant 1 : index
    %c0_206 = arith.constant 0 : index
    %c0_207 = arith.constant 0 : index
    %c37_208 = arith.constant 37 : index
    %210 = vector.load %arg1[%c1_205, %c0_206, %c0_207, %c37_208] : memref<2x1x8x512xf32, #tpu.memory_space<vmem>>, vector<1x1x8x384xf32>
    %211 = vector.shape_cast %210 : vector<1x1x8x384xf32> to vector<8x384xf32>
    %212 = arith.truncf %211 : vector<8x384xf32> to vector<8x384xbf16>
    %c7_209 = arith.constant 7 : index
    %c0_210 = arith.constant 0 : index
    %c0_211 = arith.constant 0 : index
    %213 = vector.load %arg2[%c7_209, %c0_210, %c0_211] : memref<9x8x8xbf16, #tpu.memory_space<vmem>>, vector<1x8x8xbf16>
    %214 = vector.shape_cast %213 : vector<1x8x8xbf16> to vector<8x8xbf16>
    %cst_212 = arith.constant dense<0.000000e+00> : vector<8x384xf32>
    %215 = tpu.matmul %214, %212, %cst_212 {dimension_numbers = #tpu.dot_dimension_numbers<[1], [0], [0], [1], [0, 0, 1, 1], [], []>} : vector<8x8xbf16>, vector<8x384xbf16>, vector<8x384xf32> -> vector<8x384xf32>
    %216 = arith.addf %209, %215 : vector<8x384xf32>
    %c1_213 = arith.constant 1 : index
    %c0_214 = arith.constant 0 : index
    %c0_215 = arith.constant 0 : index
    %c38_216 = arith.constant 38 : index
    %217 = vector.load %arg1[%c1_213, %c0_214, %c0_215, %c38_216] : memref<2x1x8x512xf32, #tpu.memory_space<vmem>>, vector<1x1x8x384xf32>
    %218 = vector.shape_cast %217 : vector<1x1x8x384xf32> to vector<8x384xf32>
    %219 = arith.truncf %218 : vector<8x384xf32> to vector<8x384xbf16>
    %c8_217 = arith.constant 8 : index
    %c0_218 = arith.constant 0 : index
    %c0_219 = arith.constant 0 : index
    %220 = vector.load %arg2[%c8_217, %c0_218, %c0_219] : memref<9x8x8xbf16, #tpu.memory_space<vmem>>, vector<1x8x8xbf16>
    %221 = vector.shape_cast %220 : vector<1x8x8xbf16> to vector<8x8xbf16>
    %cst_220 = arith.constant dense<0.000000e+00> : vector<8x384xf32>
    %222 = tpu.matmul %221, %219, %cst_220 {dimension_numbers = #tpu.dot_dimension_numbers<[1], [0], [0], [1], [0, 0, 1, 1], [], []>} : vector<8x8xbf16>, vector<8x384xbf16>, vector<8x384xf32> -> vector<8x384xf32>
    %223 = arith.addf %216, %222 : vector<8x384xf32>
    %c0_221 = arith.constant 0 : index
    %c0_222 = arith.constant 0 : index
    %224 = vector.load %arg3[%c0_221, %c0_222] : memref<8x1xf32, #tpu.memory_space<vmem>>, vector<8x1xf32>
    %225 = vector.broadcast %224 : vector<8x1xf32> to vector<8x384xf32>
    %226 = arith.addf %223, %225 : vector<8x384xf32>
    %cst_223 = arith.constant 1.000000e-01 : f32
    %227 = vector.broadcast %cst_223 : f32 to vector<8x384xf32>
    %228 = arith.mulf %227, %226 : vector<8x384xf32>
    %229 = arith.maximumf %226, %228 : vector<8x384xf32>
    %c0_224 = arith.constant 0 : index
    %c0_225 = arith.constant 0 : index
    %230 = vector.load %arg10[%c0_224, %c0_225] : memref<1x384xf32, #tpu.memory_space<vmem>>, vector<1x384xf32>
    %231 = vector.broadcast %230 : vector<1x384xf32> to vector<8x384xf32>
    %232 = arith.mulf %229, %231 : vector<8x384xf32>
    %c0_226 = arith.constant 0 : index
    %c0_227 = arith.constant 0 : index
    %233 = vector.load %arg14[%c0_226, %c0_227] : memref<8x512xf32, #tpu.memory_space<vmem>>, vector<8x384xf32>
    tpu.vector_store %arg14[%c0_226, %c0_227], %232 {strides = array<i32>} : memref<8x512xf32, #tpu.memory_space<vmem>>, vector<8x384xf32>,
    %cst_228 = arith.constant 0.000000e+00 : f32
    %234 = vector.broadcast %cst_228 : f32 to vector<8x384xf32>
    %c0_229 = arith.constant 0 : index
    %c0_230 = arith.constant 0 : index
    %235 = vector.load %arg14[%c0_229, %c0_230] : memref<8x512xf32, #tpu.memory_space<vmem>>, vector<8x384xf32>
    %236 = arith.truncf %235 : vector<8x384xf32> to vector<8x384xbf16>
    %c0_231 = arith.constant 0 : index
    %c0_232 = arith.constant 0 : index
    %c0_233 = arith.constant 0 : index
    %237 = vector.load %arg4[%c0_231, %c0_232, %c0_233] : memref<9x8x8xbf16, #tpu.memory_space<vmem>>, vector<1x8x8xbf16>
    %238 = vector.shape_cast %237 : vector<1x8x8xbf16> to vector<8x8xbf16>
    %cst_234 = arith.constant dense<0.000000e+00> : vector<8x384xf32>
    %239 = tpu.matmul %238, %236, %cst_234 {dimension_numbers = #tpu.dot_dimension_numbers<[1], [0], [0], [1], [0, 0, 1, 1], [], []>} : vector<8x8xbf16>, vector<8x384xbf16>, vector<8x384xf32> -> vector<8x384xf32>
    %240 = arith.addf %234, %239 : vector<8x384xf32>
    %c0_235 = arith.constant 0 : index
    %c1_236 = arith.constant 1 : index
    %241 = vector.load %arg14[%c0_235, %c1_236] : memref<8x512xf32, #tpu.memory_space<vmem>>, vector<8x384xf32>
    %242 = arith.truncf %241 : vector<8x384xf32> to vector<8x384xbf16>
    %c1_237 = arith.constant 1 : index
    %c0_238 = arith.constant 0 : index
    %c0_239 = arith.constant 0 : index
    %243 = vector.load %arg4[%c1_237, %c0_238, %c0_239] : memref<9x8x8xbf16, #tpu.memory_space<vmem>>, vector<1x8x8xbf16>
    %244 = vector.shape_cast %243 : vector<1x8x8xbf16> to vector<8x8xbf16>
    %cst_240 = arith.constant dense<0.000000e+00> : vector<8x384xf32>
    %245 = tpu.matmul %244, %242, %cst_240 {dimension_numbers = #tpu.dot_dimension_numbers<[1], [0], [0], [1], [0, 0, 1, 1], [], []>} : vector<8x8xbf16>, vector<8x384xbf16>, vector<8x384xf32> -> vector<8x384xf32>
    %246 = arith.addf %240, %245 : vector<8x384xf32>
    %c0_241 = arith.constant 0 : index
    %c2_242 = arith.constant 2 : index
    %247 = vector.load %arg14[%c0_241, %c2_242] : memref<8x512xf32, #tpu.memory_space<vmem>>, vector<8x384xf32>
    %248 = arith.truncf %247 : vector<8x384xf32> to vector<8x384xbf16>
    %c2_243 = arith.constant 2 : index
    %c0_244 = arith.constant 0 : index
    %c0_245 = arith.constant 0 : index
    %249 = vector.load %arg4[%c2_243, %c0_244, %c0_245] : memref<9x8x8xbf16, #tpu.memory_space<vmem>>, vector<1x8x8xbf16>
    %250 = vector.shape_cast %249 : vector<1x8x8xbf16> to vector<8x8xbf16>
    %cst_246 = arith.constant dense<0.000000e+00> : vector<8x384xf32>
    %251 = tpu.matmul %250, %248, %cst_246 {dimension_numbers = #tpu.dot_dimension_numbers<[1], [0], [0], [1], [0, 0, 1, 1], [], []>} : vector<8x8xbf16>, vector<8x384xbf16>, vector<8x384xf32> -> vector<8x384xf32>
    %252 = arith.addf %246, %251 : vector<8x384xf32>
    %c0_247 = arith.constant 0 : index
    %c18_248 = arith.constant 18 : index
    %253 = vector.load %arg14[%c0_247, %c18_248] : memref<8x512xf32, #tpu.memory_space<vmem>>, vector<8x384xf32>
    %254 = arith.truncf %253 : vector<8x384xf32> to vector<8x384xbf16>
    %c3_249 = arith.constant 3 : index
    %c0_250 = arith.constant 0 : index
    %c0_251 = arith.constant 0 : index
    %255 = vector.load %arg4[%c3_249, %c0_250, %c0_251] : memref<9x8x8xbf16, #tpu.memory_space<vmem>>, vector<1x8x8xbf16>
    %256 = vector.shape_cast %255 : vector<1x8x8xbf16> to vector<8x8xbf16>
    %cst_252 = arith.constant dense<0.000000e+00> : vector<8x384xf32>
    %257 = tpu.matmul %256, %254, %cst_252 {dimension_numbers = #tpu.dot_dimension_numbers<[1], [0], [0], [1], [0, 0, 1, 1], [], []>} : vector<8x8xbf16>, vector<8x384xbf16>, vector<8x384xf32> -> vector<8x384xf32>
    %258 = arith.addf %252, %257 : vector<8x384xf32>
    %c0_253 = arith.constant 0 : index
    %c19_254 = arith.constant 19 : index
    %259 = vector.load %arg14[%c0_253, %c19_254] : memref<8x512xf32, #tpu.memory_space<vmem>>, vector<8x384xf32>
    %260 = arith.truncf %259 : vector<8x384xf32> to vector<8x384xbf16>
    %c4_255 = arith.constant 4 : index
    %c0_256 = arith.constant 0 : index
    %c0_257 = arith.constant 0 : index
    %261 = vector.load %arg4[%c4_255, %c0_256, %c0_257] : memref<9x8x8xbf16, #tpu.memory_space<vmem>>, vector<1x8x8xbf16>
    %262 = vector.shape_cast %261 : vector<1x8x8xbf16> to vector<8x8xbf16>
    %cst_258 = arith.constant dense<0.000000e+00> : vector<8x384xf32>
    %263 = tpu.matmul %262, %260, %cst_258 {dimension_numbers = #tpu.dot_dimension_numbers<[1], [0], [0], [1], [0, 0, 1, 1], [], []>} : vector<8x8xbf16>, vector<8x384xbf16>, vector<8x384xf32> -> vector<8x384xf32>
    %264 = arith.addf %258, %263 : vector<8x384xf32>
    %c0_259 = arith.constant 0 : index
    %c20_260 = arith.constant 20 : index
    %265 = vector.load %arg14[%c0_259, %c20_260] : memref<8x512xf32, #tpu.memory_space<vmem>>, vector<8x384xf32>
    %266 = arith.truncf %265 : vector<8x384xf32> to vector<8x384xbf16>
    %c5_261 = arith.constant 5 : index
    %c0_262 = arith.constant 0 : index
    %c0_263 = arith.constant 0 : index
    %267 = vector.load %arg4[%c5_261, %c0_262, %c0_263] : memref<9x8x8xbf16, #tpu.memory_space<vmem>>, vector<1x8x8xbf16>
    %268 = vector.shape_cast %267 : vector<1x8x8xbf16> to vector<8x8xbf16>
    %cst_264 = arith.constant dense<0.000000e+00> : vector<8x384xf32>
    %269 = tpu.matmul %268, %266, %cst_264 {dimension_numbers = #tpu.dot_dimension_numbers<[1], [0], [0], [1], [0, 0, 1, 1], [], []>} : vector<8x8xbf16>, vector<8x384xbf16>, vector<8x384xf32> -> vector<8x384xf32>
    %270 = arith.addf %264, %269 : vector<8x384xf32>
    %c0_265 = arith.constant 0 : index
    %c36_266 = arith.constant 36 : index
    %271 = vector.load %arg14[%c0_265, %c36_266] : memref<8x512xf32, #tpu.memory_space<vmem>>, vector<8x384xf32>
    %272 = arith.truncf %271 : vector<8x384xf32> to vector<8x384xbf16>
    %c6_267 = arith.constant 6 : index
    %c0_268 = arith.constant 0 : index
    %c0_269 = arith.constant 0 : index
    %273 = vector.load %arg4[%c6_267, %c0_268, %c0_269] : memref<9x8x8xbf16, #tpu.memory_space<vmem>>, vector<1x8x8xbf16>
    %274 = vector.shape_cast %273 : vector<1x8x8xbf16> to vector<8x8xbf16>
    %cst_270 = arith.constant dense<0.000000e+00> : vector<8x384xf32>
    %275 = tpu.matmul %274, %272, %cst_270 {dimension_numbers = #tpu.dot_dimension_numbers<[1], [0], [0], [1], [0, 0, 1, 1], [], []>} : vector<8x8xbf16>, vector<8x384xbf16>, vector<8x384xf32> -> vector<8x384xf32>
    %276 = arith.addf %270, %275 : vector<8x384xf32>
    %c0_271 = arith.constant 0 : index
    %c37_272 = arith.constant 37 : index
    %277 = vector.load %arg14[%c0_271, %c37_272] : memref<8x512xf32, #tpu.memory_space<vmem>>, vector<8x384xf32>
    %278 = arith.truncf %277 : vector<8x384xf32> to vector<8x384xbf16>
    %c7_273 = arith.constant 7 : index
    %c0_274 = arith.constant 0 : index
    %c0_275 = arith.constant 0 : index
    %279 = vector.load %arg4[%c7_273, %c0_274, %c0_275] : memref<9x8x8xbf16, #tpu.memory_space<vmem>>, vector<1x8x8xbf16>
    %280 = vector.shape_cast %279 : vector<1x8x8xbf16> to vector<8x8xbf16>
    %cst_276 = arith.constant dense<0.000000e+00> : vector<8x384xf32>
    %281 = tpu.matmul %280, %278, %cst_276 {dimension_numbers = #tpu.dot_dimension_numbers<[1], [0], [0], [1], [0, 0, 1, 1], [], []>} : vector<8x8xbf16>, vector<8x384xbf16>, vector<8x384xf32> -> vector<8x384xf32>
    %282 = arith.addf %276, %281 : vector<8x384xf32>
    %c0_277 = arith.constant 0 : index
    %c38_278 = arith.constant 38 : index
    %283 = vector.load %arg14[%c0_277, %c38_278] : memref<8x512xf32, #tpu.memory_space<vmem>>, vector<8x384xf32>
    %284 = arith.truncf %283 : vector<8x384xf32> to vector<8x384xbf16>
    %c8_279 = arith.constant 8 : index
    %c0_280 = arith.constant 0 : index
    %c0_281 = arith.constant 0 : index
    %285 = vector.load %arg4[%c8_279, %c0_280, %c0_281] : memref<9x8x8xbf16, #tpu.memory_space<vmem>>, vector<1x8x8xbf16>
    %286 = vector.shape_cast %285 : vector<1x8x8xbf16> to vector<8x8xbf16>
    %cst_282 = arith.constant dense<0.000000e+00> : vector<8x384xf32>
    %287 = tpu.matmul %286, %284, %cst_282 {dimension_numbers = #tpu.dot_dimension_numbers<[1], [0], [0], [1], [0, 0, 1, 1], [], []>} : vector<8x8xbf16>, vector<8x384xbf16>, vector<8x384xf32> -> vector<8x384xf32>
    %288 = arith.addf %282, %287 : vector<8x384xf32>
    %c0_283 = arith.constant 0 : index
    %c0_284 = arith.constant 0 : index
    %289 = vector.load %arg5[%c0_283, %c0_284] : memref<8x1xf32, #tpu.memory_space<vmem>>, vector<8x1xf32>
    %290 = vector.broadcast %289 : vector<8x1xf32> to vector<8x384xf32>
    %291 = arith.addf %288, %290 : vector<8x384xf32>
    %cst_285 = arith.constant 1.000000e-01 : f32
    %292 = vector.broadcast %cst_285 : f32 to vector<8x384xf32>
    %293 = arith.mulf %292, %291 : vector<8x384xf32>
    %294 = arith.maximumf %291, %293 : vector<8x384xf32>
    %c1_286 = arith.constant 1 : index
    %c0_287 = arith.constant 0 : index
    %c0_288 = arith.constant 0 : index
    %c38_289 = arith.constant 38 : index
    %295 = vector.load %arg1[%c1_286, %c0_287, %c0_288, %c38_289] : memref<2x1x8x512xf32, #tpu.memory_space<vmem>>, vector<1x1x8x384xf32>
    %296 = vector.shape_cast %295 : vector<1x1x8x384xf32> to vector<8x384xf32>
    %297 = arith.addf %296, %294 : vector<8x384xf32>
    %c1_290 = arith.constant 1 : index
    %c0_291 = arith.constant 0 : index
    %c0_292 = arith.constant 0 : index
    %c0_293 = arith.constant 0 : index
    %298 = vector.load %arg12[%c1_290, %c0_291, %c0_292, %c0_293] : memref<2x1x8x384xf32, #tpu.memory_space<vmem>>, vector<1x1x8x384xf32>
    %299 = vector.shape_cast %298 : vector<1x1x8x384xf32> to vector<8x384xf32>
    %300 = vector.shape_cast %297 : vector<8x384xf32> to vector<1x1x8x384xf32>
    tpu.vector_store %arg12[%c1_290, %c0_291, %c0_292, %c0_293], %300 {strides = array<i32>} : memref<2x1x8x384xf32, #tpu.memory_space<vmem>>, vector<1x1x8x384xf32>,
    %301 = arith.truncf %294 : vector<8x384xf32> to vector<8x384xbf16>
    %c0_294 = arith.constant 0 : index
    %c0_295 = arith.constant 0 : index
    %302 = vector.load %arg6[%c0_294, %c0_295] : memref<8x8xbf16, #tpu.memory_space<vmem>>, vector<8x8xbf16>
    %cst_296 = arith.constant dense<0.000000e+00> : vector<8x384xf32>
    %303 = tpu.matmul %302, %301, %cst_296 {dimension_numbers = #tpu.dot_dimension_numbers<[1], [0], [0], [1], [0, 0, 1, 1], [], []>} : vector<8x8xbf16>, vector<8x384xbf16>, vector<8x384xf32> -> vector<8x384xf32>
    %c0_297 = arith.constant 0 : index
    %c0_298 = arith.constant 0 : index
    %304 = vector.load %arg7[%c0_297, %c0_298] : memref<8x1xf32, #tpu.memory_space<vmem>>, vector<8x1xf32>
    %305 = vector.broadcast %304 : vector<8x1xf32> to vector<8x384xf32>
    %306 = arith.addf %303, %305 : vector<8x384xf32>
    %c1_299 = arith.constant 1 : index
    %c0_300 = arith.constant 0 : index
    %c0_301 = arith.constant 0 : index
    %307 = vector.load %arg15[%c1_299, %c0_300, %c0_301] : memref<2x8x384xf32, #tpu.memory_space<vmem>>, vector<1x8x384xf32>
    %308 = vector.shape_cast %307 : vector<1x8x384xf32> to vector<8x384xf32>
    %309 = vector.shape_cast %306 : vector<8x384xf32> to vector<1x8x384xf32>
    tpu.vector_store %arg15[%c1_299, %c0_300, %c0_301], %309 {strides = array<i32>} : memref<2x8x384xf32, #tpu.memory_space<vmem>>, vector<1x8x384xf32>,
    %c0_302 = arith.constant 0 : index
    %c0_303 = arith.constant 0 : index
    %310 = vector.load %arg8[%c0_302, %c0_303] : memref<8x8xbf16, #tpu.memory_space<vmem>>, vector<8x8xbf16>
    %cst_304 = arith.constant dense<0.000000e+00> : vector<8x384xf32>
    %311 = tpu.matmul %310, %301, %cst_304 {dimension_numbers = #tpu.dot_dimension_numbers<[1], [0], [0], [1], [0, 0, 1, 1], [], []>} : vector<8x8xbf16>, vector<8x384xbf16>, vector<8x384xf32> -> vector<8x384xf32>
    %c0_305 = arith.constant 0 : index
    %c0_306 = arith.constant 0 : index
    %312 = vector.load %arg9[%c0_305, %c0_306] : memref<8x1xf32, #tpu.memory_space<vmem>>, vector<8x1xf32>
    %313 = vector.broadcast %312 : vector<8x1xf32> to vector<8x384xf32>
    %314 = arith.addf %311, %313 : vector<8x384xf32>
    %c1_307 = arith.constant 1 : index
    %c0_308 = arith.constant 0 : index
    %c0_309 = arith.constant 0 : index
    %315 = vector.load %arg16[%c1_307, %c0_308, %c0_309] : memref<2x8x384xf32, #tpu.memory_space<vmem>>, vector<1x8x384xf32>
    %316 = vector.shape_cast %315 : vector<1x8x384xf32> to vector<8x384xf32>
    %317 = vector.shape_cast %314 : vector<8x384xf32> to vector<1x8x384xf32>
    tpu.vector_store %arg16[%c1_307, %c0_308, %c0_309], %317 {strides = array<i32>} : memref<2x8x384xf32, #tpu.memory_space<vmem>>, vector<1x8x384xf32>,
    %c0_310 = arith.constant 0 : index
    %c0_311 = arith.constant 0 : index
    %c19_312 = arith.constant 19 : index
    %318 = vector.load %arg15[%c0_310, %c0_311, %c19_312] : memref<2x8x384xf32, #tpu.memory_space<vmem>>, vector<1x8x16xf32>
    %319 = vector.shape_cast %318 : vector<1x8x16xf32> to vector<8x16xf32>
    %c1_313 = arith.constant 1 : index
    %c0_314 = arith.constant 0 : index
    %c19_315 = arith.constant 19 : index
    %320 = vector.load %arg16[%c1_313, %c0_314, %c19_315] : memref<2x8x384xf32, #tpu.memory_space<vmem>>, vector<1x8x16xf32>
    %321 = vector.shape_cast %320 : vector<1x8x16xf32> to vector<8x16xf32>
    %cst_316 = arith.constant dense<0.000000e+00> : vector<16x16xf32>
    %322 = tpu.matmul %319, %321, %cst_316 {dimension_numbers = #tpu.dot_dimension_numbers<[0], [0], [1], [1], [0, 1, 1, 1], [], []>} : vector<8x16xf32>, vector<8x16xf32>, vector<16x16xf32> -> vector<16x16xf32>
    %cst_317 = arith.constant 1.250000e-01 : f32
    %323 = vector.broadcast %cst_317 : f32 to vector<16x16xf32>
    %324 = arith.mulf %322, %323 : vector<16x16xf32>
    %c0_318 = arith.constant 0 : index
    %c0_319 = arith.constant 0 : index
    %c0_320 = arith.constant 0 : index
    %c0_321 = arith.constant 0 : index
    %325 = vector.load %arg11[%c0_318, %c0_319, %c0_320, %c0_321] : memref<2x1x256x16xf32, #tpu.memory_space<vmem>>, vector<1x1x16x16xf32>
    %326 = vector.shape_cast %325 : vector<1x1x16x16xf32> to vector<16x16xf32>
    %327 = arith.addf %324, %326 : vector<16x16xf32>
    %c0_322 = arith.constant 0 : index
    %c0_323 = arith.constant 0 : index
    %c0_324 = arith.constant 0 : index
    %c0_325 = arith.constant 0 : index
    %328 = vector.load %arg13[%c0_322, %c0_323, %c0_324, %c0_325] : memref<2x1x256x16xf32, #tpu.memory_space<vmem>>, vector<1x1x16x16xf32>
    %329 = vector.shape_cast %328 : vector<1x1x16x16xf32> to vector<16x16xf32>
    %330 = vector.shape_cast %327 : vector<16x16xf32> to vector<1x1x16x16xf32>
    tpu.vector_store %arg13[%c0_322, %c0_323, %c0_324, %c0_325], %330 {strides = array<i32>} : memref<2x1x256x16xf32, #tpu.memory_space<vmem>>, vector<1x1x16x16xf32>,
    %c0_326 = arith.constant 0 : index
    %c0_327 = arith.constant 0 : index
    %c37_328 = arith.constant 37 : index
    %331 = vector.load %arg15[%c0_326, %c0_327, %c37_328] : memref<2x8x384xf32, #tpu.memory_space<vmem>>, vector<1x8x16xf32>
    %332 = vector.shape_cast %331 : vector<1x8x16xf32> to vector<8x16xf32>
    %c1_329 = arith.constant 1 : index
    %c0_330 = arith.constant 0 : index
    %c37_331 = arith.constant 37 : index
    %333 = vector.load %arg16[%c1_329, %c0_330, %c37_331] : memref<2x8x384xf32, #tpu.memory_space<vmem>>, vector<1x8x16xf32>
    %334 = vector.shape_cast %333 : vector<1x8x16xf32> to vector<8x16xf32>
    %cst_332 = arith.constant dense<0.000000e+00> : vector<16x16xf32>
    %335 = tpu.matmul %332, %334, %cst_332 {dimension_numbers = #tpu.dot_dimension_numbers<[0], [0], [1], [1], [0, 1, 1, 1], [], []>} : vector<8x16xf32>, vector<8x16xf32>, vector<16x16xf32> -> vector<16x16xf32>
    %cst_333 = arith.constant 1.250000e-01 : f32
    %336 = vector.broadcast %cst_333 : f32 to vector<16x16xf32>
    %337 = arith.mulf %335, %336 : vector<16x16xf32>
    %c0_334 = arith.constant 0 : index
    %c0_335 = arith.constant 0 : index
    %c16 = arith.constant 16 : index
    %c0_336 = arith.constant 0 : index
    %338 = vector.load %arg11[%c0_334, %c0_335, %c16, %c0_336] : memref<2x1x256x16xf32, #tpu.memory_space<vmem>>, vector<1x1x16x16xf32>
    %339 = vector.shape_cast %338 : vector<1x1x16x16xf32> to vector<16x16xf32>
    %340 = arith.addf %337, %339 : vector<16x16xf32>
    %c0_337 = arith.constant 0 : index
    %c0_338 = arith.constant 0 : index
    %c16_339 = arith.constant 16 : index
    %c0_340 = arith.constant 0 : index
    %341 = vector.load %arg13[%c0_337, %c0_338, %c16_339, %c0_340] : memref<2x1x256x16xf32, #tpu.memory_space<vmem>>, vector<1x1x16x16xf32>
    %342 = vector.shape_cast %341 : vector<1x1x16x16xf32> to vector<16x16xf32>
    %343 = vector.shape_cast %340 : vector<16x16xf32> to vector<1x1x16x16xf32>
    tpu.vector_store %arg13[%c0_337, %c0_338, %c16_339, %c0_340], %343 {strides = array<i32>} : memref<2x1x256x16xf32, #tpu.memory_space<vmem>>, vector<1x1x16x16xf32>,
    %c0_341 = arith.constant 0 : index
    %c0_342 = arith.constant 0 : index
    %c55 = arith.constant 55 : index
    %344 = vector.load %arg15[%c0_341, %c0_342, %c55] : memref<2x8x384xf32, #tpu.memory_space<vmem>>, vector<1x8x16xf32>
    %345 = vector.shape_cast %344 : vector<1x8x16xf32> to vector<8x16xf32>
    %c1_343 = arith.constant 1 : index
    %c0_344 = arith.constant 0 : index
    %c55_345 = arith.constant 55 : index
    %346 = vector.load %arg16[%c1_343, %c0_344, %c55_345] : memref<2x8x384xf32, #tpu.memory_space<vmem>>, vector<1x8x16xf32>
    %347 = vector.shape_cast %346 : vector<1x8x16xf32> to vector<8x16xf32>
    %cst_346 = arith.constant dense<0.000000e+00> : vector<16x16xf32>
    %348 = tpu.matmul %345, %347, %cst_346 {dimension_numbers = #tpu.dot_dimension_numbers<[0], [0], [1], [1], [0, 1, 1, 1], [], []>} : vector<8x16xf32>, vector<8x16xf32>, vector<16x16xf32> -> vector<16x16xf32>
    %cst_347 = arith.constant 1.250000e-01 : f32
    %349 = vector.broadcast %cst_347 : f32 to vector<16x16xf32>
    %350 = arith.mulf %348, %349 : vector<16x16xf32>
    %c0_348 = arith.constant 0 : index
    %c0_349 = arith.constant 0 : index
    %c32 = arith.constant 32 : index
    %c0_350 = arith.constant 0 : index
    %351 = vector.load %arg11[%c0_348, %c0_349, %c32, %c0_350] : memref<2x1x256x16xf32, #tpu.memory_space<vmem>>, vector<1x1x16x16xf32>
    %352 = vector.shape_cast %351 : vector<1x1x16x16xf32> to vector<16x16xf32>
    %353 = arith.addf %350, %352 : vector<16x16xf32>
    %c0_351 = arith.constant 0 : index
    %c0_352 = arith.constant 0 : index
    %c32_353 = arith.constant 32 : index
    %c0_354 = arith.constant 0 : index
    %354 = vector.load %arg13[%c0_351, %c0_352, %c32_353, %c0_354] : memref<2x1x256x16xf32, #tpu.memory_space<vmem>>, vector<1x1x16x16xf32>
    %355 = vector.shape_cast %354 : vector<1x1x16x16xf32> to vector<16x16xf32>
    %356 = vector.shape_cast %353 : vector<16x16xf32> to vector<1x1x16x16xf32>
    tpu.vector_store %arg13[%c0_351, %c0_352, %c32_353, %c0_354], %356 {strides = array<i32>} : memref<2x1x256x16xf32, #tpu.memory_space<vmem>>, vector<1x1x16x16xf32>,
    %c0_355 = arith.constant 0 : index
    %c0_356 = arith.constant 0 : index
    %c73 = arith.constant 73 : index
    %357 = vector.load %arg15[%c0_355, %c0_356, %c73] : memref<2x8x384xf32, #tpu.memory_space<vmem>>, vector<1x8x16xf32>
    %358 = vector.shape_cast %357 : vector<1x8x16xf32> to vector<8x16xf32>
    %c1_357 = arith.constant 1 : index
    %c0_358 = arith.constant 0 : index
    %c73_359 = arith.constant 73 : index
    %359 = vector.load %arg16[%c1_357, %c0_358, %c73_359] : memref<2x8x384xf32, #tpu.memory_space<vmem>>, vector<1x8x16xf32>
    %360 = vector.shape_cast %359 : vector<1x8x16xf32> to vector<8x16xf32>
    %cst_360 = arith.constant dense<0.000000e+00> : vector<16x16xf32>
    %361 = tpu.matmul %358, %360, %cst_360 {dimension_numbers = #tpu.dot_dimension_numbers<[0], [0], [1], [1], [0, 1, 1, 1], [], []>} : vector<8x16xf32>, vector<8x16xf32>, vector<16x16xf32> -> vector<16x16xf32>
    %cst_361 = arith.constant 1.250000e-01 : f32
    %362 = vector.broadcast %cst_361 : f32 to vector<16x16xf32>
    %363 = arith.mulf %361, %362 : vector<16x16xf32>
    %c0_362 = arith.constant 0 : index
    %c0_363 = arith.constant 0 : index
    %c48 = arith.constant 48 : index
    %c0_364 = arith.constant 0 : index
    %364 = vector.load %arg11[%c0_362, %c0_363, %c48, %c0_364] : memref<2x1x256x16xf32, #tpu.memory_space<vmem>>, vector<1x1x16x16xf32>
    %365 = vector.shape_cast %364 : vector<1x1x16x16xf32> to vector<16x16xf32>
    %366 = arith.addf %363, %365 : vector<16x16xf32>
    %c0_365 = arith.constant 0 : index
    %c0_366 = arith.constant 0 : index
    %c48_367 = arith.constant 48 : index
    %c0_368 = arith.constant 0 : index
    %367 = vector.load %arg13[%c0_365, %c0_366, %c48_367, %c0_368] : memref<2x1x256x16xf32, #tpu.memory_space<vmem>>, vector<1x1x16x16xf32>
    %368 = vector.shape_cast %367 : vector<1x1x16x16xf32> to vector<16x16xf32>
    %369 = vector.shape_cast %366 : vector<16x16xf32> to vector<1x1x16x16xf32>
    tpu.vector_store %arg13[%c0_365, %c0_366, %c48_367, %c0_368], %369 {strides = array<i32>} : memref<2x1x256x16xf32, #tpu.memory_space<vmem>>, vector<1x1x16x16xf32>,
    %c0_369 = arith.constant 0 : index
    %c0_370 = arith.constant 0 : index
    %c91 = arith.constant 91 : index
    %370 = vector.load %arg15[%c0_369, %c0_370, %c91] : memref<2x8x384xf32, #tpu.memory_space<vmem>>, vector<1x8x16xf32>
    %371 = vector.shape_cast %370 : vector<1x8x16xf32> to vector<8x16xf32>
    %c1_371 = arith.constant 1 : index
    %c0_372 = arith.constant 0 : index
    %c91_373 = arith.constant 91 : index
    %372 = vector.load %arg16[%c1_371, %c0_372, %c91_373] : memref<2x8x384xf32, #tpu.memory_space<vmem>>, vector<1x8x16xf32>
    %373 = vector.shape_cast %372 : vector<1x8x16xf32> to vector<8x16xf32>
    %cst_374 = arith.constant dense<0.000000e+00> : vector<16x16xf32>
    %374 = tpu.matmul %371, %373, %cst_374 {dimension_numbers = #tpu.dot_dimension_numbers<[0], [0], [1], [1], [0, 1, 1, 1], [], []>} : vector<8x16xf32>, vector<8x16xf32>, vector<16x16xf32> -> vector<16x16xf32>
    %cst_375 = arith.constant 1.250000e-01 : f32
    %375 = vector.broadcast %cst_375 : f32 to vector<16x16xf32>
    %376 = arith.mulf %374, %375 : vector<16x16xf32>
    %c0_376 = arith.constant 0 : index
    %c0_377 = arith.constant 0 : index
    %c64 = arith.constant 64 : index
    %c0_378 = arith.constant 0 : index
    %377 = vector.load %arg11[%c0_376, %c0_377, %c64, %c0_378] : memref<2x1x256x16xf32, #tpu.memory_space<vmem>>, vector<1x1x16x16xf32>
    %378 = vector.shape_cast %377 : vector<1x1x16x16xf32> to vector<16x16xf32>
    %379 = arith.addf %376, %378 : vector<16x16xf32>
    %c0_379 = arith.constant 0 : index
    %c0_380 = arith.constant 0 : index
    %c64_381 = arith.constant 64 : index
    %c0_382 = arith.constant 0 : index
    %380 = vector.load %arg13[%c0_379, %c0_380, %c64_381, %c0_382] : memref<2x1x256x16xf32, #tpu.memory_space<vmem>>, vector<1x1x16x16xf32>
    %381 = vector.shape_cast %380 : vector<1x1x16x16xf32> to vector<16x16xf32>
    %382 = vector.shape_cast %379 : vector<16x16xf32> to vector<1x1x16x16xf32>
    tpu.vector_store %arg13[%c0_379, %c0_380, %c64_381, %c0_382], %382 {strides = array<i32>} : memref<2x1x256x16xf32, #tpu.memory_space<vmem>>, vector<1x1x16x16xf32>,
    %c0_383 = arith.constant 0 : index
    %c0_384 = arith.constant 0 : index
    %c109 = arith.constant 109 : index
    %383 = vector.load %arg15[%c0_383, %c0_384, %c109] : memref<2x8x384xf32, #tpu.memory_space<vmem>>, vector<1x8x16xf32>
    %384 = vector.shape_cast %383 : vector<1x8x16xf32> to vector<8x16xf32>
    %c1_385 = arith.constant 1 : index
    %c0_386 = arith.constant 0 : index
    %c109_387 = arith.constant 109 : index
    %385 = vector.load %arg16[%c1_385, %c0_386, %c109_387] : memref<2x8x384xf32, #tpu.memory_space<vmem>>, vector<1x8x16xf32>
    %386 = vector.shape_cast %385 : vector<1x8x16xf32> to vector<8x16xf32>
    %cst_388 = arith.constant dense<0.000000e+00> : vector<16x16xf32>
    %387 = tpu.matmul %384, %386, %cst_388 {dimension_numbers = #tpu.dot_dimension_numbers<[0], [0], [1], [1], [0, 1, 1, 1], [], []>} : vector<8x16xf32>, vector<8x16xf32>, vector<16x16xf32> -> vector<16x16xf32>
    %cst_389 = arith.constant 1.250000e-01 : f32
    %388 = vector.broadcast %cst_389 : f32 to vector<16x16xf32>
    %389 = arith.mulf %387, %388 : vector<16x16xf32>
    %c0_390 = arith.constant 0 : index
    %c0_391 = arith.constant 0 : index
    %c80 = arith.constant 80 : index
    %c0_392 = arith.constant 0 : index
    %390 = vector.load %arg11[%c0_390, %c0_391, %c80, %c0_392] : memref<2x1x256x16xf32, #tpu.memory_space<vmem>>, vector<1x1x16x16xf32>
    %391 = vector.shape_cast %390 : vector<1x1x16x16xf32> to vector<16x16xf32>
    %392 = arith.addf %389, %391 : vector<16x16xf32>
    %c0_393 = arith.constant 0 : index
    %c0_394 = arith.constant 0 : index
    %c80_395 = arith.constant 80 : index
    %c0_396 = arith.constant 0 : index
    %393 = vector.load %arg13[%c0_393, %c0_394, %c80_395, %c0_396] : memref<2x1x256x16xf32, #tpu.memory_space<vmem>>, vector<1x1x16x16xf32>
    %394 = vector.shape_cast %393 : vector<1x1x16x16xf32> to vector<16x16xf32>
    %395 = vector.shape_cast %392 : vector<16x16xf32> to vector<1x1x16x16xf32>
    tpu.vector_store %arg13[%c0_393, %c0_394, %c80_395, %c0_396], %395 {strides = array<i32>} : memref<2x1x256x16xf32, #tpu.memory_space<vmem>>, vector<1x1x16x16xf32>,
    %c0_397 = arith.constant 0 : index
    %c0_398 = arith.constant 0 : index
    %c127 = arith.constant 127 : index
    %396 = vector.load %arg15[%c0_397, %c0_398, %c127] : memref<2x8x384xf32, #tpu.memory_space<vmem>>, vector<1x8x16xf32>
    %397 = vector.shape_cast %396 : vector<1x8x16xf32> to vector<8x16xf32>
    %c1_399 = arith.constant 1 : index
    %c0_400 = arith.constant 0 : index
    %c127_401 = arith.constant 127 : index
    %398 = vector.load %arg16[%c1_399, %c0_400, %c127_401] : memref<2x8x384xf32, #tpu.memory_space<vmem>>, vector<1x8x16xf32>
    %399 = vector.shape_cast %398 : vector<1x8x16xf32> to vector<8x16xf32>
    %cst_402 = arith.constant dense<0.000000e+00> : vector<16x16xf32>
    %400 = tpu.matmul %397, %399, %cst_402 {dimension_numbers = #tpu.dot_dimension_numbers<[0], [0], [1], [1], [0, 1, 1, 1], [], []>} : vector<8x16xf32>, vector<8x16xf32>, vector<16x16xf32> -> vector<16x16xf32>
    %cst_403 = arith.constant 1.250000e-01 : f32
    %401 = vector.broadcast %cst_403 : f32 to vector<16x16xf32>
    %402 = arith.mulf %400, %401 : vector<16x16xf32>
    %c0_404 = arith.constant 0 : index
    %c0_405 = arith.constant 0 : index
    %c96 = arith.constant 96 : index
    %c0_406 = arith.constant 0 : index
    %403 = vector.load %arg11[%c0_404, %c0_405, %c96, %c0_406] : memref<2x1x256x16xf32, #tpu.memory_space<vmem>>, vector<1x1x16x16xf32>
    %404 = vector.shape_cast %403 : vector<1x1x16x16xf32> to vector<16x16xf32>
    %405 = arith.addf %402, %404 : vector<16x16xf32>
    %c0_407 = arith.constant 0 : index
    %c0_408 = arith.constant 0 : index
    %c96_409 = arith.constant 96 : index
    %c0_410 = arith.constant 0 : index
    %406 = vector.load %arg13[%c0_407, %c0_408, %c96_409, %c0_410] : memref<2x1x256x16xf32, #tpu.memory_space<vmem>>, vector<1x1x16x16xf32>
    %407 = vector.shape_cast %406 : vector<1x1x16x16xf32> to vector<16x16xf32>
    %408 = vector.shape_cast %405 : vector<16x16xf32> to vector<1x1x16x16xf32>
    tpu.vector_store %arg13[%c0_407, %c0_408, %c96_409, %c0_410], %408 {strides = array<i32>} : memref<2x1x256x16xf32, #tpu.memory_space<vmem>>, vector<1x1x16x16xf32>,
    %c0_411 = arith.constant 0 : index
    %c0_412 = arith.constant 0 : index
    %c145 = arith.constant 145 : index
    %409 = vector.load %arg15[%c0_411, %c0_412, %c145] : memref<2x8x384xf32, #tpu.memory_space<vmem>>, vector<1x8x16xf32>
    %410 = vector.shape_cast %409 : vector<1x8x16xf32> to vector<8x16xf32>
    %c1_413 = arith.constant 1 : index
    %c0_414 = arith.constant 0 : index
    %c145_415 = arith.constant 145 : index
    %411 = vector.load %arg16[%c1_413, %c0_414, %c145_415] : memref<2x8x384xf32, #tpu.memory_space<vmem>>, vector<1x8x16xf32>
    %412 = vector.shape_cast %411 : vector<1x8x16xf32> to vector<8x16xf32>
    %cst_416 = arith.constant dense<0.000000e+00> : vector<16x16xf32>
    %413 = tpu.matmul %410, %412, %cst_416 {dimension_numbers = #tpu.dot_dimension_numbers<[0], [0], [1], [1], [0, 1, 1, 1], [], []>} : vector<8x16xf32>, vector<8x16xf32>, vector<16x16xf32> -> vector<16x16xf32>
    %cst_417 = arith.constant 1.250000e-01 : f32
    %414 = vector.broadcast %cst_417 : f32 to vector<16x16xf32>
    %415 = arith.mulf %413, %414 : vector<16x16xf32>
    %c0_418 = arith.constant 0 : index
    %c0_419 = arith.constant 0 : index
    %c112 = arith.constant 112 : index
    %c0_420 = arith.constant 0 : index
    %416 = vector.load %arg11[%c0_418, %c0_419, %c112, %c0_420] : memref<2x1x256x16xf32, #tpu.memory_space<vmem>>, vector<1x1x16x16xf32>
    %417 = vector.shape_cast %416 : vector<1x1x16x16xf32> to vector<16x16xf32>
    %418 = arith.addf %415, %417 : vector<16x16xf32>
    %c0_421 = arith.constant 0 : index
    %c0_422 = arith.constant 0 : index
    %c112_423 = arith.constant 112 : index
    %c0_424 = arith.constant 0 : index
    %419 = vector.load %arg13[%c0_421, %c0_422, %c112_423, %c0_424] : memref<2x1x256x16xf32, #tpu.memory_space<vmem>>, vector<1x1x16x16xf32>
    %420 = vector.shape_cast %419 : vector<1x1x16x16xf32> to vector<16x16xf32>
    %421 = vector.shape_cast %418 : vector<16x16xf32> to vector<1x1x16x16xf32>
    tpu.vector_store %arg13[%c0_421, %c0_422, %c112_423, %c0_424], %421 {strides = array<i32>} : memref<2x1x256x16xf32, #tpu.memory_space<vmem>>, vector<1x1x16x16xf32>,
    %c0_425 = arith.constant 0 : index
    %c0_426 = arith.constant 0 : index
    %c163 = arith.constant 163 : index
    %422 = vector.load %arg15[%c0_425, %c0_426, %c163] : memref<2x8x384xf32, #tpu.memory_space<vmem>>, vector<1x8x16xf32>
    %423 = vector.shape_cast %422 : vector<1x8x16xf32> to vector<8x16xf32>
    %c1_427 = arith.constant 1 : index
    %c0_428 = arith.constant 0 : index
    %c163_429 = arith.constant 163 : index
    %424 = vector.load %arg16[%c1_427, %c0_428, %c163_429] : memref<2x8x384xf32, #tpu.memory_space<vmem>>, vector<1x8x16xf32>
    %425 = vector.shape_cast %424 : vector<1x8x16xf32> to vector<8x16xf32>
    %cst_430 = arith.constant dense<0.000000e+00> : vector<16x16xf32>
    %426 = tpu.matmul %423, %425, %cst_430 {dimension_numbers = #tpu.dot_dimension_numbers<[0], [0], [1], [1], [0, 1, 1, 1], [], []>} : vector<8x16xf32>, vector<8x16xf32>, vector<16x16xf32> -> vector<16x16xf32>
    %cst_431 = arith.constant 1.250000e-01 : f32
    %427 = vector.broadcast %cst_431 : f32 to vector<16x16xf32>
    %428 = arith.mulf %426, %427 : vector<16x16xf32>
    %c0_432 = arith.constant 0 : index
    %c0_433 = arith.constant 0 : index
    %c128 = arith.constant 128 : index
    %c0_434 = arith.constant 0 : index
    %429 = vector.load %arg11[%c0_432, %c0_433, %c128, %c0_434] : memref<2x1x256x16xf32, #tpu.memory_space<vmem>>, vector<1x1x16x16xf32>
    %430 = vector.shape_cast %429 : vector<1x1x16x16xf32> to vector<16x16xf32>
    %431 = arith.addf %428, %430 : vector<16x16xf32>
    %c0_435 = arith.constant 0 : index
    %c0_436 = arith.constant 0 : index
    %c128_437 = arith.constant 128 : index
    %c0_438 = arith.constant 0 : index
    %432 = vector.load %arg13[%c0_435, %c0_436, %c128_437, %c0_438] : memref<2x1x256x16xf32, #tpu.memory_space<vmem>>, vector<1x1x16x16xf32>
    %433 = vector.shape_cast %432 : vector<1x1x16x16xf32> to vector<16x16xf32>
    %434 = vector.shape_cast %431 : vector<16x16xf32> to vector<1x1x16x16xf32>
    tpu.vector_store %arg13[%c0_435, %c0_436, %c128_437, %c0_438], %434 {strides = array<i32>} : memref<2x1x256x16xf32, #tpu.memory_space<vmem>>, vector<1x1x16x16xf32>,
    %c0_439 = arith.constant 0 : index
    %c0_440 = arith.constant 0 : index
    %c181 = arith.constant 181 : index
    %435 = vector.load %arg15[%c0_439, %c0_440, %c181] : memref<2x8x384xf32, #tpu.memory_space<vmem>>, vector<1x8x16xf32>
    %436 = vector.shape_cast %435 : vector<1x8x16xf32> to vector<8x16xf32>
    %c1_441 = arith.constant 1 : index
    %c0_442 = arith.constant 0 : index
    %c181_443 = arith.constant 181 : index
    %437 = vector.load %arg16[%c1_441, %c0_442, %c181_443] : memref<2x8x384xf32, #tpu.memory_space<vmem>>, vector<1x8x16xf32>
    %438 = vector.shape_cast %437 : vector<1x8x16xf32> to vector<8x16xf32>
    %cst_444 = arith.constant dense<0.000000e+00> : vector<16x16xf32>
    %439 = tpu.matmul %436, %438, %cst_444 {dimension_numbers = #tpu.dot_dimension_numbers<[0], [0], [1], [1], [0, 1, 1, 1], [], []>} : vector<8x16xf32>, vector<8x16xf32>, vector<16x16xf32> -> vector<16x16xf32>
    %cst_445 = arith.constant 1.250000e-01 : f32
    %440 = vector.broadcast %cst_445 : f32 to vector<16x16xf32>
    %441 = arith.mulf %439, %440 : vector<16x16xf32>
    %c0_446 = arith.constant 0 : index
    %c0_447 = arith.constant 0 : index
    %c144 = arith.constant 144 : index
    %c0_448 = arith.constant 0 : index
    %442 = vector.load %arg11[%c0_446, %c0_447, %c144, %c0_448] : memref<2x1x256x16xf32, #tpu.memory_space<vmem>>, vector<1x1x16x16xf32>
    %443 = vector.shape_cast %442 : vector<1x1x16x16xf32> to vector<16x16xf32>
    %444 = arith.addf %441, %443 : vector<16x16xf32>
    %c0_449 = arith.constant 0 : index
    %c0_450 = arith.constant 0 : index
    %c144_451 = arith.constant 144 : index
    %c0_452 = arith.constant 0 : index
    %445 = vector.load %arg13[%c0_449, %c0_450, %c144_451, %c0_452] : memref<2x1x256x16xf32, #tpu.memory_space<vmem>>, vector<1x1x16x16xf32>
    %446 = vector.shape_cast %445 : vector<1x1x16x16xf32> to vector<16x16xf32>
    %447 = vector.shape_cast %444 : vector<16x16xf32> to vector<1x1x16x16xf32>
    tpu.vector_store %arg13[%c0_449, %c0_450, %c144_451, %c0_452], %447 {strides = array<i32>} : memref<2x1x256x16xf32, #tpu.memory_space<vmem>>, vector<1x1x16x16xf32>,
    %c0_453 = arith.constant 0 : index
    %c0_454 = arith.constant 0 : index
    %c199 = arith.constant 199 : index
    %448 = vector.load %arg15[%c0_453, %c0_454, %c199] : memref<2x8x384xf32, #tpu.memory_space<vmem>>, vector<1x8x16xf32>
    %449 = vector.shape_cast %448 : vector<1x8x16xf32> to vector<8x16xf32>
    %c1_455 = arith.constant 1 : index
    %c0_456 = arith.constant 0 : index
    %c199_457 = arith.constant 199 : index
    %450 = vector.load %arg16[%c1_455, %c0_456, %c199_457] : memref<2x8x384xf32, #tpu.memory_space<vmem>>, vector<1x8x16xf32>
    %451 = vector.shape_cast %450 : vector<1x8x16xf32> to vector<8x16xf32>
    %cst_458 = arith.constant dense<0.000000e+00> : vector<16x16xf32>
    %452 = tpu.matmul %449, %451, %cst_458 {dimension_numbers = #tpu.dot_dimension_numbers<[0], [0], [1], [1], [0, 1, 1, 1], [], []>} : vector<8x16xf32>, vector<8x16xf32>, vector<16x16xf32> -> vector<16x16xf32>
    %cst_459 = arith.constant 1.250000e-01 : f32
    %453 = vector.broadcast %cst_459 : f32 to vector<16x16xf32>
    %454 = arith.mulf %452, %453 : vector<16x16xf32>
    %c0_460 = arith.constant 0 : index
    %c0_461 = arith.constant 0 : index
    %c160 = arith.constant 160 : index
    %c0_462 = arith.constant 0 : index
    %455 = vector.load %arg11[%c0_460, %c0_461, %c160, %c0_462] : memref<2x1x256x16xf32, #tpu.memory_space<vmem>>, vector<1x1x16x16xf32>
    %456 = vector.shape_cast %455 : vector<1x1x16x16xf32> to vector<16x16xf32>
    %457 = arith.addf %454, %456 : vector<16x16xf32>
    %c0_463 = arith.constant 0 : index
    %c0_464 = arith.constant 0 : index
    %c160_465 = arith.constant 160 : index
    %c0_466 = arith.constant 0 : index
    %458 = vector.load %arg13[%c0_463, %c0_464, %c160_465, %c0_466] : memref<2x1x256x16xf32, #tpu.memory_space<vmem>>, vector<1x1x16x16xf32>
    %459 = vector.shape_cast %458 : vector<1x1x16x16xf32> to vector<16x16xf32>
    %460 = vector.shape_cast %457 : vector<16x16xf32> to vector<1x1x16x16xf32>
    tpu.vector_store %arg13[%c0_463, %c0_464, %c160_465, %c0_466], %460 {strides = array<i32>} : memref<2x1x256x16xf32, #tpu.memory_space<vmem>>, vector<1x1x16x16xf32>,
    %c0_467 = arith.constant 0 : index
    %c0_468 = arith.constant 0 : index
    %c217 = arith.constant 217 : index
    %461 = vector.load %arg15[%c0_467, %c0_468, %c217] : memref<2x8x384xf32, #tpu.memory_space<vmem>>, vector<1x8x16xf32>
    %462 = vector.shape_cast %461 : vector<1x8x16xf32> to vector<8x16xf32>
    %c1_469 = arith.constant 1 : index
    %c0_470 = arith.constant 0 : index
    %c217_471 = arith.constant 217 : index
    %463 = vector.load %arg16[%c1_469, %c0_470, %c217_471] : memref<2x8x384xf32, #tpu.memory_space<vmem>>, vector<1x8x16xf32>
    %464 = vector.shape_cast %463 : vector<1x8x16xf32> to vector<8x16xf32>
    %cst_472 = arith.constant dense<0.000000e+00> : vector<16x16xf32>
    %465 = tpu.matmul %462, %464, %cst_472 {dimension_numbers = #tpu.dot_dimension_numbers<[0], [0], [1], [1], [0, 1, 1, 1], [], []>} : vector<8x16xf32>, vector<8x16xf32>, vector<16x16xf32> -> vector<16x16xf32>
    %cst_473 = arith.constant 1.250000e-01 : f32
    %466 = vector.broadcast %cst_473 : f32 to vector<16x16xf32>
    %467 = arith.mulf %465, %466 : vector<16x16xf32>
    %c0_474 = arith.constant 0 : index
    %c0_475 = arith.constant 0 : index
    %c176 = arith.constant 176 : index
    %c0_476 = arith.constant 0 : index
    %468 = vector.load %arg11[%c0_474, %c0_475, %c176, %c0_476] : memref<2x1x256x16xf32, #tpu.memory_space<vmem>>, vector<1x1x16x16xf32>
    %469 = vector.shape_cast %468 : vector<1x1x16x16xf32> to vector<16x16xf32>
    %470 = arith.addf %467, %469 : vector<16x16xf32>
    %c0_477 = arith.constant 0 : index
    %c0_478 = arith.constant 0 : index
    %c176_479 = arith.constant 176 : index
    %c0_480 = arith.constant 0 : index
    %471 = vector.load %arg13[%c0_477, %c0_478, %c176_479, %c0_480] : memref<2x1x256x16xf32, #tpu.memory_space<vmem>>, vector<1x1x16x16xf32>
    %472 = vector.shape_cast %471 : vector<1x1x16x16xf32> to vector<16x16xf32>
    %473 = vector.shape_cast %470 : vector<16x16xf32> to vector<1x1x16x16xf32>
    tpu.vector_store %arg13[%c0_477, %c0_478, %c176_479, %c0_480], %473 {strides = array<i32>} : memref<2x1x256x16xf32, #tpu.memory_space<vmem>>, vector<1x1x16x16xf32>,
    %c0_481 = arith.constant 0 : index
    %c0_482 = arith.constant 0 : index
    %c235 = arith.constant 235 : index
    %474 = vector.load %arg15[%c0_481, %c0_482, %c235] : memref<2x8x384xf32, #tpu.memory_space<vmem>>, vector<1x8x16xf32>
    %475 = vector.shape_cast %474 : vector<1x8x16xf32> to vector<8x16xf32>
    %c1_483 = arith.constant 1 : index
    %c0_484 = arith.constant 0 : index
    %c235_485 = arith.constant 235 : index
    %476 = vector.load %arg16[%c1_483, %c0_484, %c235_485] : memref<2x8x384xf32, #tpu.memory_space<vmem>>, vector<1x8x16xf32>
    %477 = vector.shape_cast %476 : vector<1x8x16xf32> to vector<8x16xf32>
    %cst_486 = arith.constant dense<0.000000e+00> : vector<16x16xf32>
    %478 = tpu.matmul %475, %477, %cst_486 {dimension_numbers = #tpu.dot_dimension_numbers<[0], [0], [1], [1], [0, 1, 1, 1], [], []>} : vector<8x16xf32>, vector<8x16xf32>, vector<16x16xf32> -> vector<16x16xf32>
    %cst_487 = arith.constant 1.250000e-01 : f32
    %479 = vector.broadcast %cst_487 : f32 to vector<16x16xf32>
    %480 = arith.mulf %478, %479 : vector<16x16xf32>
    %c0_488 = arith.constant 0 : index
    %c0_489 = arith.constant 0 : index
    %c192 = arith.constant 192 : index
    %c0_490 = arith.constant 0 : index
    %481 = vector.load %arg11[%c0_488, %c0_489, %c192, %c0_490] : memref<2x1x256x16xf32, #tpu.memory_space<vmem>>, vector<1x1x16x16xf32>
    %482 = vector.shape_cast %481 : vector<1x1x16x16xf32> to vector<16x16xf32>
    %483 = arith.addf %480, %482 : vector<16x16xf32>
    %c0_491 = arith.constant 0 : index
    %c0_492 = arith.constant 0 : index
    %c192_493 = arith.constant 192 : index
    %c0_494 = arith.constant 0 : index
    %484 = vector.load %arg13[%c0_491, %c0_492, %c192_493, %c0_494] : memref<2x1x256x16xf32, #tpu.memory_space<vmem>>, vector<1x1x16x16xf32>
    %485 = vector.shape_cast %484 : vector<1x1x16x16xf32> to vector<16x16xf32>
    %486 = vector.shape_cast %483 : vector<16x16xf32> to vector<1x1x16x16xf32>
    tpu.vector_store %arg13[%c0_491, %c0_492, %c192_493, %c0_494], %486 {strides = array<i32>} : memref<2x1x256x16xf32, #tpu.memory_space<vmem>>, vector<1x1x16x16xf32>,
    %c0_495 = arith.constant 0 : index
    %c0_496 = arith.constant 0 : index
    %c253 = arith.constant 253 : index
    %487 = vector.load %arg15[%c0_495, %c0_496, %c253] : memref<2x8x384xf32, #tpu.memory_space<vmem>>, vector<1x8x16xf32>
    %488 = vector.shape_cast %487 : vector<1x8x16xf32> to vector<8x16xf32>
    %c1_497 = arith.constant 1 : index
    %c0_498 = arith.constant 0 : index
    %c253_499 = arith.constant 253 : index
    %489 = vector.load %arg16[%c1_497, %c0_498, %c253_499] : memref<2x8x384xf32, #tpu.memory_space<vmem>>, vector<1x8x16xf32>
    %490 = vector.shape_cast %489 : vector<1x8x16xf32> to vector<8x16xf32>
    %cst_500 = arith.constant dense<0.000000e+00> : vector<16x16xf32>
    %491 = tpu.matmul %488, %490, %cst_500 {dimension_numbers = #tpu.dot_dimension_numbers<[0], [0], [1], [1], [0, 1, 1, 1], [], []>} : vector<8x16xf32>, vector<8x16xf32>, vector<16x16xf32> -> vector<16x16xf32>
    %cst_501 = arith.constant 1.250000e-01 : f32
    %492 = vector.broadcast %cst_501 : f32 to vector<16x16xf32>
    %493 = arith.mulf %491, %492 : vector<16x16xf32>
    %c0_502 = arith.constant 0 : index
    %c0_503 = arith.constant 0 : index
    %c208 = arith.constant 208 : index
    %c0_504 = arith.constant 0 : index
    %494 = vector.load %arg11[%c0_502, %c0_503, %c208, %c0_504] : memref<2x1x256x16xf32, #tpu.memory_space<vmem>>, vector<1x1x16x16xf32>
    %495 = vector.shape_cast %494 : vector<1x1x16x16xf32> to vector<16x16xf32>
    %496 = arith.addf %493, %495 : vector<16x16xf32>
    %c0_505 = arith.constant 0 : index
    %c0_506 = arith.constant 0 : index
    %c208_507 = arith.constant 208 : index
    %c0_508 = arith.constant 0 : index
    %497 = vector.load %arg13[%c0_505, %c0_506, %c208_507, %c0_508] : memref<2x1x256x16xf32, #tpu.memory_space<vmem>>, vector<1x1x16x16xf32>
    %498 = vector.shape_cast %497 : vector<1x1x16x16xf32> to vector<16x16xf32>
    %499 = vector.shape_cast %496 : vector<16x16xf32> to vector<1x1x16x16xf32>
    tpu.vector_store %arg13[%c0_505, %c0_506, %c208_507, %c0_508], %499 {strides = array<i32>} : memref<2x1x256x16xf32, #tpu.memory_space<vmem>>, vector<1x1x16x16xf32>,
    %c0_509 = arith.constant 0 : index
    %c0_510 = arith.constant 0 : index
    %c271 = arith.constant 271 : index
    %500 = vector.load %arg15[%c0_509, %c0_510, %c271] : memref<2x8x384xf32, #tpu.memory_space<vmem>>, vector<1x8x16xf32>
    %501 = vector.shape_cast %500 : vector<1x8x16xf32> to vector<8x16xf32>
    %c1_511 = arith.constant 1 : index
    %c0_512 = arith.constant 0 : index
    %c271_513 = arith.constant 271 : index
    %502 = vector.load %arg16[%c1_511, %c0_512, %c271_513] : memref<2x8x384xf32, #tpu.memory_space<vmem>>, vector<1x8x16xf32>
    %503 = vector.shape_cast %502 : vector<1x8x16xf32> to vector<8x16xf32>
    %cst_514 = arith.constant dense<0.000000e+00> : vector<16x16xf32>
    %504 = tpu.matmul %501, %503, %cst_514 {dimension_numbers = #tpu.dot_dimension_numbers<[0], [0], [1], [1], [0, 1, 1, 1], [], []>} : vector<8x16xf32>, vector<8x16xf32>, vector<16x16xf32> -> vector<16x16xf32>
    %cst_515 = arith.constant 1.250000e-01 : f32
    %505 = vector.broadcast %cst_515 : f32 to vector<16x16xf32>
    %506 = arith.mulf %504, %505 : vector<16x16xf32>
    %c0_516 = arith.constant 0 : index
    %c0_517 = arith.constant 0 : index
    %c224 = arith.constant 224 : index
    %c0_518 = arith.constant 0 : index
    %507 = vector.load %arg11[%c0_516, %c0_517, %c224, %c0_518] : memref<2x1x256x16xf32, #tpu.memory_space<vmem>>, vector<1x1x16x16xf32>
    %508 = vector.shape_cast %507 : vector<1x1x16x16xf32> to vector<16x16xf32>
    %509 = arith.addf %506, %508 : vector<16x16xf32>
    %c0_519 = arith.constant 0 : index
    %c0_520 = arith.constant 0 : index
    %c224_521 = arith.constant 224 : index
    %c0_522 = arith.constant 0 : index
    %510 = vector.load %arg13[%c0_519, %c0_520, %c224_521, %c0_522] : memref<2x1x256x16xf32, #tpu.memory_space<vmem>>, vector<1x1x16x16xf32>
    %511 = vector.shape_cast %510 : vector<1x1x16x16xf32> to vector<16x16xf32>
    %512 = vector.shape_cast %509 : vector<16x16xf32> to vector<1x1x16x16xf32>
    tpu.vector_store %arg13[%c0_519, %c0_520, %c224_521, %c0_522], %512 {strides = array<i32>} : memref<2x1x256x16xf32, #tpu.memory_space<vmem>>, vector<1x1x16x16xf32>,
    %c0_523 = arith.constant 0 : index
    %c0_524 = arith.constant 0 : index
    %c289 = arith.constant 289 : index
    %513 = vector.load %arg15[%c0_523, %c0_524, %c289] : memref<2x8x384xf32, #tpu.memory_space<vmem>>, vector<1x8x16xf32>
    %514 = vector.shape_cast %513 : vector<1x8x16xf32> to vector<8x16xf32>
    %c1_525 = arith.constant 1 : index
    %c0_526 = arith.constant 0 : index
    %c289_527 = arith.constant 289 : index
    %515 = vector.load %arg16[%c1_525, %c0_526, %c289_527] : memref<2x8x384xf32, #tpu.memory_space<vmem>>, vector<1x8x16xf32>
    %516 = vector.shape_cast %515 : vector<1x8x16xf32> to vector<8x16xf32>
    %cst_528 = arith.constant dense<0.000000e+00> : vector<16x16xf32>
    %517 = tpu.matmul %514, %516, %cst_528 {dimension_numbers = #tpu.dot_dimension_numbers<[0], [0], [1], [1], [0, 1, 1, 1], [], []>} : vector<8x16xf32>, vector<8x16xf32>, vector<16x16xf32> -> vector<16x16xf32>
    %cst_529 = arith.constant 1.250000e-01 : f32
    %518 = vector.broadcast %cst_529 : f32 to vector<16x16xf32>
    %519 = arith.mulf %517, %518 : vector<16x16xf32>
    %c0_530 = arith.constant 0 : index
    %c0_531 = arith.constant 0 : index
    %c240 = arith.constant 240 : index
    %c0_532 = arith.constant 0 : index
    %520 = vector.load %arg11[%c0_530, %c0_531, %c240, %c0_532] : memref<2x1x256x16xf32, #tpu.memory_space<vmem>>, vector<1x1x16x16xf32>
    %521 = vector.shape_cast %520 : vector<1x1x16x16xf32> to vector<16x16xf32>
    %522 = arith.addf %519, %521 : vector<16x16xf32>
    %c0_533 = arith.constant 0 : index
    %c0_534 = arith.constant 0 : index
    %c240_535 = arith.constant 240 : index
    %c0_536 = arith.constant 0 : index
    %523 = vector.load %arg13[%c0_533, %c0_534, %c240_535, %c0_536] : memref<2x1x256x16xf32, #tpu.memory_space<vmem>>, vector<1x1x16x16xf32>
    %524 = vector.shape_cast %523 : vector<1x1x16x16xf32> to vector<16x16xf32>
    %525 = vector.shape_cast %522 : vector<16x16xf32> to vector<1x1x16x16xf32>
    tpu.vector_store %arg13[%c0_533, %c0_534, %c240_535, %c0_536], %525 {strides = array<i32>} : memref<2x1x256x16xf32, #tpu.memory_space<vmem>>, vector<1x1x16x16xf32>,
    %c1_537 = arith.constant 1 : index
    %c0_538 = arith.constant 0 : index
    %c19_539 = arith.constant 19 : index
    %526 = vector.load %arg15[%c1_537, %c0_538, %c19_539] : memref<2x8x384xf32, #tpu.memory_space<vmem>>, vector<1x8x16xf32>
    %527 = vector.shape_cast %526 : vector<1x8x16xf32> to vector<8x16xf32>
    %c0_540 = arith.constant 0 : index
    %c0_541 = arith.constant 0 : index
    %c19_542 = arith.constant 19 : index
    %528 = vector.load %arg16[%c0_540, %c0_541, %c19_542] : memref<2x8x384xf32, #tpu.memory_space<vmem>>, vector<1x8x16xf32>
    %529 = vector.shape_cast %528 : vector<1x8x16xf32> to vector<8x16xf32>
    %cst_543 = arith.constant dense<0.000000e+00> : vector<16x16xf32>
    %530 = tpu.matmul %527, %529, %cst_543 {dimension_numbers = #tpu.dot_dimension_numbers<[0], [0], [1], [1], [0, 1, 1, 1], [], []>} : vector<8x16xf32>, vector<8x16xf32>, vector<16x16xf32> -> vector<16x16xf32>
    %cst_544 = arith.constant 1.250000e-01 : f32
    %531 = vector.broadcast %cst_544 : f32 to vector<16x16xf32>
    %532 = arith.mulf %530, %531 : vector<16x16xf32>
    %c1_545 = arith.constant 1 : index
    %c0_546 = arith.constant 0 : index
    %c0_547 = arith.constant 0 : index
    %c0_548 = arith.constant 0 : index
    %533 = vector.load %arg11[%c1_545, %c0_546, %c0_547, %c0_548] : memref<2x1x256x16xf32, #tpu.memory_space<vmem>>, vector<1x1x16x16xf32>
    %534 = vector.shape_cast %533 : vector<1x1x16x16xf32> to vector<16x16xf32>
    %535 = arith.addf %532, %534 : vector<16x16xf32>
    %c1_549 = arith.constant 1 : index
    %c0_550 = arith.constant 0 : index
    %c0_551 = arith.constant 0 : index
    %c0_552 = arith.constant 0 : index
    %536 = vector.load %arg13[%c1_549, %c0_550, %c0_551, %c0_552] : memref<2x1x256x16xf32, #tpu.memory_space<vmem>>, vector<1x1x16x16xf32>
    %537 = vector.shape_cast %536 : vector<1x1x16x16xf32> to vector<16x16xf32>
    %538 = vector.shape_cast %535 : vector<16x16xf32> to vector<1x1x16x16xf32>
    tpu.vector_store %arg13[%c1_549, %c0_550, %c0_551, %c0_552], %538 {strides = array<i32>} : memref<2x1x256x16xf32, #tpu.memory_space<vmem>>, vector<1x1x16x16xf32>,
    %c1_553 = arith.constant 1 : index
    %c0_554 = arith.constant 0 : index
    %c37_555 = arith.constant 37 : index
    %539 = vector.load %arg15[%c1_553, %c0_554, %c37_555] : memref<2x8x384xf32, #tpu.memory_space<vmem>>, vector<1x8x16xf32>
    %540 = vector.shape_cast %539 : vector<1x8x16xf32> to vector<8x16xf32>
    %c0_556 = arith.constant 0 : index
    %c0_557 = arith.constant 0 : index
    %c37_558 = arith.constant 37 : index
    %541 = vector.load %arg16[%c0_556, %c0_557, %c37_558] : memref<2x8x384xf32, #tpu.memory_space<vmem>>, vector<1x8x16xf32>
    %542 = vector.shape_cast %541 : vector<1x8x16xf32> to vector<8x16xf32>
    %cst_559 = arith.constant dense<0.000000e+00> : vector<16x16xf32>
    %543 = tpu.matmul %540, %542, %cst_559 {dimension_numbers = #tpu.dot_dimension_numbers<[0], [0], [1], [1], [0, 1, 1, 1], [], []>} : vector<8x16xf32>, vector<8x16xf32>, vector<16x16xf32> -> vector<16x16xf32>
    %cst_560 = arith.constant 1.250000e-01 : f32
    %544 = vector.broadcast %cst_560 : f32 to vector<16x16xf32>
    %545 = arith.mulf %543, %544 : vector<16x16xf32>
    %c1_561 = arith.constant 1 : index
    %c0_562 = arith.constant 0 : index
    %c16_563 = arith.constant 16 : index
    %c0_564 = arith.constant 0 : index
    %546 = vector.load %arg11[%c1_561, %c0_562, %c16_563, %c0_564] : memref<2x1x256x16xf32, #tpu.memory_space<vmem>>, vector<1x1x16x16xf32>
    %547 = vector.shape_cast %546 : vector<1x1x16x16xf32> to vector<16x16xf32>
    %548 = arith.addf %545, %547 : vector<16x16xf32>
    %c1_565 = arith.constant 1 : index
    %c0_566 = arith.constant 0 : index
    %c16_567 = arith.constant 16 : index
    %c0_568 = arith.constant 0 : index
    %549 = vector.load %arg13[%c1_565, %c0_566, %c16_567, %c0_568] : memref<2x1x256x16xf32, #tpu.memory_space<vmem>>, vector<1x1x16x16xf32>
    %550 = vector.shape_cast %549 : vector<1x1x16x16xf32> to vector<16x16xf32>
    %551 = vector.shape_cast %548 : vector<16x16xf32> to vector<1x1x16x16xf32>
    tpu.vector_store %arg13[%c1_565, %c0_566, %c16_567, %c0_568], %551 {strides = array<i32>} : memref<2x1x256x16xf32, #tpu.memory_space<vmem>>, vector<1x1x16x16xf32>,
    %c1_569 = arith.constant 1 : index
    %c0_570 = arith.constant 0 : index
    %c55_571 = arith.constant 55 : index
    %552 = vector.load %arg15[%c1_569, %c0_570, %c55_571] : memref<2x8x384xf32, #tpu.memory_space<vmem>>, vector<1x8x16xf32>
    %553 = vector.shape_cast %552 : vector<1x8x16xf32> to vector<8x16xf32>
    %c0_572 = arith.constant 0 : index
    %c0_573 = arith.constant 0 : index
    %c55_574 = arith.constant 55 : index
    %554 = vector.load %arg16[%c0_572, %c0_573, %c55_574] : memref<2x8x384xf32, #tpu.memory_space<vmem>>, vector<1x8x16xf32>
    %555 = vector.shape_cast %554 : vector<1x8x16xf32> to vector<8x16xf32>
    %cst_575 = arith.constant dense<0.000000e+00> : vector<16x16xf32>
    %556 = tpu.matmul %553, %555, %cst_575 {dimension_numbers = #tpu.dot_dimension_numbers<[0], [0], [1], [1], [0, 1, 1, 1], [], []>} : vector<8x16xf32>, vector<8x16xf32>, vector<16x16xf32> -> vector<16x16xf32>
    %cst_576 = arith.constant 1.250000e-01 : f32
    %557 = vector.broadcast %cst_576 : f32 to vector<16x16xf32>
    %558 = arith.mulf %556, %557 : vector<16x16xf32>
    %c1_577 = arith.constant 1 : index
    %c0_578 = arith.constant 0 : index
    %c32_579 = arith.constant 32 : index
    %c0_580 = arith.constant 0 : index
    %559 = vector.load %arg11[%c1_577, %c0_578, %c32_579, %c0_580] : memref<2x1x256x16xf32, #tpu.memory_space<vmem>>, vector<1x1x16x16xf32>
    %560 = vector.shape_cast %559 : vector<1x1x16x16xf32> to vector<16x16xf32>
    %561 = arith.addf %558, %560 : vector<16x16xf32>
    %c1_581 = arith.constant 1 : index
    %c0_582 = arith.constant 0 : index
    %c32_583 = arith.constant 32 : index
    %c0_584 = arith.constant 0 : index
    %562 = vector.load %arg13[%c1_581, %c0_582, %c32_583, %c0_584] : memref<2x1x256x16xf32, #tpu.memory_space<vmem>>, vector<1x1x16x16xf32>
    %563 = vector.shape_cast %562 : vector<1x1x16x16xf32> to vector<16x16xf32>
    %564 = vector.shape_cast %561 : vector<16x16xf32> to vector<1x1x16x16xf32>
    tpu.vector_store %arg13[%c1_581, %c0_582, %c32_583, %c0_584], %564 {strides = array<i32>} : memref<2x1x256x16xf32, #tpu.memory_space<vmem>>, vector<1x1x16x16xf32>,
    %c1_585 = arith.constant 1 : index
    %c0_586 = arith.constant 0 : index
    %c73_587 = arith.constant 73 : index
    %565 = vector.load %arg15[%c1_585, %c0_586, %c73_587] : memref<2x8x384xf32, #tpu.memory_space<vmem>>, vector<1x8x16xf32>
    %566 = vector.shape_cast %565 : vector<1x8x16xf32> to vector<8x16xf32>
    %c0_588 = arith.constant 0 : index
    %c0_589 = arith.constant 0 : index
    %c73_590 = arith.constant 73 : index
    %567 = vector.load %arg16[%c0_588, %c0_589, %c73_590] : memref<2x8x384xf32, #tpu.memory_space<vmem>>, vector<1x8x16xf32>
    %568 = vector.shape_cast %567 : vector<1x8x16xf32> to vector<8x16xf32>
    %cst_591 = arith.constant dense<0.000000e+00> : vector<16x16xf32>
    %569 = tpu.matmul %566, %568, %cst_591 {dimension_numbers = #tpu.dot_dimension_numbers<[0], [0], [1], [1], [0, 1, 1, 1], [], []>} : vector<8x16xf32>, vector<8x16xf32>, vector<16x16xf32> -> vector<16x16xf32>
    %cst_592 = arith.constant 1.250000e-01 : f32
    %570 = vector.broadcast %cst_592 : f32 to vector<16x16xf32>
    %571 = arith.mulf %569, %570 : vector<16x16xf32>
    %c1_593 = arith.constant 1 : index
    %c0_594 = arith.constant 0 : index
    %c48_595 = arith.constant 48 : index
    %c0_596 = arith.constant 0 : index
    %572 = vector.load %arg11[%c1_593, %c0_594, %c48_595, %c0_596] : memref<2x1x256x16xf32, #tpu.memory_space<vmem>>, vector<1x1x16x16xf32>
    %573 = vector.shape_cast %572 : vector<1x1x16x16xf32> to vector<16x16xf32>
    %574 = arith.addf %571, %573 : vector<16x16xf32>
    %c1_597 = arith.constant 1 : index
    %c0_598 = arith.constant 0 : index
    %c48_599 = arith.constant 48 : index
    %c0_600 = arith.constant 0 : index
    %575 = vector.load %arg13[%c1_597, %c0_598, %c48_599, %c0_600] : memref<2x1x256x16xf32, #tpu.memory_space<vmem>>, vector<1x1x16x16xf32>
    %576 = vector.shape_cast %575 : vector<1x1x16x16xf32> to vector<16x16xf32>
    %577 = vector.shape_cast %574 : vector<16x16xf32> to vector<1x1x16x16xf32>
    tpu.vector_store %arg13[%c1_597, %c0_598, %c48_599, %c0_600], %577 {strides = array<i32>} : memref<2x1x256x16xf32, #tpu.memory_space<vmem>>, vector<1x1x16x16xf32>,
    %c1_601 = arith.constant 1 : index
    %c0_602 = arith.constant 0 : index
    %c91_603 = arith.constant 91 : index
    %578 = vector.load %arg15[%c1_601, %c0_602, %c91_603] : memref<2x8x384xf32, #tpu.memory_space<vmem>>, vector<1x8x16xf32>
    %579 = vector.shape_cast %578 : vector<1x8x16xf32> to vector<8x16xf32>
    %c0_604 = arith.constant 0 : index
    %c0_605 = arith.constant 0 : index
    %c91_606 = arith.constant 91 : index
    %580 = vector.load %arg16[%c0_604, %c0_605, %c91_606] : memref<2x8x384xf32, #tpu.memory_space<vmem>>, vector<1x8x16xf32>
    %581 = vector.shape_cast %580 : vector<1x8x16xf32> to vector<8x16xf32>
    %cst_607 = arith.constant dense<0.000000e+00> : vector<16x16xf32>
    %582 = tpu.matmul %579, %581, %cst_607 {dimension_numbers = #tpu.dot_dimension_numbers<[0], [0], [1], [1], [0, 1, 1, 1], [], []>} : vector<8x16xf32>, vector<8x16xf32>, vector<16x16xf32> -> vector<16x16xf32>
    %cst_608 = arith.constant 1.250000e-01 : f32
    %583 = vector.broadcast %cst_608 : f32 to vector<16x16xf32>
    %584 = arith.mulf %582, %583 : vector<16x16xf32>
    %c1_609 = arith.constant 1 : index
    %c0_610 = arith.constant 0 : index
    %c64_611 = arith.constant 64 : index
    %c0_612 = arith.constant 0 : index
    %585 = vector.load %arg11[%c1_609, %c0_610, %c64_611, %c0_612] : memref<2x1x256x16xf32, #tpu.memory_space<vmem>>, vector<1x1x16x16xf32>
    %586 = vector.shape_cast %585 : vector<1x1x16x16xf32> to vector<16x16xf32>
    %587 = arith.addf %584, %586 : vector<16x16xf32>
    %c1_613 = arith.constant 1 : index
    %c0_614 = arith.constant 0 : index
    %c64_615 = arith.constant 64 : index
    %c0_616 = arith.constant 0 : index
    %588 = vector.load %arg13[%c1_613, %c0_614, %c64_615, %c0_616] : memref<2x1x256x16xf32, #tpu.memory_space<vmem>>, vector<1x1x16x16xf32>
    %589 = vector.shape_cast %588 : vector<1x1x16x16xf32> to vector<16x16xf32>
    %590 = vector.shape_cast %587 : vector<16x16xf32> to vector<1x1x16x16xf32>
    tpu.vector_store %arg13[%c1_613, %c0_614, %c64_615, %c0_616], %590 {strides = array<i32>} : memref<2x1x256x16xf32, #tpu.memory_space<vmem>>, vector<1x1x16x16xf32>,
    %c1_617 = arith.constant 1 : index
    %c0_618 = arith.constant 0 : index
    %c109_619 = arith.constant 109 : index
    %591 = vector.load %arg15[%c1_617, %c0_618, %c109_619] : memref<2x8x384xf32, #tpu.memory_space<vmem>>, vector<1x8x16xf32>
    %592 = vector.shape_cast %591 : vector<1x8x16xf32> to vector<8x16xf32>
    %c0_620 = arith.constant 0 : index
    %c0_621 = arith.constant 0 : index
    %c109_622 = arith.constant 109 : index
    %593 = vector.load %arg16[%c0_620, %c0_621, %c109_622] : memref<2x8x384xf32, #tpu.memory_space<vmem>>, vector<1x8x16xf32>
    %594 = vector.shape_cast %593 : vector<1x8x16xf32> to vector<8x16xf32>
    %cst_623 = arith.constant dense<0.000000e+00> : vector<16x16xf32>
    %595 = tpu.matmul %592, %594, %cst_623 {dimension_numbers = #tpu.dot_dimension_numbers<[0], [0], [1], [1], [0, 1, 1, 1], [], []>} : vector<8x16xf32>, vector<8x16xf32>, vector<16x16xf32> -> vector<16x16xf32>
    %cst_624 = arith.constant 1.250000e-01 : f32
    %596 = vector.broadcast %cst_624 : f32 to vector<16x16xf32>
    %597 = arith.mulf %595, %596 : vector<16x16xf32>
    %c1_625 = arith.constant 1 : index
    %c0_626 = arith.constant 0 : index
    %c80_627 = arith.constant 80 : index
    %c0_628 = arith.constant 0 : index
    %598 = vector.load %arg11[%c1_625, %c0_626, %c80_627, %c0_628] : memref<2x1x256x16xf32, #tpu.memory_space<vmem>>, vector<1x1x16x16xf32>
    %599 = vector.shape_cast %598 : vector<1x1x16x16xf32> to vector<16x16xf32>
    %600 = arith.addf %597, %599 : vector<16x16xf32>
    %c1_629 = arith.constant 1 : index
    %c0_630 = arith.constant 0 : index
    %c80_631 = arith.constant 80 : index
    %c0_632 = arith.constant 0 : index
    %601 = vector.load %arg13[%c1_629, %c0_630, %c80_631, %c0_632] : memref<2x1x256x16xf32, #tpu.memory_space<vmem>>, vector<1x1x16x16xf32>
    %602 = vector.shape_cast %601 : vector<1x1x16x16xf32> to vector<16x16xf32>
    %603 = vector.shape_cast %600 : vector<16x16xf32> to vector<1x1x16x16xf32>
    tpu.vector_store %arg13[%c1_629, %c0_630, %c80_631, %c0_632], %603 {strides = array<i32>} : memref<2x1x256x16xf32, #tpu.memory_space<vmem>>, vector<1x1x16x16xf32>,
    %c1_633 = arith.constant 1 : index
    %c0_634 = arith.constant 0 : index
    %c127_635 = arith.constant 127 : index
    %604 = vector.load %arg15[%c1_633, %c0_634, %c127_635] : memref<2x8x384xf32, #tpu.memory_space<vmem>>, vector<1x8x16xf32>
    %605 = vector.shape_cast %604 : vector<1x8x16xf32> to vector<8x16xf32>
    %c0_636 = arith.constant 0 : index
    %c0_637 = arith.constant 0 : index
    %c127_638 = arith.constant 127 : index
    %606 = vector.load %arg16[%c0_636, %c0_637, %c127_638] : memref<2x8x384xf32, #tpu.memory_space<vmem>>, vector<1x8x16xf32>
    %607 = vector.shape_cast %606 : vector<1x8x16xf32> to vector<8x16xf32>
    %cst_639 = arith.constant dense<0.000000e+00> : vector<16x16xf32>
    %608 = tpu.matmul %605, %607, %cst_639 {dimension_numbers = #tpu.dot_dimension_numbers<[0], [0], [1], [1], [0, 1, 1, 1], [], []>} : vector<8x16xf32>, vector<8x16xf32>, vector<16x16xf32> -> vector<16x16xf32>
    %cst_640 = arith.constant 1.250000e-01 : f32
    %609 = vector.broadcast %cst_640 : f32 to vector<16x16xf32>
    %610 = arith.mulf %608, %609 : vector<16x16xf32>
    %c1_641 = arith.constant 1 : index
    %c0_642 = arith.constant 0 : index
    %c96_643 = arith.constant 96 : index
    %c0_644 = arith.constant 0 : index
    %611 = vector.load %arg11[%c1_641, %c0_642, %c96_643, %c0_644] : memref<2x1x256x16xf32, #tpu.memory_space<vmem>>, vector<1x1x16x16xf32>
    %612 = vector.shape_cast %611 : vector<1x1x16x16xf32> to vector<16x16xf32>
    %613 = arith.addf %610, %612 : vector<16x16xf32>
    %c1_645 = arith.constant 1 : index
    %c0_646 = arith.constant 0 : index
    %c96_647 = arith.constant 96 : index
    %c0_648 = arith.constant 0 : index
    %614 = vector.load %arg13[%c1_645, %c0_646, %c96_647, %c0_648] : memref<2x1x256x16xf32, #tpu.memory_space<vmem>>, vector<1x1x16x16xf32>
    %615 = vector.shape_cast %614 : vector<1x1x16x16xf32> to vector<16x16xf32>
    %616 = vector.shape_cast %613 : vector<16x16xf32> to vector<1x1x16x16xf32>
    tpu.vector_store %arg13[%c1_645, %c0_646, %c96_647, %c0_648], %616 {strides = array<i32>} : memref<2x1x256x16xf32, #tpu.memory_space<vmem>>, vector<1x1x16x16xf32>,
    %c1_649 = arith.constant 1 : index
    %c0_650 = arith.constant 0 : index
    %c145_651 = arith.constant 145 : index
    %617 = vector.load %arg15[%c1_649, %c0_650, %c145_651] : memref<2x8x384xf32, #tpu.memory_space<vmem>>, vector<1x8x16xf32>
    %618 = vector.shape_cast %617 : vector<1x8x16xf32> to vector<8x16xf32>
    %c0_652 = arith.constant 0 : index
    %c0_653 = arith.constant 0 : index
    %c145_654 = arith.constant 145 : index
    %619 = vector.load %arg16[%c0_652, %c0_653, %c145_654] : memref<2x8x384xf32, #tpu.memory_space<vmem>>, vector<1x8x16xf32>
    %620 = vector.shape_cast %619 : vector<1x8x16xf32> to vector<8x16xf32>
    %cst_655 = arith.constant dense<0.000000e+00> : vector<16x16xf32>
    %621 = tpu.matmul %618, %620, %cst_655 {dimension_numbers = #tpu.dot_dimension_numbers<[0], [0], [1], [1], [0, 1, 1, 1], [], []>} : vector<8x16xf32>, vector<8x16xf32>, vector<16x16xf32> -> vector<16x16xf32>
    %cst_656 = arith.constant 1.250000e-01 : f32
    %622 = vector.broadcast %cst_656 : f32 to vector<16x16xf32>
    %623 = arith.mulf %621, %622 : vector<16x16xf32>
    %c1_657 = arith.constant 1 : index
    %c0_658 = arith.constant 0 : index
    %c112_659 = arith.constant 112 : index
    %c0_660 = arith.constant 0 : index
    %624 = vector.load %arg11[%c1_657, %c0_658, %c112_659, %c0_660] : memref<2x1x256x16xf32, #tpu.memory_space<vmem>>, vector<1x1x16x16xf32>
    %625 = vector.shape_cast %624 : vector<1x1x16x16xf32> to vector<16x16xf32>
    %626 = arith.addf %623, %625 : vector<16x16xf32>
    %c1_661 = arith.constant 1 : index
    %c0_662 = arith.constant 0 : index
    %c112_663 = arith.constant 112 : index
    %c0_664 = arith.constant 0 : index
    %627 = vector.load %arg13[%c1_661, %c0_662, %c112_663, %c0_664] : memref<2x1x256x16xf32, #tpu.memory_space<vmem>>, vector<1x1x16x16xf32>
    %628 = vector.shape_cast %627 : vector<1x1x16x16xf32> to vector<16x16xf32>
    %629 = vector.shape_cast %626 : vector<16x16xf32> to vector<1x1x16x16xf32>
    tpu.vector_store %arg13[%c1_661, %c0_662, %c112_663, %c0_664], %629 {strides = array<i32>} : memref<2x1x256x16xf32, #tpu.memory_space<vmem>>, vector<1x1x16x16xf32>,
    %c1_665 = arith.constant 1 : index
    %c0_666 = arith.constant 0 : index
    %c163_667 = arith.constant 163 : index
    %630 = vector.load %arg15[%c1_665, %c0_666, %c163_667] : memref<2x8x384xf32, #tpu.memory_space<vmem>>, vector<1x8x16xf32>
    %631 = vector.shape_cast %630 : vector<1x8x16xf32> to vector<8x16xf32>
    %c0_668 = arith.constant 0 : index
    %c0_669 = arith.constant 0 : index
    %c163_670 = arith.constant 163 : index
    %632 = vector.load %arg16[%c0_668, %c0_669, %c163_670] : memref<2x8x384xf32, #tpu.memory_space<vmem>>, vector<1x8x16xf32>
    %633 = vector.shape_cast %632 : vector<1x8x16xf32> to vector<8x16xf32>
    %cst_671 = arith.constant dense<0.000000e+00> : vector<16x16xf32>
    %634 = tpu.matmul %631, %633, %cst_671 {dimension_numbers = #tpu.dot_dimension_numbers<[0], [0], [1], [1], [0, 1, 1, 1], [], []>} : vector<8x16xf32>, vector<8x16xf32>, vector<16x16xf32> -> vector<16x16xf32>
    %cst_672 = arith.constant 1.250000e-01 : f32
    %635 = vector.broadcast %cst_672 : f32 to vector<16x16xf32>
    %636 = arith.mulf %634, %635 : vector<16x16xf32>
    %c1_673 = arith.constant 1 : index
    %c0_674 = arith.constant 0 : index
    %c128_675 = arith.constant 128 : index
    %c0_676 = arith.constant 0 : index
    %637 = vector.load %arg11[%c1_673, %c0_674, %c128_675, %c0_676] : memref<2x1x256x16xf32, #tpu.memory_space<vmem>>, vector<1x1x16x16xf32>
    %638 = vector.shape_cast %637 : vector<1x1x16x16xf32> to vector<16x16xf32>
    %639 = arith.addf %636, %638 : vector<16x16xf32>
    %c1_677 = arith.constant 1 : index
    %c0_678 = arith.constant 0 : index
    %c128_679 = arith.constant 128 : index
    %c0_680 = arith.constant 0 : index
    %640 = vector.load %arg13[%c1_677, %c0_678, %c128_679, %c0_680] : memref<2x1x256x16xf32, #tpu.memory_space<vmem>>, vector<1x1x16x16xf32>
    %641 = vector.shape_cast %640 : vector<1x1x16x16xf32> to vector<16x16xf32>
    %642 = vector.shape_cast %639 : vector<16x16xf32> to vector<1x1x16x16xf32>
    tpu.vector_store %arg13[%c1_677, %c0_678, %c128_679, %c0_680], %642 {strides = array<i32>} : memref<2x1x256x16xf32, #tpu.memory_space<vmem>>, vector<1x1x16x16xf32>,
    %c1_681 = arith.constant 1 : index
    %c0_682 = arith.constant 0 : index
    %c181_683 = arith.constant 181 : index
    %643 = vector.load %arg15[%c1_681, %c0_682, %c181_683] : memref<2x8x384xf32, #tpu.memory_space<vmem>>, vector<1x8x16xf32>
    %644 = vector.shape_cast %643 : vector<1x8x16xf32> to vector<8x16xf32>
    %c0_684 = arith.constant 0 : index
    %c0_685 = arith.constant 0 : index
    %c181_686 = arith.constant 181 : index
    %645 = vector.load %arg16[%c0_684, %c0_685, %c181_686] : memref<2x8x384xf32, #tpu.memory_space<vmem>>, vector<1x8x16xf32>
    %646 = vector.shape_cast %645 : vector<1x8x16xf32> to vector<8x16xf32>
    %cst_687 = arith.constant dense<0.000000e+00> : vector<16x16xf32>
    %647 = tpu.matmul %644, %646, %cst_687 {dimension_numbers = #tpu.dot_dimension_numbers<[0], [0], [1], [1], [0, 1, 1, 1], [], []>} : vector<8x16xf32>, vector<8x16xf32>, vector<16x16xf32> -> vector<16x16xf32>
    %cst_688 = arith.constant 1.250000e-01 : f32
    %648 = vector.broadcast %cst_688 : f32 to vector<16x16xf32>
    %649 = arith.mulf %647, %648 : vector<16x16xf32>
    %c1_689 = arith.constant 1 : index
    %c0_690 = arith.constant 0 : index
    %c144_691 = arith.constant 144 : index
    %c0_692 = arith.constant 0 : index
    %650 = vector.load %arg11[%c1_689, %c0_690, %c144_691, %c0_692] : memref<2x1x256x16xf32, #tpu.memory_space<vmem>>, vector<1x1x16x16xf32>
    %651 = vector.shape_cast %650 : vector<1x1x16x16xf32> to vector<16x16xf32>
    %652 = arith.addf %649, %651 : vector<16x16xf32>
    %c1_693 = arith.constant 1 : index
    %c0_694 = arith.constant 0 : index
    %c144_695 = arith.constant 144 : index
    %c0_696 = arith.constant 0 : index
    %653 = vector.load %arg13[%c1_693, %c0_694, %c144_695, %c0_696] : memref<2x1x256x16xf32, #tpu.memory_space<vmem>>, vector<1x1x16x16xf32>
    %654 = vector.shape_cast %653 : vector<1x1x16x16xf32> to vector<16x16xf32>
    %655 = vector.shape_cast %652 : vector<16x16xf32> to vector<1x1x16x16xf32>
    tpu.vector_store %arg13[%c1_693, %c0_694, %c144_695, %c0_696], %655 {strides = array<i32>} : memref<2x1x256x16xf32, #tpu.memory_space<vmem>>, vector<1x1x16x16xf32>,
    %c1_697 = arith.constant 1 : index
    %c0_698 = arith.constant 0 : index
    %c199_699 = arith.constant 199 : index
    %656 = vector.load %arg15[%c1_697, %c0_698, %c199_699] : memref<2x8x384xf32, #tpu.memory_space<vmem>>, vector<1x8x16xf32>
    %657 = vector.shape_cast %656 : vector<1x8x16xf32> to vector<8x16xf32>
    %c0_700 = arith.constant 0 : index
    %c0_701 = arith.constant 0 : index
    %c199_702 = arith.constant 199 : index
    %658 = vector.load %arg16[%c0_700, %c0_701, %c199_702] : memref<2x8x384xf32, #tpu.memory_space<vmem>>, vector<1x8x16xf32>
    %659 = vector.shape_cast %658 : vector<1x8x16xf32> to vector<8x16xf32>
    %cst_703 = arith.constant dense<0.000000e+00> : vector<16x16xf32>
    %660 = tpu.matmul %657, %659, %cst_703 {dimension_numbers = #tpu.dot_dimension_numbers<[0], [0], [1], [1], [0, 1, 1, 1], [], []>} : vector<8x16xf32>, vector<8x16xf32>, vector<16x16xf32> -> vector<16x16xf32>
    %cst_704 = arith.constant 1.250000e-01 : f32
    %661 = vector.broadcast %cst_704 : f32 to vector<16x16xf32>
    %662 = arith.mulf %660, %661 : vector<16x16xf32>
    %c1_705 = arith.constant 1 : index
    %c0_706 = arith.constant 0 : index
    %c160_707 = arith.constant 160 : index
    %c0_708 = arith.constant 0 : index
    %663 = vector.load %arg11[%c1_705, %c0_706, %c160_707, %c0_708] : memref<2x1x256x16xf32, #tpu.memory_space<vmem>>, vector<1x1x16x16xf32>
    %664 = vector.shape_cast %663 : vector<1x1x16x16xf32> to vector<16x16xf32>
    %665 = arith.addf %662, %664 : vector<16x16xf32>
    %c1_709 = arith.constant 1 : index
    %c0_710 = arith.constant 0 : index
    %c160_711 = arith.constant 160 : index
    %c0_712 = arith.constant 0 : index
    %666 = vector.load %arg13[%c1_709, %c0_710, %c160_711, %c0_712] : memref<2x1x256x16xf32, #tpu.memory_space<vmem>>, vector<1x1x16x16xf32>
    %667 = vector.shape_cast %666 : vector<1x1x16x16xf32> to vector<16x16xf32>
    %668 = vector.shape_cast %665 : vector<16x16xf32> to vector<1x1x16x16xf32>
    tpu.vector_store %arg13[%c1_709, %c0_710, %c160_711, %c0_712], %668 {strides = array<i32>} : memref<2x1x256x16xf32, #tpu.memory_space<vmem>>, vector<1x1x16x16xf32>,
    %c1_713 = arith.constant 1 : index
    %c0_714 = arith.constant 0 : index
    %c217_715 = arith.constant 217 : index
    %669 = vector.load %arg15[%c1_713, %c0_714, %c217_715] : memref<2x8x384xf32, #tpu.memory_space<vmem>>, vector<1x8x16xf32>
    %670 = vector.shape_cast %669 : vector<1x8x16xf32> to vector<8x16xf32>
    %c0_716 = arith.constant 0 : index
    %c0_717 = arith.constant 0 : index
    %c217_718 = arith.constant 217 : index
    %671 = vector.load %arg16[%c0_716, %c0_717, %c217_718] : memref<2x8x384xf32, #tpu.memory_space<vmem>>, vector<1x8x16xf32>
    %672 = vector.shape_cast %671 : vector<1x8x16xf32> to vector<8x16xf32>
    %cst_719 = arith.constant dense<0.000000e+00> : vector<16x16xf32>
    %673 = tpu.matmul %670, %672, %cst_719 {dimension_numbers = #tpu.dot_dimension_numbers<[0], [0], [1], [1], [0, 1, 1, 1], [], []>} : vector<8x16xf32>, vector<8x16xf32>, vector<16x16xf32> -> vector<16x16xf32>
    %cst_720 = arith.constant 1.250000e-01 : f32
    %674 = vector.broadcast %cst_720 : f32 to vector<16x16xf32>
    %675 = arith.mulf %673, %674 : vector<16x16xf32>
    %c1_721 = arith.constant 1 : index
    %c0_722 = arith.constant 0 : index
    %c176_723 = arith.constant 176 : index
    %c0_724 = arith.constant 0 : index
    %676 = vector.load %arg11[%c1_721, %c0_722, %c176_723, %c0_724] : memref<2x1x256x16xf32, #tpu.memory_space<vmem>>, vector<1x1x16x16xf32>
    %677 = vector.shape_cast %676 : vector<1x1x16x16xf32> to vector<16x16xf32>
    %678 = arith.addf %675, %677 : vector<16x16xf32>
    %c1_725 = arith.constant 1 : index
    %c0_726 = arith.constant 0 : index
    %c176_727 = arith.constant 176 : index
    %c0_728 = arith.constant 0 : index
    %679 = vector.load %arg13[%c1_725, %c0_726, %c176_727, %c0_728] : memref<2x1x256x16xf32, #tpu.memory_space<vmem>>, vector<1x1x16x16xf32>
    %680 = vector.shape_cast %679 : vector<1x1x16x16xf32> to vector<16x16xf32>
    %681 = vector.shape_cast %678 : vector<16x16xf32> to vector<1x1x16x16xf32>
    tpu.vector_store %arg13[%c1_725, %c0_726, %c176_727, %c0_728], %681 {strides = array<i32>} : memref<2x1x256x16xf32, #tpu.memory_space<vmem>>, vector<1x1x16x16xf32>,
    %c1_729 = arith.constant 1 : index
    %c0_730 = arith.constant 0 : index
    %c235_731 = arith.constant 235 : index
    %682 = vector.load %arg15[%c1_729, %c0_730, %c235_731] : memref<2x8x384xf32, #tpu.memory_space<vmem>>, vector<1x8x16xf32>
    %683 = vector.shape_cast %682 : vector<1x8x16xf32> to vector<8x16xf32>
    %c0_732 = arith.constant 0 : index
    %c0_733 = arith.constant 0 : index
    %c235_734 = arith.constant 235 : index
    %684 = vector.load %arg16[%c0_732, %c0_733, %c235_734] : memref<2x8x384xf32, #tpu.memory_space<vmem>>, vector<1x8x16xf32>
    %685 = vector.shape_cast %684 : vector<1x8x16xf32> to vector<8x16xf32>
    %cst_735 = arith.constant dense<0.000000e+00> : vector<16x16xf32>
    %686 = tpu.matmul %683, %685, %cst_735 {dimension_numbers = #tpu.dot_dimension_numbers<[0], [0], [1], [1], [0, 1, 1, 1], [], []>} : vector<8x16xf32>, vector<8x16xf32>, vector<16x16xf32> -> vector<16x16xf32>
    %cst_736 = arith.constant 1.250000e-01 : f32
    %687 = vector.broadcast %cst_736 : f32 to vector<16x16xf32>
    %688 = arith.mulf %686, %687 : vector<16x16xf32>
    %c1_737 = arith.constant 1 : index
    %c0_738 = arith.constant 0 : index
    %c192_739 = arith.constant 192 : index
    %c0_740 = arith.constant 0 : index
    %689 = vector.load %arg11[%c1_737, %c0_738, %c192_739, %c0_740] : memref<2x1x256x16xf32, #tpu.memory_space<vmem>>, vector<1x1x16x16xf32>
    %690 = vector.shape_cast %689 : vector<1x1x16x16xf32> to vector<16x16xf32>
    %691 = arith.addf %688, %690 : vector<16x16xf32>
    %c1_741 = arith.constant 1 : index
    %c0_742 = arith.constant 0 : index
    %c192_743 = arith.constant 192 : index
    %c0_744 = arith.constant 0 : index
    %692 = vector.load %arg13[%c1_741, %c0_742, %c192_743, %c0_744] : memref<2x1x256x16xf32, #tpu.memory_space<vmem>>, vector<1x1x16x16xf32>
    %693 = vector.shape_cast %692 : vector<1x1x16x16xf32> to vector<16x16xf32>
    %694 = vector.shape_cast %691 : vector<16x16xf32> to vector<1x1x16x16xf32>
    tpu.vector_store %arg13[%c1_741, %c0_742, %c192_743, %c0_744], %694 {strides = array<i32>} : memref<2x1x256x16xf32, #tpu.memory_space<vmem>>, vector<1x1x16x16xf32>,
    %c1_745 = arith.constant 1 : index
    %c0_746 = arith.constant 0 : index
    %c253_747 = arith.constant 253 : index
    %695 = vector.load %arg15[%c1_745, %c0_746, %c253_747] : memref<2x8x384xf32, #tpu.memory_space<vmem>>, vector<1x8x16xf32>
    %696 = vector.shape_cast %695 : vector<1x8x16xf32> to vector<8x16xf32>
    %c0_748 = arith.constant 0 : index
    %c0_749 = arith.constant 0 : index
    %c253_750 = arith.constant 253 : index
    %697 = vector.load %arg16[%c0_748, %c0_749, %c253_750] : memref<2x8x384xf32, #tpu.memory_space<vmem>>, vector<1x8x16xf32>
    %698 = vector.shape_cast %697 : vector<1x8x16xf32> to vector<8x16xf32>
    %cst_751 = arith.constant dense<0.000000e+00> : vector<16x16xf32>
    %699 = tpu.matmul %696, %698, %cst_751 {dimension_numbers = #tpu.dot_dimension_numbers<[0], [0], [1], [1], [0, 1, 1, 1], [], []>} : vector<8x16xf32>, vector<8x16xf32>, vector<16x16xf32> -> vector<16x16xf32>
    %cst_752 = arith.constant 1.250000e-01 : f32
    %700 = vector.broadcast %cst_752 : f32 to vector<16x16xf32>
    %701 = arith.mulf %699, %700 : vector<16x16xf32>
    %c1_753 = arith.constant 1 : index
    %c0_754 = arith.constant 0 : index
    %c208_755 = arith.constant 208 : index
    %c0_756 = arith.constant 0 : index
    %702 = vector.load %arg11[%c1_753, %c0_754, %c208_755, %c0_756] : memref<2x1x256x16xf32, #tpu.memory_space<vmem>>, vector<1x1x16x16xf32>
    %703 = vector.shape_cast %702 : vector<1x1x16x16xf32> to vector<16x16xf32>
    %704 = arith.addf %701, %703 : vector<16x16xf32>
    %c1_757 = arith.constant 1 : index
    %c0_758 = arith.constant 0 : index
    %c208_759 = arith.constant 208 : index
    %c0_760 = arith.constant 0 : index
    %705 = vector.load %arg13[%c1_757, %c0_758, %c208_759, %c0_760] : memref<2x1x256x16xf32, #tpu.memory_space<vmem>>, vector<1x1x16x16xf32>
    %706 = vector.shape_cast %705 : vector<1x1x16x16xf32> to vector<16x16xf32>
    %707 = vector.shape_cast %704 : vector<16x16xf32> to vector<1x1x16x16xf32>
    tpu.vector_store %arg13[%c1_757, %c0_758, %c208_759, %c0_760], %707 {strides = array<i32>} : memref<2x1x256x16xf32, #tpu.memory_space<vmem>>, vector<1x1x16x16xf32>,
    %c1_761 = arith.constant 1 : index
    %c0_762 = arith.constant 0 : index
    %c271_763 = arith.constant 271 : index
    %708 = vector.load %arg15[%c1_761, %c0_762, %c271_763] : memref<2x8x384xf32, #tpu.memory_space<vmem>>, vector<1x8x16xf32>
    %709 = vector.shape_cast %708 : vector<1x8x16xf32> to vector<8x16xf32>
    %c0_764 = arith.constant 0 : index
    %c0_765 = arith.constant 0 : index
    %c271_766 = arith.constant 271 : index
    %710 = vector.load %arg16[%c0_764, %c0_765, %c271_766] : memref<2x8x384xf32, #tpu.memory_space<vmem>>, vector<1x8x16xf32>
    %711 = vector.shape_cast %710 : vector<1x8x16xf32> to vector<8x16xf32>
    %cst_767 = arith.constant dense<0.000000e+00> : vector<16x16xf32>
    %712 = tpu.matmul %709, %711, %cst_767 {dimension_numbers = #tpu.dot_dimension_numbers<[0], [0], [1], [1], [0, 1, 1, 1], [], []>} : vector<8x16xf32>, vector<8x16xf32>, vector<16x16xf32> -> vector<16x16xf32>
    %cst_768 = arith.constant 1.250000e-01 : f32
    %713 = vector.broadcast %cst_768 : f32 to vector<16x16xf32>
    %714 = arith.mulf %712, %713 : vector<16x16xf32>
    %c1_769 = arith.constant 1 : index
    %c0_770 = arith.constant 0 : index
    %c224_771 = arith.constant 224 : index
    %c0_772 = arith.constant 0 : index
    %715 = vector.load %arg11[%c1_769, %c0_770, %c224_771, %c0_772] : memref<2x1x256x16xf32, #tpu.memory_space<vmem>>, vector<1x1x16x16xf32>
    %716 = vector.shape_cast %715 : vector<1x1x16x16xf32> to vector<16x16xf32>
    %717 = arith.addf %714, %716 : vector<16x16xf32>
    %c1_773 = arith.constant 1 : index
    %c0_774 = arith.constant 0 : index
    %c224_775 = arith.constant 224 : index
    %c0_776 = arith.constant 0 : index
    %718 = vector.load %arg13[%c1_773, %c0_774, %c224_775, %c0_776] : memref<2x1x256x16xf32, #tpu.memory_space<vmem>>, vector<1x1x16x16xf32>
    %719 = vector.shape_cast %718 : vector<1x1x16x16xf32> to vector<16x16xf32>
    %720 = vector.shape_cast %717 : vector<16x16xf32> to vector<1x1x16x16xf32>
    tpu.vector_store %arg13[%c1_773, %c0_774, %c224_775, %c0_776], %720 {strides = array<i32>} : memref<2x1x256x16xf32, #tpu.memory_space<vmem>>, vector<1x1x16x16xf32>,
    %c1_777 = arith.constant 1 : index
    %c0_778 = arith.constant 0 : index
    %c289_779 = arith.constant 289 : index
    %721 = vector.load %arg15[%c1_777, %c0_778, %c289_779] : memref<2x8x384xf32, #tpu.memory_space<vmem>>, vector<1x8x16xf32>
    %722 = vector.shape_cast %721 : vector<1x8x16xf32> to vector<8x16xf32>
    %c0_780 = arith.constant 0 : index
    %c0_781 = arith.constant 0 : index
    %c289_782 = arith.constant 289 : index
    %723 = vector.load %arg16[%c0_780, %c0_781, %c289_782] : memref<2x8x384xf32, #tpu.memory_space<vmem>>, vector<1x8x16xf32>
    %724 = vector.shape_cast %723 : vector<1x8x16xf32> to vector<8x16xf32>
    %cst_783 = arith.constant dense<0.000000e+00> : vector<16x16xf32>
    %725 = tpu.matmul %722, %724, %cst_783 {dimension_numbers = #tpu.dot_dimension_numbers<[0], [0], [1], [1], [0, 1, 1, 1], [], []>} : vector<8x16xf32>, vector<8x16xf32>, vector<16x16xf32> -> vector<16x16xf32>
    %cst_784 = arith.constant 1.250000e-01 : f32
    %726 = vector.broadcast %cst_784 : f32 to vector<16x16xf32>
    %727 = arith.mulf %725, %726 : vector<16x16xf32>
    %c1_785 = arith.constant 1 : index
    %c0_786 = arith.constant 0 : index
    %c240_787 = arith.constant 240 : index
    %c0_788 = arith.constant 0 : index
    %728 = vector.load %arg11[%c1_785, %c0_786, %c240_787, %c0_788] : memref<2x1x256x16xf32, #tpu.memory_space<vmem>>, vector<1x1x16x16xf32>
    %729 = vector.shape_cast %728 : vector<1x1x16x16xf32> to vector<16x16xf32>
    %730 = arith.addf %727, %729 : vector<16x16xf32>
    %c1_789 = arith.constant 1 : index
    %c0_790 = arith.constant 0 : index
    %c240_791 = arith.constant 240 : index
    %c0_792 = arith.constant 0 : index
    %731 = vector.load %arg13[%c1_789, %c0_790, %c240_791, %c0_792] : memref<2x1x256x16xf32, #tpu.memory_space<vmem>>, vector<1x1x16x16xf32>
    %732 = vector.shape_cast %731 : vector<1x1x16x16xf32> to vector<16x16xf32>
    %733 = vector.shape_cast %730 : vector<16x16xf32> to vector<1x1x16x16xf32>
    tpu.vector_store %arg13[%c1_789, %c0_790, %c240_791, %c0_792], %733 {strides = array<i32>} : memref<2x1x256x16xf32, #tpu.memory_space<vmem>>, vector<1x1x16x16xf32>,
    return
  }
  func.func @transform_0(%arg0: i32) -> (i32, i32, i32, i32) {
    %c0_i32 = arith.constant 0 : i32
    %c0_i32_0 = arith.constant 0 : i32
    %c0_i32_1 = arith.constant 0 : i32
    %c0_i32_2 = arith.constant 0 : i32
    return %c0_i32, %arg0, %c0_i32_0, %c0_i32_1 : i32, i32, i32, i32
  }
  func.func @transform_1(%arg0: i32) -> (i32, i32, i32) {
    %c0_i32 = arith.constant 0 : i32
    %c0_i32_0 = arith.constant 0 : i32
    %c0_i32_1 = arith.constant 0 : i32
    %c0_i32_2 = arith.constant 0 : i32
    return %c0_i32, %c0_i32_0, %c0_i32_1 : i32, i32, i32
  }
  func.func @transform_2(%arg0: i32) -> (i32, i32) {
    %c0_i32 = arith.constant 0 : i32
    %c0_i32_0 = arith.constant 0 : i32
    %c0_i32_1 = arith.constant 0 : i32
    return %c0_i32, %c0_i32_0 : i32, i32
  }
  func.func @transform_3(%arg0: i32) -> (i32, i32, i32) {
    %c0_i32 = arith.constant 0 : i32
    %c0_i32_0 = arith.constant 0 : i32
    %c0_i32_1 = arith.constant 0 : i32
    %c0_i32_2 = arith.constant 0 : i32
    return %c0_i32, %c0_i32_0, %c0_i32_1 : i32, i32, i32
  }
  func.func @transform_4(%arg0: i32) -> (i32, i32) {
    %c0_i32 = arith.constant 0 : i32
    %c0_i32_0 = arith.constant 0 : i32
    %c0_i32_1 = arith.constant 0 : i32
    return %c0_i32, %c0_i32_0 : i32, i32
  }
  func.func @transform_5(%arg0: i32) -> (i32, i32) {
    %c0_i32 = arith.constant 0 : i32
    %c0_i32_0 = arith.constant 0 : i32
    %c0_i32_1 = arith.constant 0 : i32
    return %c0_i32, %c0_i32_0 : i32, i32
  }
  func.func @transform_6(%arg0: i32) -> (i32, i32) {
    %c0_i32 = arith.constant 0 : i32
    %c0_i32_0 = arith.constant 0 : i32
    %c0_i32_1 = arith.constant 0 : i32
    return %c0_i32, %c0_i32_0 : i32, i32
  }
  func.func @transform_7(%arg0: i32) -> (i32, i32) {
    %c0_i32 = arith.constant 0 : i32
    %c0_i32_0 = arith.constant 0 : i32
    %c0_i32_1 = arith.constant 0 : i32
    return %c0_i32, %c0_i32_0 : i32, i32
  }
  func.func @transform_8(%arg0: i32) -> (i32, i32) {
    %c0_i32 = arith.constant 0 : i32
    %c0_i32_0 = arith.constant 0 : i32
    %c0_i32_1 = arith.constant 0 : i32
    return %c0_i32, %c0_i32_0 : i32, i32
  }
  func.func @transform_9(%arg0: i32) -> (i32, i32) {
    %c0_i32 = arith.constant 0 : i32
    %c0_i32_0 = arith.constant 0 : i32
    %c0_i32_1 = arith.constant 0 : i32
    return %c0_i32, %c0_i32_0 : i32, i32
  }
  func.func @transform_10(%arg0: i32) -> (i32, i32, i32, i32) {
    %c0_i32 = arith.constant 0 : i32
    %c0_i32_0 = arith.constant 0 : i32
    %c0_i32_1 = arith.constant 0 : i32
    %c0_i32_2 = arith.constant 0 : i32
    return %c0_i32, %arg0, %c0_i32_0, %c0_i32_1 : i32, i32, i32, i32
  }
  func.func @transform_11(%arg0: i32) -> (i32, i32, i32, i32) {
    %c0_i32 = arith.constant 0 : i32
    %c0_i32_0 = arith.constant 0 : i32
    %c0_i32_1 = arith.constant 0 : i32
    %c0_i32_2 = arith.constant 0 : i32
    return %c0_i32, %arg0, %c0_i32_0, %c0_i32_1 : i32, i32, i32, i32
  }
  func.func @transform_12(%arg0: i32) -> (i32, i32, i32, i32) {
    %c0_i32 = arith.constant 0 : i32
    %c0_i32_0 = arith.constant 0 : i32
    %c0_i32_1 = arith.constant 0 : i32
    %c0_i32_2 = arith.constant 0 : i32
    return %c0_i32, %arg0, %c0_i32_0, %c0_i32_1 : i32, i32, i32, i32
  }
}

</mosaic_0001>

<bundles_post_ra>
// kernel: pab_forward.1
= control target key start
LH: loop header
LB: loop body
LE: loop exit
PB: predicated region body
PF: predicated region fallthrough
CT: control target
= control target key end

     0   :  { %s8927_s0 = inlined_call_operand.vmem [shape: f32[2,2,8,512], index: 0, kind: input, shape index: {}]   ;;  %s8928_s1 = inlined_call_operand.vmem [shape: bf16[9,8,8], index: 1, kind: input, shape index: {}]   ;;  %s8929_s2 = inlined_call_operand.vmem [shape: f32[8,1], index: 2, kind: input, shape index: {}]   ;;  %s8930_s3 = inlined_call_operand.vmem [shape: bf16[9,8,8], index: 3, kind: input, shape index: {}]   ;;  %s8931_s4 = inlined_call_operand.vmem [shape: f32[8,1], index: 4, kind: input, shape index: {}]   ;;  %s8932_s5 = inlined_call_operand.vmem [shape: bf16[8,8], index: 5, kind: input, shape index: {}]   ;;  %s8933_s6 = inlined_call_operand.vmem [shape: f32[8,1], index: 6, kind: input, shape index: {}]   ;;  %s8934_s7 = inlined_call_operand.vmem [shape: bf16[8,8], index: 7, kind: input, shape index: {}]   ;;  %s8935_s8 = inlined_call_operand.vmem [shape: f32[8,1], index: 8, kind: input, shape index: {}]   ;;  %s8936_s9 = inlined_call_operand.vmem [shape: f32[1,384], index: 9, kind: input, shape index: {}]   ;;  %s8937_s10 = inlined_call_operand.vmem [shape: f32[2,2,256,16], index: 10, kind: input, shape index: {}]   ;;  %s8938_s11 = inlined_call_operand.vmem [shape: f32[2,2,8,384], index: 11, kind: output, shape index: {0}]   ;;  %s8939_s12 = inlined_call_operand.vmem [shape: f32[2,2,256,16], index: 12, kind: output, shape index: {1}]  }
   0x1   :  { %8972 = sst [smem:[#allocation9_spill]] %s8927_s0 }
   0x2   :  { %8973 = sst [smem:[#allocation10_spill]] %s8928_s1 }
   0x3   :  { %s7137_s21 = smov 0   ;;  %s7139_s22 = smov 0  }
   0x4   :  { %s7141_s23 = smov 0  }
   0x5 LB: > { %s7153_s24 = sadd.s32 4294967295, %s7045_s23   ;;  %s7156_s25 = sadd.s32 1, %s7045_s23   ;;  %s7045_s23 = sphi %s7141_s23, %s8996_s23   ;;  %s7041_s22 = sphi %s7139_s22, %s8995_s22   ;;  %s7037_s21 = sphi %s7137_s21, %s8994_s21  }
   0x6   : > { %s27_s26 = ssub.s32 %s7045_s23, %s7156_s25  ;;  %s30_s27 = sadd.s32 1, %s7041_s22 }
   0x7   : > { %p28_p0 = scmp.eq.s32.totalorder %s27_s26, 0  ;;  %p37_p1 = scmp.ne.s32.totalorder %s7041_s22, %s7037_s21 }
   0x8   : > { %p38_p2 = scmp.eq.s32.totalorder %s7045_s23, 0  ;;  %p282_p3 = scmp.eq.s32.totalorder %s7153_s24, 1 }
   0x9   : > { %s7166_s28 = scalar_select %p28_p0, %s7041_s22, %s30_s27  }
   0xa   : > { %p7168_p4 = por %p38_p2, %p37_p1  ;;  %p7172_p5 = por %p282_p3, %p37_p1 }
   0xb   : > { %p6577_p6 = scmp.ge.s32.totalorder %s7045_s23, 2 }
   0xd   : > { %357 = sbr.rel (%p6577_p6) target bundleno = 104 (0x68), region = 52 }
  0x12   : > { %360 = sbr.rel (!%p7168_p4) target bundleno = 36 (0x24), region = 56  ;;  %s362_s13 = sand.u32 (%p7168_p4), 1, %s7041_s22  }
  0x13   : > { %s6885_s14 = sshll.u32 (%p7168_p4), %s7045_s23, 5  ;;  %s6578_s15 = sshll.u32 (%p7168_p4), %s362_s13, 6 }
  0x14   : > { %s8976_s0 = sld [smem:[#allocation9_spill]] (%p7168_p4)  ;;  %s364_s19 = scalar_lea.vmem (%p7168_p4), [#allocation5], %s6578_s15 }
  0x1a   : > { %s367_s18 = scalar_lea.vmem %s8976_s0, %s6885_s14 }
  0x1b   : > { %v380_v0 = vld [vmem:[%s367_s18] sm:$0xff]  ;;  %v382_v1 = vld [vmem:[%s367_s18 + $0x8] sm:$0xff]  ;;  %v384_v2 = vld [vmem:[%s367_s18 + $0x10] sm:$0xff] }
  0x1c   : > { %381 = vst [vmem:[%s364_s19] sm:$0xff] %v380_v0  ;;  %v386_v3 = vld [vmem:[%s367_s18 + $0x18] sm:$0xff]  ;;  %v388_v4 = vld [vmem:[%s367_s18 + $0x40] sm:$0xff]  ;;  %v390_v5 = vld [vmem:[%s367_s18 + $0x48] sm:$0xff] }
  0x1d   : > { %383 = vst [vmem:[%s364_s19 + $0x8] sm:$0xff] %v382_v1  ;;  %v392_v6 = vld [vmem:[%s367_s18 + $0x50] sm:$0xff]  ;;  %v394_v7 = vld [vmem:[%s367_s18 + $0x58] sm:$0xff] }
  0x1e   : > { %385 = vst [vmem:[%s364_s19 + $0x10] sm:$0xff] %v384_v2 }
  0x1f   : > { %387 = vst [vmem:[%s364_s19 + $0x18] sm:$0xff] %v386_v3 }
  0x20   : > { %389 = vst [vmem:[%s364_s19 + $0x20] sm:$0xff] %v388_v4 }
  0x21   : > { %391 = vst [vmem:[%s364_s19 + $0x28] sm:$0xff] %v390_v5 }
  0x22   : > { %393 = vst [vmem:[%s364_s19 + $0x30] sm:$0xff] %v392_v6 }
  0x23   : > { %395 = vst [vmem:[%s364_s19 + $0x38] sm:$0xff] %v394_v7 }
  0x24 PF: > { %401 = sbr.rel (!%p7168_p4) target bundleno = 104 (0x68), region = 79  ;;  %s403_s20 = sand.u32 (%p7168_p4), 1, %s7041_s22  }
  0x25   : > { %s6886_s26 = sshll.u32 (%p7168_p4), %s7045_s23, 8  ;;  %s6581_s27 = sshll.u32 (%p7168_p4), %s403_s20, 9 }
  0x26   : > { %s7191_s15 = scalar_lea.vmem (%p7168_p4), %s8937_s10, %s6886_s26  ;;  %s7196_s29 = scalar_lea.vmem (%p7168_p4), [#allocation6], %s6581_s27 }
  0x27   : > { %v563_v8 = vld [vmem:[%s7191_s15] sm:$0xff] (%p7168_p4)  ;;  %v565_v9 = vld [vmem:[%s7191_s15 + $0x8] sm:$0xff] (%p7168_p4)  ;;  %v567_v10 = vld [vmem:[%s7191_s15 + $0x10] sm:$0xff] (%p7168_p4) }
  0x28   : > { %564 = vst [vmem:[%s7196_s29] sm:$0xff] (%p7168_p4), %v563_v8  ;;  %v569_v11 = vld [vmem:[%s7191_s15 + $0x18] sm:$0xff] (%p7168_p4)  ;;  %v571_v12 = vld [vmem:[%s7191_s15 + $0x20] sm:$0xff] (%p7168_p4)  ;;  %v573_v13 = vld [vmem:[%s7191_s15 + $0x28] sm:$0xff] (%p7168_p4) }
  0x29   : > { %566 = vst [vmem:[%s7196_s29 + $0x8] sm:$0xff] %v565_v9  ;;  %v575_v14 = vld [vmem:[%s7191_s15 + $0x30] sm:$0xff]  ;;  %v577_v15 = vld [vmem:[%s7191_s15 + $0x38] sm:$0xff]  ;;  %v579_v16 = vld [vmem:[%s7191_s15 + $0x40] sm:$0xff] }
  0x2a   : > { %568 = vst [vmem:[%s7196_s29 + $0x10] sm:$0xff] %v567_v10  ;;  %v581_v17 = vld [vmem:[%s7191_s15 + $0x48] sm:$0xff]  ;;  %v583_v18 = vld [vmem:[%s7191_s15 + $0x50] sm:$0xff]  ;;  %v585_v19 = vld [vmem:[%s7191_s15 + $0x58] sm:$0xff] }
  0x2b   : > { %570 = vst [vmem:[%s7196_s29 + $0x18] sm:$0xff] %v569_v11  ;;  %v587_v20 = vld [vmem:[%s7191_s15 + $0x60] sm:$0xff]  ;;  %v589_v21 = vld [vmem:[%s7191_s15 + $0x68] sm:$0xff]  ;;  %v591_v22 = vld [vmem:[%s7191_s15 + $0x70] sm:$0xff] }
  0x2c   : > { %572 = vst [vmem:[%s7196_s29 + $0x20] sm:$0xff] %v571_v12  ;;  %v593_v23 = vld [vmem:[%s7191_s15 + $0x78] sm:$0xff]  ;;  %v595_v24 = vld [vmem:[%s7191_s15 + $0x80] sm:$0xff]  ;;  %v597_v25 = vld [vmem:[%s7191_s15 + $0x88] sm:$0xff] }
  0x2d   : > { %574 = vst [vmem:[%s7196_s29 + $0x28] sm:$0xff] %v573_v13  ;;  %v599_v26 = vld [vmem:[%s7191_s15 + $0x90] sm:$0xff]  ;;  %v601_v27 = vld [vmem:[%s7191_s15 + $0x98] sm:$0xff]  ;;  %v603_v28 = vld [vmem:[%s7191_s15 + $0xa0] sm:$0xff] }
  0x2e   : > { %576 = vst [vmem:[%s7196_s29 + $0x30] sm:$0xff] %v575_v14  ;;  %v605_v29 = vld [vmem:[%s7191_s15 + $0xa8] sm:$0xff]  ;;  %v607_v30 = vld [vmem:[%s7191_s15 + $0xb0] sm:$0xff]  ;;  %v609_v31 = vld [vmem:[%s7191_s15 + $0xb8] sm:$0xff] }
  0x2f   : > { %578 = vst [vmem:[%s7196_s29 + $0x38] sm:$0xff] %v577_v15  ;;  %v611_v32 = vld [vmem:[%s7191_s15 + $0xc0] sm:$0xff]  ;;  %v613_v33 = vld [vmem:[%s7191_s15 + $0xc8] sm:$0xff]  ;;  %v615_v34 = vld [vmem:[%s7191_s15 + $0xd0] sm:$0xff] }
  0x30   : > { %580 = vst [vmem:[%s7196_s29 + $0x40] sm:$0xff] %v579_v16  ;;  %v617_v35 = vld [vmem:[%s7191_s15 + $0xd8] sm:$0xff]  ;;  %v619_v36 = vld [vmem:[%s7191_s15 + $0xe0] sm:$0xff]  ;;  %v621_v37 = vld [vmem:[%s7191_s15 + $0xe8] sm:$0xff] }
  0x31   : > { %582 = vst [vmem:[%s7196_s29 + $0x48] sm:$0xff] %v581_v17  ;;  %v623_v38 = vld [vmem:[%s7191_s15 + $0xf0] sm:$0xff]  ;;  %v625_v39 = vld [vmem:[%s7191_s15 + $0xf8] sm:$0xff]  ;;  %v627_v40 = vld [vmem:[%s7191_s15 + $0x200] sm:$0xff] }
  0x32   : > { %584 = vst [vmem:[%s7196_s29 + $0x50] sm:$0xff] %v583_v18  ;;  %v629_v41 = vld [vmem:[%s7191_s15 + $0x208] sm:$0xff]  ;;  %v631_v42 = vld [vmem:[%s7191_s15 + $0x210] sm:$0xff]  ;;  %v633_v43 = vld [vmem:[%s7191_s15 + $0x218] sm:$0xff] }
  0x33   : > { %586 = vst [vmem:[%s7196_s29 + $0x58] sm:$0xff] %v585_v19  ;;  %v635_v44 = vld [vmem:[%s7191_s15 + $0x220] sm:$0xff]  ;;  %v637_v45 = vld [vmem:[%s7191_s15 + $0x228] sm:$0xff]  ;;  %v639_v46 = vld [vmem:[%s7191_s15 + $0x230] sm:$0xff] }
  0x34   : > { %588 = vst [vmem:[%s7196_s29 + $0x60] sm:$0xff] %v587_v20  ;;  %v641_v47 = vld [vmem:[%s7191_s15 + $0x238] sm:$0xff]  ;;  %v643_v48 = vld [vmem:[%s7191_s15 + $0x240] sm:$0xff]  ;;  %v645_v49 = vld [vmem:[%s7191_s15 + $0x248] sm:$0xff] }
  0x35   : > { %590 = vst [vmem:[%s7196_s29 + $0x68] sm:$0xff] %v589_v21  ;;  %v647_v50 = vld [vmem:[%s7191_s15 + $0x250] sm:$0xff]  ;;  %v649_v51 = vld [vmem:[%s7191_s15 + $0x258] sm:$0xff]  ;;  %v651_v52 = vld [vmem:[%s7191_s15 + $0x260] sm:$0xff] }
  0x36   : > { %592 = vst [vmem:[%s7196_s29 + $0x70] sm:$0xff] %v591_v22  ;;  %v653_v53 = vld [vmem:[%s7191_s15 + $0x268] sm:$0xff]  ;;  %v655_v54 = vld [vmem:[%s7191_s15 + $0x270] sm:$0xff]  ;;  %v657_v55 = vld [vmem:[%s7191_s15 + $0x278] sm:$0xff] }
  0x37   : > { %594 = vst [vmem:[%s7196_s29 + $0x78] sm:$0xff] %v593_v23  ;;  %v659_v56 = vld [vmem:[%s7191_s15 + $0x280] sm:$0xff]  ;;  %v661_v57 = vld [vmem:[%s7191_s15 + $0x288] sm:$0xff]  ;;  %v663_v58 = vld [vmem:[%s7191_s15 + $0x290] sm:$0xff] }
  0x38   : > { %596 = vst [vmem:[%s7196_s29 + $0x80] sm:$0xff] %v595_v24  ;;  %v665_v59 = vld [vmem:[%s7191_s15 + $0x298] sm:$0xff]  ;;  %v667_v60 = vld [vmem:[%s7191_s15 + $0x2a0] sm:$0xff]  ;;  %v669_v61 = vld [vmem:[%s7191_s15 + $0x2a8] sm:$0xff] }
  0x39   : > { %598 = vst [vmem:[%s7196_s29 + $0x88] sm:$0xff] %v597_v25  ;;  %v671_v62 = vld [vmem:[%s7191_s15 + $0x2b0] sm:$0xff]  ;;  %v673_v63 = vld [vmem:[%s7191_s15 + $0x2b8] sm:$0xff]  ;;  %v675_v0 = vld [vmem:[%s7191_s15 + $0x2c0] sm:$0xff] }
  0x3a   : > { %600 = vst [vmem:[%s7196_s29 + $0x90] sm:$0xff] %v599_v26  ;;  %v677_v1 = vld [vmem:[%s7191_s15 + $0x2c8] sm:$0xff]  ;;  %v679_v2 = vld [vmem:[%s7191_s15 + $0x2d0] sm:$0xff]  ;;  %v681_v3 = vld [vmem:[%s7191_s15 + $0x2d8] sm:$0xff] }
  0x3b   : > { %602 = vst [vmem:[%s7196_s29 + $0x98] sm:$0xff] %v601_v27  ;;  %v683_v4 = vld [vmem:[%s7191_s15 + $0x2e0] sm:$0xff]  ;;  %v685_v5 = vld [vmem:[%s7191_s15 + $0x2e8] sm:$0xff]  ;;  %v687_v6 = vld [vmem:[%s7191_s15 + $0x2f0] sm:$0xff] }
  0x3c   : > { %604 = vst [vmem:[%s7196_s29 + $0xa0] sm:$0xff] %v603_v28  ;;  %v689_v7 = vld [vmem:[%s7191_s15 + $0x2f8] sm:$0xff] }
  0x3d   : > { %606 = vst [vmem:[%s7196_s29 + $0xa8] sm:$0xff] %v605_v29 }
  0x3e   : > { %608 = vst [vmem:[%s7196_s29 + $0xb0] sm:$0xff] %v607_v30 }
  0x3f   : > { %610 = vst [vmem:[%s7196_s29 + $0xb8] sm:$0xff] %v609_v31 }
  0x40   : > { %612 = vst [vmem:[%s7196_s29 + $0xc0] sm:$0xff] %v611_v32 }
  0x41   : > { %614 = vst [vmem:[%s7196_s29 + $0xc8] sm:$0xff] %v613_v33 }
  0x42   : > { %616 = vst [vmem:[%s7196_s29 + $0xd0] sm:$0xff] %v615_v34 }
  0x43   : > { %618 = vst [vmem:[%s7196_s29 + $0xd8] sm:$0xff] %v617_v35 }
  0x44   : > { %620 = vst [vmem:[%s7196_s29 + $0xe0] sm:$0xff] %v619_v36 }
  0x45   : > { %622 = vst [vmem:[%s7196_s29 + $0xe8] sm:$0xff] %v621_v37 }
  0x46   : > { %624 = vst [vmem:[%s7196_s29 + $0xf0] sm:$0xff] %v623_v38 }
  0x47   : > { %626 = vst [vmem:[%s7196_s29 + $0xf8] sm:$0xff] %v625_v39 }
  0x48   : > { %628 = vst [vmem:[%s7196_s29 + $0x100] sm:$0xff] %v627_v40 }
  0x49   : > { %630 = vst [vmem:[%s7196_s29 + $0x108] sm:$0xff] %v629_v41 }
  0x4a   : > { %632 = vst [vmem:[%s7196_s29 + $0x110] sm:$0xff] %v631_v42 }
  0x4b   : > { %634 = vst [vmem:[%s7196_s29 + $0x118] sm:$0xff] %v633_v43 }
  0x4c   : > { %636 = vst [vmem:[%s7196_s29 + $0x120] sm:$0xff] %v635_v44 }
  0x4d   : > { %638 = vst [vmem:[%s7196_s29 + $0x128] sm:$0xff] %v637_v45 }
  0x4e   : > { %640 = vst [vmem:[%s7196_s29 + $0x130] sm:$0xff] %v639_v46 }
  0x4f   : > { %642 = vst [vmem:[%s7196_s29 + $0x138] sm:$0xff] %v641_v47 }
  0x50   : > { %644 = vst [vmem:[%s7196_s29 + $0x140] sm:$0xff] %v643_v48 }
  0x51   : > { %646 = vst [vmem:[%s7196_s29 + $0x148] sm:$0xff] %v645_v49 }
  0x52   : > { %648 = vst [vmem:[%s7196_s29 + $0x150] sm:$0xff] %v647_v50 }
  0x53   : > { %650 = vst [vmem:[%s7196_s29 + $0x158] sm:$0xff] %v649_v51 }
  0x54   : > { %652 = vst [vmem:[%s7196_s29 + $0x160] sm:$0xff] %v651_v52 }
  0x55   : > { %654 = vst [vmem:[%s7196_s29 + $0x168] sm:$0xff] %v653_v53 }
  0x56   : > { %656 = vst [vmem:[%s7196_s29 + $0x170] sm:$0xff] %v655_v54 }
  0x57   : > { %658 = vst [vmem:[%s7196_s29 + $0x178] sm:$0xff] %v657_v55 }
  0x58   : > { %660 = vst [vmem:[%s7196_s29 + $0x180] sm:$0xff] %v659_v56 }
  0x59   : > { %662 = vst [vmem:[%s7196_s29 + $0x188] sm:$0xff] %v661_v57 }
  0x5a   : > { %664 = vst [vmem:[%s7196_s29 + $0x190] sm:$0xff] %v663_v58 }
  0x5b   : > { %666 = vst [vmem:[%s7196_s29 + $0x198] sm:$0xff] %v665_v59 }
  0x5c   : > { %668 = vst [vmem:[%s7196_s29 + $0x1a0] sm:$0xff] %v667_v60 }
  0x5d   : > { %670 = vst [vmem:[%s7196_s29 + $0x1a8] sm:$0xff] %v669_v61 }
  0x5e   : > { %672 = vst [vmem:[%s7196_s29 + $0x1b0] sm:$0xff] %v671_v62 }
  0x5f   : > { %674 = vst [vmem:[%s7196_s29 + $0x1b8] sm:$0xff] %v673_v63 }
  0x60   : > { %676 = vst [vmem:[%s7196_s29 + $0x1c0] sm:$0xff] %v675_v0 }
  0x61   : > { %678 = vst [vmem:[%s7196_s29 + $0x1c8] sm:$0xff] %v677_v1 }
  0x62   : > { %680 = vst [vmem:[%s7196_s29 + $0x1d0] sm:$0xff] %v679_v2 }
  0x63   : > { %682 = vst [vmem:[%s7196_s29 + $0x1d8] sm:$0xff] %v681_v3 }
  0x64   : > { %684 = vst [vmem:[%s7196_s29 + $0x1e0] sm:$0xff] %v683_v4 }
  0x65   : > { %686 = vst [vmem:[%s7196_s29 + $0x1e8] sm:$0xff] %v685_v5 }
  0x66   : > { %688 = vst [vmem:[%s7196_s29 + $0x1f0] sm:$0xff] %v687_v6 }
  0x67   : > { %690 = vst [vmem:[%s7196_s29 + $0x1f8] sm:$0xff] %v689_v7 }
  0x68 PF: > { %p6584_p7 = scmp.ge.s32.totalorder %s7045_s23, 1  ;;  %p695_p8 = scmp.lt.s32.totalorder %s7045_s23, 3 }
  0x6a   : > { %p696_p9 = pnand %p6584_p7, %p695_p8 }
  0x6b   : > { %s7326_s16 = sand.u32 (!%p696_p9), 1, %s7037_s21   ;;  %s7047_s19 = smov (!%p696_p9), 127  }
  0x6c   : > { %699 = sbr.rel (%p696_p9) target bundleno = 2690 (0xa82), region = 117  ;;  %s6585_s17 = sshll.u32 (!%p696_p9), %s7326_s16, 6 }
  0x6d   : > { %s7329_s18 = scalar_lea.vmem (!%p696_p9), [#allocation5], %s6585_s17  ;;  %s7048_s21 = smov (!%p696_p9), 126  }
  0x6e   : > { %s7049_s23 = smov (!%p696_p9), 110   ;;  %s8948_s20 = smov (!%p696_p9), 109  }
  0x6f   : > { %s8946_s26 = smov (!%p696_p9), 108   ;;  %s8944_s27 = smov (!%p696_p9), 92  }
  0x70   : > { %s8942_s13 = smov (!%p696_p9), 91   ;;  %s8940_s14 = smov (!%p696_p9), 90  }
  0x71   : > { %v761_v8 = vld [vmem:[%s7329_s18 + $0x10] sm:$0xff]  ;;  %v759_v9 = vld [vmem:[%s7329_s18] sm:$0xff]  ;;  %v766_v12 = vld [vmem:[%s7329_s18 + $0x18] sm:$0xff]  ;;  %vm790_vm0 = vcmask 1043456   ;;  %s8977_s1 = sld [smem:[#allocation10_spill]]  ;;  %vm786_vm1 = vcmask 64512  }
  0x72   : > { %v7333_v10 = vpack.c.bf16 %v761_v8, %v761_v8  ;;  %v762_v11 = vpack.c.bf16 %v759_v9, %v759_v9  ;;  %v760_v13 = vld [vmem:[%s7329_s18 + $0x8] sm:$0xff]  ;;  %v767_v14 = vpack.c.bf16 %v766_v12, %v766_v12  ;;  %vm782_vm2 = vcmask 1039360   ;;  %s8978_s17 = smov 90   ;;  %s8979_s15 = smov 108  }
  0x73   : > { %v763_v15 = vpack.c.bf16 %v760_v13, %v760_v13  ;;  %vm900_vm3 = vcmask 1031168   ;;  %vm968_vm4 = vcmask 900096   ;;  %vm1036_vm5 = vcmask 891904   ;;  %s7062_s0 = smov 1   ;;  %s8964_s29 = smov 93  }
  0x74   : > { %778 = vrot.lane.b32.xlu1 %v7333_v10, %s7047_s19  ;;  %774 = vrot.lane.b32.xlu0 %v762_v11, %s7047_s19  ;;  %v843_v16 = vsel %vm790_vm0, %v762_v11, 0  ;;  %v849_v30 = vsel %vm790_vm0, %v7333_v10, 0  ;;  %vm1104_vm6 = vcmask 883712   ;;  %vm1172_vm7 = vcmask 752640  }
  0x75   : > { %892 = vrot.lane.b32.xlu2 %v762_v11, %s7048_s21  ;;  %858 = vmatpush.bf16.msra.mxu3 %v843_v16  ;;  %v846_v26 = vsel %vm790_vm0, %v763_v15, 0  ;;  %vm1240_vm8 = vcmask 744448   ;;  %vm1308_vm9 = vcmask 736256   ;;  %vm2026_vm10 = vcmask 310272  }
  0x76   : > { %vm4052_vm11 = vcmask 7168   ;;  %vm4616_vm12 = vcmask 23552   ;;  %vm3644_vm13 = vcmask 130048  }
  0x77   : > { %v765_v17 = vld [vmem:[%s8977_s1] sm:$0xf]  ;;  %v6588_v35 = vld [vmem:[%s8977_s1 + $0x4] sm:$0xf]  ;;  %v6595_v43 = vld [vmem:[%s8977_s1 + $0x8] sm:$0xf] }
  0x78   : > { %6592 = vmatmul.msk.bf16.vlgmr.msra.gmra.mxu3 %vm786_vm1, %v765_v17  ;;  %v6599_v60 = vld [vmem:[%s8977_s1 + $0xc] sm:$0xf] }
  0x7c   : > { %780 = vrot.lane.b32.xlu1 %v767_v14, %s7047_s19  ;;  %776 = vrot.lane.b32.xlu0 %v763_v15, %s7047_s19 }
  0x7d   : > { %894 = vrot.lane.b32.xlu2 %v763_v15, %s7048_s21 }
  0x84   : > { %896 = vrot.lane.b32.xlu0 %v7333_v10, %s7048_s21  ;;  %898 = vrot.lane.b32.xlu1 %v767_v14, %s7048_s21 }
  0x85   : > { %960 = vrot.lane.b32.xlu2 %v762_v11, %s7049_s23 }
  0x8c   : > { %964 = vrot.lane.b32.xlu1 %v7333_v10, %s7049_s23  ;;  %962 = vrot.lane.b32.xlu0 %v763_v15, %s7049_s23 }
  0x8d   : > { %966 = vrot.lane.b32.xlu2 %v767_v14, %s7049_s23 }
  0x94   : > { %1030 = vrot.lane.b32.xlu1 %v763_v15, %s8948_s20  ;;  %1028 = vrot.lane.b32.xlu0 %v762_v11, %s8948_s20 }
  0x95   : > { %1032 = vrot.lane.b32.xlu2 %v7333_v10, %s8948_s20 }
  0x9c   : > { %1096 = vrot.lane.b32.xlu1 %v762_v11, %s8946_s26  ;;  %1034 = vrot.lane.b32.xlu0 %v767_v14, %s8948_s20 }
  0x9d   : > { %1098 = vrot.lane.b32.xlu2 %v763_v15, %s8946_s26 }
  0xa4   : > { %1102 = vrot.lane.b32.xlu1 %v767_v14, %s8946_s26  ;;  %1100 = vrot.lane.b32.xlu0 %v7333_v10, %s8946_s26 }
  0xa5   : > { %1164 = vrot.lane.b32.xlu2 %v762_v11, %s8944_s27 }
  0xac   : > { %1168 = vrot.lane.b32.xlu1 %v7333_v10, %s8944_s27  ;;  %1166 = vrot.lane.b32.xlu0 %v763_v15, %s8944_s27 }
  0xad   : > { %1170 = vrot.lane.b32.xlu2 %v767_v14, %s8944_s27 }
  0xb4   : > { %1232 = vrot.lane.b32.xlu0 %v762_v11, %s8942_s13  ;;  %1234 = vrot.lane.b32.xlu1 %v763_v15, %s8942_s13 }
  0xb5   : > { %1236 = vrot.lane.b32.xlu2 %v7333_v10, %s8942_s13 }
  0xbc   : > { %1238 = vrot.lane.b32.xlu0 %v767_v14, %s8942_s13  ;;  %1300 = vrot.lane.b32.xlu1 %v762_v11, %s8940_s14 }
  0xbd   : > { %1302 = vrot.lane.b32.xlu2 %v763_v15, %s8940_s14 }
  0xc4   : > { %1306 = vrot.lane.b32.xlu1 %v767_v14, %s8940_s14  ;;  %1304 = vrot.lane.b32.xlu0 %v7333_v10, %s8940_s14  ;;  %v6607_v10 = vld [vmem:[%s8977_s1 + $0x14] sm:$0xf]  ;;  %s8980_s14 = smov 92  }
  0xcf   : > { %v893_v18 = vpop.permute.xlu2 %892 }
  0xd7   : > { %v895_v19 = vpop.permute.xlu2 %894 }
  0xd8   : > { %v901_v23 = vsel %vm900_vm3, %v893_v18, %v895_v19 }
  0xd9   : > { %v908_v34 = vsel %vm790_vm0, %v901_v23, 0 }
  0xdf   : > { %v961_v22 = vpop.permute.xlu2 %960 }
  0xe6   : > { %v779_v20 = vpop.permute.xlu1 %778  ;;  %v775_v21 = vpop.permute.xlu0 %774 }
  0xe7   : > { %v967_v36 = vpop.permute.xlu2 %966 }
  0xee   : > { %v781_v24 = vpop.permute.xlu1 %780  ;;  %v777_v25 = vpop.permute.xlu0 %776 }
  0xef   : > { %v783_v27 = vsel %vm782_vm2, %v775_v21, %v777_v25  ;;  %v784_v28 = vsel %vm782_vm2, %v777_v25, %v779_v20  ;;  %v785_v29 = vsel %vm782_vm2, %v779_v20, %v781_v24  ;;  %v1033_v44 = vpop.permute.xlu2 %1032 }
  0xf0   : > { %v792_v31 = vsel %vm790_vm0, %v783_v27, 0  ;;  %v795_v32 = vsel %vm790_vm0, %v784_v28, 0  ;;  %v798_v33 = vsel %vm790_vm0, %v785_v29, 0  ;;  %v6611_v28 = vld [vmem:[%s8977_s1 + $0x18] sm:$0xf] }
  0xf1   : > { %807 = vmatpush.bf16.msra.mxu0 %v792_v31  ;;  %820 = vmatpush.bf16.msra.mxu1 %v795_v32 }
  0xf2   : > { %833 = vmatpush.bf16.msra.mxu2 %v798_v33 }
  0xf4   : > { %6589 = vmatmul.msk.bf16.vlgmr.msra.gmra.mxu0 %vm786_vm1, %v6588_v35  ;;  %6590 = vmatmul.msk.bf16.vlgmr.msra.gmra.mxu1 %vm786_vm1, %v6588_v35 }
  0xf5   : > { %871 = vmatpush.bf16.msrb.mxu0 %v846_v26  ;;  %884 = vmatpush.bf16.msrb.mxu1 %v849_v30 }
  0xf6   : > { %923 = vmatpush.bf16.msrb.mxu2 %v908_v34  ;;  %v897_v37 = vpop.permute.xlu0 %896  ;;  %v899_v38 = vpop.permute.xlu1 %898 }
  0xf7   : > { %6591 = vmatmul.msk.bf16.vlgmr.msra.gmra.mxu2 %vm786_vm1, %v6588_v35  ;;  %v902_v39 = vsel %vm900_vm3, %v895_v19, %v897_v37  ;;  %v903_v40 = vsel %vm900_vm3, %v897_v37, %v899_v38  ;;  %v1099_v59 = vpop.permute.xlu2 %1098  ;;  %v6603_v19 = vld [vmem:[%s8977_s1 + $0x10] sm:$0xf] }
  0xf8   : > { %v911_v41 = vsel %vm790_vm0, %v902_v39, 0  ;;  %v914_v42 = vsel %vm790_vm0, %v903_v40, 0 }
  0xf9   : > { %936 = vmatpush.bf16.msrb.mxu3 %v911_v41  ;;  %949 = vmatpush.bf16.msra.mxu0 %v914_v42  ;;  %v6615_v42 = vld [vmem:[%s8977_s1 + $0x1c] sm:$0xf] }
  0xfc   : > { %6597 = vmatmul.msk.bf16.vlgmr.msrb.gmra.mxu3 %vm786_vm1, %v6595_v43 }
  0xfe   : > { %v965_v45 = vpop.permute.xlu1 %964  ;;  %v963_v46 = vpop.permute.xlu0 %962 }
  0xff   : > { %v971_v47 = vsel %vm968_vm4, %v965_v45, %v967_v36  ;;  %v969_v48 = vsel %vm968_vm4, %v961_v22, %v963_v46  ;;  %v970_v49 = vsel %vm968_vm4, %v963_v46, %v965_v45  ;;  %v1165_v3 = vpop.permute.xlu2 %1164  ;;  %v7486_v45 = vld [vmem:[%s8929_s2] sm:$0xff]  ;;  %v7055_v46 = vmov 0  }
 0x100   : > { %v982_v50 = vsel %vm790_vm0, %v971_v47, 0  ;;  %v976_v51 = vsel %vm790_vm0, %v969_v48, 0  ;;  %v979_v52 = vsel %vm790_vm0, %v970_v49, 0  ;;  %6940 = vset.pattern.permute.xlu2 %v7055_v46  ;;  %6941 = vset.pattern.permute.xlu1 %v7055_v46 }
 0x101   : > { %1017 = vmatpush.bf16.msra.mxu3 %v982_v50  ;;  %991 = vmatpush.bf16.msra.mxu1 %v976_v51 }
 0x102   : > { %1004 = vmatpush.bf16.msra.mxu2 %v979_v52  ;;  %1369 = vperm.xlu2 %6940, %v7486_v45  }
 0x104   : > { %6593 = vmatmul.msk.bf16.vlgmr.msrb.gmra.mxu0 %vm786_vm1, %v765_v17  ;;  %6594 = vmatmul.msk.bf16.vlgmr.msrb.gmra.mxu1 %vm786_vm1, %v765_v17 }
 0x106   : > { %v1031_v53 = vpop.permute.xlu1 %1030  ;;  %v1029_v54 = vpop.permute.xlu0 %1028 }
 0x107   : > { %6596 = vmatmul.msk.bf16.vlgmr.msrb.gmra.mxu2 %vm786_vm1, %v6595_v43  ;;  %v1038_v55 = vsel %vm1036_vm5, %v1031_v53, %v1033_v44  ;;  %v1037_v56 = vsel %vm1036_vm5, %v1029_v54, %v1031_v53  ;;  %v1171_v11 = vpop.permute.xlu2 %1170 }
 0x108   : > { %v1047_v57 = vsel %vm790_vm0, %v1038_v55, 0  ;;  %v1044_v58 = vsel %vm790_vm0, %v1037_v56, 0 }
 0x109   : > { %1059 = vmatpush.bf16.msrb.mxu0 %v1044_v58  ;;  %1072 = vmatpush.bf16.msrb.mxu1 %v1047_v57 }
 0x10c   : > { %6602 = vmatmul.msk.bf16.vlgmr.msra.gmra.mxu3 %vm786_vm1, %v6599_v60 }
 0x10e   : > { %v1097_v61 = vpop.permute.xlu1 %1096  ;;  %v1035_v62 = vpop.permute.xlu0 %1034 }
 0x10f   : > { %v1105_v63 = vsel %vm1104_vm6, %v1097_v61, %v1099_v59  ;;  %v1039_v0 = vsel %vm1036_vm5, %v1033_v44, %v1035_v62  ;;  %v1237_v21 = vpop.permute.xlu2 %1236  ;;  %v860_v44 = vpop.f32.mrf.mxu3 }
 0x110   : > { %v1050_v1 = vsel %vm790_vm0, %v1039_v0, 0  ;;  %v1112_v2 = vsel %vm790_vm0, %v1105_v63, 0 }
 0x111   : > { %1127 = vmatpush.bf16.msrb.mxu3 %v1112_v2  ;;  %1085 = vmatpush.bf16.msrb.mxu2 %v1050_v1 }
 0x114   : > { %6598 = vmatmul.msk.bf16.vlgmr.msra.gmra.mxu0 %vm786_vm1, %v6595_v43  ;;  %6600 = vmatmul.msk.bf16.vlgmr.msra.gmra.mxu1 %vm786_vm1, %v6599_v60  ;;  %v6619_v43 = vld [vmem:[%s8977_s1 + $0x20] sm:$0xf] }
 0x116   : > { %v1103_v4 = vpop.permute.xlu1 %1102  ;;  %v1101_v5 = vpop.permute.xlu0 %1100 }
 0x117   : > { %6601 = vmatmul.msk.bf16.vlgmr.msra.gmra.mxu2 %vm786_vm1, %v6599_v60  ;;  %v1106_v6 = vsel %vm1104_vm6, %v1099_v59, %v1101_v5  ;;  %v1107_v7 = vsel %vm1104_vm6, %v1101_v5, %v1103_v4  ;;  %v1303_v29 = vpop.permute.xlu2 %1302  ;;  %v862_v47 = vpop.f32.mrf.mxu3 }
 0x118   : > { %v1115_v8 = vsel %vm790_vm0, %v1106_v6, 0  ;;  %v1118_v9 = vsel %vm790_vm0, %v1107_v7, 0 }
 0x119   : > { %1140 = vmatpush.bf16.msra.mxu0 %v1115_v8  ;;  %1153 = vmatpush.bf16.msra.mxu1 %v1118_v9 }
 0x11c   : > { %6608 = vmatmul.msk.bf16.vlgmr.msrb.gmra.mxu3 %vm786_vm1, %v6607_v10 }
 0x11e   : > { %v1169_v12 = vpop.permute.xlu1 %1168  ;;  %v1167_v13 = vpop.permute.xlu0 %1166 }
 0x11f   : > { %v1173_v14 = vsel %vm1172_vm7, %v1165_v3, %v1167_v13  ;;  %v1174_v15 = vsel %vm1172_vm7, %v1167_v13, %v1169_v12  ;;  %v1175_v16 = vsel %vm1172_vm7, %v1169_v12, %v1171_v11 }
 0x120   : > { %v1183_v17 = vsel %vm790_vm0, %v1174_v15, 0  ;;  %v1180_v18 = vsel %vm790_vm0, %v1173_v14, 0  ;;  %v1186_v20 = vsel %vm790_vm0, %v1175_v16, 0 }
 0x121   : > { %1208 = vmatpush.bf16.msra.mxu3 %v1183_v17  ;;  %1195 = vmatpush.bf16.msra.mxu2 %v1180_v18 }
 0x124   : > { %6604 = vmatmul.msk.bf16.vlgmr.msrb.gmra.mxu0 %vm786_vm1, %v6603_v19  ;;  %6605 = vmatmul.msk.bf16.vlgmr.msrb.gmra.mxu1 %vm786_vm1, %v6603_v19 }
 0x125   : > { %1221 = vmatpush.bf16.msrb.mxu0 %v1186_v20 }
 0x126   : > { %v1233_v22 = vpop.permute.xlu0 %1232  ;;  %v1235_v23 = vpop.permute.xlu1 %1234 }
 0x127   : > { %6606 = vmatmul.msk.bf16.vlgmr.msrb.gmra.mxu2 %vm786_vm1, %v6603_v19  ;;  %v1241_v24 = vsel %vm1240_vm8, %v1233_v22, %v1235_v23  ;;  %v1242_v25 = vsel %vm1240_vm8, %v1235_v23, %v1237_v21 }
 0x128   : > { %v1248_v26 = vsel %vm790_vm0, %v1241_v24, 0  ;;  %v1251_v27 = vsel %vm790_vm0, %v1242_v25, 0 }
 0x129   : > { %1263 = vmatpush.bf16.msrb.mxu1 %v1248_v26  ;;  %1276 = vmatpush.bf16.msrb.mxu2 %v1251_v27 }
 0x12c   : > { %6613 = vmatmul.msk.bf16.vlgmr.msra.gmra.mxu3 %vm786_vm1, %v6611_v28 }
 0x12e   : > { %v1239_v30 = vpop.permute.xlu0 %1238  ;;  %v1301_v31 = vpop.permute.xlu1 %1300 }
 0x12f   : > { %v1243_v32 = vsel %vm1240_vm8, %v1237_v21, %v1239_v30  ;;  %v1309_v33 = vsel %vm1308_vm9, %v1301_v31, %v1303_v29 }
 0x130   : > { %v1254_v34 = vsel %vm790_vm0, %v1243_v32, 0  ;;  %v1316_v35 = vsel %vm790_vm0, %v1309_v33, 0 }
 0x131   : > { %1289 = vmatpush.bf16.msrb.mxu3 %v1254_v34 }
 0x134   : > { %6609 = vmatmul.msk.bf16.vlgmr.msra.gmra.mxu0 %vm786_vm1, %v6607_v10  ;;  %6610 = vmatmul.msk.bf16.vlgmr.msra.gmra.mxu1 %vm786_vm1, %v6607_v10 }
 0x135   : > { %1331 = vmatpush.bf16.msra.mxu0 %v1316_v35 }
 0x136   : > { %v1307_v36 = vpop.permute.xlu1 %1306  ;;  %v1305_v37 = vpop.permute.xlu0 %1304 }
 0x137   : > { %6612 = vmatmul.msk.bf16.vlgmr.msra.gmra.mxu2 %vm786_vm1, %v6611_v28  ;;  %v1310_v38 = vsel %vm1308_vm9, %v1303_v29, %v1305_v37  ;;  %v1311_v39 = vsel %vm1308_vm9, %v1305_v37, %v1307_v36 }
 0x138   : > { %v1319_v40 = vsel %vm790_vm0, %v1310_v38, 0  ;;  %v1322_v41 = vsel %vm790_vm0, %v1311_v39, 0 }
 0x139   : > { %1344 = vmatpush.bf16.msra.mxu1 %v1319_v40  ;;  %1357 = vmatpush.bf16.msra.mxu2 %v1322_v41 }
 0x13c   : > { %6618 = vmatmul.msk.bf16.vlgmr.msrb.gmra.mxu3 %vm786_vm1, %v6615_v42 }
 0x144   : > { %6614 = vmatmul.msk.bf16.vlgmr.msrb.gmra.mxu0 %vm786_vm1, %v6611_v28  ;;  %6616 = vmatmul.msk.bf16.vlgmr.msrb.gmra.mxu1 %vm786_vm1, %v6615_v42 }
 0x147   : > { %6617 = vmatmul.msk.bf16.vlgmr.msrb.gmra.mxu2 %vm786_vm1, %v6615_v42 }
 0x154   : > { %6620 = vmatmul.msk.bf16.vlgmr.msra.gmra.mxu0 %vm786_vm1, %v6619_v43  ;;  %6621 = vmatmul.msk.bf16.vlgmr.msra.gmra.mxu1 %vm786_vm1, %v6619_v43 }
 0x157   : > { %6622 = vmatmul.msk.bf16.vlgmr.msra.gmra.mxu2 %vm786_vm1, %v6619_v43 }
 0x171   : > { %v809_v48 = vpop.f32.mrf.mxu0  ;;  %v822_v49 = vpop.f32.mrf.mxu1 }
 0x172   : > { %v861_v50 = vadd.f32 %v860_v44, %v809_v48 }
 0x179   : > { %v811_v52 = vpop.f32.mrf.mxu0  ;;  %v824_v53 = vpop.f32.mrf.mxu1 }
 0x17a   : > { %v835_v51 = vpop.f32.mrf.mxu2 }
 0x17f   : > { %v938_v54 = vpop.f32.mrf.mxu3 }
 0x181   : > { %v873_v56 = vpop.f32.mrf.mxu0  ;;  %v886_v57 = vpop.f32.mrf.mxu1 }
 0x182   : > { %v837_v55 = vpop.f32.mrf.mxu2  ;;  %v874_v58 = vadd.f32 %v873_v56, %v822_v49  ;;  %v887_v59 = vadd.f32 %v886_v57, %v835_v51  ;;  %v1370_v51 = vpop.permute.xlu2 %1369  ;;  %v1381_v57 = vld [vmem:[%s8936_s9] sm:$0x7] }
 0x184   : > { %v956_v60 = vadd.f32 %v938_v54, %v874_v58 }
 0x187   : > { %v940_v61 = vpop.f32.mrf.mxu3 }
 0x188   : > { %v1384_v61 = vperm.slane %v1381_v57, 1 }
 0x189   : > { %v875_v63 = vpop.f32.mrf.mxu0  ;;  %v888_v0 = vpop.f32.mrf.mxu1 }
 0x18a   : > { %v925_v62 = vpop.f32.mrf.mxu2 }
 0x18b   : > { %v955_v29 = vadd.f32 %v925_v62, %v861_v50 }
 0x18f   : > { %v1019_v1 = vpop.f32.mrf.mxu3 }
 0x191   : > { %v951_v3 = vpop.f32.mrf.mxu0  ;;  %v993_v4 = vpop.f32.mrf.mxu1 }
 0x192   : > { %v927_v2 = vpop.f32.mrf.mxu2  ;;  %v1023_v30 = vadd.f32 %v993_v4, %v955_v29  ;;  %v957_v36 = vadd.f32 %v951_v3, %v887_v59 }
 0x194   : > { %v1025_v41 = vadd.f32 %v1019_v1, %v957_v36 }
 0x197   : > { %v1021_v5 = vpop.f32.mrf.mxu3 }
 0x199   : > { %v953_v7 = vpop.f32.mrf.mxu0  ;;  %v995_v8 = vpop.f32.mrf.mxu1 }
 0x19a   : > { %v1006_v6 = vpop.f32.mrf.mxu2 }
 0x19b   : > { %v1024_v31 = vadd.f32 %v1006_v6, %v956_v60  ;;  %v1383_v60 = vperm.slane %v1381_v57, 0 }
 0x19f   : > { %v1129_v9 = vpop.f32.mrf.mxu3 }
 0x1a1   : > { %v1061_v11 = vpop.f32.mrf.mxu0  ;;  %v1074_v12 = vpop.f32.mrf.mxu1 }
 0x1a2   : > { %v1008_v10 = vpop.f32.mrf.mxu2  ;;  %v1091_v33 = vadd.f32 %v1061_v11, %v1023_v30  ;;  %v1092_v34 = vadd.f32 %v1074_v12, %v1024_v31  ;;  %v6666_v30 = vld [vmem:[%s7329_s18 + $0x30] sm:$0xff] }
 0x1a4   : > { %v1159_v40 = vadd.f32 %v1129_v9, %v1091_v33 }
 0x1a7   : > { %v1131_v13 = vpop.f32.mrf.mxu3 }
 0x1a8   : > { %v1385_v13 = vperm.slane %v1381_v57, 2 }
 0x1a9   : > { %v1063_v15 = vpop.f32.mrf.mxu0  ;;  %v1076_v16 = vpop.f32.mrf.mxu1 }
 0x1aa   : > { %v1087_v14 = vpop.f32.mrf.mxu2 }
 0x1ab   : > { %v1093_v44 = vadd.f32 %v1087_v14, %v1025_v41 }
 0x1af   : > { %v1210_v17 = vpop.f32.mrf.mxu3 }
 0x1b1   : > { %v1142_v19 = vpop.f32.mrf.mxu0  ;;  %v1155_v20 = vpop.f32.mrf.mxu1 }
 0x1b2   : > { %v1089_v18 = vpop.f32.mrf.mxu2  ;;  %v1160_v39 = vadd.f32 %v1142_v19, %v1092_v34  ;;  %v1161_v50 = vadd.f32 %v1155_v20, %v1093_v44  ;;  %v7056_v19 = vmov 0.0|0.0   ;;  %v6664_v20 = vld [vmem:[%s7329_s18 + $0x20] sm:$0xff] }
 0x1b4   : > { %v1228_v42 = vadd.f32 %v1210_v17, %v1160_v39 }
 0x1b7   : > { %v1212_v21 = vpop.f32.mrf.mxu3 }
 0x1b8   : > { %v7550_v21 = vpack.c.bf16 %v6664_v20, %v6664_v20 }
 0x1b9   : > { %v1144_v23 = vpop.f32.mrf.mxu0  ;;  %v1157_v24 = vpop.f32.mrf.mxu1 }
 0x1ba   : > { %v1197_v22 = vpop.f32.mrf.mxu2  ;;  %v2063_v23 = vld [vmem:[%s8933_s6] sm:$0xff]  ;;  %v6665_v24 = vld [vmem:[%s7329_s18 + $0x28] sm:$0xff] }
 0x1bb   : > { %v1227_v43 = vadd.f32 %v1197_v22, %v1159_v40  ;;  %v1998_v22 = vld [vmem:[%s8931_s4] sm:$0xff] }
 0x1bf   : > { %v1291_v25 = vpop.f32.mrf.mxu3 }
 0x1c1   : > { %v1223_v27 = vpop.f32.mrf.mxu0  ;;  %v1265_v28 = vpop.f32.mrf.mxu1 }
 0x1c2   : > { %v1199_v26 = vpop.f32.mrf.mxu2  ;;  %v1295_v47 = vadd.f32 %v1265_v28, %v1227_v43  ;;  %v1229_v56 = vadd.f32 %v1223_v27, %v1161_v50  ;;  %v7577_v27 = vpack.c.bf16 %v6665_v24, %v6665_v24  ;;  %v6667_v28 = vld [vmem:[%s7329_s18 + $0x38] sm:$0xff]  ;;  %v6623_v43 = vld [vmem:[%s8930_s3 + $0x4] sm:$0xf] }
 0x1c3   : > { %v2124_v26 = vld [vmem:[%s8935_s8] sm:$0xff]  ;;  %v7580_v29 = vpack.c.bf16 %v6667_v28, %v6667_v28 }
 0x1c4   : > { %v1297_v0 = vadd.f32 %v1291_v25, %v1229_v56  ;;  %v7570_v25 = vld [vmem:[%s8930_s3] sm:$0xf] }
 0x1c7   : > { %v1293_v32 = vpop.f32.mrf.mxu3 }
 0x1c8   : > { %v7587_v32 = vpack.c.bf16 %v6666_v30, %v6666_v30 }
 0x1c9   : > { %v1225_v37 = vpop.f32.mrf.mxu0  ;;  %v1267_v38 = vpop.f32.mrf.mxu1 }
 0x1ca   : > { %v1278_v35 = vpop.f32.mrf.mxu2 }
 0x1cb   : > { %v1296_v48 = vadd.f32 %v1278_v35, %v1228_v42 }
 0x1d1   : > { %v1333_v52 = vpop.f32.mrf.mxu0  ;;  %v1346_v53 = vpop.f32.mrf.mxu1 }
 0x1d2   : > { %v1280_v49 = vpop.f32.mrf.mxu2  ;;  %v1363_v54 = vadd.f32 %v1333_v52, %v1295_v47  ;;  %v1364_v55 = vadd.f32 %v1346_v53, %v1296_v48 }
 0x1d4   : > { %v1372_v58 = vadd.f32 %v1370_v51, %v1363_v54  ;;  %v1373_v59 = vadd.f32 %v1370_v51, %v1364_v55 }
 0x1d6   : > { %v1375_v62 = vmul.f32 0.1, %v1372_v58  ;;  %v1376_v63 = vmul.f32 0.1, %v1373_v59 }
 0x1d8   : > { %v1378_v1 = vmax.f32 %v1372_v58, %v1375_v62  ;;  %v1379_v2 = vmax.f32 %v1373_v59, %v1376_v63  ;;  %v6630_v59 = vld [vmem:[%s8930_s3 + $0x8] sm:$0xf] }
 0x1d9   : > { %v1335_v5 = vpop.f32.mrf.mxu0  ;;  %v1348_v6 = vpop.f32.mrf.mxu1 }
 0x1da   : > { %v1359_v3 = vpop.f32.mrf.mxu2  ;;  %v1389_v7 = vmul.f32 %v1383_v60, %v1378_v1  ;;  %v1390_v8 = vmul.f32 %v1384_v61, %v1379_v2 }
 0x1db   : > { %v1365_v4 = vadd.f32 %v1359_v3, %v1297_v0 }
 0x1dc   : > { %v1398_v10 = vpack.c.bf16 %v1389_v7, %v1389_v7  ;;  %v7494_v11 = vpack.c.bf16 %v1390_v8, %v1390_v8 }
 0x1dd   : > { %v1374_v9 = vadd.f32 %v1370_v51, %v1365_v4 }
 0x1de   : > { %1418 = vrot.lane.b32.xlu1 %v7494_v11, %s7047_s19  ;;  %1416 = vrot.lane.b32.xlu0 %v1398_v10, %s7047_s19  ;;  %v1482_v14 = vsel %vm790_vm0, %v1398_v10, 0  ;;  %v1485_v42 = vsel %vm790_vm0, %v7494_v11, 0 }
 0x1df   : > { %v1377_v12 = vmul.f32 0.1, %v1374_v9  ;;  %1497 = vmatpush.bf16.msrb.mxu2 %v1482_v14 }
 0x1e1   : > { %v1380_v15 = vmax.f32 %v1374_v9, %v1377_v12  ;;  %v6634_v12 = vld [vmem:[%s8930_s3 + $0xc] sm:$0xf] }
 0x1e2   : > { %v1361_v16 = vpop.f32.mrf.mxu2  ;;  %6627 = vmatmul.msk.bf16.vlgmr.msrb.gmra.mxu2 %vm786_vm1, %v7570_v25 }
 0x1e3   : > { %v1391_v17 = vmul.f32 %v1385_v13, %v1380_v15 }
 0x1e5   : > { %v7500_v18 = vpack.c.bf16 %v1391_v17, %v1391_v17 }
 0x1e6   : > { %1531 = vrot.lane.b32.xlu1 %v1398_v10, %s7048_s21  ;;  %1422 = vrot.lane.b32.xlu0 %v7056_v19, %s7047_s19 }
 0x1e7   : > { %1420 = vrot.lane.b32.xlu2 %v7500_v18, %s7047_s19  ;;  %v1488_v41 = vsel %vm790_vm0, %v7500_v18, 0 }
 0x1ee   : > { %1537 = vrot.lane.b32.xlu1 %v7056_v19, %s7048_s21  ;;  %1535 = vrot.lane.b32.xlu0 %v7500_v18, %s7048_s21 }
 0x1ef   : > { %1533 = vrot.lane.b32.xlu2 %v7494_v11, %s7048_s21 }
 0x1f6   : > { %1602 = vrot.lane.b32.xlu1 %v7500_v18, %s7049_s23  ;;  %1600 = vrot.lane.b32.xlu0 %v7494_v11, %s7049_s23 }
 0x1f7   : > { %1598 = vrot.lane.b32.xlu2 %v1398_v10, %s7049_s23 }
 0x1fe   : > { %1667 = vrot.lane.b32.xlu1 %v7494_v11, %s8948_s20  ;;  %1665 = vrot.lane.b32.xlu0 %v1398_v10, %s8948_s20 }
 0x1ff   : > { %1604 = vrot.lane.b32.xlu2 %v7056_v19, %s7049_s23 }
 0x206   : > { %1732 = vrot.lane.b32.xlu1 %v1398_v10, %s8946_s26  ;;  %1671 = vrot.lane.b32.xlu0 %v7056_v19, %s8948_s20 }
 0x207   : > { %1669 = vrot.lane.b32.xlu2 %v7500_v18, %s8948_s20 }
 0x20e   : > { %1738 = vrot.lane.b32.xlu1 %v7056_v19, %s8946_s26  ;;  %1736 = vrot.lane.b32.xlu0 %v7500_v18, %s8946_s26 }
 0x20f   : > { %1734 = vrot.lane.b32.xlu2 %v7494_v11, %s8946_s26  ;;  %s8950_s26 = smov 38  }
 0x216   : > { %1803 = vrot.lane.b32.xlu1 %v7500_v18, %s8944_s27  ;;  %1801 = vrot.lane.b32.xlu0 %v7494_v11, %s8944_s27 }
 0x217   : > { %1799 = vrot.lane.b32.xlu2 %v1398_v10, %s8944_s27 }
 0x21e   : > { %1868 = vrot.lane.b32.xlu1 %v7494_v11, %s8942_s13  ;;  %1866 = vrot.lane.b32.xlu0 %v1398_v10, %s8942_s13 }
 0x21f   : > { %1805 = vrot.lane.b32.xlu2 %v7056_v19, %s8944_s27  ;;  %s6888_s27 = smul.u32 48, %s7326_s16 }
 0x226   : > { %1933 = vrot.lane.b32.xlu1 %v1398_v10, %s8978_s17  ;;  %1872 = vrot.lane.b32.xlu0 %v7056_v19, %s8942_s13 }
 0x227   : > { %1870 = vrot.lane.b32.xlu2 %v7500_v18, %s8942_s13  ;;  %s8981_s13 = smov 91  }
 0x22e   : > { %1939 = vrot.lane.b32.xlu1 %v7056_v19, %s8978_s17  ;;  %2190 = vrot.lane.b32.xlu0 %v7550_v21, %s7047_s19 }
 0x22f   : > { %1935 = vrot.lane.b32.xlu2 %v7494_v11, %s8978_s17 }
 0x236   : > { %2066 = vperm.xlu1 %6941, %v2063_v23   ;;  %1937 = vrot.lane.b32.xlu0 %v7500_v18, %s8978_s17 }
 0x237   : > { %2001 = vperm.xlu2 %6940, %v1998_v22  }
 0x23e   : > { %2192 = vrot.lane.b32.xlu1 %v7577_v27, %s7047_s19  ;;  %2196 = vrot.lane.b32.xlu0 %v7580_v29, %s7047_s19 }
 0x23f   : > { %2127 = vperm.xlu2 %6940, %v2124_v26  }
 0x241   : > { %v1421_v31 = vpop.permute.xlu2 %1420 }
 0x246   : > { %2304 = vrot.lane.b32.xlu1 %v7550_v21, %s7048_s21  ;;  %2308 = vrot.lane.b32.xlu0 %v7587_v32, %s7048_s21 }
 0x247   : > { %2194 = vrot.lane.b32.xlu2 %v7587_v32, %s7047_s19 }
 0x249   : > { %v1534_v33 = vpop.permute.xlu2 %1533 }
 0x24e   : > { %2310 = vrot.lane.b32.xlu1 %v7580_v29, %s7048_s21  ;;  %2372 = vrot.lane.b32.xlu0 %v7577_v27, %s7049_s23 }
 0x24f   : > { %2306 = vrot.lane.b32.xlu2 %v7577_v27, %s7048_s21 }
 0x250   : > { %v1419_v34 = vpop.permute.xlu1 %1418  ;;  %v1417_v35 = vpop.permute.xlu0 %1416 }
 0x251   : > { %v1599_v36 = vpop.permute.xlu2 %1598  ;;  %v1425_v37 = vsel %vm782_vm2, %v1419_v34, %v1421_v31  ;;  %v1424_v38 = vsel %vm782_vm2, %v1417_v35, %v1419_v34 }
 0x252   : > { %v1431_v39 = vsel %vm790_vm0, %v1424_v38, 0  ;;  %v1434_v40 = vsel %vm790_vm0, %v1425_v37, 0 }
 0x253   : > { %1446 = vmatpush.bf16.msra.mxu3 %v1431_v39  ;;  %1459 = vmatpush.bf16.msrb.mxu0 %v1434_v40 }
 0x256   : > { %6625 = vmatmul.msk.bf16.vlgmr.msrb.gmra.mxu0 %vm786_vm1, %v6623_v43  ;;  %6624 = vmatmul.msk.bf16.vlgmr.msra.gmra.mxu3 %vm786_vm1, %v6623_v43 }
 0x257   : > { %1523 = vmatpush.bf16.msra.mxu0 %v1488_v41  ;;  %1510 = vmatpush.bf16.msrb.mxu3 %v1485_v42 }
 0x258   : > { %2370 = vrot.lane.b32.xlu2 %v7550_v21, %s7049_s23  ;;  %2374 = vrot.lane.b32.xlu1 %v7587_v32, %s7049_s23  ;;  %v1532_v44 = vpop.permute.xlu1 %1531  ;;  %v1423_v47 = vpop.permute.xlu0 %1422 }
 0x259   : > { %2436 = vrot.lane.b32.xlu0 %v7550_v21, %s8948_s20  ;;  %v1539_v48 = vsel %vm900_vm3, %v1532_v44, %v1534_v33  ;;  %v1426_v49 = vsel %vm782_vm2, %v1421_v31, %v1423_v47  ;;  %v1605_v52 = vpop.permute.xlu2 %1604  ;;  %v6638_v31 = vld [vmem:[%s8930_s3 + $0x10] sm:$0xf] }
 0x25a   : > { %v1546_v51 = vsel %vm790_vm0, %v1539_v48, 0  ;;  %v1437_v50 = vsel %vm790_vm0, %v1426_v49, 0 }
 0x25b   : > { %1472 = vmatpush.bf16.msrb.mxu1 %v1437_v50  ;;  %v6646_v50 = vld [vmem:[%s8930_s3 + $0x18] sm:$0xf] }
 0x25e   : > { %6626 = vmatmul.msk.bf16.vlgmr.msrb.gmra.mxu1 %vm786_vm1, %v6623_v43 }
 0x25f   : > { %1561 = vmatpush.bf16.msra.mxu1 %v1546_v51 }
 0x260   : > { %2376 = vrot.lane.b32.xlu2 %v7580_v29, %s7049_s23  ;;  %2438 = vrot.lane.b32.xlu1 %v7577_v27, %s8948_s20  ;;  %v1538_v53 = vpop.permute.xlu1 %1537  ;;  %v1536_v54 = vpop.permute.xlu0 %1535 }
 0x261   : > { %2442 = vrot.lane.b32.xlu0 %v7580_v29, %s8948_s20  ;;  %v1540_v55 = vsel %vm900_vm3, %v1534_v33, %v1536_v54  ;;  %v1541_v56 = vsel %vm900_vm3, %v1536_v54, %v1538_v53  ;;  %v1670_v60 = vpop.permute.xlu2 %1669  ;;  %v6642_v33 = vld [vmem:[%s8930_s3 + $0x14] sm:$0xf] }
 0x262   : > { %v1549_v57 = vsel %vm790_vm0, %v1540_v55, 0  ;;  %v1552_v58 = vsel %vm790_vm0, %v1541_v56, 0 }
 0x263   : > { %1574 = vmatpush.bf16.msra.mxu2 %v1549_v57  ;;  %1587 = vmatpush.bf16.msra.mxu3 %v1552_v58  ;;  %v6650_v58 = vld [vmem:[%s8930_s3 + $0x1c] sm:$0xf] }
 0x266   : > { %6629 = vmatmul.msk.bf16.vlgmr.msra.gmra.mxu0 %vm786_vm1, %v7570_v25  ;;  %6628 = vmatmul.msk.bf16.vlgmr.msrb.gmra.mxu3 %vm786_vm1, %v7570_v25 }
 0x267   : > { %6632 = vmatmul.msk.bf16.vlgmr.msra.gmra.mxu2 %vm786_vm1, %v6630_v59 }
 0x268   : > { %2440 = vrot.lane.b32.xlu2 %v7587_v32, %s8948_s20  ;;  %2502 = vrot.lane.b32.xlu1 %v7550_v21, %s8979_s15  ;;  %v1603_v61 = vpop.permute.xlu1 %1602  ;;  %v1601_v62 = vpop.permute.xlu0 %1600  ;;  %s7924_s20 = scalar_lea.vmem [#allocation7], %s6888_s27  ;;  %s8982_s27 = smov 109  }
 0x269   : > { %2506 = vrot.lane.b32.xlu0 %v7587_v32, %s8979_s15  ;;  %v1608_v63 = vsel %vm968_vm4, %v1603_v61, %v1605_v52  ;;  %v1606_v0 = vsel %vm968_vm4, %v1599_v36, %v1601_v62  ;;  %v1607_v1 = vsel %vm968_vm4, %v1601_v62, %v1603_v61  ;;  %v1735_v5 = vpop.permute.xlu2 %1734 }
 0x26a   : > { %v1613_v2 = vsel %vm790_vm0, %v1606_v0, 0  ;;  %v1616_v3 = vsel %vm790_vm0, %v1607_v1, 0  ;;  %v1619_v4 = vsel %vm790_vm0, %v1608_v63, 0  ;;  %v6654_v1 = vld [vmem:[%s8930_s3 + $0x20] sm:$0xf] }
 0x26b   : > { %1628 = vmatpush.bf16.msrb.mxu0 %v1613_v2  ;;  %1641 = vmatpush.bf16.msrb.mxu1 %v1616_v3  ;;  %v1499_v2 = vpop.f32.mrf.mxu2 }
 0x26c   : > { %1654 = vmatpush.bf16.msrb.mxu2 %v1619_v4 }
 0x26e   : > { %6631 = vmatmul.msk.bf16.vlgmr.msra.gmra.mxu1 %vm786_vm1, %v6630_v59 }
 0x270   : > { %2504 = vrot.lane.b32.xlu2 %v7577_v27, %s8979_s15  ;;  %2508 = vrot.lane.b32.xlu1 %v7580_v29, %s8979_s15  ;;  %v1668_v6 = vpop.permute.xlu1 %1667  ;;  %v1666_v7 = vpop.permute.xlu0 %1665 }
 0x271   : > { %2570 = vrot.lane.b32.xlu0 %v7577_v27, %s8980_s14  ;;  %v1674_v8 = vsel %vm1036_vm5, %v1668_v6, %v1670_v60  ;;  %v1673_v9 = vsel %vm1036_vm5, %v1666_v7, %v1668_v6  ;;  %v1800_v15 = vpop.permute.xlu2 %1799 }
 0x272   : > { %v1680_v10 = vsel %vm790_vm0, %v1673_v9, 0  ;;  %v1683_v11 = vsel %vm790_vm0, %v1674_v8, 0 }
 0x273   : > { %1695 = vmatpush.bf16.msrb.mxu3 %v1680_v10  ;;  %1708 = vmatpush.bf16.msra.mxu0 %v1683_v11  ;;  %v1501_v3 = vpop.f32.mrf.mxu2 }
 0x276   : > { %6633 = vmatmul.msk.bf16.vlgmr.msra.gmra.mxu3 %vm786_vm1, %v6630_v59  ;;  %6635 = vmatmul.msk.bf16.vlgmr.msrb.gmra.mxu0 %vm786_vm1, %v6634_v12 }
 0x277   : > { %6637 = vmatmul.msk.bf16.vlgmr.msrb.gmra.mxu2 %vm786_vm1, %v6634_v12 }
 0x278   : > { %2568 = vrot.lane.b32.xlu2 %v7550_v21, %s8980_s14  ;;  %2572 = vrot.lane.b32.xlu1 %v7587_v32, %s8980_s14  ;;  %v1733_v13 = vpop.permute.xlu1 %1732  ;;  %v1672_v14 = vpop.permute.xlu0 %1671 }
 0x279   : > { %2634 = vrot.lane.b32.xlu0 %v7550_v21, %s8981_s13  ;;  %v1740_v16 = vsel %vm1104_vm6, %v1733_v13, %v1735_v5  ;;  %v1675_v17 = vsel %vm1036_vm5, %v1670_v60, %v1672_v14  ;;  %v1806_v30 = vpop.permute.xlu2 %1805 }
 0x27a   : > { %v1747_v18 = vsel %vm790_vm0, %v1740_v16, 0  ;;  %v1686_v20 = vsel %vm790_vm0, %v1675_v17, 0 }
 0x27b   : > { %1721 = vmatpush.bf16.msra.mxu1 %v1686_v20  ;;  %1762 = vmatpush.bf16.msra.mxu2 %v1747_v18 }
 0x27e   : > { %6636 = vmatmul.msk.bf16.vlgmr.msrb.gmra.mxu1 %vm786_vm1, %v6634_v12 }
 0x280   : > { %2574 = vrot.lane.b32.xlu2 %v7580_v29, %s8980_s14  ;;  %2636 = vrot.lane.b32.xlu1 %v7577_v27, %s8981_s13  ;;  %v1739_v22 = vpop.permute.xlu1 %1738  ;;  %v1737_v23 = vpop.permute.xlu0 %1736 }
 0x281   : > { %2640 = vrot.lane.b32.xlu0 %v7580_v29, %s8981_s13  ;;  %v1741_v24 = vsel %vm1104_vm6, %v1735_v5, %v1737_v23  ;;  %v1742_v25 = vsel %vm1104_vm6, %v1737_v23, %v1739_v22  ;;  %v1871_v42 = vpop.permute.xlu2 %1870 }
 0x282   : > { %v1750_v26 = vsel %vm790_vm0, %v1741_v24, 0  ;;  %v1753_v28 = vsel %vm790_vm0, %v1742_v25, 0 }
 0x283   : > { %1775 = vmatpush.bf16.msra.mxu3 %v1750_v26  ;;  %1788 = vmatpush.bf16.msrb.mxu0 %v1753_v28 }
 0x286   : > { %6639 = vmatmul.msk.bf16.vlgmr.msrb.gmra.mxu3 %vm786_vm1, %v6638_v31  ;;  %6640 = vmatmul.msk.bf16.vlgmr.msra.gmra.mxu0 %vm786_vm1, %v6638_v31 }
 0x287   : > { %6643 = vmatmul.msk.bf16.vlgmr.msra.gmra.mxu2 %vm786_vm1, %v6642_v33 }
 0x288   : > { %2638 = vrot.lane.b32.xlu2 %v7587_v32, %s8981_s13  ;;  %2700 = vrot.lane.b32.xlu1 %v7550_v21, %s8978_s17  ;;  %v1804_v34 = vpop.permute.xlu1 %1803  ;;  %v1802_v35 = vpop.permute.xlu0 %1801 }
 0x289   : > { %2704 = vrot.lane.b32.xlu0 %v7587_v32, %s8978_s17  ;;  %v1809_v36 = vsel %vm1172_vm7, %v1804_v34, %v1806_v30  ;;  %v1807_v37 = vsel %vm1172_vm7, %v1800_v15, %v1802_v35  ;;  %v1808_v38 = vsel %vm1172_vm7, %v1802_v35, %v1804_v34 }
 0x28a   : > { %v1814_v39 = vsel %vm790_vm0, %v1807_v37, 0  ;;  %v1817_v40 = vsel %vm790_vm0, %v1808_v38, 0  ;;  %v1820_v41 = vsel %vm790_vm0, %v1809_v36, 0 }
 0x28b   : > { %1829 = vmatpush.bf16.msrb.mxu1 %v1814_v39  ;;  %1842 = vmatpush.bf16.msrb.mxu2 %v1817_v40 }
 0x28c   : > { %1855 = vmatpush.bf16.msrb.mxu3 %v1820_v41 }
 0x28e   : > { %6641 = vmatmul.msk.bf16.vlgmr.msra.gmra.mxu1 %vm786_vm1, %v6638_v31 }
 0x290   : > { %2702 = vrot.lane.b32.xlu2 %v7577_v27, %s8978_s17  ;;  %2706 = vrot.lane.b32.xlu1 %v7580_v29, %s8978_s17  ;;  %v1869_v43 = vpop.permute.xlu1 %1868  ;;  %v1867_v44 = vpop.permute.xlu0 %1866 }
 0x291   : > { %2820 = vrot.lane.b32.xlu0 %v7056_v19, %s7047_s19  ;;  %v1875_v47 = vsel %vm1240_vm8, %v1869_v43, %v1871_v42  ;;  %v1874_v48 = vsel %vm1240_vm8, %v1867_v44, %v1869_v43  ;;  %v1936_v29 = vpop.permute.xlu2 %1935 }
 0x292   : > { %v1881_v49 = vsel %vm790_vm0, %v1874_v48, 0  ;;  %v1884_v51 = vsel %vm790_vm0, %v1875_v47, 0 }
 0x293   : > { %1896 = vmatpush.bf16.msra.mxu0 %v1881_v49  ;;  %1909 = vmatpush.bf16.msra.mxu1 %v1884_v51 }
 0x296   : > { %6644 = vmatmul.msk.bf16.vlgmr.msra.gmra.mxu3 %vm786_vm1, %v6642_v33  ;;  %6645 = vmatmul.msk.bf16.vlgmr.msrb.gmra.mxu0 %vm786_vm1, %v6642_v33 }
 0x297   : > { %6648 = vmatmul.msk.bf16.vlgmr.msrb.gmra.mxu2 %vm786_vm1, %v6646_v50 }
 0x298   : > { %2768 = vperm.xlu2 %6940, %v7486_v45   ;;  %2934 = vrot.lane.b32.xlu1 %v7056_v19, %s7048_s21  ;;  %v1934_v52 = vpop.permute.xlu1 %1933  ;;  %v1873_v53 = vpop.permute.xlu0 %1872 }
 0x299   : > { %v1941_v54 = vsel %vm1308_vm9, %v1934_v52, %v1936_v29  ;;  %v1876_v55 = vsel %vm1240_vm8, %v1871_v42, %v1873_v53  ;;  %v2002_v53 = vpop.permute.xlu2 %2001 }
 0x29a   : > { %v1948_v56 = vsel %vm790_vm0, %v1941_v54, 0  ;;  %v1887_v45 = vsel %vm790_vm0, %v1876_v55, 0 }
 0x29b   : > { %1922 = vmatpush.bf16.msra.mxu2 %v1887_v45  ;;  %1963 = vmatpush.bf16.msra.mxu3 %v1948_v56 }
 0x29e   : > { %6647 = vmatmul.msk.bf16.vlgmr.msrb.gmra.mxu1 %vm786_vm1, %v6646_v50 }
 0x2a0   : > { %v7739_v57 = vpop.permute.xlu0 %2190  ;;  %v1940_v59 = vpop.permute.xlu1 %1939 }
 0x2a6   : > { %6649 = vmatmul.msk.bf16.vlgmr.msrb.gmra.mxu3 %vm786_vm1, %v6646_v50  ;;  %6651 = vmatmul.msk.bf16.vlgmr.msra.gmra.mxu0 %vm786_vm1, %v6650_v58 }
 0x2a7   : > { %6653 = vmatmul.msk.bf16.vlgmr.msra.gmra.mxu2 %vm786_vm1, %v6650_v58 }
 0x2a8   : > { %v1938_v60 = vpop.permute.xlu0 %1937  ;;  %v7758_v45 = vpop.permute.xlu1 %2066 }
 0x2a9   : > { %v1942_v61 = vsel %vm1308_vm9, %v1936_v29, %v1938_v60  ;;  %v1943_v62 = vsel %vm1308_vm9, %v1938_v60, %v1940_v59 }
 0x2aa   : > { %v1951_v63 = vsel %vm790_vm0, %v1942_v61, 0  ;;  %v1954_v0 = vsel %vm790_vm0, %v1943_v62, 0 }
 0x2ab   : > { %1976 = vmatpush.bf16.msrb.mxu0 %v1951_v63  ;;  %1989 = vmatpush.bf16.msrb.mxu1 %v1954_v0  ;;  %v7760_v0 = vpop.permute.xlu2 %2127 }
 0x2ae   : > { %6652 = vmatmul.msk.bf16.vlgmr.msra.gmra.mxu1 %vm786_vm1, %v6650_v58 }
 0x2b6   : > { %6655 = vmatmul.msk.bf16.vlgmr.msra.gmra.mxu3 %vm786_vm1, %v6654_v1  ;;  %6656 = vmatmul.msk.bf16.vlgmr.msrb.gmra.mxu0 %vm786_vm1, %v6654_v1 }
 0x2be   : > { %6657 = vmatmul.msk.bf16.vlgmr.msrb.gmra.mxu1 %vm786_vm1, %v6654_v1 }
 0x2d3   : > { %v1461_v4 = vpop.f32.mrf.mxu0 }
 0x2d9   : > { %v1448_v5 = vpop.f32.mrf.mxu3 }
 0x2da   : > { %v1500_v6 = vadd.f32 %v1499_v2, %v1448_v5 }
 0x2db   : > { %v1463_v7 = vpop.f32.mrf.mxu0  ;;  %v1474_v8 = vpop.f32.mrf.mxu1 }
 0x2e1   : > { %v1450_v9 = vpop.f32.mrf.mxu3 }
 0x2e3   : > { %v1476_v10 = vpop.f32.mrf.mxu1  ;;  %v1525_v11 = vpop.f32.mrf.mxu0 }
 0x2e4   : > { %v1526_v12 = vadd.f32 %v1525_v11, %v1474_v8  ;;  %v2193_v11 = vpop.permute.xlu1 %2192 }
 0x2e9   : > { %v1512_v13 = vpop.f32.mrf.mxu3 }
 0x2ea   : > { %v1576_v14 = vpop.f32.mrf.mxu2  ;;  %v1513_v51 = vadd.f32 %v1512_v13, %v1461_v4 }
 0x2eb   : > { %v1527_v15 = vpop.f32.mrf.mxu0  ;;  %v1563_v16 = vpop.f32.mrf.mxu1 }
 0x2ec   : > { %v1593_v17 = vadd.f32 %v1563_v16, %v1500_v6  ;;  %v1594_v54 = vadd.f32 %v1576_v14, %v1513_v51 }
 0x2f1   : > { %v1514_v18 = vpop.f32.mrf.mxu3 }
 0x2f2   : > { %v1578_v20 = vpop.f32.mrf.mxu2 }
 0x2f3   : > { %v1565_v22 = vpop.f32.mrf.mxu1  ;;  %v1630_v23 = vpop.f32.mrf.mxu0 }
 0x2f4   : > { %v1660_v1 = vadd.f32 %v1630_v23, %v1593_v17  ;;  %v2195_v20 = vpop.permute.xlu2 %2194 }
 0x2f9   : > { %v1589_v24 = vpop.f32.mrf.mxu3 }
 0x2fa   : > { %v1656_v25 = vpop.f32.mrf.mxu2  ;;  %v1595_v62 = vadd.f32 %v1589_v24, %v1526_v12 }
 0x2fb   : > { %v1632_v26 = vpop.f32.mrf.mxu0  ;;  %v1643_v28 = vpop.f32.mrf.mxu1 }
 0x2fc   : > { %v1661_v55 = vadd.f32 %v1643_v28, %v1594_v54  ;;  %v1662_v2 = vadd.f32 %v1656_v25, %v1595_v62  ;;  %v2197_v28 = vpop.permute.xlu0 %2196  ;;  %v2259_v62 = vsel %vm790_vm0, %v7577_v27, 0 }
 0x301   : > { %v1591_v30 = vpop.f32.mrf.mxu3 }
 0x302   : > { %v1658_v31 = vpop.f32.mrf.mxu2 }
 0x303   : > { %v1645_v33 = vpop.f32.mrf.mxu1  ;;  %v1710_v34 = vpop.f32.mrf.mxu0 }
 0x304   : > { %v1728_v58 = vadd.f32 %v1710_v34, %v1661_v55  ;;  %v2198_v55 = vsel %vm782_vm2, %v7739_v57, %v2193_v11 }
 0x305   : > { %v2205_v57 = vsel %vm790_vm0, %v2198_v55, 0  ;;  %v6683_v55 = vld [vmem:[%s8977_s1 + $0x10] sm:$0xf] }
 0x309   : > { %v1697_v35 = vpop.f32.mrf.mxu3 }
 0x30a   : > { %v1764_v36 = vpop.f32.mrf.mxu2  ;;  %v1727_v3 = vadd.f32 %v1697_v35, %v1660_v1 }
 0x30b   : > { %v1712_v37 = vpop.f32.mrf.mxu0  ;;  %v1723_v38 = vpop.f32.mrf.mxu1 }
 0x30c   : > { %v1729_v6 = vadd.f32 %v1723_v38, %v1662_v2  ;;  %v1794_v13 = vadd.f32 %v1764_v36, %v1727_v3  ;;  %v2305_v36 = vpop.permute.xlu1 %2304 }
 0x311   : > { %v1699_v39 = vpop.f32.mrf.mxu3 }
 0x312   : > { %v1766_v40 = vpop.f32.mrf.mxu2 }
 0x313   : > { %v1725_v41 = vpop.f32.mrf.mxu1  ;;  %v1790_v42 = vpop.f32.mrf.mxu0  ;;  %v2062_v40 = vld [vmem:[%s8932_s5] sm:$0xf] }
 0x314   : > { %v1796_v14 = vadd.f32 %v1790_v42, %v1729_v6  ;;  %v2199_v41 = vsel %vm782_vm2, %v2193_v11, %v2195_v20 }
 0x319   : > { %v1777_v43 = vpop.f32.mrf.mxu3 }
 0x31a   : > { %v1844_v44 = vpop.f32.mrf.mxu2  ;;  %v1795_v63 = vadd.f32 %v1777_v43, %v1728_v58 }
 0x31b   : > { %v1792_v47 = vpop.f32.mrf.mxu0  ;;  %v1831_v48 = vpop.f32.mrf.mxu1 }
 0x31c   : > { %v1862_v4 = vadd.f32 %v1844_v44, %v1795_v63  ;;  %v1861_v16 = vadd.f32 %v1831_v48, %v1794_v13  ;;  %v2307_v47 = vpop.permute.xlu2 %2306  ;;  %v2262_v63 = vsel %vm790_vm0, %v7587_v32, 0 }
 0x31d   : > { %v2312_v27 = vsel %vm900_vm3, %v2305_v36, %v2307_v47 }
 0x321   : > { %v1779_v49 = vpop.f32.mrf.mxu3 }
 0x322   : > { %v1846_v50 = vpop.f32.mrf.mxu2 }
 0x323   : > { %v1833_v29 = vpop.f32.mrf.mxu1  ;;  %v1898_v52 = vpop.f32.mrf.mxu0  ;;  %v2208_v50 = vsel %vm790_vm0, %v2199_v41, 0 }
 0x324   : > { %v1928_v22 = vadd.f32 %v1898_v52, %v1861_v16  ;;  %v2200_v29 = vsel %vm782_vm2, %v2195_v20, %v2197_v28  ;;  %v2309_v52 = vpop.permute.xlu0 %2308 }
 0x325   : > { %v2313_v1 = vsel %vm900_vm3, %v2307_v47, %v2309_v52 }
 0x329   : > { %v1857_v56 = vpop.f32.mrf.mxu3 }
 0x32a   : > { %v1924_v59 = vpop.f32.mrf.mxu2  ;;  %v1863_v18 = vadd.f32 %v1857_v56, %v1796_v14  ;;  %v2123_v56 = vld [vmem:[%s8934_s7] sm:$0xf] }
 0x32b   : > { %v1900_v60 = vpop.f32.mrf.mxu0  ;;  %v1911_v61 = vpop.f32.mrf.mxu1 }
 0x32c   : > { %v1929_v7 = vadd.f32 %v1911_v61, %v1862_v4  ;;  %v1930_v23 = vadd.f32 %v1924_v59, %v1863_v18  ;;  %v2211_v59 = vsel %vm790_vm0, %v2200_v29, 0  ;;  %v2311_v60 = vpop.permute.xlu1 %2310  ;;  %v2256_v61 = vsel %vm790_vm0, %v7550_v21, 0  ;;  %v2371_v21 = vpop.permute.xlu2 %2370 }
 0x32d   : > { %v2373_v2 = vpop.permute.xlu0 %2372  ;;  %v2322_v4 = vsel %vm790_vm0, %v2313_v1, 0  ;;  %v2314_v6 = vsel %vm900_vm3, %v2309_v52, %v2311_v60 }
 0x32e   : > { %v2378_v32 = vsel %vm968_vm4, %v2371_v21, %v2373_v2  ;;  %v2325_v11 = vsel %vm790_vm0, %v2314_v6, 0 }
 0x331   : > { %v1859_v5 = vpop.f32.mrf.mxu3 }
 0x332   : > { %v1926_v8 = vpop.f32.mrf.mxu2  ;;  %v6668_v5 = vld [vmem:[%s8977_s1 + $0x4] sm:$0xf] }
 0x333   : > { %v1913_v9 = vpop.f32.mrf.mxu1  ;;  %v1978_v10 = vpop.f32.mrf.mxu0 }
 0x334   : > { %v1996_v15 = vadd.f32 %v1978_v10, %v1929_v7  ;;  %v2375_v3 = vpop.permute.xlu1 %2374  ;;  %v2319_v7 = vsel %vm790_vm0, %v2312_v27, 0  ;;  %v2377_v8 = vpop.permute.xlu2 %2376  ;;  %v2385_v10 = vsel %vm790_vm0, %v2378_v32, 0 }
 0x335   : > { %v2437_v9 = vpop.permute.xlu0 %2436  ;;  %v2380_v14 = vsel %vm968_vm4, %v2375_v3, %v2377_v8  ;;  %v2379_v20 = vsel %vm968_vm4, %v2373_v2, %v2375_v3  ;;  %v6691_v8 = vld [vmem:[%s8977_s1 + $0x18] sm:$0xf] }
 0x336   : > { %v2005_v12 = vadd.f32 %v2002_v53, %v1996_v15  ;;  %v2182_v15 = vld [vmem:[%s8977_s1] sm:$0xf]  ;;  %v2391_v16 = vsel %vm790_vm0, %v2380_v14, 0 }
 0x338   : > { %v2008_v24 = vmul.f32 0.1, %v2005_v12 }
 0x339   : > { %v1965_v17 = vpop.f32.mrf.mxu3 }
 0x33a   : > { %v1995_v25 = vadd.f32 %v1965_v17, %v1928_v22  ;;  %v2011_v26 = vmax.f32 %v2005_v12, %v2008_v24 }
 0x33b   : > { %v1991_v30 = vpop.f32.mrf.mxu1  ;;  %v1980_v31 = vpop.f32.mrf.mxu0 }
 0x33c   : > { %v2004_v33 = vadd.f32 %v2002_v53, %v1995_v25  ;;  %v1997_v34 = vadd.f32 %v1991_v30, %v1930_v23  ;;  %2022 = vrot.lane.b32.xlu1 %v2011_v26, %s8950_s26  ;;  %v2060_v35 = vpack.c.bf16 %v2011_v26, %v2011_v26  ;;  %v2439_v13 = vpop.permute.xlu1 %2438  ;;  %v2441_v18 = vpop.permute.xlu2 %2440  ;;  %v2388_v23 = vsel %vm790_vm0, %v2379_v20, 0 }
 0x33d   : > { %v2443_v12 = vpop.permute.xlu0 %2442  ;;  %v2445_v22 = vsel %vm1036_vm5, %v2439_v13, %v2441_v18  ;;  %v2444_v17 = vsel %vm1036_vm5, %v2437_v9, %v2439_v13 }
 0x33e   : > { %v2007_v37 = vmul.f32 0.1, %v2004_v33  ;;  %v2006_v38 = vadd.f32 %v2002_v53, %v1997_v34  ;;  %v2076_v39 = vsel %vm790_vm0, %v2060_v35, 0  ;;  %v2454_v25 = vsel %vm790_vm0, %v2445_v22, 0  ;;  %v6675_v34 = vld [vmem:[%s8977_s1 + $0x8] sm:$0xf] }
 0x33f   : > { %2101 = vmatpush.bf16.msrb.mxu3 %v2076_v39  ;;  %v2451_v26 = vsel %vm790_vm0, %v2444_v17, 0  ;;  %v2446_v36 = vsel %vm1036_vm5, %v2441_v18, %v2443_v12  ;;  %v2014_v17 = vld [vmem:[%s7329_s18 + $0x8] sm:$0xff] }
 0x340   : > { %v2009_v42 = vmul.f32 0.1, %v2006_v38  ;;  %v2010_v43 = vmax.f32 %v2004_v33, %v2007_v37 }
 0x341   : > { %v1967_v44 = vpop.f32.mrf.mxu3 }
 0x342   : > { %6659 = vmatmul.msk.bf16.vlgmr.msrb.gmra.mxu3 %vm786_vm1, %v2062_v40  ;;  %2020 = vrot.lane.b32.xlu0 %v2010_v43, %s8950_s26  ;;  %v2012_v48 = vmax.f32 %v2006_v38, %v2009_v42  ;;  %v2059_v49 = vpack.c.bf16 %v2010_v43, %v2010_v43  ;;  %v2457_v42 = vsel %vm790_vm0, %v2446_v36, 0 }
 0x343   : > { %v1993_v51 = vpop.f32.mrf.mxu1 }
 0x344   : > { %2024 = vrot.lane.b32.xlu2 %v2012_v48, %s8950_s26  ;;  %v2073_v53 = vsel %vm790_vm0, %v2059_v49, 0  ;;  %v2061_v54 = vpack.c.bf16 %v2012_v48, %v2012_v48  ;;  %v2503_v24 = vpop.permute.xlu1 %2502  ;;  %v2505_v28 = vpop.permute.xlu2 %2504  ;;  %s7059_s26 = smov 73  }
 0x345   : > { %2088 = vmatpush.bf16.msrb.mxu2 %v2073_v53  ;;  %2140 = vmatpush.bf16.msra.mxu1 %v2073_v53  ;;  %v2507_v30 = vpop.permute.xlu0 %2506  ;;  %v2510_v31 = vsel %vm1104_vm6, %v2503_v24, %v2505_v28  ;;  %v2013_v24 = vld [vmem:[%s7329_s18] sm:$0xff] }
 0x346   : > { %v2079_v58 = vsel %vm790_vm0, %v2061_v54, 0  ;;  %v2517_v35 = vsel %vm790_vm0, %v2510_v31, 0  ;;  %v2016_v31 = vld [vmem:[%s7329_s18 + $0x18] sm:$0xff] }
 0x347   : > { %2114 = vmatpush.bf16.msra.mxu0 %v2079_v58  ;;  %2166 = vmatpush.bf16.msra.mxu3 %v2079_v58 }
 0x348   : > { %6658 = vmatmul.msk.bf16.vlgmr.msrb.gmra.mxu2 %vm786_vm1, %v2062_v40  ;;  %6661 = vmatmul.msk.bf16.vlgmr.msra.gmra.mxu1 %vm786_vm1, %v2123_v56 }
 0x349   : > { %2153 = vmatpush.bf16.msra.mxu2 %v2076_v39  ;;  %2233 = vmatpush.bf16.msrb.mxu1 %v2208_v50  ;;  %v6679_v39 = vld [vmem:[%s8977_s1 + $0xc] sm:$0xf] }
 0x34a   : > { %6660 = vmatmul.msk.bf16.vlgmr.msra.gmra.mxu0 %vm786_vm1, %v2062_v40  ;;  %v2511_v40 = vsel %vm1104_vm6, %v2505_v28, %v2507_v30 }
 0x34b   : > { %2220 = vmatpush.bf16.msrb.mxu0 %v2205_v57  ;;  %2271 = vmatpush.bf16.msrb.mxu3 %v2256_v61  ;;  %v2520_v47 = vsel %vm790_vm0, %v2511_v40, 0 }
 0x34c   : > { %v2509_v33 = vpop.permute.xlu1 %2508  ;;  %v2569_v38 = vpop.permute.xlu2 %2568 }
 0x34d   : > { %2246 = vmatpush.bf16.msrb.mxu2 %v2211_v59  ;;  %2297 = vmatpush.bf16.msra.mxu1 %v2262_v63  ;;  %v2512_v37 = vsel %vm1104_vm6, %v2507_v30, %v2509_v33  ;;  %v2571_v41 = vpop.permute.xlu0 %2570  ;;  %v6699_v30 = vld [vmem:[%s8977_s1 + $0x20] sm:$0xf] }
 0x34e   : > { %v2523_v43 = vsel %vm790_vm0, %v2512_v37, 0  ;;  %v2576_v52 = vsel %vm1172_vm7, %v2569_v38, %v2571_v41 }
 0x34f   : > { %2284 = vmatpush.bf16.msra.mxu0 %v2259_v62  ;;  %v2583_v58 = vsel %vm790_vm0, %v2576_v52, 0  ;;  %v6687_v62 = vld [vmem:[%s8977_s1 + $0x14] sm:$0xf] }
 0x352   : > { %6663 = vmatmul.msk.bf16.vlgmr.msra.gmra.mxu3 %vm786_vm1, %v2123_v56 }
 0x353   : > { %2347 = vmatpush.bf16.msra.mxu3 %v2322_v4 }
 0x354   : > { %v2573_v44 = vpop.permute.xlu1 %2572  ;;  %v2575_v49 = vpop.permute.xlu2 %2574 }
 0x355   : > { %v2577_v48 = vsel %vm1172_vm7, %v2571_v41, %v2573_v44  ;;  %v2635_v51 = vpop.permute.xlu0 %2634  ;;  %v2578_v54 = vsel %vm1172_vm7, %v2573_v44, %v2575_v49 }
 0x356   : > { %v2586_v50 = vsel %vm790_vm0, %v2577_v48, 0  ;;  %v2589_v59 = vsel %vm790_vm0, %v2578_v54, 0 }
 0x358   : > { %6662 = vmatmul.msk.bf16.vlgmr.msra.gmra.mxu2 %vm786_vm1, %v2123_v56  ;;  %6670 = vmatmul.msk.bf16.vlgmr.msrb.gmra.mxu1 %vm786_vm1, %v6668_v5 }
 0x359   : > { %2334 = vmatpush.bf16.msra.mxu2 %v2319_v7  ;;  %2400 = vmatpush.bf16.msrb.mxu1 %v2385_v10 }
 0x35a   : > { %6669 = vmatmul.msk.bf16.vlgmr.msrb.gmra.mxu0 %vm786_vm1, %v6668_v5 }
 0x35b   : > { %2360 = vmatpush.bf16.msrb.mxu0 %v2325_v11  ;;  %v6695_v11 = vld [vmem:[%s8977_s1 + $0x1c] sm:$0xf]  ;;  %s8970_s1 = smov 3  }
 0x35c   : > { %v2637_v29 = vpop.permute.xlu1 %2636  ;;  %v2639_v60 = vpop.permute.xlu2 %2638 }
 0x35d   : > { %v2642_v53 = vsel %vm1240_vm8, %v2635_v51, %v2637_v29  ;;  %v2641_v61 = vpop.permute.xlu0 %2640  ;;  %v2643_v2 = vsel %vm1240_vm8, %v2637_v29, %v2639_v60 }
 0x35e   : > { %v2649_v56 = vsel %vm790_vm0, %v2642_v53, 0  ;;  %v2644_v57 = vsel %vm1240_vm8, %v2639_v60, %v2641_v61  ;;  %v2652_v32 = vsel %vm790_vm0, %v2643_v2, 0 }
 0x35f   : > { %v2655_v21 = vsel %vm790_vm0, %v2644_v57, 0 }
 0x362   : > { %6672 = vmatmul.msk.bf16.vlgmr.msrb.gmra.mxu3 %vm786_vm1, %v2182_v15 }
 0x363   : > { %2426 = vmatpush.bf16.msrb.mxu3 %v2391_v16  ;;  %v2015_v16 = vld [vmem:[%s7329_s18 + $0x10] sm:$0xff] }
 0x364   : > { %v2701_v63 = vpop.permute.xlu1 %2700  ;;  %v2703_v1 = vpop.permute.xlu2 %2702 }
 0x365   : > { %v2705_v3 = vpop.permute.xlu0 %2704  ;;  %v2708_v27 = vsel %vm1308_vm9, %v2701_v63, %v2703_v1 }
 0x366   : > { %v2709_v4 = vsel %vm1308_vm9, %v2703_v1, %v2705_v3  ;;  %v2715_v6 = vsel %vm790_vm0, %v2708_v27, 0 }
 0x368   : > { %6671 = vmatmul.msk.bf16.vlgmr.msrb.gmra.mxu2 %vm786_vm1, %v6668_v5  ;;  %6674 = vmatmul.msk.bf16.vlgmr.msra.gmra.mxu1 %vm786_vm1, %v2182_v15  ;;  %v2718_v5 = vsel %vm790_vm0, %v2709_v4, 0 }
 0x369   : > { %2413 = vmatpush.bf16.msrb.mxu2 %v2388_v23  ;;  %2479 = vmatpush.bf16.msra.mxu1 %v2454_v25 }
 0x36a   : > { %6673 = vmatmul.msk.bf16.vlgmr.msra.gmra.mxu0 %vm786_vm1, %v2182_v15 }
 0x36b   : > { %2466 = vmatpush.bf16.msra.mxu0 %v2451_v26 }
 0x36c   : > { %v2707_v7 = vpop.permute.xlu1 %2706  ;;  %v7879_v13 = vpop.permute.xlu2 %2768 }
 0x36d   : > { %v2710_v9 = vsel %vm1308_vm9, %v2705_v3, %v2707_v7  ;;  %v7885_v15 = vpop.permute.xlu0 %2820 }
 0x36e   : > { %v2721_v14 = vsel %vm790_vm0, %v2710_v9, 0 }
 0x372   : > { %6677 = vmatmul.msk.bf16.vlgmr.msra.gmra.mxu3 %vm786_vm1, %v6675_v34 }
 0x373   : > { %2532 = vmatpush.bf16.msra.mxu3 %v2517_v35 }
 0x374   : > { %v7874_v10 = vpop.permute.xlu1 %2934 }
 0x378   : > { %6676 = vmatmul.msk.bf16.vlgmr.msra.gmra.mxu2 %vm786_vm1, %v6675_v34  ;;  %6680 = vmatmul.msk.bf16.vlgmr.msrb.gmra.mxu1 %vm786_vm1, %v6679_v39 }
 0x379   : > { %2492 = vmatpush.bf16.msra.mxu2 %v2457_v42  ;;  %2558 = vmatpush.bf16.msrb.mxu1 %v2523_v43 }
 0x37a   : > { %6678 = vmatmul.msk.bf16.vlgmr.msrb.gmra.mxu0 %vm786_vm1, %v6675_v34 }
 0x37b   : > { %2545 = vmatpush.bf16.msrb.mxu0 %v2520_v47 }
 0x382   : > { %6682 = vmatmul.msk.bf16.vlgmr.msrb.gmra.mxu3 %vm786_vm1, %v6679_v39 }
 0x383   : > { %2611 = vmatpush.bf16.msrb.mxu3 %v2586_v50 }
 0x388   : > { %6681 = vmatmul.msk.bf16.vlgmr.msrb.gmra.mxu2 %vm786_vm1, %v6679_v39  ;;  %6685 = vmatmul.msk.bf16.vlgmr.msra.gmra.mxu1 %vm786_vm1, %v6683_v55 }
 0x389   : > { %2598 = vmatpush.bf16.msrb.mxu2 %v2583_v58  ;;  %2664 = vmatpush.bf16.msra.mxu1 %v2649_v56 }
 0x38a   : > { %6684 = vmatmul.msk.bf16.vlgmr.msra.gmra.mxu0 %vm786_vm1, %v6683_v55 }
 0x38b   : > { %2624 = vmatpush.bf16.msra.mxu0 %v2589_v59 }
 0x392   : > { %6688 = vmatmul.msk.bf16.vlgmr.msra.gmra.mxu3 %vm786_vm1, %v6687_v62 }
 0x393   : > { %2690 = vmatpush.bf16.msra.mxu3 %v2655_v21 }
 0x398   : > { %6686 = vmatmul.msk.bf16.vlgmr.msra.gmra.mxu2 %vm786_vm1, %v6683_v55  ;;  %6690 = vmatmul.msk.bf16.vlgmr.msrb.gmra.mxu1 %vm786_vm1, %v6687_v62 }
 0x399   : > { %2677 = vmatpush.bf16.msra.mxu2 %v2652_v32  ;;  %2743 = vmatpush.bf16.msrb.mxu1 %v2718_v5 }
 0x39a   : > { %6689 = vmatmul.msk.bf16.vlgmr.msrb.gmra.mxu0 %vm786_vm1, %v6687_v62 }
 0x39b   : > { %2730 = vmatpush.bf16.msrb.mxu0 %v2715_v6 }
 0x39e   : > { %v2025_v18 = vpop.permute.xlu2 %2024 }
 0x39f   : > { %v2036_v33 = vadd.f32 %v2025_v18, %v2016_v31 }
 0x3a2   : > { %6693 = vmatmul.msk.bf16.vlgmr.msrb.gmra.mxu3 %vm786_vm1, %v6691_v8 }
 0x3a8   : > { %6692 = vmatmul.msk.bf16.vlgmr.msrb.gmra.mxu2 %vm786_vm1, %v6691_v8  ;;  %6696 = vmatmul.msk.bf16.vlgmr.msra.gmra.mxu1 %vm786_vm1, %v6695_v11 }
 0x3a9   : > { %2756 = vmatpush.bf16.msrb.mxu2 %v2721_v14 }
 0x3aa   : > { %6694 = vmatmul.msk.bf16.vlgmr.msra.gmra.mxu0 %vm786_vm1, %v6691_v8 }
 0x3ae   : > { %v2023_v12 = vpop.permute.xlu1 %2022 }
 0x3af   : > { %v2028_v20 = vsel %vm2026_vm10, %v2023_v12, %v2025_v18 }
 0x3b0   : > { %v2035_v22 = vadd.f32 %v2028_v20, %v2015_v16 }
 0x3b2   : > { %2045 = vrot.lane.b32.xlu2 %v2035_v22, %s8978_s17  ;;  %6698 = vmatmul.msk.bf16.vlgmr.msra.gmra.mxu3 %vm786_vm1, %v6695_v11 }
 0x3b4   : > { %v2021_v23 = vpop.permute.xlu0 %2020 }
 0x3b5   : > { %v2027_v25 = vsel %vm2026_vm10, %v2021_v23, %v2023_v12  ;;  %v2033_v26 = vadd.f32 %v2021_v23, %v2013_v24 }
 0x3b6   : > { %v2034_v28 = vadd.f32 %v2027_v25, %v2014_v17 }
 0x3b7   : > { %2041 = vrot.lane.b32.xlu0 %v2033_v26, %s8978_s17 }
 0x3b8   : > { %2043 = vrot.lane.b32.xlu1 %v2034_v28, %s8978_s17  ;;  %6697 = vmatmul.msk.bf16.vlgmr.msra.gmra.mxu2 %vm786_vm1, %v6695_v11 }
 0x3b9   : > { %6701 = vmatmul.msk.bf16.vlgmr.msrb.gmra.mxu1 %vm786_vm1, %v6699_v30 }
 0x3ba   : > { %6700 = vmatmul.msk.bf16.vlgmr.msrb.gmra.mxu0 %vm786_vm1, %v6699_v30 }
 0x3bf   : > { %2047 = vrot.lane.b32.xlu0 %v2036_v33, %s8978_s17 }
 0x3c5   : > { %v7904_v34 = vpop.f32.mrf.mxu3  ;;  %v7906_v35 = vpop.f32.mrf.mxu1 }
 0x3c7   : > { %v7908_v36 = vpop.f32.mrf.mxu0 }
 0x3c8   : > { %6702 = vmatmul.msk.bf16.vlgmr.msrb.gmra.mxu2 %vm786_vm1, %v6699_v30 }
 0x3cb   : > { %v7911_v37 = vpop.f32.mrf.mxu2 }
 0x3cd   : > { %v2105_v38 = vpop.f32.mrf.mxu3  ;;  %v2144_v39 = vpop.f32.mrf.mxu1 }
 0x3cf   : > { %v2118_v40 = vpop.f32.mrf.mxu0 }
 0x3d3   : > { %v2092_v41 = vpop.f32.mrf.mxu2 }
 0x3d5   : > { %v7913_v42 = vpop.f32.mrf.mxu3  ;;  %v2235_v43 = vpop.f32.mrf.mxu1 }
 0x3d7   : > { %v2222_v44 = vpop.f32.mrf.mxu0 }
 0x3db   : > { %v7915_v47 = vpop.f32.mrf.mxu2 }
 0x3dd   : > { %v2170_v48 = vpop.f32.mrf.mxu3  ;;  %v2237_v49 = vpop.f32.mrf.mxu1 }
 0x3df   : > { %v2224_v51 = vpop.f32.mrf.mxu0 }
 0x3e3   : > { %v2157_v50 = vpop.f32.mrf.mxu2 }
 0x3e5   : > { %v2273_v29 = vpop.f32.mrf.mxu3  ;;  %v2299_v52 = vpop.f32.mrf.mxu1 }
 0x3e6   : > { %v2274_v53 = vadd.f32 %v2273_v29, %v2222_v44 }
 0x3e7   : > { %v2286_v54 = vpop.f32.mrf.mxu0 }
 0x3e8   : > { %v2287_v55 = vadd.f32 %v2286_v54, %v2235_v43 }
 0x3eb   : > { %v2248_v56 = vpop.f32.mrf.mxu2 }
 0x3ec   : > { %v2300_v58 = vadd.f32 %v2299_v52, %v2248_v56 }
 0x3ed   : > { %v2275_v59 = vpop.f32.mrf.mxu3  ;;  %v2301_v60 = vpop.f32.mrf.mxu1 }
 0x3ef   : > { %v2288_v61 = vpop.f32.mrf.mxu0 }
 0x3f3   : > { %v2250_v57 = vpop.f32.mrf.mxu2 }
 0x3f5   : > { %v2349_v62 = vpop.f32.mrf.mxu3  ;;  %v2402_v63 = vpop.f32.mrf.mxu1 }
 0x3f6   : > { %v2367_v29 = vadd.f32 %v2349_v62, %v2287_v55 }
 0x3f7   : > { %v2362_v21 = vpop.f32.mrf.mxu0 }
 0x3f8   : > { %v7917_v1 = vadd.f32 %v2362_v21, %v2300_v58 }
 0x3fb   : > { %v2336_v2 = vpop.f32.mrf.mxu2 }
 0x3fc   : > { %v2366_v31 = vadd.f32 %v2336_v2, %v2274_v53 }
 0x3fd   : > { %v2351_v3 = vpop.f32.mrf.mxu3  ;;  %v2404_v4 = vpop.f32.mrf.mxu1 }
 0x3fe   : > { %v2432_v44 = vadd.f32 %v2402_v63, %v2366_v31  ;;  %v2780_v4 = vld [vmem:[%s8936_s9] sm:$0x7] }
 0x3ff   : > { %v2364_v27 = vpop.f32.mrf.mxu0 }
 0x403   : > { %v2338_v32 = vpop.f32.mrf.mxu2 }
 0x405   : > { %v2428_v5 = vpop.f32.mrf.mxu3  ;;  %v2481_v6 = vpop.f32.mrf.mxu1 }
 0x407   : > { %v2468_v7 = vpop.f32.mrf.mxu0 }
 0x408   : > { %v2498_v51 = vadd.f32 %v2468_v7, %v2432_v44  ;;  %v2782_v7 = vperm.slane %v2780_v4, 0 }
 0x40b   : > { %v2415_v8 = vpop.f32.mrf.mxu2 }
 0x40c   : > { %v2046_v38 = vpop.permute.xlu2 %2045  ;;  %v2433_v54 = vadd.f32 %v2415_v8, %v2367_v29  ;;  %v8016_v29 = vadd.f32 %v7904_v34, %v7758_v45 }
 0x40d   : > { %v2430_v9 = vpop.f32.mrf.mxu3  ;;  %v2483_v11 = vpop.f32.mrf.mxu1 }
 0x40e   : > { %v2499_v61 = vadd.f32 %v2481_v6, %v2433_v54 }
 0x40f   : > { %v2470_v14 = vpop.f32.mrf.mxu0 }
 0x413   : > { %v2417_v16 = vpop.f32.mrf.mxu2 }
 0x415   : > { %v2534_v18 = vpop.f32.mrf.mxu3  ;;  %v7919_v12 = vpop.f32.mrf.mxu1 }
 0x416   : > { %v2564_v52 = vadd.f32 %v2534_v18, %v2498_v51  ;;  %v2434_v18 = vadd.f32 %v2428_v5, %v7917_v1 }
 0x417   : > { %v2547_v20 = vpop.f32.mrf.mxu0 }
 0x418   : > { %v2565_v2 = vadd.f32 %v2547_v20, %v2499_v61 }
 0x41b   : > { %v2494_v22 = vpop.f32.mrf.mxu2 }
 0x41d   : > { %v2536_v24 = vpop.f32.mrf.mxu3  ;;  %v2562_v17 = vpop.f32.mrf.mxu1 }
 0x41e   : > { %v2500_v17 = vadd.f32 %v2494_v22, %v2434_v18 }
 0x41f   : > { %v2549_v23 = vpop.f32.mrf.mxu0 }
 0x423   : > { %v2496_v25 = vpop.f32.mrf.mxu2 }
 0x425   : > { %v2613_v26 = vpop.f32.mrf.mxu3  ;;  %v2666_v28 = vpop.f32.mrf.mxu1 }
 0x426   : > { %v2631_v55 = vadd.f32 %v2613_v26, %v2565_v2  ;;  %v2783_v26 = vperm.slane %v2780_v4, 1 }
 0x427   : > { %v2626_v30 = vpop.f32.mrf.mxu0 }
 0x429   : > { %v2042_v33 = vpop.permute.xlu0 %2041 }
 0x42a   : > { %v2044_v39 = vpop.permute.xlu1 %2043 }
 0x42b   : > { %v2050_v40 = vsel %vm1308_vm9, %v2042_v33, %v2044_v39  ;;  %v2051_v41 = vsel %vm1308_vm9, %v2044_v39, %v2046_v38  ;;  %v2600_v43 = vpop.f32.mrf.mxu2 }
 0x42c   : > { %2056 = vst [vmem:[%s7924_s20] sm:$0xff] %v2050_v40  ;;  %v2630_v56 = vadd.f32 %v2600_v43, %v2564_v52 }
 0x42d   : > { %2057 = vst [vmem:[%s7924_s20 + $0x8] sm:$0xff] %v2051_v41  ;;  %v2615_v48 = vpop.f32.mrf.mxu3  ;;  %v2668_v49 = vpop.f32.mrf.mxu1 }
 0x42e   : > { %v2696_v57 = vadd.f32 %v2666_v28, %v2630_v56 }
 0x42f   : > { %v2628_v50 = vpop.f32.mrf.mxu0 }
 0x430   : > { %v3453_v50 = vld [vmem:[%s8933_s6] sm:$0xff] }
 0x431   : > { %v2048_v53 = vpop.permute.xlu0 %2047 }
 0x432   : > { %v2052_v58 = vsel %vm1308_vm9, %v2046_v38, %v2048_v53  ;;  %v2566_v38 = vadd.f32 %v7919_v12, %v2500_v17  ;;  %v2784_v12 = vperm.slane %v2780_v4, 2  ;;  %v8026_v53 = vadd.f32 %v7908_v36, %v7758_v45 }
 0x433   : > { %2058 = vst [vmem:[%s7924_s20 + $0x10] sm:$0xff] %v2052_v58  ;;  %v2602_v59 = vpop.f32.mrf.mxu2 }
 0x434   : > { %v2632_v1 = vadd.f32 %v2626_v30, %v2566_v38 }
 0x435   : > { %v2692_v60 = vpop.f32.mrf.mxu3 }
 0x436   : > { %v2745_v63 = vpop.f32.mrf.mxu1  ;;  %v2698_v40 = vadd.f32 %v2692_v60, %v2632_v1 }
 0x437   : > { %v2732_v21 = vpop.f32.mrf.mxu0 }
 0x438   : > { %v2762_v3 = vadd.f32 %v2732_v21, %v2696_v57 }
 0x43a   : > { %v2771_v62 = vadd.f32 %v7879_v13, %v2762_v3 }
 0x43b   : > { %v2679_v27 = vpop.f32.mrf.mxu2 }
 0x43c   : > { %v2774_v32 = vmul.f32 0.1, %v2771_v62  ;;  %v2697_v8 = vadd.f32 %v2679_v27, %v2631_v55 }
 0x43d   : > { %v2694_v9 = vpop.f32.mrf.mxu3 }
 0x43e   : > { %v2777_v11 = vmax.f32 %v2771_v62, %v2774_v32  ;;  %v2763_v14 = vadd.f32 %v2745_v63, %v2697_v8  ;;  %v2747_v6 = vpop.f32.mrf.mxu1  ;;  %v6710_v8 = vld [vmem:[%s8930_s3 + $0x8] sm:$0xf] }
 0x43f   : > { %v2734_v16 = vpop.f32.mrf.mxu0 }
 0x440   : > { %v2788_v20 = vmul.f32 %v2782_v7, %v2777_v11  ;;  %v2772_v24 = vadd.f32 %v7879_v13, %v2763_v14  ;;  %v2800_v7 = vld [vmem:[%s8930_s3] sm:$0xf] }
 0x442   : > { %v2797_v23 = vpack.c.bf16 %v2788_v20, %v2788_v20  ;;  %v2775_v25 = vmul.f32 0.1, %v2772_v24 }
 0x443   : > { %v2681_v28 = vpop.f32.mrf.mxu2 }
 0x444   : > { %v2778_v31 = vmax.f32 %v2772_v24, %v2775_v25  ;;  %2928 = vrot.lane.b32.xlu1 %v2797_v23, %s7048_s21  ;;  %2814 = vrot.lane.b32.xlu0 %v2797_v23, %s7047_s19  ;;  %v2880_v33 = vsel %vm790_vm0, %v2797_v23, 0 }
 0x445   : > { %2895 = vmatpush.bf16.msra.mxu2 %v2880_v33 }
 0x446   : > { %v2789_v39 = vmul.f32 %v2783_v26, %v2778_v31  ;;  %v6714_v31 = vld [vmem:[%s8930_s3 + $0xc] sm:$0xf] }
 0x448   : > { %v7940_v5 = vpack.c.bf16 %v2789_v39, %v2789_v39  ;;  %6707 = vmatmul.msk.bf16.vlgmr.msra.gmra.mxu2 %vm786_vm1, %v2800_v7 }
 0x44a   : > { %2930 = vrot.lane.b32.xlu2 %v7940_v5, %s7048_s21  ;;  %v2883_v55 = vsel %vm790_vm0, %v7940_v5, 0 }
 0x44b   : > { %v2758_v22 = vpop.f32.mrf.mxu2 }
 0x44c   : > { %v2764_v41 = vadd.f32 %v2758_v22, %v2698_v40  ;;  %2996 = vrot.lane.b32.xlu0 %v7940_v5, %s7049_s23  ;;  %2816 = vrot.lane.b32.xlu1 %v7940_v5, %s7047_s19 }
 0x44e   : > { %v2773_v43 = vadd.f32 %v7879_v13, %v2764_v41  ;;  %v7983_v13 = vadd.f32 %v7911_v37, %v7758_v45  ;;  %v3515_v37 = vld [vmem:[%s8935_s8] sm:$0xff] }
 0x44f   : > { %v6703_v45 = vld [vmem:[%s8930_s3 + $0x4] sm:$0xf] }
 0x450   : > { %v2776_v44 = vmul.f32 0.1, %v2773_v43 }
 0x452   : > { %v2779_v48 = vmax.f32 %v2773_v43, %v2776_v44 }
 0x453   : > { %v2760_v30 = vpop.f32.mrf.mxu2 }
 0x454   : > { %v2790_v49 = vmul.f32 %v2784_v12, %v2779_v48  ;;  %3060 = vrot.lane.b32.xlu0 %v2797_v23, %s8982_s27  ;;  %3062 = vrot.lane.b32.xlu1 %v7940_v5, %s8982_s27 }
 0x456   : > { %v7952_v51 = vpack.c.bf16 %v2790_v49, %v2790_v49 }
 0x458   : > { %2818 = vrot.lane.b32.xlu2 %v7952_v51, %s7047_s19  ;;  %s8956_s19 = smov 37   ;;  %v2886_v62 = vsel %vm790_vm0, %v7952_v51, 0 }
 0x45c   : > { %3066 = vrot.lane.b32.xlu0 %v7056_v19, %s8982_s27  ;;  %3126 = vrot.lane.b32.xlu1 %v2797_v23, %s8979_s15 }
 0x460   : > { %2994 = vrot.lane.b32.xlu2 %v2797_v23, %s7049_s23 }
 0x464   : > { %3194 = vrot.lane.b32.xlu0 %v7940_v5, %s8980_s14  ;;  %3132 = vrot.lane.b32.xlu1 %v7056_v19, %s8979_s15 }
 0x468   : > { %3000 = vrot.lane.b32.xlu2 %v7056_v19, %s7049_s23 }
 0x46c   : > { %3258 = vrot.lane.b32.xlu0 %v2797_v23, %s8981_s13  ;;  %3260 = vrot.lane.b32.xlu1 %v7940_v5, %s8981_s13 }
 0x470   : > { %3128 = vrot.lane.b32.xlu2 %v7940_v5, %s8979_s15 }
 0x474   : > { %3264 = vrot.lane.b32.xlu0 %v7056_v19, %s8981_s13  ;;  %3324 = vrot.lane.b32.xlu1 %v2797_v23, %s8978_s17 }
 0x478   : > { %3192 = vrot.lane.b32.xlu2 %v2797_v23, %s8980_s14 }
 0x47c   : > { %2998 = vrot.lane.b32.xlu1 %v7952_v51, %s7049_s23  ;;  %2932 = vrot.lane.b32.xlu0 %v7952_v51, %s7048_s21  ;;  %s8952_s21 = smov 55   ;;  %s8954_s23 = smov 113  }
 0x480   : > { %3198 = vrot.lane.b32.xlu2 %v7056_v19, %s8980_s14 }
 0x484   : > { %3330 = vrot.lane.b32.xlu1 %v7056_v19, %s8978_s17  ;;  %3570 = vrot.lane.b32.xlu0 %v7983_v13, %s8982_s27  ;;  %v3389_v19 = vld [vmem:[%s8931_s4] sm:$0xff] }
 0x488   : > { %3064 = vrot.lane.b32.xlu2 %v7952_v51, %s8982_s27 }
 0x48c   : > { %3456 = vperm.xlu1 %6941, %v3453_v50   ;;  %3650 = vrot.lane.b32.xlu0 %v7983_v13, %s8981_s13 }
 0x490   : > { %3326 = vrot.lane.b32.xlu2 %v7940_v5, %s8978_s17 }
 0x494   : > { %3808 = vrot.lane.b32.xlu1 %v7983_v13, %s8952_s21  ;;  %3729 = vrot.lane.b32.xlu0 %v7983_v13, %s7059_s26  ;;  %s8960_s21 = smov 19  }
 0x498   : > { %3392 = vperm.xlu2 %6940, %v3389_v19  }
 0x49c   : > { %3887 = vrot.lane.b32.xlu1 %v7983_v13, %s8956_s19  ;;  %s7068_s19 = smov 75  }
 0x4a0   : > { %3518 = vperm.xlu2 %6940, %v3515_v37  }
 0x4a4   : > { %3196 = vrot.lane.b32.xlu1 %v7952_v51, %s8980_s14  ;;  %v8018_v52 = vpop.permute.xlu2 %2930  ;;  %s8958_s14 = smov 95  }
 0x4a8   : > { %3966 = vrot.lane.b32.xlu2 %v7983_v13, %s8960_s21  ;;  %s8992_s21 = smov 57  }
 0x4ac   : > { %4050 = vrot.lane.b32.xlu1 %v8016_v29, %s7062_s0 }
 0x4b0   : > { %3262 = vrot.lane.b32.xlu2 %v7952_v51, %s8981_s13 }
 0x4b2   : > { %v2819_v54 = vpop.permute.xlu2 %2818 }
 0x4b3   : > { %v2824_v56 = vsel %vm782_vm2, %v2819_v54, %v7885_v15 }
 0x4b4   : > { %v2835_v34 = vsel %vm790_vm0, %v2824_v56, 0  ;;  %4614 = vrot.lane.b32.xlu1 %v8026_v53, %s8970_s1 }
 0x4b5   : > { %2870 = vmatpush.bf16.msra.mxu1 %v2835_v34 }
 0x4b6   : > { %v2929_v58 = vpop.permute.xlu1 %2928  ;;  %v2815_v59 = vpop.permute.xlu0 %2814 }
 0x4b7   : > { %v2936_v60 = vsel %vm900_vm3, %v2929_v58, %v8018_v52 }
 0x4b8   : > { %v2943_v36 = vsel %vm790_vm0, %v2936_v60, 0  ;;  %6706 = vmatmul.msk.bf16.vlgmr.msra.gmra.mxu1 %vm786_vm1, %v6703_v45 }
 0x4b9   : > { %2958 = vmatpush.bf16.msrb.mxu1 %v2943_v36 }
 0x4ba   : > { %v2995_v15 = vpop.permute.xlu2 %2994 }
 0x4bc   : > { %4699 = vrot.lane.b32.xlu1 %v8026_v53, %s8954_s23  ;;  %s8968_s23 = smov 57  }
 0x4be   : > { %v2997_v61 = vpop.permute.xlu0 %2996  ;;  %v2817_v57 = vpop.permute.xlu1 %2816 }
 0x4bf   : > { %v2822_v63 = vsel %vm782_vm2, %v2815_v59, %v2817_v57  ;;  %v2823_v21 = vsel %vm782_vm2, %v2817_v57, %v2819_v54  ;;  %v3002_v4 = vsel %vm968_vm4, %v2995_v15, %v2997_v61  ;;  %v6718_v59 = vld [vmem:[%s8930_s3 + $0x10] sm:$0xf] }
 0x4c0   : > { %v2829_v2 = vsel %vm790_vm0, %v2822_v63, 0  ;;  %v2832_v3 = vsel %vm790_vm0, %v2823_v21, 0  ;;  %v3009_v32 = vsel %vm790_vm0, %v3002_v4, 0 }
 0x4c1   : > { %2844 = vmatpush.bf16.msrb.mxu3 %v2829_v2  ;;  %2857 = vmatpush.bf16.msra.mxu0 %v2832_v3 }
 0x4c2   : > { %v3001_v27 = vpop.permute.xlu2 %3000 }
 0x4c4   : > { %6705 = vmatmul.msk.bf16.vlgmr.msra.gmra.mxu0 %vm786_vm1, %v6703_v45  ;;  %6704 = vmatmul.msk.bf16.vlgmr.msrb.gmra.mxu3 %vm786_vm1, %v6703_v45 }
 0x4c5   : > { %2908 = vmatpush.bf16.msra.mxu3 %v2883_v55  ;;  %2921 = vmatpush.bf16.msrb.mxu0 %v2886_v62  ;;  %v6722_v62 = vld [vmem:[%s8930_s3 + $0x14] sm:$0xf] }
 0x4c6   : > { %v3061_v9 = vpop.permute.xlu0 %3060  ;;  %v3063_v11 = vpop.permute.xlu1 %3062 }
 0x4c7   : > { %v3068_v5 = vsel %vm1036_vm5, %v3061_v9, %v3063_v11 }
 0x4c8   : > { %6711 = vmatmul.msk.bf16.vlgmr.msrb.gmra.mxu1 %vm786_vm1, %v6710_v8  ;;  %v3075_v54 = vsel %vm790_vm0, %v3068_v5, 0 }
 0x4c9   : > { %3024 = vmatpush.bf16.msra.mxu0 %v3009_v32 }
 0x4ca   : > { %v8062_v14 = vpop.permute.xlu2 %3128 }
 0x4ce   : > { %v3067_v6 = vpop.permute.xlu0 %3066  ;;  %v3127_v16 = vpop.permute.xlu1 %3126 }
 0x4cf   : > { %v3134_v37 = vsel %vm1104_vm6, %v3127_v16, %v8062_v14 }
 0x4d0   : > { %v3141_v34 = vsel %vm790_vm0, %v3134_v37, 0 }
 0x4d2   : > { %v3193_v18 = vpop.permute.xlu2 %3192 }
 0x4d4   : > { %6709 = vmatmul.msk.bf16.vlgmr.msrb.gmra.mxu0 %vm786_vm1, %v2800_v7  ;;  %6708 = vmatmul.msk.bf16.vlgmr.msra.gmra.mxu3 %vm786_vm1, %v2800_v7 }
 0x4d6   : > { %v8066_v20 = vpop.permute.xlu0 %3194  ;;  %v8068_v24 = vpop.permute.xlu1 %3132 }
 0x4da   : > { %v8070_v17 = vpop.permute.xlu2 %3198 }
 0x4de   : > { %v8072_v23 = vpop.permute.xlu0 %3258  ;;  %v8074_v25 = vpop.permute.xlu1 %3260 }
 0x4e2   : > { %v3065_v26 = vpop.permute.xlu2 %3064 }
 0x4e3   : > { %v3069_v28 = vsel %vm1036_vm5, %v3063_v11, %v3065_v26  ;;  %v3070_v40 = vsel %vm1036_vm5, %v3065_v26, %v3067_v6 }
 0x4e4   : > { %v3078_v33 = vsel %vm790_vm0, %v3069_v28, 0  ;;  %6715 = vmatmul.msk.bf16.vlgmr.msra.gmra.mxu0 %vm786_vm1, %v6714_v31  ;;  %v6730_v28 = vld [vmem:[%s8930_s3 + $0x1c] sm:$0xf] }
 0x4e5   : > { %3103 = vmatpush.bf16.msrb.mxu0 %v3078_v33 }
 0x4e6   : > { %v3265_v38 = vpop.permute.xlu0 %3264  ;;  %v8082_v39 = vpop.permute.xlu1 %3324 }
 0x4ea   : > { %v8084_v1 = vpop.permute.xlu2 %3326 }
 0x4ee   : > { %v2999_v22 = vpop.permute.xlu1 %2998  ;;  %v2933_v41 = vpop.permute.xlu0 %2932 }
 0x4ef   : > { %v3003_v43 = vsel %vm968_vm4, %v2997_v61, %v2999_v22  ;;  %v3004_v44 = vsel %vm968_vm4, %v2999_v22, %v3001_v27  ;;  %v2937_v12 = vsel %vm900_vm3, %v8018_v52, %v2933_v41  ;;  %v2938_v48 = vsel %vm900_vm3, %v2933_v41, %v7874_v10 }
 0x4f0   : > { %v3012_v30 = vsel %vm790_vm0, %v3003_v43, 0  ;;  %v3015_v49 = vsel %vm790_vm0, %v3004_v44, 0  ;;  %v2946_v50 = vsel %vm790_vm0, %v2937_v12, 0  ;;  %v2949_v19 = vsel %vm790_vm0, %v2938_v48, 0  ;;  %v8213_v48 = vpop.f32.mrf.mxu2 }
 0x4f1   : > { %2971 = vmatpush.bf16.msrb.mxu2 %v2946_v50  ;;  %2984 = vmatpush.bf16.msrb.mxu3 %v2949_v19  ;;  %v3200_v52 = vsel %vm1172_vm7, %v3193_v18, %v8066_v20  ;;  %v3081_v10 = vsel %vm790_vm0, %v3070_v40, 0  ;;  %v3332_v41 = vsel %vm1308_vm9, %v8082_v39, %v8084_v1 }
 0x4f2   : > { %3037 = vmatpush.bf16.msra.mxu1 %v3012_v30  ;;  %v8104_v56 = vpop.permute.xlu2 %3392  ;;  %v3207_v58 = vsel %vm790_vm0, %v3200_v52, 0 }
 0x4f4   : > { %6712 = vmatmul.msk.bf16.vlgmr.msrb.gmra.mxu2 %vm786_vm1, %v6710_v8  ;;  %6713 = vmatmul.msk.bf16.vlgmr.msrb.gmra.mxu3 %vm786_vm1, %v6710_v8 }
 0x4f5   : > { %3050 = vmatpush.bf16.msra.mxu2 %v3015_v49  ;;  %3090 = vmatpush.bf16.msra.mxu3 %v3075_v54 }
 0x4f6   : > { %3116 = vmatpush.bf16.msrb.mxu1 %v3081_v10  ;;  %v8114_v60 = vpop.permute.xlu1 %3330  ;;  %v3571_v45 = vpop.permute.xlu0 %3570  ;;  %6720 = vmatmul.msk.bf16.vlgmr.msrb.gmra.mxu0 %vm786_vm1, %v6718_v59 }
 0x4f7   : > { %6716 = vmatmul.msk.bf16.vlgmr.msra.gmra.mxu1 %vm786_vm1, %v6714_v31  ;;  %3573 = vxpose.xlu1.b32.start.end [1/1] (short) (narrow) %v3571_v45, 16 }
 0x4f8   : > { %v2899_v19 = vpop.f32.mrf.mxu2 }
 0x4f9   : > { %3156 = vmatpush.bf16.msrb.mxu2 %v3141_v34  ;;  %v6734_v34 = vld [vmem:[%s8930_s3 + $0x20] sm:$0xf] }
 0x4fa   : > { %3222 = vmatpush.bf16.msra.mxu1 %v3207_v58  ;;  %v8117_v36 = vpop.permute.xlu2 %3518 }
 0x4fe   : > { %v8119_v15 = vpop.permute.xlu1 %3456  ;;  %v3651_v61 = vpop.permute.xlu0 %3650 }
 0x4ff   : > { %3653 = vxpose.xlu2.b32.start.end [1/1] (short) (narrow) %v3651_v61, 16 }
 0x502   : > { %v3967_v57 = vpop.permute.xlu2 %3966 }
 0x504   : > { %6717 = vmatmul.msk.bf16.vlgmr.msra.gmra.mxu2 %vm786_vm1, %v6714_v31  ;;  %6719 = vmatmul.msk.bf16.vlgmr.msra.gmra.mxu3 %vm786_vm1, %v6718_v59 }
 0x506   : > { %v3809_v63 = vpop.permute.xlu1 %3808  ;;  %v3730_v21 = vpop.permute.xlu0 %3729 }
 0x507   : > { %6721 = vmatmul.msk.bf16.vlgmr.msrb.gmra.mxu1 %vm786_vm1, %v6718_v59  ;;  %3732 = vxpose.xlu0.b32.start.end [1/1] (short) (narrow) %v3730_v21, 16 }
 0x50a   : > { %v3263_v2 = vpop.permute.xlu2 %3262 }
 0x50b   : > { %v3267_v3 = vsel %vm1240_vm8, %v8074_v25, %v3263_v2  ;;  %v3268_v27 = vsel %vm1240_vm8, %v3263_v2, %v3265_v38 }
 0x50c   : > { %v3276_v4 = vsel %vm790_vm0, %v3267_v3, 0  ;;  %v3279_v11 = vsel %vm790_vm0, %v3268_v27, 0 }
 0x50d   : > { %3301 = vmatpush.bf16.msrb.mxu1 %v3276_v4 }
 0x50e   : > { %v3888_v55 = vpop.permute.xlu1 %3887 }
 0x50f   : > { %3890 = vxpose.xlu1.b32.start.end [1/1] (short) (narrow) %v3888_v55, 16  ;;  %3969 = vxpose.xlu2.b32.start.end [1/1] (short) (narrow) %v3967_v57, 16 }
 0x514   : > { %6723 = vmatmul.msk.bf16.vlgmr.msrb.gmra.mxu2 %vm786_vm1, %v6722_v62 }
 0x516   : > { %v3197_v32 = vpop.permute.xlu1 %3196 }
 0x517   : > { %v3201_v7 = vsel %vm1172_vm7, %v8066_v20, %v3197_v32  ;;  %v3202_v8 = vsel %vm1172_vm7, %v3197_v32, %v8070_v17  ;;  %3811 = vxpose.xlu0.b32.start.end [1/1] (short) (narrow) %v3809_v63, 16  ;;  %v8146_v20 = vadd.f32 %v7915_v47, %v7760_v0  ;;  %v8150_v17 = vadd.f32 %v7906_v35, %v7760_v0  ;;  %v6726_v35 = vld [vmem:[%s8930_s3 + $0x18] sm:$0xf] }
 0x518   : > { %v3210_v9 = vsel %vm790_vm0, %v3201_v7, 0  ;;  %6727 = vmatmul.msk.bf16.vlgmr.msra.gmra.mxu1 %vm786_vm1, %v6726_v35  ;;  %v3213_v43 = vsel %vm790_vm0, %v3202_v8, 0 }
 0x519   : > { %3235 = vmatpush.bf16.msra.mxu2 %v3210_v9  ;;  %v6942_v26 = vpack.i.bf16 %v8146_v20, %v8150_v17 }
 0x51d   : > { %3314 = vmatpush.bf16.msrb.mxu2 %v3279_v11 }
 0x51e   : > { %v4051_v6 = vpop.permute.xlu1 %4050 }
 0x524   : > { %6728 = vmatmul.msk.bf16.vlgmr.msra.gmra.mxu2 %vm786_vm1, %v6726_v35 }
 0x526   : > { %v8138_v16 = vpop.permute.xlu1 %4614 }
 0x528   : > { %6732 = vmatmul.msk.bf16.vlgmr.msrb.gmra.mxu1 %vm786_vm1, %v6730_v28 }
 0x52e   : > { %v4700_v18 = vpop.permute.xlu1 %4699 }
 0x52f   : > { %4702 = vxpose.xlu1.b32.start.end [1/1] (short) (narrow) %v4700_v18, 16 }
 0x534   : > { %6733 = vmatmul.msk.bf16.vlgmr.msrb.gmra.mxu2 %vm786_vm1, %v6730_v28 }
 0x541   : > { %v2859_v52 = vpop.f32.mrf.mxu0 }
 0x547   : > { %v8211_v12 = vpop.f32.mrf.mxu3 }
 0x549   : > { %v2861_v61 = vpop.f32.mrf.mxu0 }
 0x54f   : > { %v2848_v50 = vpop.f32.mrf.mxu3 }
 0x551   : > { %v2923_v3 = vpop.f32.mrf.mxu0 }
 0x557   : > { %v2910_v10 = vpop.f32.mrf.mxu3 }
 0x559   : > { %v2925_v32 = vpop.f32.mrf.mxu0 }
 0x55f   : > { %v2912_v57 = vpop.f32.mrf.mxu3 }
 0x577   : > { %v2973_v58 = vpop.f32.mrf.mxu2  ;;  %v2986_v4 = vpop.f32.mrf.mxu3 }
 0x57f   : > { %v2975_v63 = vpop.f32.mrf.mxu2  ;;  %v2988_v7 = vpop.f32.mrf.mxu3 }
 0x587   : > { %v3052_v55 = vpop.f32.mrf.mxu2 }
 0x58d   : > { %3130 = vrot.lane.b32.xlu0 %v7952_v51, %s8979_s15  ;;  %s8962_s15 = smov 111  }
 0x58f   : > { %v3054_v8 = vpop.f32.mrf.mxu2 }
 0x591   : > { %4778 = vrot.lane.b32.xlu1 %v8026_v53, %s8958_s14  ;;  %s6889_s14 = smul.u32 (%p7172_p5), 24, %s7153_s24 }
 0x595   : > { %4048 = vrot.lane.b32.xlu0 %v7983_v13, %s7062_s0 }
 0x599   : > { %6943 = vrot.lane.b32.xlu1 %v6942_v26, %s7062_s0  ;;  %v3026_v26 = vpop.f32.mrf.mxu0 }
 0x59b   : > { %v8225_v9 = vpop.trf.xlu1 }
 0x59d   : > { %4135 = vrot.lane.b32.xlu0 %v8016_v29, %s8962_s15  ;;  %s7070_s15 = smov 39  }
 0x5a5   : > { %4214 = vrot.lane.b32.xlu0 %v8016_v29, %s8964_s29  ;;  %s8966_s29 = smov 21  }
 0x5ab   : > { %v8178_v47 = vpop.trf.xlu0 }
 0x5ad   : > { %4293 = vrot.lane.b32.xlu0 %v8016_v29, %s7068_s19 }
 0x5b3   : > { %v8180_v13 = vpop.trf.xlu0 }
 0x5b5   : > { %4372 = vrot.lane.b32.xlu0 %v8016_v29, %s8968_s23  ;;  %s8991_s23 = smov 93  }
 0x5bb   : > { %v8182_v53 = vpop.trf.xlu0 }
 0x5bd   : > { %4451 = vrot.lane.b32.xlu0 %v8016_v29, %s7070_s15 }
 0x5c3   : > { %v8189_v31 = vpop.trf.xlu0 }
 0x5c5   : > { %4530 = vrot.lane.b32.xlu0 %v8016_v29, %s8966_s29  ;;  %s8990_s29 = smov 3  }
 0x5cd   : > { %4612 = vrot.lane.b32.xlu0 %v8016_v29, %s8970_s1  ;;  %s8983_s1 = smov 38  }
 0x5d5   : > { %3328 = vrot.lane.b32.xlu0 %v7952_v51, %s8978_s17  ;;  %v3266_v51 = vsel %vm1240_vm8, %v8072_v23, %v8074_v25  ;;  %v8208_v23 = vpop.f32.mrf.mxu1 }
 0x5d6   : > { %v3273_v22 = vsel %vm790_vm0, %v3266_v51, 0  ;;  %v8231_v51 = vpop.trf.xlu1  ;;  %v2924_v32 = vadd.f32 %v2923_v3, %v8208_v23 }
 0x5dd   : > { %v2874_v44 = vpop.f32.mrf.mxu1 }
 0x5e5   : > { %v8217_v49 = vpop.f32.mrf.mxu1 }
 0x5ed   : > { %v2962_v54 = vpop.f32.mrf.mxu1 }
 0x5f5   : > { %v3039_v45 = vpop.f32.mrf.mxu1 }
 0x5fd   : > { %v3041_v2 = vpop.f32.mrf.mxu1 }
 0x5fe   : > { %v8249_v2 = vpop.trf.xlu2 }
 0x5ff   : > { %v3131_v29 = vpop.permute.xlu0 %3130 }
 0x600   : > { %v3135_v33 = vsel %vm1104_vm6, %v8062_v14, %v3131_v29  ;;  %v3136_v38 = vsel %vm1104_vm6, %v3131_v29, %v8068_v24  ;;  %v3339_v14 = vsel %vm790_vm0, %v3332_v41, 0 }
 0x601   : > { %v3144_v5 = vsel %vm790_vm0, %v3135_v33, 0  ;;  %v3147_v40 = vsel %vm790_vm0, %v3136_v38, 0 }
 0x602   : > { %3169 = vmatpush.bf16.msrb.mxu3 %v3144_v5  ;;  %3182 = vmatpush.bf16.msra.mxu0 %v3147_v40 }
 0x605   : > { %6724 = vmatmul.msk.bf16.vlgmr.msrb.gmra.mxu3 %vm786_vm1, %v6722_v62  ;;  %6725 = vmatmul.msk.bf16.vlgmr.msra.gmra.mxu0 %vm786_vm1, %v6722_v62  ;;  %v8223_v27 = vpop.f32.mrf.mxu1 }
 0x606   : > { %3248 = vmatpush.bf16.msra.mxu3 %v3213_v43  ;;  %3288 = vmatpush.bf16.msrb.mxu0 %v3273_v22  ;;  %v3028_v22 = vpop.f32.mrf.mxu0 }
 0x607   : > { %v4049_v24 = vpop.permute.xlu0 %4048 }
 0x608   : > { %v4053_v25 = vsel %vm4052_vm11, %v4049_v24, %v4051_v6 }
 0x609   : > { %4055 = vxpose.xlu2.b32.start.end [1/1] (short) (narrow) %v4053_v25, 16 }
 0x60a   : > { %3354 = vmatpush.bf16.msrb.mxu3 %v3339_v14  ;;  %v8241_v14 = vpop.trf.xlu1 }
 0x60d   : > { %v3120_v18 = vpop.f32.mrf.mxu1 }
 0x60f   : > { %v4136_v39 = vpop.permute.xlu0 %4135 }
 0x612   : > { %v8243_v25 = vpop.trf.xlu1 }
 0x615   : > { %6729 = vmatmul.msk.bf16.vlgmr.msra.gmra.mxu3 %vm786_vm1, %v6726_v35  ;;  %6731 = vmatmul.msk.bf16.vlgmr.msrb.gmra.mxu0 %vm786_vm1, %v6730_v28  ;;  %v3092_v35 = vpop.f32.mrf.mxu3  ;;  %v8229_v28 = vpop.f32.mrf.mxu2 }
 0x617   : > { %v4215_v30 = vpop.permute.xlu0 %4214 }
 0x619   : > { %4138 = vxpose.xlu2.b32.start.end [1/1] (short) (narrow) %v4136_v39, 16 }
 0x61a   : > { %v8245_v39 = vpop.trf.xlu1 }
 0x61d   : > { %v3094_v41 = vpop.f32.mrf.mxu3  ;;  %v3160_v43 = vpop.f32.mrf.mxu2 }
 0x61f   : > { %v4294_v37 = vpop.permute.xlu0 %4293 }
 0x622   : > { %v8247_v50 = vpop.trf.xlu1 }
 0x625   : > { %6735 = vmatmul.msk.bf16.vlgmr.msrb.gmra.mxu3 %vm786_vm1, %v6734_v34  ;;  %v3237_v44 = vpop.f32.mrf.mxu2 }
 0x627   : > { %v4373_v59 = vpop.permute.xlu0 %4372 }
 0x629   : > { %4217 = vxpose.xlu2.b32.start.end [1/1] (short) (narrow) %v4215_v30, 16 }
 0x62a   : > { %v4779_v54 = vpop.permute.xlu1 %4778 }
 0x62d   : > { %v3239_v19 = vpop.f32.mrf.mxu2 }
 0x62f   : > { %v4452_v21 = vpop.permute.xlu0 %4451 }
 0x637   : > { %v4531_v62 = vpop.permute.xlu0 %4530 }
 0x639   : > { %4296 = vxpose.xlu2.b32.start.end [1/1] (short) (narrow) %v4294_v37, 16 }
 0x63f   : > { %v4613_v11 = vpop.permute.xlu0 %4612 }
 0x640   : > { %v4617_v6 = vsel %vm4616_vm12, %v4613_v11, %v8138_v16  ;;  %v3224_v16 = vpop.f32.mrf.mxu1 }
 0x641   : > { %4619 = vxpose.xlu0.b32.start.end [1/1] (short) (narrow) %v4617_v6, 16  ;;  %v2992_v6 = vadd.f32 %v2986_v4, %v2924_v32 }
 0x647   : > { %v3329_v29 = vpop.permute.xlu0 %3328 }
 0x648   : > { %v3333_v33 = vsel %vm1308_vm9, %v8084_v1, %v3329_v29  ;;  %v3334_v38 = vsel %vm1308_vm9, %v3329_v29, %v8114_v60  ;;  %v3105_v1 = vpop.f32.mrf.mxu0  ;;  %v3226_v24 = vpop.f32.mrf.mxu1 }
 0x649   : > { %v3342_v5 = vsel %vm790_vm0, %v3333_v33, 0  ;;  %v3345_v40 = vsel %vm790_vm0, %v3334_v38, 0  ;;  %4375 = vxpose.xlu2.b32.start.end [1/1] (short) (narrow) %v4373_v59, 16  ;;  %v2911_v59 = vadd.f32 %v2910_v10, %v2859_v52  ;;  %v8252_v33 = vpop.trf.xlu2  ;;  %v3058_v38 = vadd.f32 %v3052_v55, %v2992_v6 }
 0x64a   : > { %3367 = vmatpush.bf16.msra.mxu0 %v3342_v5  ;;  %3380 = vmatpush.bf16.msra.mxu1 %v3345_v40  ;;  %v2898_v52 = vadd.f32 %v8213_v48, %v8211_v12 }
 0x64b   : > { %v2991_v61 = vadd.f32 %v2973_v58, %v2911_v59  ;;  %v3124_v58 = vadd.f32 %v8223_v27, %v3058_v38 }
 0x64d   : > { %6736 = vmatmul.msk.bf16.vlgmr.msra.gmra.mxu0 %vm786_vm1, %v6734_v34  ;;  %6737 = vmatmul.msk.bf16.vlgmr.msra.gmra.mxu1 %vm786_vm1, %v6734_v34  ;;  %v3316_v34 = vpop.f32.mrf.mxu2 }
 0x650   : > { %v3107_v60 = vpop.f32.mrf.mxu0  ;;  %v3303_v30 = vpop.f32.mrf.mxu1 }
 0x651   : > { %v8258_v23 = vpop.trf.xlu2 }
 0x655   : > { %v3318_v63 = vpop.f32.mrf.mxu2 }
 0x658   : > { %v3305_v37 = vpop.f32.mrf.mxu1 }
 0x659   : > { %4454 = vxpose.xlu2.b32.start.end [1/1] (short) (narrow) %v4452_v21, 16  ;;  %v3057_v21 = vadd.f32 %v3039_v45, %v2991_v61  ;;  %v2990_v45 = vadd.f32 %v8217_v49, %v2898_v52  ;;  %v8260_v24 = vpop.trf.xlu2 }
 0x65b   : > { %v3123_v7 = vadd.f32 %v3105_v1, %v3057_v21  ;;  %v3056_v22 = vadd.f32 %v3026_v26, %v2990_v45 }
 0x65d   : > { %v3122_v1 = vadd.f32 %v3092_v35, %v3056_v22 }
 0x65f   : > { %v3188_v60 = vadd.f32 %v8229_v28, %v3122_v1  ;;  %v3452_v28 = vld [vmem:[%s8932_s5] sm:$0xf] }
 0x661   : > { %v3254_v12 = vadd.f32 %v3224_v16, %v3188_v60  ;;  %v3514_v16 = vld [vmem:[%s8934_s7] sm:$0xf] }
 0x669   : > { %4533 = vxpose.xlu2.b32.start.end [1/1] (short) (narrow) %v4531_v62, 16 }
 0x679   : > { %4781 = vxpose.xlu2.b32.start.end [1/1] (short) (narrow) %v4779_v54, 16 }
 0x682   : > { %v3184_v57 = vpop.f32.mrf.mxu0 }
 0x683   : > { %v3190_v3 = vadd.f32 %v3184_v57, %v3124_v58 }
 0x688   : > { %v3171_v62 = vpop.f32.mrf.mxu3 }
 0x689   : > { %v3189_v8 = vadd.f32 %v3171_v62, %v3123_v7 }
 0x68a   : > { %v3186_v11 = vpop.f32.mrf.mxu0 }
 0x68b   : > { %v3255_v18 = vadd.f32 %v3237_v44, %v3189_v8 }
 0x68d   : > { %v3321_v29 = vadd.f32 %v3303_v30, %v3255_v18 }
 0x690   : > { %v3173_v5 = vpop.f32.mrf.mxu3 }
 0x692   : > { %v3290_v10 = vpop.f32.mrf.mxu0 }
 0x693   : > { %v3320_v27 = vadd.f32 %v3290_v10, %v3254_v12 }
 0x698   : > { %v3250_v40 = vpop.f32.mrf.mxu3 }
 0x699   : > { %v3256_v4 = vadd.f32 %v3250_v40, %v3190_v3 }
 0x69a   : > { %v3292_v41 = vpop.f32.mrf.mxu0 }
 0x69b   : > { %v3322_v43 = vadd.f32 %v3316_v34, %v3256_v4 }
 0x6a0   : > { %v3252_v55 = vpop.f32.mrf.mxu3 }
 0x6a2   : > { %v8263_v48 = vpop.trf.xlu2 }
 0x6a8   : > { %v3356_v44 = vpop.f32.mrf.mxu3 }
 0x6a9   : > { %v3386_v49 = vadd.f32 %v3356_v44, %v3320_v27  ;;  %v6738_v27 = vld [vmem:[%s7329_s18 + $0x20] sm:$0xff] }
 0x6aa   : > { %v8266_v37 = vpop.trf.xlu2 }
 0x6ab   : > { %v3395_v30 = vadd.f32 %v8104_v56, %v3386_v49 }
 0x6ad   : > { %v3398_v19 = vmul.f32 0.1, %v3395_v30 }
 0x6af   : > { %v3401_v26 = vmax.f32 %v3395_v30, %v3398_v19 }
 0x6b0   : > { %v3358_v54 = vpop.f32.mrf.mxu3 }
 0x6b1   : > { %v3449_v34 = vpack.c.bf16 %v3401_v26, %v3401_v26 }
 0x6b2   : > { %v8278_v59 = vpop.trf.xlu2 }
 0x6b3   : > { %v3463_v35 = vsel %vm790_vm0, %v3449_v34, 0  ;;  %v8322_v34 = vpop.permute.xlu1 %6943 }
 0x6b4   : > { %3478 = vmatpush.bf16.msra.mxu2 %v3463_v35  ;;  %3531 = vmatpush.bf16.msrb.mxu1 %v3463_v35 }
 0x6b7   : > { %6745 = vmatmul.msk.bf16.vlgmr.msra.gmra.mxu2 %vm786_vm1, %v3452_v28  ;;  %3411 = vrot.lane.b32.xlu0 %v3401_v26, %s8983_s1 }
 0x6b8   : > { %6748 = vmatmul.msk.bf16.vlgmr.msrb.gmra.mxu1 %vm786_vm1, %v3514_v16 }
 0x6ba   : > { %v8280_v61 = vpop.trf.xlu2 }
 0x6c2   : > { %v8282_v7 = vpop.trf.xlu2 }
 0x6ca   : > { %v3369_v57 = vpop.f32.mrf.mxu0  ;;  %v3382_v63 = vpop.f32.mrf.mxu1 }
 0x6cb   : > { %v3387_v21 = vadd.f32 %v3369_v57, %v3321_v29  ;;  %v3388_v32 = vadd.f32 %v3382_v63, %v3322_v43  ;;  %v8289_v3 = vpop.trf.xlu2  ;;  %v6739_v63 = vld [vmem:[%s7329_s18 + $0x28] sm:$0xff] }
 0x6cd   : > { %v3396_v62 = vadd.f32 %v8104_v56, %v3387_v21  ;;  %v3397_v8 = vadd.f32 %v8104_v56, %v3388_v32  ;;  %v6740_v21 = vld [vmem:[%s7329_s18 + $0x30] sm:$0xff] }
 0x6cf   : > { %v3399_v11 = vmul.f32 0.1, %v3396_v62  ;;  %v3400_v6 = vmul.f32 0.1, %v3397_v8 }
 0x6d1   : > { %v3402_v18 = vmax.f32 %v3396_v62, %v3399_v11  ;;  %v3403_v38 = vmax.f32 %v3397_v8, %v3400_v6 }
 0x6d2   : > { %v3371_v5 = vpop.f32.mrf.mxu0  ;;  %v3384_v52 = vpop.f32.mrf.mxu1 }
 0x6d3   : > { %3413 = vrot.lane.b32.xlu1 %v3402_v18, %s8983_s1  ;;  %v3450_v10 = vpack.c.bf16 %v3402_v18, %v3402_v18  ;;  %v3451_v58 = vpack.c.bf16 %v3403_v38, %v3403_v38  ;;  %v8294_v56 = vpop.trf.xlu2 }
 0x6d5   : > { %v3466_v45 = vsel %vm790_vm0, %v3450_v10, 0  ;;  %v3469_v29 = vsel %vm790_vm0, %v3451_v58, 0 }
 0x6d6   : > { %3491 = vmatpush.bf16.msra.mxu3 %v3466_v45  ;;  %3504 = vmatpush.bf16.msrb.mxu0 %v3469_v29 }
 0x6d7   : > { %3544 = vmatpush.bf16.msrb.mxu2 %v3466_v45 }
 0x6d9   : > { %6746 = vmatmul.msk.bf16.vlgmr.msra.gmra.mxu3 %vm786_vm1, %v3452_v28  ;;  %6747 = vmatmul.msk.bf16.vlgmr.msrb.gmra.mxu0 %vm786_vm1, %v3452_v28  ;;  %v6741_v28 = vld [vmem:[%s7329_s18 + $0x38] sm:$0xff]  ;;  %s8984_s18 = smov 55  }
 0x6da   : > { %3557 = vmatpush.bf16.msrb.mxu3 %v3469_v29  ;;  %6749 = vmatmul.msk.bf16.vlgmr.msrb.gmra.mxu2 %vm786_vm1, %v3514_v16 }
 0x6db   : > { %v8298_v40 = vpop.trf.xlu2 }
 0x6e3   : > { %v8300_v22 = vpop.trf.xlu2 }
 0x6e5   : > { %v8308_v1 = vpop.trf.xlu0 }
 0x6e9   : > { %6750 = vmatmul.msk.bf16.vlgmr.msrb.gmra.mxu3 %vm786_vm1, %v3514_v16 }
 0x6ea   : > { %3415 = vrot.lane.b32.xlu2 %v3403_v38, %s8983_s1  ;;  %s8986_s1 = smov 37  }
 0x6eb   : > { %v8302_v4 = vpop.trf.xlu2 }
 0x6ed   : > { %v8312_v60 = vpop.trf.xlu0 }
 0x6f3   : > { %v8304_v41 = vpop.trf.xlu2 }
 0x6fb   : > { %v8306_v43 = vpop.trf.xlu2 }
 0x703   : > { %v8310_v55 = vpop.trf.xlu2 }
 0x70b   : > { %v8314_v12 = vpop.trf.xlu2 }
 0x713   : > { %v8318_v30 = vpop.trf.xlu2 }
 0x71b   : > { %v8320_v54 = vpop.trf.xlu2 }
 0x729   : > { %v3412_v44 = vpop.permute.xlu0 %3411 }
 0x72a   : > { %v3423_v49 = vadd.f32 %v6738_v27, %v3412_v44 }
 0x72c   : > { %3431 = vrot.lane.b32.xlu0 %v3423_v49, %s8978_s17 }
 0x735   : > { %v3533_v19 = vpop.f32.mrf.mxu1 }
 0x736   : > { %v3534_v38 = vadd.f32 %v3533_v19, %v8117_v36 }
 0x738   : > { %v6952_v5 = vpack.i.bf16 %v8150_v17, %v3534_v38 }
 0x73a   : > { %v3480_v26 = vpop.f32.mrf.mxu2 }
 0x73b   : > { %v3481_v52 = vadd.f32 %v3480_v26, %v8119_v15 }
 0x73d   : > { %v3535_v35 = vpop.f32.mrf.mxu1 }
 0x742   : > { %v3482_v16 = vpop.f32.mrf.mxu2 }
 0x744   : > { %v3416_v57 = vpop.permute.xlu2 %3415 }
 0x745   : > { %v3426_v32 = vadd.f32 %v6741_v28, %v3416_v57  ;;  %v3414_v62 = vpop.permute.xlu1 %3413 }
 0x746   : > { %v3417_v8 = vsel %vm2026_vm10, %v3412_v44, %v3414_v62  ;;  %v3418_v11 = vsel %vm2026_vm10, %v3414_v62, %v3416_v57 }
 0x747   : > { %v3424_v6 = vadd.f32 %v6739_v63, %v3417_v8  ;;  %v3425_v18 = vadd.f32 %v6740_v21, %v3418_v11  ;;  %3437 = vrot.lane.b32.xlu0 %v3426_v32, %s8978_s17 }
 0x749   : > { %3433 = vrot.lane.b32.xlu1 %v3424_v6, %s8978_s17  ;;  %3435 = vrot.lane.b32.xlu2 %v3425_v18, %s8978_s17  ;;  %s8985_s17 = smov 19  }
 0x74f   : > { %6953 = vrot.lane.b32.xlu0 %v6952_v5, %s8981_s13 }
 0x751   : > { %4938 = vrot.lane.b32.xlu1 %v3481_v52, %s8981_s13  ;;  %6948 = vrot.lane.b32.xlu2 %v6952_v5, %s8982_s27  ;;  %s8987_s13 = smov 113  }
 0x756   : > { %v3506_v10 = vpop.f32.mrf.mxu0 }
 0x757   : > { %6963 = vrot.lane.b32.xlu0 %v6952_v5, %s8984_s18  ;;  %v8351_v19 = vadd.f32 %v3506_v10, %v8119_v15 }
 0x759   : > { %5096 = vrot.lane.b32.xlu1 %v3481_v52, %s8984_s18  ;;  %6958 = vrot.lane.b32.xlu2 %v6952_v5, %s7059_s26 }
 0x75c   : > { %v3493_v58 = vpop.f32.mrf.mxu3 }
 0x75d   : > { %v3546_v45 = vpop.f32.mrf.mxu2  ;;  %v8348_v49 = vadd.f32 %v3493_v58, %v8119_v15 }
 0x75e   : > { %v3508_v29 = vpop.f32.mrf.mxu0  ;;  %v3547_v26 = vadd.f32 %v3546_v45, %v8117_v36 }
 0x75f   : > { %6973 = vrot.lane.b32.xlu0 %v6952_v5, %s8985_s17 }
 0x760   : > { %v6977_v28 = vpack.i.bf16 %v3547_v26, %v3534_v38  ;;  %v6982_v16 = vpack.i.bf16 %v8146_v20, %v3547_v26 }
 0x761   : > { %5254 = vrot.lane.b32.xlu1 %v3481_v52, %s8985_s17  ;;  %6968 = vrot.lane.b32.xlu2 %v6952_v5, %s8986_s1 }
 0x764   : > { %v3495_v17 = vpop.f32.mrf.mxu3 }
 0x765   : > { %v3548_v27 = vpop.f32.mrf.mxu2 }
 0x767   : > { %5017 = vrot.lane.b32.xlu0 %v3481_v52, %s7059_s26  ;;  %s8989_s26 = smov 111  }
 0x769   : > { %5336 = vrot.lane.b32.xlu1 %v3481_v52, %s7062_s0  ;;  %4857 = vrot.lane.b32.xlu2 %v3481_v52, %s8982_s27  ;;  %s8988_s27 = smov 95  }
 0x76c   : > { %v3559_v44 = vpop.f32.mrf.mxu3 }
 0x76d   : > { %v3560_v15 = vadd.f32 %v3559_v44, %v8117_v36 }
 0x76f   : > { %5580 = vrot.lane.b32.xlu0 %v8348_v49, %s7068_s19  ;;  %v7012_v57 = vpack.i.bf16 %v3560_v15, %v3547_v26 }
 0x771   : > { %5985 = vrot.lane.b32.xlu1 %v8351_v19, %s8987_s13  ;;  %5175 = vrot.lane.b32.xlu2 %v3481_v52, %s8986_s1  ;;  %s6153_s1 = scalar_lea.vmem (%p7172_p5), %s8938_s11, %s6889_s14 }
 0x774   : > { %v3561_v35 = vpop.f32.mrf.mxu3 }
 0x777   : > { %6978 = vrot.lane.b32.xlu0 %v6977_v28, %s7062_s0 }
 0x779   : > { %6064 = vrot.lane.b32.xlu1 %v8351_v19, %s8988_s27  ;;  %5738 = vrot.lane.b32.xlu2 %v8348_v49, %s7070_s15 }
 0x77f   : > { %6983 = vrot.lane.b32.xlu0 %v6982_v16, %s8989_s26 }
 0x781   : > { %5338 = vrot.lane.b32.xlu1 %v8348_v49, %s7062_s0  ;;  %7013 = vrot.lane.b32.xlu2 %v7012_v57, %s8990_s29  ;;  %s8993_s0 = smov 21  }
 0x787   : > { %6988 = vrot.lane.b32.xlu0 %v6982_v16, %s8991_s23 }
 0x789   : > { %5422 = vrot.lane.b32.xlu1 %v8348_v49, %s8989_s26 }
 0x78f   : > { %6993 = vrot.lane.b32.xlu0 %v6982_v16, %s7068_s19 }
 0x791   : > { %5501 = vrot.lane.b32.xlu1 %v8348_v49, %s8991_s23 }
 0x797   : > { %6998 = vrot.lane.b32.xlu0 %v6982_v16, %s8992_s21 }
 0x799   : > { %5659 = vrot.lane.b32.xlu1 %v8348_v49, %s8992_s21 }
 0x79e   : > { %v3432_v32 = vpop.permute.xlu0 %3431 }
 0x79f   : > { %7003 = vrot.lane.b32.xlu0 %v6982_v16, %s7070_s15  ;;  %s6586_s15 = sshll.u32 %s7326_s16, 9 }
 0x7a0   : > { %s8510_s19 = scalar_lea.vmem [#allocation6], %s6586_s15  ;;  %s8518_s16 = scalar_lea.vmem [#allocation8], %s6586_s15 }
 0x7a1   : > { %5817 = vrot.lane.b32.xlu1 %v8348_v49, %s8993_s0 }
 0x7a3   : > { %v3436_v36 = vpop.permute.xlu2 %3435 }
 0x7a7   : > { %4735 = vrot.lane.b32.xlu0 %v3560_v15, %s8987_s13 }
 0x7a9   : > { %7008 = vrot.lane.b32.xlu1 %v6982_v16, %s8993_s0 }
 0x7ab   : > { %v8384_v63 = vpop.permute.xlu2 %6948 }
 0x7ac   : > { %v6950_v21 = vunpack.i.l.bf16 %v8384_v63 }
 0x7ae   : > { %3630 = vmatpush.msra.mxu0 %v6950_v21 }
 0x7af   : > { %4814 = vrot.lane.b32.xlu0 %v3560_v15, %s8988_s27  ;;  %6751 = vmatmul.msk.f32.vlgmr.msra.gmra.mxu0 %vm786_vm1, %v8225_v9 }
 0x7b3   : > { %v8390_v62 = vpop.permute.xlu2 %6958 }
 0x7b4   : > { %v6960_v8 = vunpack.i.l.bf16 %v8390_v62 }
 0x7b6   : > { %3789 = vmatpush.msra.mxu2 %v6960_v8 }
 0x7b7   : > { %6752 = vmatmul.msk.f32.gmra.mxu0 %vm786_vm1, %v8231_v51  ;;  %6755 = vmatmul.msk.f32.vlgmr.msra.gmra.mxu2 %vm786_vm1, %v8178_v47 }
 0x7b9   : > { %v3438_v11 = vpop.permute.xlu0 %3437 }
 0x7ba   : > { %v3441_v6 = vsel %vm1308_vm9, %v3436_v36, %v3438_v11 }
 0x7bb   : > { %6744 = vst [vmem:[%s7924_s20 + $0x28] sm:$0xff] %v3441_v6  ;;  %v3434_v18 = vpop.permute.xlu1 %3433  ;;  %v8399_v38 = vpop.permute.xlu2 %6968 }
 0x7bc   : > { %v3439_v9 = vsel %vm1308_vm9, %v3432_v32, %v3434_v18  ;;  %v3440_v5 = vsel %vm1308_vm9, %v3434_v18, %v3436_v36  ;;  %v6970_v52 = vunpack.i.l.bf16 %v8399_v38 }
 0x7bd   : > { %6742 = vst [vmem:[%s7924_s20 + $0x18] sm:$0xff] %v3439_v9 }
 0x7be   : > { %6743 = vst [vmem:[%s7924_s20 + $0x20] sm:$0xff] %v3440_v5  ;;  %3947 = vmatpush.msrb.mxu0 %v6970_v52 }
 0x7bf   : > { %6756 = vmatmul.msk.f32.gmra.mxu2 %vm786_vm1, %v8180_v13  ;;  %6759 = vmatmul.msk.f32.vlgmr.msrb.gmra.mxu0 %vm786_vm1, %v8241_v14 }
 0x7c1   : > { %v8410_v47 = vpop.permute.xlu0 %6953 }
 0x7c2   : > { %v6955_v51 = vunpack.i.l.bf16 %v8410_v47  ;;  %v6956_v18 = vunpack.i.h.bf16 %v8410_v47 }
 0x7c3   : > { %v4939_v10 = vpop.permute.xlu1 %4938  ;;  %v4858_v14 = vpop.permute.xlu2 %4857 }
 0x7c4   : > { %3710 = vmatpush.msra.mxu1 %v6955_v51  ;;  %v6961_v51 = vunpack.i.h.bf16 %v8390_v62 }
 0x7c5   : > { %6753 = vmatmul.msk.f32.vlgmr.msra.gmra.mxu1 %vm786_vm1, %v8249_v2 }
 0x7c7   : > { %6760 = vmatmul.msk.f32.gmra.mxu0 %vm786_vm1, %v8243_v25 }
 0x7c9   : > { %v8417_v58 = vpop.permute.xlu0 %6963 }
 0x7ca   : > { %v6965_v45 = vunpack.i.l.bf16 %v8417_v58 }
 0x7cb   : > { %v5097_v13 = vpop.permute.xlu1 %5096 }
 0x7cc   : > { %3868 = vmatpush.msra.mxu3 %v6965_v45  ;;  %5099 = vxpose.xlu2.b32.start.end [1/1] (short) (narrow) %v5097_v13, 16 }
 0x7cd   : > { %6754 = vmatmul.msk.f32.gmra.mxu1 %vm786_vm1, %v8252_v33  ;;  %6757 = vmatmul.msk.f32.vlgmr.msra.gmra.mxu3 %vm786_vm1, %v8182_v53  ;;  %v5176_v53 = vpop.permute.xlu2 %5175 }
 0x7d1   : > { %v8424_v29 = vpop.permute.xlu0 %6973  ;;  %4860 = vxpose.xlu0.b32.start.end [1/1] (short) (narrow) %v4858_v14, 16  ;;  %v3799_v14 = vld [vmem:[%s8510_s19 + $0x20] sm:$0xff] }
 0x7d2   : > { %v6975_v2 = vunpack.i.l.bf16 %v8424_v29  ;;  %v6976_v47 = vunpack.i.h.bf16 %v8424_v29 }
 0x7d3   : > { %v5255_v25 = vpop.permute.xlu1 %5254 }
 0x7d4   : > { %4026 = vmatpush.msrb.mxu1 %v6975_v2 }
 0x7d5   : > { %6758 = vmatmul.msk.f32.gmra.mxu3 %vm786_vm1, %v8189_v31  ;;  %6761 = vmatmul.msk.f32.vlgmr.msrb.gmra.mxu1 %vm786_vm1, %v8258_v23  ;;  %v5739_v57 = vpop.permute.xlu2 %5738 }
 0x7d9   : > { %v5018_v17 = vpop.permute.xlu0 %5017 }
 0x7db   : > { %v8431_v27 = vpop.permute.xlu1 %5336 }
 0x7dd   : > { %6762 = vmatmul.msk.f32.gmra.mxu1 %vm786_vm1, %v8260_v24  ;;  %v7014_v32 = vpop.permute.xlu2 %7013 }
 0x7de   : > { %4941 = vxpose.xlu1.b32.start.end [1/1] (short) (narrow) %v4939_v10, 16  ;;  %v7016_v8 = vunpack.i.h.bf16 %v7014_v32  ;;  %v7015_v11 = vunpack.i.l.bf16 %v7014_v32 }
 0x7e1   : > { %v5581_v33 = vpop.permute.xlu0 %5580  ;;  %5178 = vxpose.xlu0.b32.start.end [1/1] (short) (narrow) %v5176_v53, 16 }
 0x7e2   : > { %5583 = vxpose.xlu2.b32.start.end [1/1] (short) (narrow) %v5581_v33, 16 }
 0x7e3   : > { %v5986_v44 = vpop.permute.xlu1 %5985 }
 0x7e9   : > { %v6979_v26 = vpop.permute.xlu0 %6978 }
 0x7ea   : > { %v6981_v35 = vunpack.i.h.bf16 %v6979_v26  ;;  %v6980_v28 = vunpack.i.l.bf16 %v6979_v26 }
 0x7eb   : > { %v8435_v15 = vpop.permute.xlu1 %6064 }
 0x7ec   : > { %v4093_v31 = vsel %vm4052_vm11, %v6980_v28, %v6981_v35  ;;  %v3800_v35 = vld [vmem:[%s8510_s19 + $0x28] sm:$0xff] }
 0x7ed   : > { %4116 = vmatpush.msrb.mxu2 %v4093_v31 }
 0x7ee   : > { %5020 = vxpose.xlu1.b32.start.end [1/1] (short) (narrow) %v5018_v17, 16  ;;  %6763 = vmatmul.msk.f32.vlgmr.msrb.gmra.mxu2 %vm786_vm1, %v8263_v48 }
 0x7f1   : > { %v8440_v23 = vpop.permute.xlu0 %6983  ;;  %5257 = vxpose.xlu0.b32.start.end [1/1] (short) (narrow) %v5255_v25, 16  ;;  %v3957_v25 = vld [vmem:[%s8510_s19 + $0x40] sm:$0xff] }
 0x7f2   : > { %v6985_v24 = vunpack.i.l.bf16 %v8440_v23 }
 0x7f3   : > { %v8443_v16 = vpop.permute.xlu1 %5338 }
 0x7f4   : > { %4195 = vmatpush.msrb.mxu3 %v6985_v24  ;;  %v3958_v24 = vld [vmem:[%s8510_s19 + $0x48] sm:$0xff] }
 0x7f5   : > { %6765 = vmatmul.msk.f32.vlgmr.msrb.gmra.mxu3 %vm786_vm1, %v8278_v59 }
 0x7f6   : > { %6764 = vmatmul.msk.f32.gmra.mxu2 %vm786_vm1, %v8266_v37 }
 0x7f9   : > { %v8449_v36 = vpop.permute.xlu0 %6988 }
 0x7fa   : > { %v6990_v21 = vunpack.i.l.bf16 %v8449_v36 }
 0x7fb   : > { %v5423_v48 = vpop.permute.xlu1 %5422 }
 0x7fc   : > { %4274 = vmatpush.msra.mxu0 %v6990_v21 }
 0x7fd   : > { %6766 = vmatmul.msk.f32.gmra.mxu3 %vm786_vm1, %v8280_v61  ;;  %6767 = vmatmul.msk.f32.vlgmr.msra.gmra.mxu0 %vm786_vm1, %v8282_v7  ;;  %v4657_v61 = vsel %vm4616_vm12, %v7015_v11, %v7016_v8  ;;  %v3721_v8 = vld [vmem:[%s8510_s19 + $0x18] sm:$0xff] }
 0x801   : > { %v8456_v6 = vpop.permute.xlu0 %6993  ;;  %5425 = vxpose.xlu0.b32.start.end [1/1] (short) (narrow) %v5423_v48, 16 }
 0x802   : > { %v6995_v37 = vunpack.i.l.bf16 %v8456_v6 }
 0x803   : > { %v8459_v59 = vpop.permute.xlu1 %5501 }
 0x804   : > { %4353 = vmatpush.msra.mxu1 %v6995_v37 }
 0x805   : > { %6768 = vmatmul.msk.f32.gmra.mxu0 %vm786_vm1, %v8289_v3  ;;  %6769 = vmatmul.msk.f32.vlgmr.msra.gmra.mxu1 %vm786_vm1, %v8294_v56 }
 0x806   : > { %4680 = vmatpush.msrb.mxu1 %v4657_v61  ;;  %v3878_v61 = vld [vmem:[%s8510_s19 + $0x30] sm:$0xff] }
 0x808   : > { %4998 = vmatpush.msra.mxu1 %v6956_v18 }
 0x809   : > { %v8467_v7 = vpop.permute.xlu0 %6998 }
 0x80a   : > { %v7000_v9 = vunpack.i.l.bf16 %v8467_v7 }
 0x80b   : > { %v5660_v5 = vpop.permute.xlu1 %5659 }
 0x80c   : > { %5662 = vxpose.xlu2.b32.start.end [1/1] (short) (narrow) %v5660_v5, 16  ;;  %4432 = vmatpush.msra.mxu2 %v7000_v9 }
 0x80d   : > { %6770 = vmatmul.msk.f32.gmra.mxu1 %vm786_vm1, %v8298_v40  ;;  %6771 = vmatmul.msk.f32.vlgmr.msra.gmra.mxu2 %vm786_vm1, %v8300_v22  ;;  %v6946_v40 = vunpack.i.h.bf16 %v8322_v34  ;;  %v6945_v22 = vunpack.i.l.bf16 %v8322_v34  ;;  %v6971_v34 = vunpack.i.h.bf16 %v8399_v38  ;;  %v3641_v38 = vld [vmem:[%s8510_s19 + $0x8] sm:$0xff] }
 0x811   : > { %v8474_v3 = vpop.permute.xlu0 %7003  ;;  %5741 = vxpose.xlu0.b32.start.end [1/1] (short) (narrow) %v5739_v57, 16 }
 0x812   : > { %v7005_v56 = vunpack.i.l.bf16 %v8474_v3 }
 0x813   : > { %v5818_v52 = vpop.permute.xlu1 %5817 }
 0x814   : > { %4511 = vmatpush.msra.mxu3 %v7005_v56  ;;  %v4036_v56 = vld [vmem:[%s8510_s19 + $0x50] sm:$0xff] }
 0x815   : > { %6772 = vmatmul.msk.f32.gmra.mxu2 %vm786_vm1, %v8302_v4  ;;  %6773 = vmatmul.msk.f32.vlgmr.msra.gmra.mxu3 %vm786_vm1, %v8304_v41  ;;  %v5380_v41 = vsel %vm4052_vm11, %v6945_v22, %v6946_v40  ;;  %v2169_v22 = vadd.f32 %v7913_v42, %v7760_v0  ;;  %v7006_v0 = vunpack.i.h.bf16 %v8474_v3  ;;  %v4205_v3 = vld [vmem:[%s8510_s19 + $0x70] sm:$0xff] }
 0x816   : > { %6777 = vmatmul.msk.f32.vlgmr.msrb.gmra.mxu1 %vm786_vm1, %v8308_v1  ;;  %v6951_v1 = vunpack.i.h.bf16 %v8384_v63 }
 0x817   : > { %5314 = vmatpush.msrb.mxu1 %v6976_v47 }
 0x819   : > { %v4736_v10 = vpop.permute.xlu0 %4735 }
 0x81a   : > { %4759 = vmatpush.msrb.mxu2 %v4736_v10 }
 0x81b   : > { %v8487_v45 = vpop.permute.xlu1 %7008 }
 0x81c   : > { %5077 = vmatpush.msra.mxu2 %v6961_v51  ;;  %v7010_v4 = vunpack.i.l.bf16 %v8487_v45  ;;  %5988 = vxpose.xlu2.b32.start.end [1/1] (short) (narrow) %v5986_v44, 16  ;;  %v3720_v44 = vld [vmem:[%s8510_s19 + $0x10] sm:$0xff]  ;;  %v3879_v51 = vld [vmem:[%s8510_s19 + $0x38] sm:$0xff] }
 0x81d   : > { %6774 = vmatmul.msk.f32.gmra.mxu3 %vm786_vm1, %v8306_v43  ;;  %6779 = vmatmul.msk.f32.vlgmr.msrb.gmra.mxu2 %vm786_vm1, %v8245_v39  ;;  %v6966_v43 = vunpack.i.h.bf16 %v8417_v58  ;;  %v6986_v39 = vunpack.i.h.bf16 %v8440_v23 }
 0x81e   : > { %6778 = vmatmul.msk.f32.gmra.mxu1 %vm786_vm1, %v8312_v60  ;;  %5403 = vmatpush.msrb.mxu2 %v5380_v41  ;;  %v3640_v60 = vld [vmem:[%s8510_s19] sm:$0xff]  ;;  %v4037_v41 = vld [vmem:[%s8510_s19 + $0x58] sm:$0xff] }
 0x81f   : > { %4590 = vmatpush.msrb.mxu0 %v7010_v4 }
 0x820   : > { %6775 = vmatmul.msk.f32.vlgmr.msrb.gmra.mxu0 %vm786_vm1, %v8310_v55 }
 0x821   : > { %4917 = vmatpush.msra.mxu0 %v6951_v1  ;;  %v4815_v62 = vpop.permute.xlu0 %4814  ;;  %5820 = vxpose.xlu0.b32.start.end [1/1] (short) (narrow) %v5818_v52, 16 }
 0x822   : > { %4838 = vmatpush.msrb.mxu3 %v4815_v62  ;;  %v7017_v62 = vpack.i.bf16 %v2169_v22, %v8146_v20 }
 0x823   : > { %5235 = vmatpush.msrb.mxu0 %v6971_v34 }
 0x824   : > { %5156 = vmatpush.msra.mxu3 %v6966_v43 }
 0x825   : > { %6780 = vmatmul.msk.f32.gmra.mxu2 %vm786_vm1, %v8247_v50  ;;  %6781 = vmatmul.msk.f32.vlgmr.msrb.gmra.mxu3 %vm786_vm1, %v8318_v30  ;;  %v5340_v30 = vsel %vm4052_vm11, %v8431_v27, %v8443_v16 }
 0x826   : > { %5482 = vmatpush.msrb.mxu3 %v6986_v39 }
 0x828   : > { %6776 = vmatmul.msk.f32.gmra.mxu0 %vm786_vm1, %v8314_v12 }
 0x82c   : > { %v3632_v55 = vpop.f32.mrf.mxu0 }
 0x82d   : > { %v3638_v63 = vmul.f32 0.125, %v3632_v55  ;;  %6782 = vmatmul.msk.f32.gmra.mxu3 %vm786_vm1, %v8320_v54  ;;  %v4126_v55 = vld [vmem:[%s8510_s19 + $0x60] sm:$0xff] }
 0x82f   : > { %v3642_v50 = vadd.f32 %v3640_v60, %v3638_v63 }
 0x831   : > { %3645 = vst.msk [vmem:[%s8518_s16] sm:$0xff] %vm3644_vm13, %v3642_v50  ;;  %5342 = vxpose.xlu0.b32.start.end [1/1] (short) (narrow) %v5340_v30, 16  ;;  %v6991_v50 = vunpack.i.h.bf16 %v8449_v36 }
 0x834   : > { %v3635_v12 = vpop.f32.mrf.mxu0 }
 0x835   : > { %v3639_v54 = vmul.f32 0.125, %v3635_v12 }
 0x837   : > { %v3643_v58 = vadd.f32 %v3641_v38, %v3639_v54  ;;  %v4127_v54 = vld [vmem:[%s8510_s19 + $0x68] sm:$0xff] }
 0x839   : > { %3646 = vst.msk [vmem:[%s8518_s16 + $0x8] sm:$0xff] %vm3644_vm13, %v3643_v58 }
 0x83a   : > { %v3791_v13 = vpop.f32.mrf.mxu2 }
 0x83b   : > { %v3797_v29 = vmul.f32 0.125, %v3791_v13 }
 0x83c   : > { %v3949_v2 = vpop.f32.mrf.mxu0 }
 0x83d   : > { %v3801_v17 = vadd.f32 %v3799_v14, %v3797_v29  ;;  %v3955_v27 = vmul.f32 0.125, %v3949_v2  ;;  %v4284_v14 = vld [vmem:[%s8510_s19 + $0x80] sm:$0xff] }
 0x83f   : > { %3803 = vst.msk [vmem:[%s8518_s16 + $0x20] sm:$0xff] %vm3644_vm13, %v3801_v17  ;;  %v3959_v53 = vadd.f32 %v3957_v25, %v3955_v27 }
 0x841   : > { %3961 = vst.msk [vmem:[%s8518_s16 + $0x40] sm:$0xff] %vm3644_vm13, %v3959_v53  ;;  %v4206_v53 = vld [vmem:[%s8510_s19 + $0x78] sm:$0xff] }
 0x842   : > { %v3712_v33 = vpop.f32.mrf.mxu1  ;;  %v3794_v26 = vpop.f32.mrf.mxu2 }
 0x843   : > { %v3718_v28 = vmul.f32 0.125, %v3712_v33  ;;  %v3798_v31 = vmul.f32 0.125, %v3794_v26 }
 0x844   : > { %v3952_v23 = vpop.f32.mrf.mxu0 }
 0x845   : > { %v3722_v16 = vadd.f32 %v3720_v44, %v3718_v28  ;;  %v3802_v57 = vadd.f32 %v3800_v35, %v3798_v31  ;;  %v3956_v21 = vmul.f32 0.125, %v3952_v23  ;;  %v6996_v44 = vunpack.i.h.bf16 %v8456_v6  ;;  %v4285_v28 = vld [vmem:[%s8510_s19 + $0x88] sm:$0xff] }
 0x847   : > { %3724 = vst.msk [vmem:[%s8518_s16 + $0x10] sm:$0xff] %vm3644_vm13, %v3722_v16  ;;  %v3960_v48 = vadd.f32 %v3958_v24, %v3956_v21  ;;  %v4363_v16 = vld [vmem:[%s8510_s19 + $0x90] sm:$0xff]  ;;  %v7011_v21 = vunpack.i.h.bf16 %v8487_v45 }
 0x848   : > { %3804 = vst.msk [vmem:[%s8518_s16 + $0x28] sm:$0xff] %vm3644_vm13, %v3802_v57 }
 0x849   : > { %3962 = vst.msk [vmem:[%s8518_s16 + $0x48] sm:$0xff] %vm3644_vm13, %v3960_v48 }
 0x84a   : > { %v3715_v32 = vpop.f32.mrf.mxu1 }
 0x84b   : > { %v3719_v11 = vmul.f32 0.125, %v3715_v32 }
 0x84d   : > { %v3723_v37 = vadd.f32 %v3721_v8, %v3719_v11 }
 0x84f   : > { %3725 = vst.msk [vmem:[%s8518_s16 + $0x18] sm:$0xff] %vm3644_vm13, %v3723_v37  ;;  %v4364_v37 = vld [vmem:[%s8510_s19 + $0x98] sm:$0xff] }
 0x850   : > { %5901 = vrot.lane.b32.xlu1 %v8351_v19, %s8990_s29  ;;  %v3870_v18 = vpop.f32.mrf.mxu3 }
 0x851   : > { %v3876_v9 = vmul.f32 0.125, %v3870_v18 }
 0x852   : > { %v4028_v5 = vpop.f32.mrf.mxu1 }
 0x853   : > { %v3880_v52 = vadd.f32 %v3878_v61, %v3876_v9  ;;  %v4034_v47 = vmul.f32 0.125, %v4028_v5  ;;  %v4442_v5 = vld [vmem:[%s8510_s19 + $0xa0] sm:$0xff] }
 0x855   : > { %3882 = vst.msk [vmem:[%s8518_s16 + $0x30] sm:$0xff] %vm3644_vm13, %v3880_v52  ;;  %v4038_v40 = vadd.f32 %v4036_v56, %v4034_v47  ;;  %v7001_v52 = vunpack.i.h.bf16 %v8467_v7 }
 0x857   : > { %4040 = vst.msk [vmem:[%s8518_s16 + $0x50] sm:$0xff] %vm3644_vm13, %v4038_v40 }
 0x858   : > { %6021 = vrot.lane.b32.xlu1 %v2169_v22, %s8987_s13  ;;  %v3873_v19 = vpop.f32.mrf.mxu3 }
 0x859   : > { %v3877_v10 = vmul.f32 0.125, %v3873_v19  ;;  %v4690_v19 = vld [vmem:[%s8510_s19 + $0xd0] sm:$0xff] }
 0x85a   : > { %v4031_v4 = vpop.f32.mrf.mxu1 }
 0x85b   : > { %v3881_v1 = vadd.f32 %v3879_v51, %v3877_v10  ;;  %v4035_v34 = vmul.f32 0.125, %v4031_v4 }
 0x85d   : > { %3883 = vst.msk [vmem:[%s8518_s16 + $0x38] sm:$0xff] %vm3644_vm13, %v3881_v1  ;;  %v4039_v43 = vadd.f32 %v4037_v41, %v4035_v34  ;;  %v4443_v41 = vld [vmem:[%s8510_s19 + $0xa8] sm:$0xff]  ;;  %v4521_v34 = vld [vmem:[%s8510_s19 + $0xb0] sm:$0xff] }
 0x85f   : > { %4041 = vst.msk [vmem:[%s8518_s16 + $0x58] sm:$0xff] %vm3644_vm13, %v4039_v43 }
 0x860   : > { %6100 = vrot.lane.b32.xlu1 %v2169_v22, %s8988_s27 }
 0x865   : > { %v5115_v42 = vpop.trf.xlu2 }
 0x866   : > { %6801 = vmatmul.msk.f32.vlgmr.msra.gmra.mxu3 %vm786_vm1, %v5115_v42 }
 0x867   : > { %5798 = vmatpush.msra.mxu3 %v7006_v0 }
 0x868   : > { %7018 = vrot.lane.b32.xlu1 %v7017_v62, %s8990_s29 }
 0x871   : > { %v4118_v39 = vpop.f32.mrf.mxu2 }
 0x872   : > { %v4124_v60 = vmul.f32 0.125, %v4118_v39 }
 0x874   : > { %v4128_v63 = vadd.f32 %v4126_v55, %v4124_v60  ;;  %v4691_v60 = vld [vmem:[%s8510_s19 + $0xd8] sm:$0xff] }
 0x875   : > { %v4876_v30 = vpop.trf.xlu0 }
 0x876   : > { %4130 = vst.msk [vmem:[%s8518_s16 + $0x60] sm:$0xff] %vm3644_vm13, %v4128_v63  ;;  %6783 = vmatmul.msk.f32.vlgmr.msra.gmra.mxu0 %vm786_vm1, %v4876_v30  ;;  %v4600_v30 = vld [vmem:[%s8510_s19 + $0xc0] sm:$0xff] }
 0x877   : > { %5561 = vmatpush.msra.mxu0 %v6991_v50 }
 0x878   : > { %v4197_v20 = vpop.f32.mrf.mxu3 }
 0x879   : > { %v4203_v12 = vmul.f32 0.125, %v4197_v20  ;;  %v4121_v38 = vpop.f32.mrf.mxu2 }
 0x87a   : > { %v4125_v58 = vmul.f32 0.125, %v4121_v38  ;;  %v4276_v13 = vpop.f32.mrf.mxu0 }
 0x87b   : > { %v4207_v36 = vadd.f32 %v4205_v3, %v4203_v12  ;;  %v4282_v29 = vmul.f32 0.125, %v4276_v13  ;;  %v4769_v13 = vld [vmem:[%s8510_s19 + $0xe0] sm:$0xff] }
 0x87c   : > { %v4129_v2 = vadd.f32 %v4127_v54, %v4125_v58  ;;  %v4522_v54 = vld [vmem:[%s8510_s19 + $0xb8] sm:$0xff] }
 0x87d   : > { %4209 = vst.msk [vmem:[%s8518_s16 + $0x70] sm:$0xff] %vm3644_vm13, %v4207_v36  ;;  %v4286_v25 = vadd.f32 %v4284_v14, %v4282_v29  ;;  %v4877_v17 = vpop.trf.xlu0 }
 0x87e   : > { %4131 = vst.msk [vmem:[%s8518_s16 + $0x68] sm:$0xff] %vm3644_vm13, %v4129_v2  ;;  %6784 = vmatmul.msk.f32.gmra.mxu0 %vm786_vm1, %v4877_v17 }
 0x87f   : > { %4288 = vst.msk [vmem:[%s8518_s16 + $0x80] sm:$0xff] %vm3644_vm13, %v4286_v25  ;;  %v4601_v25 = vld [vmem:[%s8510_s19 + $0xc8] sm:$0xff] }
 0x880   : > { %v4200_v27 = vpop.f32.mrf.mxu3 }
 0x881   : > { %v4204_v33 = vmul.f32 0.125, %v4200_v27 }
 0x882   : > { %v4957_v26 = vpop.trf.xlu1  ;;  %v4279_v35 = vpop.f32.mrf.mxu0 }
 0x883   : > { %v4208_v31 = vadd.f32 %v4206_v53, %v4204_v33  ;;  %v4283_v23 = vmul.f32 0.125, %v4279_v35  ;;  %v4355_v24 = vpop.f32.mrf.mxu1  ;;  %6789 = vmatmul.msk.f32.vlgmr.msra.gmra.mxu1 %vm786_vm1, %v4957_v26  ;;  %v4848_v35 = vld [vmem:[%s8510_s19 + $0xf0] sm:$0xff] }
 0x884   : > { %v4361_v57 = vmul.f32 0.125, %v4355_v24  ;;  %5640 = vmatpush.msra.mxu1 %v6996_v44  ;;  %v4770_v44 = vld [vmem:[%s8510_s19 + $0xe8] sm:$0xff] }
 0x885   : > { %4210 = vst.msk [vmem:[%s8518_s16 + $0x78] sm:$0xff] %vm3644_vm13, %v4208_v31  ;;  %v4287_v6 = vadd.f32 %v4285_v28, %v4283_v23  ;;  %v5194_v48 = vpop.trf.xlu0  ;;  %v5116_v23 = vpop.trf.xlu2 }
 0x886   : > { %v4365_v32 = vadd.f32 %v4363_v16, %v4361_v57  ;;  %6807 = vmatmul.msk.f32.vlgmr.msrb.gmra.mxu0 %vm786_vm1, %v5194_v48  ;;  %6802 = vmatmul.msk.f32.gmra.mxu3 %vm786_vm1, %v5116_v23  ;;  %v6797_v23 = vld [vmem:[%s8510_s19 + $0x120] sm:$0xff] }
 0x887   : > { %4289 = vst.msk [vmem:[%s8518_s16 + $0x88] sm:$0xff] %vm3644_vm13, %v4287_v6  ;;  %5877 = vmatpush.msrb.mxu0 %v7011_v21  ;;  %v4849_v21 = vld [vmem:[%s8510_s19 + $0xf8] sm:$0xff] }
 0x888   : > { %4367 = vst.msk [vmem:[%s8518_s16 + $0x90] sm:$0xff] %vm3644_vm13, %v4365_v32 }
 0x88a   : > { %v4958_v8 = vpop.trf.xlu1 }
 0x88b   : > { %v4358_v11 = vpop.f32.mrf.mxu1  ;;  %6790 = vmatmul.msk.f32.gmra.mxu1 %vm786_vm1, %v4958_v8 }
 0x88c   : > { %v4362_v45 = vmul.f32 0.125, %v4358_v11 }
 0x88d   : > { %v5195_v18 = vpop.trf.xlu0 }
 0x88e   : > { %v4366_v61 = vadd.f32 %v4364_v37, %v4362_v45  ;;  %6808 = vmatmul.msk.f32.gmra.mxu0 %vm786_vm1, %v5195_v18 }
 0x890   : > { %4368 = vst.msk [vmem:[%s8518_s16 + $0x98] sm:$0xff] %vm3644_vm13, %v4366_v61  ;;  %v4434_v9 = vpop.f32.mrf.mxu2 }
 0x891   : > { %v4440_v56 = vmul.f32 0.125, %v4434_v9 }
 0x892   : > { %v5036_v47 = vpop.trf.xlu1 }
 0x893   : > { %v4444_v40 = vadd.f32 %v4442_v5, %v4440_v56  ;;  %v4682_v22 = vpop.f32.mrf.mxu1  ;;  %6795 = vmatmul.msk.f32.vlgmr.msra.gmra.mxu2 %vm786_vm1, %v5036_v47 }
 0x894   : > { %v4688_v51 = vmul.f32 0.125, %v4682_v22  ;;  %5719 = vmatpush.msra.mxu2 %v7001_v52  ;;  %v6785_v22 = vld [vmem:[%s8510_s19 + $0x100] sm:$0xff] }
 0x895   : > { %4446 = vst.msk [vmem:[%s8518_s16 + $0xa0] sm:$0xff] %vm3644_vm13, %v4444_v40  ;;  %v5273_v10 = vpop.trf.xlu0 }
 0x896   : > { %v4692_v4 = vadd.f32 %v4690_v19, %v4688_v51  ;;  %6813 = vmatmul.msk.f32.vlgmr.msrb.gmra.mxu1 %vm786_vm1, %v5273_v10 }
 0x898   : > { %4694 = vst.msk [vmem:[%s8518_s16 + $0xd0] sm:$0xff] %vm3644_vm13, %v4692_v4  ;;  %v4437_v7 = vpop.f32.mrf.mxu2  ;;  %v4513_v1 = vpop.f32.mrf.mxu3  ;;  %7022 = vset.pattern.permute.xlu0 %v7055_v46  ;;  %v6786_v4 = vld [vmem:[%s8510_s19 + $0x108] sm:$0xff] }
 0x899   : > { %v4441_v43 = vmul.f32 0.125, %v4437_v7  ;;  %v4519_v0 = vmul.f32 0.125, %v4513_v1 }
 0x89a   : > { %v5037_v42 = vpop.trf.xlu1 }
 0x89b   : > { %v4445_v62 = vadd.f32 %v4443_v41, %v4441_v43  ;;  %v4523_v39 = vadd.f32 %v4521_v34, %v4519_v0  ;;  %v4685_v55 = vpop.f32.mrf.mxu1  ;;  %6796 = vmatmul.msk.f32.gmra.mxu2 %vm786_vm1, %v5037_v42 }
 0x89c   : > { %v4689_v63 = vmul.f32 0.125, %v4685_v55 }
 0x89d   : > { %4447 = vst.msk [vmem:[%s8518_s16 + $0xa8] sm:$0xff] %vm3644_vm13, %v4445_v62  ;;  %v4592_v50 = vpop.f32.mrf.mxu0  ;;  %5504 = vxpose.xlu1.b32.start.end [1/1] (short) (narrow) %v8459_v59, 16  ;;  %v5274_v46 = vpop.trf.xlu0  ;;  %v6809_v62 = vld [vmem:[%s8510_s19 + $0x140] sm:$0xff] }
 0x89e   : > { %4525 = vst.msk [vmem:[%s8518_s16 + $0xb0] sm:$0xff] %vm3644_vm13, %v4523_v39  ;;  %v4693_v20 = vadd.f32 %v4691_v60, %v4689_v63  ;;  %v4598_v3 = vmul.f32 0.125, %v4592_v50  ;;  %6814 = vmatmul.msk.f32.gmra.mxu1 %vm786_vm1, %v5274_v46  ;;  %v6791_v63 = vld [vmem:[%s8510_s19 + $0x110] sm:$0xff]  ;;  %v6810_v46 = vld [vmem:[%s8510_s19 + $0x148] sm:$0xff] }
 0x8a0   : > { %4695 = vst.msk [vmem:[%s8518_s16 + $0xd8] sm:$0xff] %vm3644_vm13, %v4693_v20  ;;  %v4602_v12 = vadd.f32 %v4600_v30, %v4598_v3  ;;  %v4516_v38 = vpop.f32.mrf.mxu3  ;;  %v4761_v58 = vpop.f32.mrf.mxu2 }
 0x8a1   : > { %v4520_v14 = vmul.f32 0.125, %v4516_v38  ;;  %v4767_v59 = vmul.f32 0.125, %v4761_v58 }
 0x8a2   : > { %4604 = vst.msk [vmem:[%s8518_s16 + $0xc0] sm:$0xff] %vm3644_vm13, %v4602_v12 }
 0x8a3   : > { %v4524_v36 = vadd.f32 %v4522_v54, %v4520_v14  ;;  %v4771_v29 = vadd.f32 %v4769_v13, %v4767_v59  ;;  %v6792_v54 = vld [vmem:[%s8510_s19 + $0x118] sm:$0xff]  ;;  %v6815_v13 = vld [vmem:[%s8510_s19 + $0x150] sm:$0xff] }
 0x8a5   : > { %4526 = vst.msk [vmem:[%s8518_s16 + $0xb8] sm:$0xff] %vm3644_vm13, %v4524_v36  ;;  %v4595_v2 = vpop.f32.mrf.mxu0  ;;  %v5441_v17 = vpop.trf.xlu0 }
 0x8a6   : > { %4773 = vst.msk [vmem:[%s8518_s16 + $0xe0] sm:$0xff] %vm3644_vm13, %v4771_v29  ;;  %v4599_v27 = vmul.f32 0.125, %v4595_v2  ;;  %6825 = vmatmul.msk.f32.vlgmr.msrb.gmra.mxu3 %vm786_vm1, %v5441_v17 }
 0x8a7   : > { %5899 = vrot.lane.b32.xlu0 %v8348_v49, %s8990_s29 }
 0x8a8   : > { %v4603_v53 = vadd.f32 %v4601_v25, %v4599_v27  ;;  %v4764_v33 = vpop.f32.mrf.mxu2  ;;  %v4840_v26 = vpop.f32.mrf.mxu3  ;;  %v6803_v25 = vld [vmem:[%s8510_s19 + $0x130] sm:$0xff]  ;;  %v6816_v27 = vld [vmem:[%s8510_s19 + $0x158] sm:$0xff] }
 0x8a9   : > { %v4768_v28 = vmul.f32 0.125, %v4764_v33  ;;  %v4846_v31 = vmul.f32 0.125, %v4840_v26 }
 0x8aa   : > { %4605 = vst.msk [vmem:[%s8518_s16 + $0xc8] sm:$0xff] %vm3644_vm13, %v4603_v53 }
 0x8ab   : > { %v4772_v24 = vadd.f32 %v4770_v44, %v4768_v28  ;;  %v4850_v16 = vadd.f32 %v4848_v35, %v4846_v31  ;;  %v6804_v35 = vld [vmem:[%s8510_s19 + $0x138] sm:$0xff] }
 0x8ad   : > { %4774 = vst.msk [vmem:[%s8518_s16 + $0xe8] sm:$0xff] %vm3644_vm13, %v4772_v24  ;;  %6067 = vxpose.xlu1.b32.start.end [1/1] (short) (narrow) %v8435_v15, 16  ;;  %v5442_v49 = vpop.trf.xlu0  ;;  %v5599_v24 = vpop.trf.xlu2 }
 0x8ae   : > { %4852 = vst.msk [vmem:[%s8518_s16 + $0xf0] sm:$0xff] %vm3644_vm13, %v4850_v16  ;;  %6826 = vmatmul.msk.f32.gmra.mxu3 %vm786_vm1, %v5442_v49  ;;  %6837 = vmatmul.msk.f32.vlgmr.msra.gmra.mxu1 %vm786_vm1, %v5599_v24 }
 0x8b0   : > { %v4843_v57 = vpop.f32.mrf.mxu3 }
 0x8b1   : > { %v4847_v6 = vmul.f32 0.125, %v4843_v57  ;;  %v6827_v57 = vld [vmem:[%s8510_s19 + $0x170] sm:$0xff] }
 0x8b3   : > { %v4851_v48 = vadd.f32 %v4849_v21, %v4847_v6 }
 0x8b5   : > { %4853 = vst.msk [vmem:[%s8518_s16 + $0xf8] sm:$0xff] %vm3644_vm13, %v4851_v48  ;;  %v5757_v32 = vpop.trf.xlu0 }
 0x8b6   : > { %6849 = vmatmul.msk.f32.vlgmr.msra.gmra.mxu3 %vm786_vm1, %v5757_v32 }
 0x8bd   : > { %v5758_v8 = vpop.trf.xlu0 }
 0x8be   : > { %6850 = vmatmul.msk.f32.gmra.mxu3 %vm786_vm1, %v5758_v8 }
 0x8c2   : > { %v5902_v11 = vpop.permute.xlu1 %5901 }
 0x8c5   : > { %v8648_v37 = vpop.trf.xlu0 }
 0x8ca   : > { %v6022_v15 = vpop.permute.xlu1 %6021 }
 0x8cd   : > { %v8651_v45 = vpop.trf.xlu0 }
 0x8d2   : > { %v6101_v18 = vpop.permute.xlu1 %6100 }
 0x8d3   : > { %6124 = vmatpush.msrb.mxu3 %v6101_v18 }
 0x8d5   : > { %v5358_v61 = vpop.trf.xlu0 }
 0x8d6   : > { %6819 = vmatmul.msk.f32.vlgmr.msrb.gmra.mxu2 %vm786_vm1, %v5358_v61 }
 0x8d7   : > { %6045 = vmatpush.msrb.mxu2 %v6022_v15  ;;  %v5600_v15 = vpop.trf.xlu2 }
 0x8d8   : > { %6838 = vmatmul.msk.f32.gmra.mxu1 %vm786_vm1, %v5600_v15 }
 0x8da   : > { %v7019_v9 = vpop.permute.xlu1 %7018 }
 0x8db   : > { %v7021_v5 = vunpack.i.h.bf16 %v7019_v9  ;;  %v7020_v56 = vunpack.i.l.bf16 %v7019_v9  ;;  %v6828_v9 = vld [vmem:[%s8510_s19 + $0x178] sm:$0xff] }
 0x8dd   : > { %v5943_v52 = vsel %vm4616_vm12, %v7020_v56, %v7021_v5  ;;  %v5359_v47 = vpop.trf.xlu0 }
 0x8de   : > { %5966 = vmatpush.msrb.mxu1 %v5943_v52  ;;  %6820 = vmatmul.msk.f32.gmra.mxu2 %vm786_vm1, %v5359_v47 }
 0x8e9   : > { %v5158_v36 = vpop.f32.mrf.mxu3 }
 0x8ea   : > { %v5164_v2 = vmul.f32 0.125, %v5158_v36 }
 0x8ec   : > { %v5168_v53 = vadd.f32 %v6803_v25, %v5164_v2 }
 0x8ee   : > { %6805 = vst.msk [vmem:[%s8518_s16 + $0x130] sm:$0xff] %vm3644_vm13, %v5168_v53 }
 0x8f3   : > { %v4919_v40 = vpop.f32.mrf.mxu0 }
 0x8f4   : > { %v4925_v19 = vmul.f32 0.125, %v4919_v40  ;;  %v5678_v40 = vpop.trf.xlu2 }
 0x8f5   : > { %6843 = vmatmul.msk.f32.vlgmr.msra.gmra.mxu2 %vm786_vm1, %v5678_v40 }
 0x8f6   : > { %v4930_v51 = vadd.f32 %v6785_v22, %v4925_v19  ;;  %v6851_v19 = vld [vmem:[%s8510_s19 + $0x1b0] sm:$0xff] }
 0x8f8   : > { %6787 = vst.msk [vmem:[%s8518_s16 + $0x100] sm:$0xff] %vm3644_vm13, %v4930_v51 }
 0x8fb   : > { %v4922_v10 = vpop.f32.mrf.mxu0 }
 0x8fc   : > { %v4926_v7 = vmul.f32 0.125, %v4922_v10 }
 0x8fe   : > { %v4931_v41 = vadd.f32 %v6786_v4, %v4926_v7  ;;  %v5679_v7 = vpop.trf.xlu2 }
 0x8ff   : > { %6844 = vmatmul.msk.f32.gmra.mxu2 %vm786_vm1, %v5679_v7  ;;  %v6876_v7 = vld [vmem:[%s8510_s19 + $0x1f8] sm:$0xff] }
 0x900   : > { %6788 = vst.msk [vmem:[%s8518_s16 + $0x108] sm:$0xff] %vm3644_vm13, %v4931_v41  ;;  %v5000_v34 = vpop.f32.mrf.mxu1 }
 0x901   : > { %v5006_v60 = vmul.f32 0.125, %v5000_v34 }
 0x903   : > { %v5237_v0 = vpop.f32.mrf.mxu0  ;;  %v5010_v20 = vadd.f32 %v6791_v63, %v5006_v60  ;;  %v6822_v60 = vld [vmem:[%s8510_s19 + $0x168] sm:$0xff] }
 0x904   : > { %v5243_v42 = vmul.f32 0.125, %v5237_v0  ;;  %v6821_v0 = vld [vmem:[%s8510_s19 + $0x160] sm:$0xff] }
 0x905   : > { %6793 = vst.msk [vmem:[%s8518_s16 + $0x110] sm:$0xff] %vm3644_vm13, %v5010_v20 }
 0x906   : > { %v5247_v39 = vadd.f32 %v6809_v62, %v5243_v42 }
 0x908   : > { %6811 = vst.msk [vmem:[%s8518_s16 + $0x140] sm:$0xff] %vm3644_vm13, %v5247_v39  ;;  %v5003_v55 = vpop.f32.mrf.mxu1  ;;  %v6004_v39 = vpop.trf.xlu2 }
 0x909   : > { %v5007_v38 = vmul.f32 0.125, %v5003_v55  ;;  %v5161_v44 = vpop.f32.mrf.mxu3  ;;  %6867 = vmatmul.msk.f32.vlgmr.msrb.gmra.mxu2 %vm786_vm1, %v6004_v39 }
 0x90a   : > { %v5165_v26 = vmul.f32 0.125, %v5161_v44 }
 0x90b   : > { %v5240_v50 = vpop.f32.mrf.mxu0  ;;  %v5011_v14 = vadd.f32 %v6792_v54, %v5007_v38 }
 0x90c   : > { %v5244_v30 = vmul.f32 0.125, %v5240_v50  ;;  %v5169_v28 = vadd.f32 %v6804_v35, %v5165_v26  ;;  %v6857_v26 = vld [vmem:[%s8510_s19 + $0x1c0] sm:$0xff] }
 0x90d   : > { %6794 = vst.msk [vmem:[%s8518_s16 + $0x118] sm:$0xff] %vm3644_vm13, %v5011_v14 }
 0x90e   : > { %v5248_v3 = vadd.f32 %v6810_v46, %v5244_v30  ;;  %6806 = vst.msk [vmem:[%s8518_s16 + $0x138] sm:$0xff] %vm3644_vm13, %v5169_v28 }
 0x910   : > { %6812 = vst.msk [vmem:[%s8518_s16 + $0x148] sm:$0xff] %vm3644_vm13, %v5248_v3  ;;  %v6005_v30 = vpop.trf.xlu2 }
 0x911   : > { %6868 = vmatmul.msk.f32.gmra.mxu2 %vm786_vm1, %v6005_v30  ;;  %v6174_v30 = vld [vmem:[%s7924_s20 + $0x20] sm:$0xff] (%p7172_p5) }
 0x912   : > { %6175 = vst [vmem:[%s6153_s1 + $0x38] sm:$0xff] (%p7172_p5), %v6174_v30 }
 0x913   : > { %v5316_v12 = vpop.f32.mrf.mxu1 }
 0x914   : > { %v5322_v58 = vmul.f32 0.125, %v5316_v12  ;;  %v6839_v12 = vld [vmem:[%s8510_s19 + $0x190] sm:$0xff] }
 0x916   : > { %v5326_v59 = vadd.f32 %v6815_v13, %v5322_v58  ;;  %v5079_v31 = vpop.f32.mrf.mxu2  ;;  %v6833_v58 = vld [vmem:[%s8510_s19 + $0x180] sm:$0xff] }
 0x917   : > { %v5085_v16 = vmul.f32 0.125, %v5079_v31  ;;  %v6845_v31 = vld [vmem:[%s8510_s19 + $0x1a0] sm:$0xff] }
 0x918   : > { %6817 = vst.msk [vmem:[%s8518_s16 + $0x150] sm:$0xff] %vm3644_vm13, %v5326_v59 }
 0x919   : > { %v5900_v1 = vpop.permute.xlu0 %5899  ;;  %v5089_v21 = vadd.f32 %v6797_v23, %v5085_v16 }
 0x91a   : > { %v5903_v43 = vsel %vm4616_vm12, %v5900_v1, %v5902_v11  ;;  %v6798_v11 = vld [vmem:[%s8510_s19 + $0x128] sm:$0xff]  ;;  %v6852_v1 = vld [vmem:[%s8510_s19 + $0x1b8] sm:$0xff] }
 0x91b   : > { %5905 = vxpose.xlu2.b32.start.end [1/1] (short) (narrow) %v5903_v43, 16  ;;  %v5319_v29 = vpop.f32.mrf.mxu1  ;;  %6799 = vst.msk [vmem:[%s8518_s16 + $0x120] sm:$0xff] %vm3644_vm13, %v5089_v21 }
 0x91c   : > { %v5323_v17 = vmul.f32 0.125, %v5319_v29  ;;  %v6840_v29 = vld [vmem:[%s8510_s19 + $0x198] sm:$0xff] }
 0x91e   : > { %v5327_v33 = vadd.f32 %v6816_v27, %v5323_v17  ;;  %v5082_v8 = vpop.f32.mrf.mxu2  ;;  %v6834_v17 = vld [vmem:[%s8510_s19 + $0x188] sm:$0xff] }
 0x91f   : > { %v5086_v18 = vmul.f32 0.125, %v5082_v8 }
 0x920   : > { %6818 = vst.msk [vmem:[%s8518_s16 + $0x158] sm:$0xff] %vm3644_vm13, %v5327_v33 }
 0x921   : > { %v5090_v5 = vadd.f32 %v6798_v11, %v5086_v18  ;;  %v6869_v18 = vld [vmem:[%s8510_s19 + $0x1e0] sm:$0xff] }
 0x923   : > { %6800 = vst.msk [vmem:[%s8518_s16 + $0x128] sm:$0xff] %vm3644_vm13, %v5090_v5 }
 0x929   : > { %v5484_v49 = vpop.f32.mrf.mxu3 }
 0x92a   : > { %v5490_v6 = vmul.f32 0.125, %v5484_v49 }
 0x92b   : > { %v5642_v3 = vpop.f32.mrf.mxu1 }
 0x92c   : > { %v5494_v32 = vadd.f32 %v6827_v57, %v5490_v6  ;;  %v5648_v38 = vmul.f32 0.125, %v5642_v3  ;;  %v6858_v57 = vld [vmem:[%s8510_s19 + $0x1c8] sm:$0xff] }
 0x92e   : > { %6829 = vst.msk [vmem:[%s8518_s16 + $0x170] sm:$0xff] %vm3644_vm13, %v5494_v32  ;;  %v5652_v13 = vadd.f32 %v6839_v12, %v5648_v38 }
 0x930   : > { %6841 = vst.msk [vmem:[%s8518_s16 + $0x190] sm:$0xff] %vm3644_vm13, %v5652_v13 }
 0x931   : > { %v5487_v61 = vpop.f32.mrf.mxu3 }
 0x932   : > { %v5491_v56 = vmul.f32 0.125, %v5487_v61 }
 0x934   : > { %v5495_v47 = vadd.f32 %v6828_v9, %v5491_v56  ;;  %v6870_v56 = vld [vmem:[%s8510_s19 + $0x1e8] sm:$0xff] }
 0x936   : > { %6830 = vst.msk [vmem:[%s8518_s16 + $0x178] sm:$0xff] %vm3644_vm13, %v5495_v47 }
 0x939   : > { %v5800_v22 = vpop.f32.mrf.mxu3 }
 0x93a   : > { %v5806_v51 = vmul.f32 0.125, %v5800_v22 }
 0x93c   : > { %v5810_v4 = vadd.f32 %v6851_v19, %v5806_v51  ;;  %v6875_v19 = vld [vmem:[%s8510_s19 + $0x1f0] sm:$0xff] }
 0x93e   : > { %6853 = vst.msk [vmem:[%s8518_s16 + $0x1b0] sm:$0xff] %vm3644_vm13, %v5810_v4 }
 0x941   : > { %v5520_v48 = vpop.trf.xlu1  ;;  %v5803_v41 = vpop.f32.mrf.mxu3 }
 0x942   : > { %6831 = vmatmul.msk.f32.vlgmr.msra.gmra.mxu0 %vm786_vm1, %v5520_v48  ;;  %v5807_v34 = vmul.f32 0.125, %v5803_v41  ;;  %v6846_v48 = vld [vmem:[%s8510_s19 + $0x1a8] sm:$0xff] }
 0x949   : > { %v5521_v52 = vpop.trf.xlu1 }
 0x94a   : > { %6832 = vmatmul.msk.f32.gmra.mxu0 %vm786_vm1, %v5521_v52 }
 0x951   : > { %v6083_v10 = vpop.trf.xlu1 }
 0x952   : > { %6855 = vmatmul.msk.f32.vlgmr.msrb.gmra.mxu0 %vm786_vm1, %v8648_v37  ;;  %6873 = vmatmul.msk.f32.vlgmr.msrb.gmra.mxu3 %vm786_vm1, %v6083_v10  ;;  %v5811_v37 = vadd.f32 %v6852_v1, %v5807_v34  ;;  %v6863_v34 = vld [vmem:[%s8510_s19 + $0x1d0] sm:$0xff] }
 0x954   : > { %6854 = vst.msk [vmem:[%s8518_s16 + $0x1b8] sm:$0xff] %vm3644_vm13, %v5811_v37 }
 0x955   : > { %v5645_v36 = vpop.f32.mrf.mxu1 }
 0x956   : > { %v5649_v2 = vmul.f32 0.125, %v5645_v36 }
 0x958   : > { %v5653_v27 = vadd.f32 %v6840_v29, %v5649_v2 }
 0x959   : > { %v5405_v43 = vpop.f32.mrf.mxu2 }
 0x95a   : > { %6856 = vmatmul.msk.f32.gmra.mxu0 %vm786_vm1, %v8651_v45  ;;  %v5411_v42 = vmul.f32 0.125, %v5405_v43  ;;  %v6084_v45 = vpop.trf.xlu1  ;;  %6842 = vst.msk [vmem:[%s8518_s16 + $0x198] sm:$0xff] %vm3644_vm13, %v5653_v27 }
 0x95b   : > { %6874 = vmatmul.msk.f32.gmra.mxu3 %vm786_vm1, %v6084_v45  ;;  %v6176_v45 = vld [vmem:[%s7924_s20 + $0x28] sm:$0xff] (%p7172_p5) }
 0x95c   : > { %v5415_v62 = vadd.f32 %v6821_v0, %v5411_v42  ;;  %v6864_v42 = vld [vmem:[%s8510_s19 + $0x1d8] sm:$0xff]  ;;  %6177 = vst [vmem:[%s6153_s1 + $0x40] sm:$0xff] (%p7172_p5), %v6176_v45 }
 0x95e   : > { %6823 = vst.msk [vmem:[%s8518_s16 + $0x160] sm:$0xff] %vm3644_vm13, %v5415_v62 }
 0x961   : > { %v5408_v55 = vpop.f32.mrf.mxu2 }
 0x962   : > { %v5412_v63 = vmul.f32 0.125, %v5408_v55  ;;  %v6166_v55 = vld [vmem:[%s7924_s20] sm:$0xff] (%p7172_p5) }
 0x963   : > { %6167 = vst [vmem:[%s6153_s1] sm:$0xff] (%p7172_p5), %v6166_v55 }
 0x964   : > { %v5416_v50 = vadd.f32 %v6822_v60, %v5412_v63  ;;  %v6168_v60 = vld [vmem:[%s7924_s20 + $0x8] sm:$0xff] (%p7172_p5)  ;;  %v6170_v63 = vld [vmem:[%s7924_s20 + $0x10] sm:$0xff] (%p7172_p5) }
 0x965   : > { %6169 = vst [vmem:[%s6153_s1 + $0x8] sm:$0xff] (%p7172_p5), %v6168_v60 }
 0x966   : > { %6824 = vst.msk [vmem:[%s8518_s16 + $0x168] sm:$0xff] %vm3644_vm13, %v5416_v50  ;;  %v6172_v50 = vld [vmem:[%s7924_s20 + $0x18] sm:$0xff] (%p7172_p5) }
 0x967   : > { %6171 = vst [vmem:[%s6153_s1 + $0x10] sm:$0xff] (%p7172_p5), %v6170_v63 }
 0x968   : > { %6173 = vst [vmem:[%s6153_s1 + $0x30] sm:$0xff] (%p7172_p5), %v6172_v50 }
 0x978   : > { %v5721_v28 = vpop.f32.mrf.mxu2 }
 0x979   : > { %v5727_v23 = vmul.f32 0.125, %v5721_v28 }
 0x97b   : > { %v5731_v16 = vadd.f32 %v6845_v31, %v5727_v23 }
 0x97d   : > { %6847 = vst.msk [vmem:[%s8518_s16 + $0x1a0] sm:$0xff] %vm3644_vm13, %v5731_v16 }
 0x982   : > { %v5724_v6 = vpop.f32.mrf.mxu2 }
 0x983   : > { %v5728_v32 = vmul.f32 0.125, %v5724_v6 }
 0x985   : > { %v5732_v11 = vadd.f32 %v6846_v48, %v5728_v32 }
 0x987   : > { %6848 = vst.msk [vmem:[%s8518_s16 + $0x1a8] sm:$0xff] %vm3644_vm13, %v5732_v11 }
 0x98c   : > { %v6047_v15 = vpop.f32.mrf.mxu2 }
 0x98d   : > { %v6053_v61 = vmul.f32 0.125, %v6047_v15 }
 0x98f   : > { %v6057_v9 = vadd.f32 %v6869_v18, %v6053_v61 }
 0x991   : > { %6871 = vst.msk [vmem:[%s8518_s16 + $0x1e0] sm:$0xff] %vm3644_vm13, %v6057_v9 }
 0x994   : > { %v6050_v5 = vpop.f32.mrf.mxu2 }
 0x995   : > { %v6054_v52 = vmul.f32 0.125, %v6050_v5 }
 0x997   : > { %v6058_v47 = vadd.f32 %v6870_v56, %v6054_v52 }
 0x999   : > { %6872 = vst.msk [vmem:[%s8518_s16 + $0x1e8] sm:$0xff] %vm3644_vm13, %v6058_v47 }
 0x9b4   : > { %v5921_v46 = vpop.trf.xlu2 }
 0x9b5   : > { %6861 = vmatmul.msk.f32.vlgmr.msrb.gmra.mxu1 %vm786_vm1, %v5921_v46 }
 0x9bc   : > { %v5922_v20 = vpop.trf.xlu2 }
 0x9bd   : > { %6862 = vmatmul.msk.f32.gmra.mxu1 %vm786_vm1, %v5922_v20 }
 0x9bf   : > { %v5563_v54 = vpop.f32.mrf.mxu0 }
 0x9c0   : > { %v5569_v14 = vmul.f32 0.125, %v5563_v54 }
 0x9c2   : > { %v5573_v59 = vadd.f32 %v6833_v58, %v5569_v14 }
 0x9c4   : > { %6835 = vst.msk [vmem:[%s8518_s16 + $0x180] sm:$0xff] %vm3644_vm13, %v5573_v59 }
 0x9c7   : > { %v5566_v25 = vpop.f32.mrf.mxu0 }
 0x9c8   : > { %v5570_v53 = vmul.f32 0.125, %v5566_v25 }
 0x9ca   : > { %v5574_v33 = vadd.f32 %v6834_v17, %v5570_v53 }
 0x9cc   : > { %6836 = vst.msk [vmem:[%s8518_s16 + $0x188] sm:$0xff] %vm3644_vm13, %v5574_v33 }
 0x9cf   : > { %v5879_v44 = vpop.f32.mrf.mxu0 }
 0x9d0   : > { %v5885_v35 = vmul.f32 0.125, %v5879_v44 }
 0x9d2   : > { %v5889_v24 = vadd.f32 %v6857_v26, %v5885_v35 }
 0x9d4   : > { %6859 = vst.msk [vmem:[%s8518_s16 + $0x1c0] sm:$0xff] %vm3644_vm13, %v5889_v24 }
 0x9d5   : > { %v6126_v40 = vpop.f32.mrf.mxu3 }
 0x9d6   : > { %v6132_v22 = vmul.f32 0.125, %v6126_v40 }
 0x9d7   : > { %v5882_v49 = vpop.f32.mrf.mxu0 }
 0x9d8   : > { %v5886_v21 = vmul.f32 0.125, %v5882_v49  ;;  %v6136_v51 = vadd.f32 %v6875_v19, %v6132_v22 }
 0x9da   : > { %v5890_v8 = vadd.f32 %v6858_v57, %v5886_v21  ;;  %6877 = vst.msk [vmem:[%s8518_s16 + $0x1f0] sm:$0xff] %vm3644_vm13, %v6136_v51 }
 0x9dc   : > { %6860 = vst.msk [vmem:[%s8518_s16 + $0x1c8] sm:$0xff] %vm3644_vm13, %v5890_v8 }
 0x9de   : > { %v6129_v10 = vpop.f32.mrf.mxu3 }
 0x9df   : > { %v6133_v4 = vmul.f32 0.125, %v6129_v10 }
 0x9e1   : > { %v6137_v41 = vadd.f32 %v6876_v7, %v6133_v4 }
 0x9e3   : > { %6878 = vst.msk [vmem:[%s8518_s16 + $0x1f8] sm:$0xff] %vm3644_vm13, %v6137_v41 }
 0xa32   : > { %v5968_v1 = vpop.f32.mrf.mxu1 }
 0xa33   : > { %v5974_v43 = vmul.f32 0.125, %v5968_v1 }
 0xa35   : > { %v5978_v0 = vadd.f32 %v6863_v34, %v5974_v43 }
 0xa37   : > { %6865 = vst.msk [vmem:[%s8518_s16 + $0x1d0] sm:$0xff] %vm3644_vm13, %v5978_v0 }
 0xa3a   : > { %v5971_v37 = vpop.f32.mrf.mxu1 }
 0xa3b   : > { %v5975_v62 = vmul.f32 0.125, %v5971_v37  ;;  %6150 = sbr.rel (!%p7172_p5) target bundleno = 2624 (0xa40), region = 129 }
 0xa3d   : > { %v5979_v39 = vadd.f32 %v6864_v42, %v5975_v62 }
 0xa3f   : > { %6866 = vst.msk [vmem:[%s8518_s16 + $0x1d8] sm:$0xff] %vm3644_vm13, %v5979_v39 }
 0xa40 PF: > { %6183 = sbr.rel (!%p7172_p5) target bundleno = 2690 (0xa82), region = 152  ;;  %s6887_s13 = sshll.u32 (%p7172_p5), %s7153_s24, 8  ;;  %v6341_v46 = vld [vmem:[%s8518_s16] sm:$0xff] (%p7172_p5)  ;;  %v6343_v20 = vld [vmem:[%s8518_s16 + $0x8] sm:$0xff] (%p7172_p5)  ;;  %v6345_v3 = vld [vmem:[%s8518_s16 + $0x10] sm:$0xff] (%p7172_p5) }
 0xa41   : > { %s8789_s26 = scalar_lea.vmem (%p7172_p5), %s8939_s12, %s6887_s13  ;;  %v6347_v12 = vld [vmem:[%s8518_s16 + $0x18] sm:$0xff] (%p7172_p5)  ;;  %v6349_v38 = vld [vmem:[%s8518_s16 + $0x20] sm:$0xff] (%p7172_p5)  ;;  %v6351_v54 = vld [vmem:[%s8518_s16 + $0x28] sm:$0xff] (%p7172_p5) }
 0xa42   : > { %6342 = vst [vmem:[%s8789_s26] sm:$0xff] (%p7172_p5), %v6341_v46  ;;  %v6353_v58 = vld [vmem:[%s8518_s16 + $0x30] sm:$0xff] (%p7172_p5)  ;;  %v6355_v13 = vld [vmem:[%s8518_s16 + $0x38] sm:$0xff] (%p7172_p5)  ;;  %v6357_v14 = vld [vmem:[%s8518_s16 + $0x40] sm:$0xff] (%p7172_p5) }
 0xa43   : > { %6344 = vst [vmem:[%s8789_s26 + $0x8] sm:$0xff] (%p7172_p5), %v6343_v20  ;;  %v6359_v59 = vld [vmem:[%s8518_s16 + $0x48] sm:$0xff] (%p7172_p5)  ;;  %v6361_v36 = vld [vmem:[%s8518_s16 + $0x50] sm:$0xff] (%p7172_p5)  ;;  %v6363_v29 = vld [vmem:[%s8518_s16 + $0x58] sm:$0xff] (%p7172_p5) }
 0xa44   : > { %6346 = vst [vmem:[%s8789_s26 + $0x10] sm:$0xff] (%p7172_p5), %v6345_v3  ;;  %v6365_v2 = vld [vmem:[%s8518_s16 + $0x60] sm:$0xff] (%p7172_p5)  ;;  %v6367_v25 = vld [vmem:[%s8518_s16 + $0x68] sm:$0xff] (%p7172_p5)  ;;  %v6369_v17 = vld [vmem:[%s8518_s16 + $0x70] sm:$0xff] (%p7172_p5) }
 0xa45   : > { %6348 = vst [vmem:[%s8789_s26 + $0x18] sm:$0xff] %v6347_v12  ;;  %v6371_v27 = vld [vmem:[%s8518_s16 + $0x78] sm:$0xff]  ;;  %v6373_v53 = vld [vmem:[%s8518_s16 + $0x80] sm:$0xff]  ;;  %v6375_v33 = vld [vmem:[%s8518_s16 + $0x88] sm:$0xff] }
 0xa46   : > { %6350 = vst [vmem:[%s8789_s26 + $0x20] sm:$0xff] %v6349_v38  ;;  %v6377_v44 = vld [vmem:[%s8518_s16 + $0x90] sm:$0xff]  ;;  %v6379_v26 = vld [vmem:[%s8518_s16 + $0x98] sm:$0xff]  ;;  %v6381_v35 = vld [vmem:[%s8518_s16 + $0xa0] sm:$0xff] }
 0xa47   : > { %6352 = vst [vmem:[%s8789_s26 + $0x28] sm:$0xff] %v6351_v54  ;;  %v6383_v28 = vld [vmem:[%s8518_s16 + $0xa8] sm:$0xff]  ;;  %v6385_v31 = vld [vmem:[%s8518_s16 + $0xb0] sm:$0xff]  ;;  %v6387_v23 = vld [vmem:[%s8518_s16 + $0xb8] sm:$0xff] }
 0xa48   : > { %6354 = vst [vmem:[%s8789_s26 + $0x30] sm:$0xff] %v6353_v58  ;;  %v6389_v24 = vld [vmem:[%s8518_s16 + $0xc0] sm:$0xff]  ;;  %v6391_v16 = vld [vmem:[%s8518_s16 + $0xc8] sm:$0xff]  ;;  %v6393_v49 = vld [vmem:[%s8518_s16 + $0xd0] sm:$0xff] }
 0xa49   : > { %6356 = vst [vmem:[%s8789_s26 + $0x38] sm:$0xff] %v6355_v13  ;;  %v6395_v57 = vld [vmem:[%s8518_s16 + $0xd8] sm:$0xff]  ;;  %v6397_v21 = vld [vmem:[%s8518_s16 + $0xe0] sm:$0xff]  ;;  %v6399_v6 = vld [vmem:[%s8518_s16 + $0xe8] sm:$0xff] }
 0xa4a   : > { %6358 = vst [vmem:[%s8789_s26 + $0x40] sm:$0xff] %v6357_v14  ;;  %v6401_v48 = vld [vmem:[%s8518_s16 + $0xf0] sm:$0xff]  ;;  %v6403_v32 = vld [vmem:[%s8518_s16 + $0xf8] sm:$0xff]  ;;  %v6405_v8 = vld [vmem:[%s8518_s16 + $0x100] sm:$0xff] }
 0xa4b   : > { %6360 = vst [vmem:[%s8789_s26 + $0x48] sm:$0xff] %v6359_v59  ;;  %v6407_v11 = vld [vmem:[%s8518_s16 + $0x108] sm:$0xff]  ;;  %v6409_v15 = vld [vmem:[%s8518_s16 + $0x110] sm:$0xff]  ;;  %v6411_v18 = vld [vmem:[%s8518_s16 + $0x118] sm:$0xff] }
 0xa4c   : > { %6362 = vst [vmem:[%s8789_s26 + $0x50] sm:$0xff] %v6361_v36  ;;  %v6413_v61 = vld [vmem:[%s8518_s16 + $0x120] sm:$0xff]  ;;  %v6415_v9 = vld [vmem:[%s8518_s16 + $0x128] sm:$0xff]  ;;  %v6417_v5 = vld [vmem:[%s8518_s16 + $0x130] sm:$0xff] }
 0xa4d   : > { %6364 = vst [vmem:[%s8789_s26 + $0x58] sm:$0xff] %v6363_v29  ;;  %v6419_v56 = vld [vmem:[%s8518_s16 + $0x138] sm:$0xff]  ;;  %v6421_v52 = vld [vmem:[%s8518_s16 + $0x140] sm:$0xff]  ;;  %v6423_v47 = vld [vmem:[%s8518_s16 + $0x148] sm:$0xff] }
 0xa4e   : > { %6366 = vst [vmem:[%s8789_s26 + $0x60] sm:$0xff] %v6365_v2  ;;  %v6425_v40 = vld [vmem:[%s8518_s16 + $0x150] sm:$0xff]  ;;  %v6427_v22 = vld [vmem:[%s8518_s16 + $0x158] sm:$0xff]  ;;  %v6429_v19 = vld [vmem:[%s8518_s16 + $0x160] sm:$0xff] }
 0xa4f   : > { %6368 = vst [vmem:[%s8789_s26 + $0x68] sm:$0xff] %v6367_v25  ;;  %v6431_v51 = vld [vmem:[%s8518_s16 + $0x168] sm:$0xff]  ;;  %v6433_v10 = vld [vmem:[%s8518_s16 + $0x170] sm:$0xff]  ;;  %v6435_v4 = vld [vmem:[%s8518_s16 + $0x178] sm:$0xff] }
 0xa50   : > { %6370 = vst [vmem:[%s8789_s26 + $0x70] sm:$0xff] %v6369_v17  ;;  %v6437_v7 = vld [vmem:[%s8518_s16 + $0x180] sm:$0xff]  ;;  %v6439_v41 = vld [vmem:[%s8518_s16 + $0x188] sm:$0xff]  ;;  %v6441_v1 = vld [vmem:[%s8518_s16 + $0x190] sm:$0xff] }
 0xa51   : > { %6372 = vst [vmem:[%s8789_s26 + $0x78] sm:$0xff] %v6371_v27  ;;  %v6443_v34 = vld [vmem:[%s8518_s16 + $0x198] sm:$0xff]  ;;  %v6445_v43 = vld [vmem:[%s8518_s16 + $0x1a0] sm:$0xff]  ;;  %v6447_v0 = vld [vmem:[%s8518_s16 + $0x1a8] sm:$0xff] }
 0xa52   : > { %6374 = vst [vmem:[%s8789_s26 + $0x80] sm:$0xff] %v6373_v53  ;;  %v6449_v37 = vld [vmem:[%s8518_s16 + $0x1b0] sm:$0xff]  ;;  %v6451_v42 = vld [vmem:[%s8518_s16 + $0x1b8] sm:$0xff]  ;;  %v6453_v62 = vld [vmem:[%s8518_s16 + $0x1c0] sm:$0xff] }
 0xa53   : > { %6376 = vst [vmem:[%s8789_s26 + $0x88] sm:$0xff] %v6375_v33  ;;  %v6455_v39 = vld [vmem:[%s8518_s16 + $0x1c8] sm:$0xff]  ;;  %v6457_v55 = vld [vmem:[%s8518_s16 + $0x1d0] sm:$0xff]  ;;  %v6459_v60 = vld [vmem:[%s8518_s16 + $0x1d8] sm:$0xff] }
 0xa54   : > { %6378 = vst [vmem:[%s8789_s26 + $0x90] sm:$0xff] %v6377_v44  ;;  %v6461_v63 = vld [vmem:[%s8518_s16 + $0x1e0] sm:$0xff]  ;;  %v6463_v50 = vld [vmem:[%s8518_s16 + $0x1e8] sm:$0xff]  ;;  %v6465_v30 = vld [vmem:[%s8518_s16 + $0x1f0] sm:$0xff] }
 0xa55   : > { %6380 = vst [vmem:[%s8789_s26 + $0x98] sm:$0xff] %v6379_v26  ;;  %v6467_v45 = vld [vmem:[%s8518_s16 + $0x1f8] sm:$0xff] }
 0xa56   : > { %6382 = vst [vmem:[%s8789_s26 + $0xa0] sm:$0xff] %v6381_v35 }
 0xa57   : > { %6384 = vst [vmem:[%s8789_s26 + $0xa8] sm:$0xff] %v6383_v28 }
 0xa58   : > { %6386 = vst [vmem:[%s8789_s26 + $0xb0] sm:$0xff] %v6385_v31 }
 0xa59   : > { %6388 = vst [vmem:[%s8789_s26 + $0xb8] sm:$0xff] %v6387_v23 }
 0xa5a   : > { %6390 = vst [vmem:[%s8789_s26 + $0xc0] sm:$0xff] %v6389_v24 }
 0xa5b   : > { %6392 = vst [vmem:[%s8789_s26 + $0xc8] sm:$0xff] %v6391_v16 }
 0xa5c   : > { %6394 = vst [vmem:[%s8789_s26 + $0xd0] sm:$0xff] %v6393_v49 }
 0xa5d   : > { %6396 = vst [vmem:[%s8789_s26 + $0xd8] sm:$0xff] %v6395_v57 }
 0xa5e   : > { %6398 = vst [vmem:[%s8789_s26 + $0xe0] sm:$0xff] %v6397_v21 }
 0xa5f   : > { %6400 = vst [vmem:[%s8789_s26 + $0xe8] sm:$0xff] %v6399_v6 }
 0xa60   : > { %6402 = vst [vmem:[%s8789_s26 + $0xf0] sm:$0xff] %v6401_v48 }
 0xa61   : > { %6404 = vst [vmem:[%s8789_s26 + $0xf8] sm:$0xff] %v6403_v32 }
 0xa62   : > { %6406 = vst [vmem:[%s8789_s26 + $0x200] sm:$0xff] %v6405_v8 }
 0xa63   : > { %6408 = vst [vmem:[%s8789_s26 + $0x208] sm:$0xff] %v6407_v11 }
 0xa64   : > { %6410 = vst [vmem:[%s8789_s26 + $0x210] sm:$0xff] %v6409_v15 }
 0xa65   : > { %6412 = vst [vmem:[%s8789_s26 + $0x218] sm:$0xff] %v6411_v18 }
 0xa66   : > { %6414 = vst [vmem:[%s8789_s26 + $0x220] sm:$0xff] %v6413_v61 }
 0xa67   : > { %6416 = vst [vmem:[%s8789_s26 + $0x228] sm:$0xff] %v6415_v9 }
 0xa68   : > { %6418 = vst [vmem:[%s8789_s26 + $0x230] sm:$0xff] %v6417_v5 }
 0xa69   : > { %6420 = vst [vmem:[%s8789_s26 + $0x238] sm:$0xff] %v6419_v56 }
 0xa6a   : > { %6422 = vst [vmem:[%s8789_s26 + $0x240] sm:$0xff] %v6421_v52 }
 0xa6b   : > { %6424 = vst [vmem:[%s8789_s26 + $0x248] sm:$0xff] %v6423_v47 }
 0xa6c   : > { %6426 = vst [vmem:[%s8789_s26 + $0x250] sm:$0xff] %v6425_v40 }
 0xa6d   : > { %6428 = vst [vmem:[%s8789_s26 + $0x258] sm:$0xff] %v6427_v22 }
 0xa6e   : > { %6430 = vst [vmem:[%s8789_s26 + $0x260] sm:$0xff] %v6429_v19 }
 0xa6f   : > { %6432 = vst [vmem:[%s8789_s26 + $0x268] sm:$0xff] %v6431_v51 }
 0xa70   : > { %6434 = vst [vmem:[%s8789_s26 + $0x270] sm:$0xff] %v6433_v10 }
 0xa71   : > { %6436 = vst [vmem:[%s8789_s26 + $0x278] sm:$0xff] %v6435_v4 }
 0xa72   : > { %6438 = vst [vmem:[%s8789_s26 + $0x280] sm:$0xff] %v6437_v7 }
 0xa73   : > { %6440 = vst [vmem:[%s8789_s26 + $0x288] sm:$0xff] %v6439_v41 }
 0xa74   : > { %6442 = vst [vmem:[%s8789_s26 + $0x290] sm:$0xff] %v6441_v1 }
 0xa75   : > { %6444 = vst [vmem:[%s8789_s26 + $0x298] sm:$0xff] %v6443_v34 }
 0xa76   : > { %6446 = vst [vmem:[%s8789_s26 + $0x2a0] sm:$0xff] %v6445_v43 }
 0xa77   : > { %6448 = vst [vmem:[%s8789_s26 + $0x2a8] sm:$0xff] %v6447_v0 }
 0xa78   : > { %6450 = vst [vmem:[%s8789_s26 + $0x2b0] sm:$0xff] %v6449_v37 }
 0xa79   : > { %6452 = vst [vmem:[%s8789_s26 + $0x2b8] sm:$0xff] %v6451_v42 }
 0xa7a   : > { %6454 = vst [vmem:[%s8789_s26 + $0x2c0] sm:$0xff] %v6453_v62 }
 0xa7b   : > { %6456 = vst [vmem:[%s8789_s26 + $0x2c8] sm:$0xff] %v6455_v39 }
 0xa7c   : > { %6458 = vst [vmem:[%s8789_s26 + $0x2d0] sm:$0xff] %v6457_v55 }
 0xa7d   : > { %6460 = vst [vmem:[%s8789_s26 + $0x2d8] sm:$0xff] %v6459_v60 }
 0xa7e   : > { %6462 = vst [vmem:[%s8789_s26 + $0x2e0] sm:$0xff] %v6461_v63 }
 0xa7f   : > { %6464 = vst [vmem:[%s8789_s26 + $0x2e8] sm:$0xff] %v6463_v50 }
 0xa80   : > { %6466 = vst [vmem:[%s8789_s26 + $0x2f0] sm:$0xff] %v6465_v30 }
 0xa81   : > { %6468 = vst [vmem:[%s8789_s26 + $0x2f8] sm:$0xff] %v6467_v45 }
 0xa82 PF: > { %p20_p10 = scmp.ge.s32.totalorder %s7156_s25, 4   ;;  %s8994_s21 = smov %s7041_s22 }
 0xa83   : > { %s8995_s22 = smov %s7166_s28  ;;  %s8996_s23 = smov %s7156_s25 }
 0xa84   :  { %22 = sbr.rel (!%p20_p10) target bundleno = 5 (0x5), region = 263 }

</bundles_post_ra>
